<compile_context>
chip_gen: v7x
topology: tpu7x:2x2x1
jax: 0.10.0
libtpu: 0.0.40
codegen_flags: <defaults>
</compile_context>

<pallas_src>
import functools
import math

import jax
import jax.numpy as jnp
from jax import lax
from jax.experimental import pallas as pl
from jax.experimental.pallas import tpu as pltpu

BN_EPS = 1e-5
LANE = 128


def _ceil_to(v, m):
    return ((v + m - 1) // m) * m


def _pad_axis(a, axis, new_size):
    if a.shape[axis] == new_size:
        return a
    pw = [(0, 0)] * a.ndim
    pw[axis] = (0, new_size - a.shape[axis])
    return jnp.pad(a, pw)


# ----------------------------------------------------------------------------
# In-kernel helpers
# ----------------------------------------------------------------------------
def _zero_halo_ring(ref, h, w, c):
    """Zero only the 1-pixel border ring of an (h+2, w+2, c) bf16 scratch."""
    zrow = jnp.zeros((1, w + 2, c), jnp.bfloat16)
    zcol = jnp.zeros((h + 2, 1, c), jnp.bfloat16)
    ref[0:1, :, :] = zrow
    ref[h + 1:h + 2, :, :] = zrow
    ref[:, 0:1, :] = zcol
    ref[:, w + 1:w + 2, :] = zcol


def _im2col_3x3(padded_ref, h, w):
    """(h+2, w+2, c) padded image -> (h*w, 9*c) im2col rows (tap-major)."""
    taps = [padded_ref[kh:kh + h, kw:kw + w, :]
            for kh in range(3) for kw in range(3)]
    return jnp.concatenate(taps, axis=-1).reshape(h * w, -1)


# ----------------------------------------------------------------------------
# Fused Pallas kernels (one per stride variant)
# ----------------------------------------------------------------------------
def _block_s2_kernel(p_ref, w1_ref, bn1s_ref, bn1b_ref, w2_ref, w3_ref,
                     bn2s_ref, bn2b_ref, wsc_ref, scs_ref, scb_ref,
                     o_ref, padA, padB, *, Ho, Wo, Cin, Cout, Cmid):
    # p_ref : (1, 4, Ho+1, Wo+1, Cin) bf16 phase planes of pad(x, 1):
    #         p_ref[0, 2*pr+pc, a, b, :] = xpad[2a+pr, 2b+pc, :]
    # padA  : (Ho+2, Wo+2, 4*Cout) bf16  post-SPD / BN1 / ReLU activation
    # padB  : (Ho+2, Wo+2, Cmid)   bf16  conv2 output
    M = Ho * Wo

    _zero_halo_ring(padA, Ho, Wo, 4 * Cout)
    _zero_halo_ring(padB, Ho, Wo, Cmid)

    planes = p_ref[0]                      # (4, Ho+1, Wo+1, Cin) bf16
    bn1s = bn1s_ref[...]                   # (4, Cout) f32
    bn1b = bn1b_ref[...]

    # conv1 fused with space_to_depth: one K=9*Cin dot per output phase group.
    for g in range(4):                     # group g == output phase (ri, rj)
        ri, rj = g % 2, g // 2
        taps = []
        for kh in range(3):
            pr, ar = (ri + kh) % 2, (ri + kh) // 2
            for kw in range(3):
                pc, ac = (rj + kw) % 2, (rj + kw) // 2
                taps.append(planes[2 * pr + pc, ar:ar + Ho, ac:ac + Wo, :])
        col1 = jnp.concatenate(taps, axis=-1).reshape(M, 9 * Cin)
        s_g = jnp.dot(col1, w1_ref[...], preferred_element_type=jnp.float32)
        # folded BatchNorm(4*Cout) slice for this group + ReLU (f32)
        a_g = jnp.maximum(s_g * bn1s[g:g + 1, :] + bn1b[g:g + 1, :], 0.0)
        padA[1:Ho + 1, 1:Wo + 1, g * Cout:(g + 1) * Cout] = (
            a_g.reshape(Ho, Wo, Cout).astype(jnp.bfloat16))

    # conv2: single un-grouped K = 9*4*Cout dot
    col2 = _im2col_3x3(padA, Ho, Wo)                          # (M, 9*4*Cout)
    c2 = jnp.dot(col2, w2_ref[...], preferred_element_type=jnp.float32)

    # conv3 + folded BN2
    padB[1:Ho + 1, 1:Wo + 1, :] = c2.reshape(Ho, Wo, Cmid).astype(jnp.bfloat16)
    col3 = _im2col_3x3(padB, Ho, Wo)                          # (M, 9*Cmid)
    res = jnp.dot(col3, w3_ref[...], preferred_element_type=jnp.float32)
    res = res * bn2s_ref[...] + bn2b_ref[...]

    # projection shortcut: stride-2 1x1 conv + BN on x[::2, ::2] == phase (1,1)
    xsc = planes[3, 0:Ho, 0:Wo, :].reshape(M, Cin)
    sc = jnp.dot(xsc, wsc_ref[...], preferred_element_type=jnp.float32)
    sc = sc * scs_ref[...] + scb_ref[...]

    out = jnp.maximum(res + sc, 0.0)
    o_ref[...] = out.reshape(1, Ho, Wo, Cout).astype(o_ref.dtype)


def _block_s1_kernel(*refs, H, W, Cin, Cout, has_proj):
    if has_proj:
        (x_ref, w1_ref, bn1s_ref, bn1b_ref, w2_ref, bn2s_ref, bn2b_ref,
         wsc_ref, scs_ref, scb_ref, o_ref, padX, padA) = refs
    else:
        (x_ref, w1_ref, bn1s_ref, bn1b_ref, w2_ref, bn2s_ref, bn2b_ref,
         o_ref, padX, padA) = refs
    M = H * W

    _zero_halo_ring(padX, H, W, Cin)
    _zero_halo_ring(padA, H, W, Cout)

    x = x_ref[0]                                        # (H, W, Cin) bf16
    padX[1:H + 1, 1:W + 1, :] = x

    # conv1 (single K=9*Cin dot) + folded BN1 + ReLU
    col1 = _im2col_3x3(padX, H, W)                      # (M, 9*Cin) bf16
    c1 = jnp.dot(col1, w1_ref[...], preferred_element_type=jnp.float32)
    a = jnp.maximum(c1 * bn1s_ref[...] + bn1b_ref[...], 0.0)

    # conv2 (single K=9*Cout dot) + folded BN2
    padA[1:H + 1, 1:W + 1, :] = a.reshape(H, W, Cout).astype(jnp.bfloat16)
    col2 = _im2col_3x3(padA, H, W)                      # (M, 9*Cout) bf16
    res = jnp.dot(col2, w2_ref[...], preferred_element_type=jnp.float32)
    res = res * bn2s_ref[...] + bn2b_ref[...]

    # shortcut: 1x1 projection conv + BN, or a plain identity add
    if has_proj:
        sc = jnp.dot(x.reshape(M, Cin), wsc_ref[...],
                     preferred_element_type=jnp.float32)
        sc = sc * scs_ref[...] + scb_ref[...]
    else:
        sc = x.reshape(M, Cout).astype(jnp.float32)

    out = jnp.maximum(res + sc, 0.0)
    o_ref[...] = out.reshape(1, H, W, Cout).astype(o_ref.dtype)


# ----------------------------------------------------------------------------
# Wrappers (one pallas_call per block); NHWC activations, lane-padded channels
# ----------------------------------------------------------------------------
def _block_forward_s2(x, p):
    """stride=2 block: conv3x3 -> space_to_depth -> BN -> ReLU -> conv3x3 ->
    conv3x3 -> BN, + projection shortcut, add, ReLU — one pallas_call."""
    N, H, W, Cin = x.shape
    Cout = p["w1"].shape[-1]
    Ho, Wo = H // 2, W // 2
    Cin_p = _ceil_to(Cin, LANE)
    Cp = _ceil_to(Cout, LANE)
    Cmid_p = _ceil_to(2 * Cout, LANE)
    bf = jnp.bfloat16
    out_dtype = x.dtype

    # Phase-split the zero-padded bf16 input in XLA (smallest tensor prep):
    # planes[:, 2*pr+pc, a, b, :] = pad(x,1)[:, 2a+pr, 2b+pc, :]
    xb = _pad_axis(x.astype(bf), 3, Cin_p)
    xpad = jnp.pad(xb, ((0, 0), (1, 1), (1, 1), (0, 0)))
    planes = jnp.stack(
        [xpad[:, pr::2, pc::2, :] for pr in (0, 1) for pc in (0, 1)],
        axis=1)                                        # (N, 4, Ho+1, Wo+1, Cin_p)

    # Weights -> lane-padded im2col column matrices (row order kh, kw, [g,] cin)
    w1 = _pad_axis(_pad_axis(p["w1"], 2, Cin_p), 3, Cp)
    w1 = w1.reshape(9 * Cin_p, Cp).astype(bf)
    w2 = p["w2"].reshape(3, 3, 4, Cout, 2 * Cout)       # per-SPD-group input chans
    w2 = _pad_axis(_pad_axis(w2, 3, Cp), 4, Cmid_p)
    w2 = w2.reshape(9 * 4 * Cp, Cmid_p).astype(bf)
    w3 = _pad_axis(_pad_axis(p["w3"], 2, Cmid_p), 3, Cp)
    w3 = w3.reshape(9 * Cmid_p, Cp).astype(bf)
    wsc = _pad_axis(_pad_axis(p["w_sc"], 0, Cin_p), 1, Cp).astype(bf)

    bn1s = _pad_axis(p["bn1_scale"].reshape(4, Cout), 1, Cp)
    bn1b = _pad_axis(p["bn1_bias"].reshape(4, Cout), 1, Cp)
    bn2s = _pad_axis(p["bn2_scale"].reshape(1, Cout), 1, Cp)
    bn2b = _pad_axis(p["bn2_bias"].reshape(1, Cout), 1, Cp)
    scs = _pad_axis(p["sc_scale"].reshape(1, Cout), 1, Cp)
    scb = _pad_axis(p["sc_bias"].reshape(1, Cout), 1, Cp)

    kernel = functools.partial(_block_s2_kernel, Ho=Ho, Wo=Wo,
                               Cin=Cin_p, Cout=Cp, Cmid=Cmid_p)
    out = pl.pallas_call(
        kernel,
        out_shape=jax.ShapeDtypeStruct((N, Ho, Wo, Cp), out_dtype),
        grid=(N,),
        in_specs=[
            pl.BlockSpec((1, 4, Ho + 1, Wo + 1, Cin_p), lambda n: (n, 0, 0, 0, 0)),
            pl.BlockSpec((9 * Cin_p, Cp), lambda n: (0, 0)),
            pl.BlockSpec((4, Cp), lambda n: (0, 0)),
            pl.BlockSpec((4, Cp), lambda n: (0, 0)),
            pl.BlockSpec((9 * 4 * Cp, Cmid_p), lambda n: (0, 0)),
            pl.BlockSpec((9 * Cmid_p, Cp), lambda n: (0, 0)),
            pl.BlockSpec((1, Cp), lambda n: (0, 0)),
            pl.BlockSpec((1, Cp), lambda n: (0, 0)),
            pl.BlockSpec((Cin_p, Cp), lambda n: (0, 0)),
            pl.BlockSpec((1, Cp), lambda n: (0, 0)),
            pl.BlockSpec((1, Cp), lambda n: (0, 0)),
        ],
        out_specs=pl.BlockSpec((1, Ho, Wo, Cp), lambda n: (n, 0, 0, 0)),
        scratch_shapes=[pltpu.VMEM((Ho + 2, Wo + 2, 4 * Cp), bf),
                        pltpu.VMEM((Ho + 2, Wo + 2, Cmid_p), bf)],
        compiler_params=pltpu.CompilerParams(
            dimension_semantics=("parallel",)),
    )(planes, w1, bn1s, bn1b, w2, w3, bn2s, bn2b, wsc, scs, scb)
    return out[..., :Cout]


def _block_forward_s1(x, p):
    """stride=1 block: conv3x3 -> BN -> ReLU -> conv3x3 -> BN, + shortcut
    (projection or identity), add, ReLU — one pallas_call."""
    N, H, W, Cin = x.shape
    Cout = p["w1"].shape[-1]
    has_proj = "w_sc" in p
    Cin_p = _ceil_to(Cin, LANE)
    Cp = _ceil_to(Cout, LANE)
    bf = jnp.bfloat16

    xb = _pad_axis(x.astype(bf), 3, Cin_p)     # bf16 DMA: halves HBM->VMEM bytes

    w1 = _pad_axis(_pad_axis(p["w1"], 2, Cin_p), 3, Cp)
    w1 = w1.reshape(9 * Cin_p, Cp).astype(bf)
    w2 = _pad_axis(_pad_axis(p["w2"], 2, Cp), 3, Cp)
    w2 = w2.reshape(9 * Cp, Cp).astype(bf)
    bn1s = _pad_axis(p["bn1_scale"].reshape(1, Cout), 1, Cp)
    bn1b = _pad_axis(p["bn1_bias"].reshape(1, Cout), 1, Cp)
    bn2s = _pad_axis(p["bn2_scale"].reshape(1, Cout), 1, Cp)
    bn2b = _pad_axis(p["bn2_bias"].reshape(1, Cout), 1, Cp)

    inputs = [xb, w1, bn1s, bn1b, w2, bn2s, bn2b]
    in_specs = [
        pl.BlockSpec((1, H, W, Cin_p), lambda n: (n, 0, 0, 0)),
        pl.BlockSpec((9 * Cin_p, Cp), lambda n: (0, 0)),
        pl.BlockSpec((1, Cp), lambda n: (0, 0)),
        pl.BlockSpec((1, Cp), lambda n: (0, 0)),
        pl.BlockSpec((9 * Cp, Cp), lambda n: (0, 0)),
        pl.BlockSpec((1, Cp), lambda n: (0, 0)),
        pl.BlockSpec((1, Cp), lambda n: (0, 0)),
    ]
    if has_proj:
        wsc = _pad_axis(_pad_axis(p["w_sc"], 0, Cin_p), 1, Cp).astype(bf)
        scs = _pad_axis(p["sc_scale"].reshape(1, Cout), 1, Cp)
        scb = _pad_axis(p["sc_bias"].reshape(1, Cout), 1, Cp)
        inputs += [wsc, scs, scb]
        in_specs += [pl.BlockSpec((Cin_p, Cp), lambda n: (0, 0)),
                     pl.BlockSpec((1, Cp), lambda n: (0, 0)),
                     pl.BlockSpec((1, Cp), lambda n: (0, 0))]

    kernel = functools.partial(_block_s1_kernel, H=H, W=W, Cin=Cin_p, Cout=Cp,
                               has_proj=has_proj)
    out = pl.pallas_call(
        kernel,
        out_shape=jax.ShapeDtypeStruct((N, H, W, Cp), x.dtype),
        grid=(N,),
        in_specs=in_specs,
        out_specs=pl.BlockSpec((1, H, W, Cp), lambda n: (n, 0, 0, 0)),
        scratch_shapes=[pltpu.VMEM((H + 2, W + 2, Cin_p), bf),
                        pltpu.VMEM((H + 2, W + 2, Cp), bf)],
        compiler_params=pltpu.CompilerParams(
            dimension_semantics=("parallel",)),
    )(*inputs)
    return out[..., :Cout]


def basic_block_forward_nhwc(x_nhwc, p, stride):
    assert stride in (1, 2)
    return _block_forward_s2(x_nhwc, p) if stride == 2 else _block_forward_s1(x_nhwc, p)


def basic_block_forward(x_nchw, p, stride):
    """BasicBlock.forward — input/output NCHW (PyTorch convention).
    A full model should stay NHWC and call basic_block_forward_nhwc directly."""
    x = jnp.transpose(x_nchw, (0, 2, 3, 1))   # NCHW -> NHWC
    out = basic_block_forward_nhwc(x, p, stride)
    return jnp.transpose(out, (0, 3, 1, 2))   # NHWC -> NCHW


# ----------------------------------------------------------------------------
# Parameter init / BN folding
# ----------------------------------------------------------------------------
def fold_bn(gamma, beta, mean, var):
    scale = gamma / jnp.sqrt(var + BN_EPS)
    return scale, beta - mean * scale


def init_params(key, cin, cout, stride):
    ks = jax.random.split(key, 8)

    def conv_w(k, kh, kw, ci, co):
        fan_in = kh * kw * ci
        return jax.random.normal(k, (kh, kw, ci, co), jnp.float32) / math.sqrt(fan_in)

    def bn(k, c):
        k1, k2, k3, k4 = jax.random.split(k, 4)
        gamma = jax.random.uniform(k1, (c,), jnp.float32, 0.5, 1.5)
        beta = 0.1 * jax.random.normal(k2, (c,), jnp.float32)
        mean = 0.1 * jax.random.normal(k3, (c,), jnp.float32)
        var = jax.random.uniform(k4, (c,), jnp.float32, 0.5, 1.5)
        return fold_bn(gamma, beta, mean, var)

    p = {}
    if stride == 2:
        p["w1"] = conv_w(ks[0], 3, 3, cin, cout)
        p["bn1_scale"], p["bn1_bias"] = bn(ks[1], 4 * cout)
        p["w2"] = conv_w(ks[2], 3, 3, 4 * cout, 2 * cout)
        p["w3"] = conv_w(ks[3], 3, 3, 2 * cout, cout)
        p["bn2_scale"], p["bn2_bias"] = bn(ks[4], cout)
    else:
        p["w1"] = conv_w(ks[0], 3, 3, cin, cout)
        p["bn1_scale"], p["bn1_bias"] = bn(ks[1], cout)
        p["w2"] = conv_w(ks[2], 3, 3, cout, cout)
        p["bn2_scale"], p["bn2_bias"] = bn(ks[4], cout)

    if stride != 1 or cin != cout:  # projection shortcut: 1x1 conv + BN
        p["w_sc"] = jax.random.normal(ks[5], (cin, cout), jnp.float32) / math.sqrt(cin)
        p["sc_scale"], p["sc_bias"] = bn(ks[6], cout)
    # identity shortcut: no params (pure add inside the kernel)
    return p


# ----------------------------------------------------------------------------
# Pure-JAX reference (correctness check; emulates the kernel's bf16 operands)
# ----------------------------------------------------------------------------
def space_to_depth_nhwc(x):
    return jnp.concatenate(
        [x[:, ::2, ::2, :], x[:, 1::2, ::2, :],
         x[:, ::2, 1::2, :], x[:, 1::2, 1::2, :]], axis=-1)


def _conv_ref(x, w, stride=1, pad=1):
    return lax.conv_general_dilated(
        x, w, (stride, stride), [(pad, pad), (pad, pad)],
        dimension_numbers=("NHWC", "HWIO", "NHWC"),
        precision=lax.Precision.HIGHEST)


def _rb(t):
    # emulate the kernel's bf16 MXU operands / bf16 activations (f32 accumulate)
    return t.astype(jnp.bfloat16).astype(jnp.float32)


def reference_forward(x_nchw, p, stride):
    x = jnp.transpose(x_nchw, (0, 2, 3, 1))
    if stride == 2:
        c1 = _conv_ref(_rb(x), _rb(p["w1"]))
        s = space_to_depth_nhwc(c1)
        a = jnp.maximum(s * p["bn1_scale"] + p["bn1_bias"], 0.0)
        c2 = _conv_ref(_rb(a), _rb(p["w2"]))
        res = _conv_ref(_rb(c2), _rb(p["w3"])) * p["bn2_scale"] + p["bn2_bias"]
        x_sc = x[:, ::2, ::2, :]
    else:
        c1 = jnp.maximum(_conv_ref(_rb(x), _rb(p["w1"])) * p["bn1_scale"]
                         + p["bn1_bias"], 0.0)
        res = _conv_ref(_rb(c1), _rb(p["w2"])) * p["bn2_scale"] + p["bn2_bias"]
        x_sc = x
    if "w_sc" in p:
        sc = jnp.einsum("nhwc,cd->nhwd", _rb(x_sc), _rb(p["w_sc"]),
                        precision=lax.Precision.HIGHEST)
        sc = sc * p["sc_scale"] + p["sc_bias"]
    else:
        sc = _rb(x_sc)   # kernel adds the bf16 input for the identity shortcut
    out = jnp.maximum(res + sc, 0.0)
    return jnp.transpose(out, (0, 3, 1, 2))


# ----------------------------------------------------------------------------
if __name__ == "__main__":
    key = jax.random.PRNGKey(0)
    kx, kx0, kp2, kp1, kp0 = jax.random.split(key, 5)

    N, Cin, H, W, Cout = 2, 4, 16, 16, 8
    x = jax.random.normal(kx, (N, Cin, H, W), jnp.float32)

    def check(out, ref, name):
        err = float(jnp.max(jnp.abs(out - ref)))
        assert bool(jnp.allclose(out, ref, rtol=1e-2, atol=1e-2)), \
            f"{name}: max|diff|={err}"

    # stride=2: conv -> space_to_depth -> BN -> ReLU -> conv -> conv -> BN (+proj shortcut)
    p2 = init_params(kp2, Cin, Cout, stride=2)
    out2 = jax.block_until_ready(basic_block_forward(x, p2, stride=2))
    assert out2.shape == (N, Cout, H // 2, W // 2)
    check(out2, reference_forward(x, p2, stride=2), "stride2")

    # stride=1, projection shortcut (Cin != Cout)
    p1 = init_params(kp1, Cin, Cout, stride=1)
    out1 = jax.block_until_ready(basic_block_forward(x, p1, stride=1))
    assert out1.shape == (N, Cout, H, W)
    check(out1, reference_forward(x, p1, stride=1), "stride1_proj")

    # stride=1, identity shortcut (Cin == Cout) — plain add, no projection
    x0 = jax.random.normal(kx0, (N, Cout, H, W), jnp.float32)
    p0 = init_params(kp0, Cout, Cout, stride=1)
    out0 = jax.block_until_ready(basic_block_forward(x0, p0, stride=1))
    assert out0.shape == (N, Cout, H, W)
    check(out0, reference_forward(x0, p0, stride=1), "stride1_identity")

    print("KERNEL_OK")
</pallas_src>

<mosaic_0001>
module attributes {stable_mosaic.version = 11 : i64} {
  func.func @_block_s2_kernel(%arg0: i32, %arg1: memref<1x4x9x9x128xbf16, #tpu.memory_space<vmem>>, %arg2: memref<1152x128xbf16, #tpu.memory_space<vmem>>, %arg3: memref<4x128xf32, #tpu.memory_space<vmem>>, %arg4: memref<4x128xf32, #tpu.memory_space<vmem>>, %arg5: memref<4608x128xbf16, #tpu.memory_space<vmem>>, %arg6: memref<1152x128xbf16, #tpu.memory_space<vmem>>, %arg7: memref<1x128xf32, #tpu.memory_space<vmem>>, %arg8: memref<1x128xf32, #tpu.memory_space<vmem>>, %arg9: memref<128x128xbf16, #tpu.memory_space<vmem>>, %arg10: memref<1x128xf32, #tpu.memory_space<vmem>>, %arg11: memref<1x128xf32, #tpu.memory_space<vmem>>, %arg12: memref<1x8x8x128xf32, #tpu.memory_space<vmem>>, %arg13: memref<10x10x512xbf16, #tpu.memory_space<vmem>>, %arg14: memref<10x10x128xbf16, #tpu.memory_space<vmem>>) attributes {dimension_semantics = [#tpu.dimension_semantics<parallel>], iteration_bounds = array<i64: 2>, scalar_prefetch = 0 : i64, scratch_operands = 2 : i64, tpu.core_type = #tpu.core_type<tc>, window_params = [{transform_indices = @transform_0, window_bounds = array<i64: 1, 4, 9, 9, 128>}, {pipeline_mode = #tpu.pipeline_mode<synchronous>, transform_indices = @transform_1, window_bounds = array<i64: 1152, 128>}, {pipeline_mode = #tpu.pipeline_mode<synchronous>, transform_indices = @transform_2, window_bounds = array<i64: 4, 128>}, {pipeline_mode = #tpu.pipeline_mode<synchronous>, transform_indices = @transform_3, window_bounds = array<i64: 4, 128>}, {pipeline_mode = #tpu.pipeline_mode<synchronous>, transform_indices = @transform_4, window_bounds = array<i64: 4608, 128>}, {pipeline_mode = #tpu.pipeline_mode<synchronous>, transform_indices = @transform_5, window_bounds = array<i64: 1152, 128>}, {pipeline_mode = #tpu.pipeline_mode<synchronous>, transform_indices = @transform_6, window_bounds = array<i64: 1, 128>}, {pipeline_mode = #tpu.pipeline_mode<synchronous>, transform_indices = @transform_7, window_bounds = array<i64: 1, 128>}, {pipeline_mode = #tpu.pipeline_mode<synchronous>, transform_indices = @transform_8, window_bounds = array<i64: 128, 128>}, {pipeline_mode = #tpu.pipeline_mode<synchronous>, transform_indices = @transform_9, window_bounds = array<i64: 1, 128>}, {pipeline_mode = #tpu.pipeline_mode<synchronous>, transform_indices = @transform_10, window_bounds = array<i64: 1, 128>}, {transform_indices = @transform_11, window_bounds = array<i64: 1, 8, 8, 128>}]} {
    %cst = arith.constant 0.000000e+00 : bf16
    %0 = vector.broadcast %cst : bf16 to vector<1x10x512xbf16>
    %cst_0 = arith.constant 0.000000e+00 : bf16
    %1 = vector.broadcast %cst_0 : bf16 to vector<10x1x512xbf16>
    %c0 = arith.constant 0 : index
    %c0_1 = arith.constant 0 : index
    %c0_2 = arith.constant 0 : index
    %2 = vector.load %arg13[%c0, %c0_1, %c0_2] : memref<10x10x512xbf16, #tpu.memory_space<vmem>>, vector<1x10x512xbf16>
    tpu.vector_store %arg13[%c0, %c0_1, %c0_2], %0 {strides = array<i32>} : memref<10x10x512xbf16, #tpu.memory_space<vmem>>, vector<1x10x512xbf16>,
    %c9 = arith.constant 9 : index
    %c0_3 = arith.constant 0 : index
    %c0_4 = arith.constant 0 : index
    %3 = vector.load %arg13[%c9, %c0_3, %c0_4] : memref<10x10x512xbf16, #tpu.memory_space<vmem>>, vector<1x10x512xbf16>
    tpu.vector_store %arg13[%c9, %c0_3, %c0_4], %0 {strides = array<i32>} : memref<10x10x512xbf16, #tpu.memory_space<vmem>>, vector<1x10x512xbf16>,
    %c0_5 = arith.constant 0 : index
    %c0_6 = arith.constant 0 : index
    %c0_7 = arith.constant 0 : index
    %4 = vector.load %arg13[%c0_5, %c0_6, %c0_7] : memref<10x10x512xbf16, #tpu.memory_space<vmem>>, vector<10x1x512xbf16>
    tpu.vector_store %arg13[%c0_5, %c0_6, %c0_7], %1 {strides = array<i32>} : memref<10x10x512xbf16, #tpu.memory_space<vmem>>, vector<10x1x512xbf16>,
    %c0_8 = arith.constant 0 : index
    %c9_9 = arith.constant 9 : index
    %c0_10 = arith.constant 0 : index
    %5 = vector.load %arg13[%c0_8, %c9_9, %c0_10] : memref<10x10x512xbf16, #tpu.memory_space<vmem>>, vector<10x1x512xbf16>
    tpu.vector_store %arg13[%c0_8, %c9_9, %c0_10], %1 {strides = array<i32>} : memref<10x10x512xbf16, #tpu.memory_space<vmem>>, vector<10x1x512xbf16>,
    %cst_11 = arith.constant 0.000000e+00 : bf16
    %6 = vector.broadcast %cst_11 : bf16 to vector<1x10x128xbf16>
    %cst_12 = arith.constant 0.000000e+00 : bf16
    %7 = vector.broadcast %cst_12 : bf16 to vector<10x1x128xbf16>
    %c0_13 = arith.constant 0 : index
    %c0_14 = arith.constant 0 : index
    %c0_15 = arith.constant 0 : index
    %8 = vector.load %arg14[%c0_13, %c0_14, %c0_15] : memref<10x10x128xbf16, #tpu.memory_space<vmem>>, vector<1x10x128xbf16>
    tpu.vector_store %arg14[%c0_13, %c0_14, %c0_15], %6 {strides = array<i32>} : memref<10x10x128xbf16, #tpu.memory_space<vmem>>, vector<1x10x128xbf16>,
    %c9_16 = arith.constant 9 : index
    %c0_17 = arith.constant 0 : index
    %c0_18 = arith.constant 0 : index
    %9 = vector.load %arg14[%c9_16, %c0_17, %c0_18] : memref<10x10x128xbf16, #tpu.memory_space<vmem>>, vector<1x10x128xbf16>
    tpu.vector_store %arg14[%c9_16, %c0_17, %c0_18], %6 {strides = array<i32>} : memref<10x10x128xbf16, #tpu.memory_space<vmem>>, vector<1x10x128xbf16>,
    %c0_19 = arith.constant 0 : index
    %c0_20 = arith.constant 0 : index
    %c0_21 = arith.constant 0 : index
    %10 = vector.load %arg14[%c0_19, %c0_20, %c0_21] : memref<10x10x128xbf16, #tpu.memory_space<vmem>>, vector<10x1x128xbf16>
    tpu.vector_store %arg14[%c0_19, %c0_20, %c0_21], %7 {strides = array<i32>} : memref<10x10x128xbf16, #tpu.memory_space<vmem>>, vector<10x1x128xbf16>,
    %c0_22 = arith.constant 0 : index
    %c9_23 = arith.constant 9 : index
    %c0_24 = arith.constant 0 : index
    %11 = vector.load %arg14[%c0_22, %c9_23, %c0_24] : memref<10x10x128xbf16, #tpu.memory_space<vmem>>, vector<10x1x128xbf16>
    tpu.vector_store %arg14[%c0_22, %c9_23, %c0_24], %7 {strides = array<i32>} : memref<10x10x128xbf16, #tpu.memory_space<vmem>>, vector<10x1x128xbf16>,
    %c0_25 = arith.constant 0 : index
    %c0_26 = arith.constant 0 : index
    %c0_27 = arith.constant 0 : index
    %c0_28 = arith.constant 0 : index
    %c0_29 = arith.constant 0 : index
    %12 = vector.load %arg1[%c0_25, %c0_26, %c0_27, %c0_28, %c0_29] : memref<1x4x9x9x128xbf16, #tpu.memory_space<vmem>>, vector<1x4x9x9x128xbf16>
    %13 = vector.shape_cast %12 : vector<1x4x9x9x128xbf16> to vector<4x9x9x128xbf16>
    %c0_30 = arith.constant 0 : index
    %c0_31 = arith.constant 0 : index
    %14 = vector.load %arg3[%c0_30, %c0_31] : memref<4x128xf32, #tpu.memory_space<vmem>>, vector<4x128xf32>
    %c0_32 = arith.constant 0 : index
    %c0_33 = arith.constant 0 : index
    %15 = vector.load %arg4[%c0_32, %c0_33] : memref<4x128xf32, #tpu.memory_space<vmem>>, vector<4x128xf32>
    %16 = vector.extract_strided_slice %13 {offsets = [0, 0, 0, 0], sizes = [1, 8, 8, 128], strides = [1, 1, 1, 1]} : vector<4x9x9x128xbf16> to vector<1x8x8x128xbf16>
    %17 = vector.shape_cast %16 : vector<1x8x8x128xbf16> to vector<8x8x128xbf16>
    %18 = vector.extract_strided_slice %13 {offsets = [1, 0, 0, 0], sizes = [1, 8, 8, 128], strides = [1, 1, 1, 1]} : vector<4x9x9x128xbf16> to vector<1x8x8x128xbf16>
    %19 = vector.shape_cast %18 : vector<1x8x8x128xbf16> to vector<8x8x128xbf16>
    %20 = vector.extract_strided_slice %13 {offsets = [0, 0, 1, 0], sizes = [1, 8, 8, 128], strides = [1, 1, 1, 1]} : vector<4x9x9x128xbf16> to vector<1x8x8x128xbf16>
    %21 = vector.shape_cast %20 : vector<1x8x8x128xbf16> to vector<8x8x128xbf16>
    %22 = vector.extract_strided_slice %13 {offsets = [2, 0, 0, 0], sizes = [1, 8, 8, 128], strides = [1, 1, 1, 1]} : vector<4x9x9x128xbf16> to vector<1x8x8x128xbf16>
    %23 = vector.shape_cast %22 : vector<1x8x8x128xbf16> to vector<8x8x128xbf16>
    %24 = vector.extract_strided_slice %13 {offsets = [3, 0, 0, 0], sizes = [1, 8, 8, 128], strides = [1, 1, 1, 1]} : vector<4x9x9x128xbf16> to vector<1x8x8x128xbf16>
    %25 = vector.shape_cast %24 : vector<1x8x8x128xbf16> to vector<8x8x128xbf16>
    %26 = vector.extract_strided_slice %13 {offsets = [2, 0, 1, 0], sizes = [1, 8, 8, 128], strides = [1, 1, 1, 1]} : vector<4x9x9x128xbf16> to vector<1x8x8x128xbf16>
    %27 = vector.shape_cast %26 : vector<1x8x8x128xbf16> to vector<8x8x128xbf16>
    %28 = vector.extract_strided_slice %13 {offsets = [0, 1, 0, 0], sizes = [1, 8, 8, 128], strides = [1, 1, 1, 1]} : vector<4x9x9x128xbf16> to vector<1x8x8x128xbf16>
    %29 = vector.shape_cast %28 : vector<1x8x8x128xbf16> to vector<8x8x128xbf16>
    %30 = vector.extract_strided_slice %13 {offsets = [1, 1, 0, 0], sizes = [1, 8, 8, 128], strides = [1, 1, 1, 1]} : vector<4x9x9x128xbf16> to vector<1x8x8x128xbf16>
    %31 = vector.shape_cast %30 : vector<1x8x8x128xbf16> to vector<8x8x128xbf16>
    %32 = vector.extract_strided_slice %13 {offsets = [0, 1, 1, 0], sizes = [1, 8, 8, 128], strides = [1, 1, 1, 1]} : vector<4x9x9x128xbf16> to vector<1x8x8x128xbf16>
    %33 = vector.shape_cast %32 : vector<1x8x8x128xbf16> to vector<8x8x128xbf16>
    %34 = tpu.concatenate %17, %19, %21, %23, %25, %27, %29, %31, %33 in 2 : vector<8x8x128xbf16>, vector<8x8x128xbf16>, vector<8x8x128xbf16>, vector<8x8x128xbf16>, vector<8x8x128xbf16>, vector<8x8x128xbf16>, vector<8x8x128xbf16>, vector<8x8x128xbf16>, vector<8x8x128xbf16> -> vector<8x8x1152xbf16>
    %35 = vector.shape_cast %34 : vector<8x8x1152xbf16> to vector<64x1152xbf16>
    %c0_34 = arith.constant 0 : index
    %c0_35 = arith.constant 0 : index
    %36 = vector.load %arg2[%c0_34, %c0_35] : memref<1152x128xbf16, #tpu.memory_space<vmem>>, vector<1152x128xbf16>
    %cst_36 = arith.constant dense<0.000000e+00> : vector<64x128xf32>
    %37 = tpu.matmul %35, %36, %cst_36 {dimension_numbers = #tpu.dot_dimension_numbers<[1], [0], [0], [1], [0, 0, 1, 1], [], []>} : vector<64x1152xbf16>, vector<1152x128xbf16>, vector<64x128xf32> -> vector<64x128xf32>
    %38 = vector.extract_strided_slice %14 {offsets = [0, 0], sizes = [1, 128], strides = [1, 1]} : vector<4x128xf32> to vector<1x128xf32>
    %39 = vector.broadcast %38 : vector<1x128xf32> to vector<64x128xf32>
    %40 = arith.mulf %37, %39 : vector<64x128xf32>
    %41 = vector.extract_strided_slice %15 {offsets = [0, 0], sizes = [1, 128], strides = [1, 1]} : vector<4x128xf32> to vector<1x128xf32>
    %42 = vector.broadcast %41 : vector<1x128xf32> to vector<64x128xf32>
    %43 = arith.addf %40, %42 : vector<64x128xf32>
    %cst_37 = arith.constant 0.000000e+00 : f32
    %44 = vector.broadcast %cst_37 : f32 to vector<64x128xf32>
    %45 = arith.maximumf %43, %44 : vector<64x128xf32>
    %46 = vector.shape_cast %45 : vector<64x128xf32> to vector<8x8x128xf32>
    %47 = arith.truncf %46 : vector<8x8x128xf32> to vector<8x8x128xbf16>
    %c1 = arith.constant 1 : index
    %c1_38 = arith.constant 1 : index
    %c0_39 = arith.constant 0 : index
    %48 = vector.load %arg13[%c1, %c1_38, %c0_39] : memref<10x10x512xbf16, #tpu.memory_space<vmem>>, vector<8x8x128xbf16>
    tpu.vector_store %arg13[%c1, %c1_38, %c0_39], %47 {strides = array<i32>} : memref<10x10x512xbf16, #tpu.memory_space<vmem>>, vector<8x8x128xbf16>,
    %49 = vector.extract_strided_slice %13 {offsets = [2, 0, 0, 0], sizes = [1, 8, 8, 128], strides = [1, 1, 1, 1]} : vector<4x9x9x128xbf16> to vector<1x8x8x128xbf16>
    %50 = vector.shape_cast %49 : vector<1x8x8x128xbf16> to vector<8x8x128xbf16>
    %51 = vector.extract_strided_slice %13 {offsets = [3, 0, 0, 0], sizes = [1, 8, 8, 128], strides = [1, 1, 1, 1]} : vector<4x9x9x128xbf16> to vector<1x8x8x128xbf16>
    %52 = vector.shape_cast %51 : vector<1x8x8x128xbf16> to vector<8x8x128xbf16>
    %53 = vector.extract_strided_slice %13 {offsets = [2, 0, 1, 0], sizes = [1, 8, 8, 128], strides = [1, 1, 1, 1]} : vector<4x9x9x128xbf16> to vector<1x8x8x128xbf16>
    %54 = vector.shape_cast %53 : vector<1x8x8x128xbf16> to vector<8x8x128xbf16>
    %55 = vector.extract_strided_slice %13 {offsets = [0, 1, 0, 0], sizes = [1, 8, 8, 128], strides = [1, 1, 1, 1]} : vector<4x9x9x128xbf16> to vector<1x8x8x128xbf16>
    %56 = vector.shape_cast %55 : vector<1x8x8x128xbf16> to vector<8x8x128xbf16>
    %57 = vector.extract_strided_slice %13 {offsets = [1, 1, 0, 0], sizes = [1, 8, 8, 128], strides = [1, 1, 1, 1]} : vector<4x9x9x128xbf16> to vector<1x8x8x128xbf16>
    %58 = vector.shape_cast %57 : vector<1x8x8x128xbf16> to vector<8x8x128xbf16>
    %59 = vector.extract_strided_slice %13 {offsets = [0, 1, 1, 0], sizes = [1, 8, 8, 128], strides = [1, 1, 1, 1]} : vector<4x9x9x128xbf16> to vector<1x8x8x128xbf16>
    %60 = vector.shape_cast %59 : vector<1x8x8x128xbf16> to vector<8x8x128xbf16>
    %61 = vector.extract_strided_slice %13 {offsets = [2, 1, 0, 0], sizes = [1, 8, 8, 128], strides = [1, 1, 1, 1]} : vector<4x9x9x128xbf16> to vector<1x8x8x128xbf16>
    %62 = vector.shape_cast %61 : vector<1x8x8x128xbf16> to vector<8x8x128xbf16>
    %63 = vector.extract_strided_slice %13 {offsets = [3, 1, 0, 0], sizes = [1, 8, 8, 128], strides = [1, 1, 1, 1]} : vector<4x9x9x128xbf16> to vector<1x8x8x128xbf16>
    %64 = vector.shape_cast %63 : vector<1x8x8x128xbf16> to vector<8x8x128xbf16>
    %65 = vector.extract_strided_slice %13 {offsets = [2, 1, 1, 0], sizes = [1, 8, 8, 128], strides = [1, 1, 1, 1]} : vector<4x9x9x128xbf16> to vector<1x8x8x128xbf16>
    %66 = vector.shape_cast %65 : vector<1x8x8x128xbf16> to vector<8x8x128xbf16>
    %67 = tpu.concatenate %50, %52, %54, %56, %58, %60, %62, %64, %66 in 2 : vector<8x8x128xbf16>, vector<8x8x128xbf16>, vector<8x8x128xbf16>, vector<8x8x128xbf16>, vector<8x8x128xbf16>, vector<8x8x128xbf16>, vector<8x8x128xbf16>, vector<8x8x128xbf16>, vector<8x8x128xbf16> -> vector<8x8x1152xbf16>
    %68 = vector.shape_cast %67 : vector<8x8x1152xbf16> to vector<64x1152xbf16>
    %c0_40 = arith.constant 0 : index
    %c0_41 = arith.constant 0 : index
    %69 = vector.load %arg2[%c0_40, %c0_41] : memref<1152x128xbf16, #tpu.memory_space<vmem>>, vector<1152x128xbf16>
    %cst_42 = arith.constant dense<0.000000e+00> : vector<64x128xf32>
    %70 = tpu.matmul %68, %69, %cst_42 {dimension_numbers = #tpu.dot_dimension_numbers<[1], [0], [0], [1], [0, 0, 1, 1], [], []>} : vector<64x1152xbf16>, vector<1152x128xbf16>, vector<64x128xf32> -> vector<64x128xf32>
    %71 = vector.extract_strided_slice %14 {offsets = [1, 0], sizes = [1, 128], strides = [1, 1]} : vector<4x128xf32> to vector<1x128xf32>
    %72 = vector.broadcast %71 : vector<1x128xf32> to vector<64x128xf32>
    %73 = arith.mulf %70, %72 : vector<64x128xf32>
    %74 = vector.extract_strided_slice %15 {offsets = [1, 0], sizes = [1, 128], strides = [1, 1]} : vector<4x128xf32> to vector<1x128xf32>
    %75 = vector.broadcast %74 : vector<1x128xf32> to vector<64x128xf32>
    %76 = arith.addf %73, %75 : vector<64x128xf32>
    %cst_43 = arith.constant 0.000000e+00 : f32
    %77 = vector.broadcast %cst_43 : f32 to vector<64x128xf32>
    %78 = arith.maximumf %76, %77 : vector<64x128xf32>
    %79 = vector.shape_cast %78 : vector<64x128xf32> to vector<8x8x128xf32>
    %80 = arith.truncf %79 : vector<8x8x128xf32> to vector<8x8x128xbf16>
    %c1_44 = arith.constant 1 : index
    %c1_45 = arith.constant 1 : index
    %c128 = arith.constant 128 : index
    %81 = vector.load %arg13[%c1_44, %c1_45, %c128] : memref<10x10x512xbf16, #tpu.memory_space<vmem>>, vector<8x8x128xbf16>
    tpu.vector_store %arg13[%c1_44, %c1_45, %c128], %80 {strides = array<i32>} : memref<10x10x512xbf16, #tpu.memory_space<vmem>>, vector<8x8x128xbf16>,
    %82 = vector.extract_strided_slice %13 {offsets = [1, 0, 0, 0], sizes = [1, 8, 8, 128], strides = [1, 1, 1, 1]} : vector<4x9x9x128xbf16> to vector<1x8x8x128xbf16>
    %83 = vector.shape_cast %82 : vector<1x8x8x128xbf16> to vector<8x8x128xbf16>
    %84 = vector.extract_strided_slice %13 {offsets = [0, 0, 1, 0], sizes = [1, 8, 8, 128], strides = [1, 1, 1, 1]} : vector<4x9x9x128xbf16> to vector<1x8x8x128xbf16>
    %85 = vector.shape_cast %84 : vector<1x8x8x128xbf16> to vector<8x8x128xbf16>
    %86 = vector.extract_strided_slice %13 {offsets = [1, 0, 1, 0], sizes = [1, 8, 8, 128], strides = [1, 1, 1, 1]} : vector<4x9x9x128xbf16> to vector<1x8x8x128xbf16>
    %87 = vector.shape_cast %86 : vector<1x8x8x128xbf16> to vector<8x8x128xbf16>
    %88 = vector.extract_strided_slice %13 {offsets = [3, 0, 0, 0], sizes = [1, 8, 8, 128], strides = [1, 1, 1, 1]} : vector<4x9x9x128xbf16> to vector<1x8x8x128xbf16>
    %89 = vector.shape_cast %88 : vector<1x8x8x128xbf16> to vector<8x8x128xbf16>
    %90 = vector.extract_strided_slice %13 {offsets = [2, 0, 1, 0], sizes = [1, 8, 8, 128], strides = [1, 1, 1, 1]} : vector<4x9x9x128xbf16> to vector<1x8x8x128xbf16>
    %91 = vector.shape_cast %90 : vector<1x8x8x128xbf16> to vector<8x8x128xbf16>
    %92 = vector.extract_strided_slice %13 {offsets = [3, 0, 1, 0], sizes = [1, 8, 8, 128], strides = [1, 1, 1, 1]} : vector<4x9x9x128xbf16> to vector<1x8x8x128xbf16>
    %93 = vector.shape_cast %92 : vector<1x8x8x128xbf16> to vector<8x8x128xbf16>
    %94 = vector.extract_strided_slice %13 {offsets = [1, 1, 0, 0], sizes = [1, 8, 8, 128], strides = [1, 1, 1, 1]} : vector<4x9x9x128xbf16> to vector<1x8x8x128xbf16>
    %95 = vector.shape_cast %94 : vector<1x8x8x128xbf16> to vector<8x8x128xbf16>
    %96 = vector.extract_strided_slice %13 {offsets = [0, 1, 1, 0], sizes = [1, 8, 8, 128], strides = [1, 1, 1, 1]} : vector<4x9x9x128xbf16> to vector<1x8x8x128xbf16>
    %97 = vector.shape_cast %96 : vector<1x8x8x128xbf16> to vector<8x8x128xbf16>
    %98 = vector.extract_strided_slice %13 {offsets = [1, 1, 1, 0], sizes = [1, 8, 8, 128], strides = [1, 1, 1, 1]} : vector<4x9x9x128xbf16> to vector<1x8x8x128xbf16>
    %99 = vector.shape_cast %98 : vector<1x8x8x128xbf16> to vector<8x8x128xbf16>
    %100 = tpu.concatenate %83, %85, %87, %89, %91, %93, %95, %97, %99 in 2 : vector<8x8x128xbf16>, vector<8x8x128xbf16>, vector<8x8x128xbf16>, vector<8x8x128xbf16>, vector<8x8x128xbf16>, vector<8x8x128xbf16>, vector<8x8x128xbf16>, vector<8x8x128xbf16>, vector<8x8x128xbf16> -> vector<8x8x1152xbf16>
    %101 = vector.shape_cast %100 : vector<8x8x1152xbf16> to vector<64x1152xbf16>
    %c0_46 = arith.constant 0 : index
    %c0_47 = arith.constant 0 : index
    %102 = vector.load %arg2[%c0_46, %c0_47] : memref<1152x128xbf16, #tpu.memory_space<vmem>>, vector<1152x128xbf16>
    %cst_48 = arith.constant dense<0.000000e+00> : vector<64x128xf32>
    %103 = tpu.matmul %101, %102, %cst_48 {dimension_numbers = #tpu.dot_dimension_numbers<[1], [0], [0], [1], [0, 0, 1, 1], [], []>} : vector<64x1152xbf16>, vector<1152x128xbf16>, vector<64x128xf32> -> vector<64x128xf32>
    %104 = vector.extract_strided_slice %14 {offsets = [2, 0], sizes = [1, 128], strides = [1, 1]} : vector<4x128xf32> to vector<1x128xf32>
    %105 = vector.broadcast %104 : vector<1x128xf32> to vector<64x128xf32>
    %106 = arith.mulf %103, %105 : vector<64x128xf32>
    %107 = vector.extract_strided_slice %15 {offsets = [2, 0], sizes = [1, 128], strides = [1, 1]} : vector<4x128xf32> to vector<1x128xf32>
    %108 = vector.broadcast %107 : vector<1x128xf32> to vector<64x128xf32>
    %109 = arith.addf %106, %108 : vector<64x128xf32>
    %cst_49 = arith.constant 0.000000e+00 : f32
    %110 = vector.broadcast %cst_49 : f32 to vector<64x128xf32>
    %111 = arith.maximumf %109, %110 : vector<64x128xf32>
    %112 = vector.shape_cast %111 : vector<64x128xf32> to vector<8x8x128xf32>
    %113 = arith.truncf %112 : vector<8x8x128xf32> to vector<8x8x128xbf16>
    %c1_50 = arith.constant 1 : index
    %c1_51 = arith.constant 1 : index
    %c256 = arith.constant 256 : index
    %114 = vector.load %arg13[%c1_50, %c1_51, %c256] : memref<10x10x512xbf16, #tpu.memory_space<vmem>>, vector<8x8x128xbf16>
    tpu.vector_store %arg13[%c1_50, %c1_51, %c256], %113 {strides = array<i32>} : memref<10x10x512xbf16, #tpu.memory_space<vmem>>, vector<8x8x128xbf16>,
    %115 = vector.extract_strided_slice %13 {offsets = [3, 0, 0, 0], sizes = [1, 8, 8, 128], strides = [1, 1, 1, 1]} : vector<4x9x9x128xbf16> to vector<1x8x8x128xbf16>
    %116 = vector.shape_cast %115 : vector<1x8x8x128xbf16> to vector<8x8x128xbf16>
    %117 = vector.extract_strided_slice %13 {offsets = [2, 0, 1, 0], sizes = [1, 8, 8, 128], strides = [1, 1, 1, 1]} : vector<4x9x9x128xbf16> to vector<1x8x8x128xbf16>
    %118 = vector.shape_cast %117 : vector<1x8x8x128xbf16> to vector<8x8x128xbf16>
    %119 = vector.extract_strided_slice %13 {offsets = [3, 0, 1, 0], sizes = [1, 8, 8, 128], strides = [1, 1, 1, 1]} : vector<4x9x9x128xbf16> to vector<1x8x8x128xbf16>
    %120 = vector.shape_cast %119 : vector<1x8x8x128xbf16> to vector<8x8x128xbf16>
    %121 = vector.extract_strided_slice %13 {offsets = [1, 1, 0, 0], sizes = [1, 8, 8, 128], strides = [1, 1, 1, 1]} : vector<4x9x9x128xbf16> to vector<1x8x8x128xbf16>
    %122 = vector.shape_cast %121 : vector<1x8x8x128xbf16> to vector<8x8x128xbf16>
    %123 = vector.extract_strided_slice %13 {offsets = [0, 1, 1, 0], sizes = [1, 8, 8, 128], strides = [1, 1, 1, 1]} : vector<4x9x9x128xbf16> to vector<1x8x8x128xbf16>
    %124 = vector.shape_cast %123 : vector<1x8x8x128xbf16> to vector<8x8x128xbf16>
    %125 = vector.extract_strided_slice %13 {offsets = [1, 1, 1, 0], sizes = [1, 8, 8, 128], strides = [1, 1, 1, 1]} : vector<4x9x9x128xbf16> to vector<1x8x8x128xbf16>
    %126 = vector.shape_cast %125 : vector<1x8x8x128xbf16> to vector<8x8x128xbf16>
    %127 = vector.extract_strided_slice %13 {offsets = [3, 1, 0, 0], sizes = [1, 8, 8, 128], strides = [1, 1, 1, 1]} : vector<4x9x9x128xbf16> to vector<1x8x8x128xbf16>
    %128 = vector.shape_cast %127 : vector<1x8x8x128xbf16> to vector<8x8x128xbf16>
    %129 = vector.extract_strided_slice %13 {offsets = [2, 1, 1, 0], sizes = [1, 8, 8, 128], strides = [1, 1, 1, 1]} : vector<4x9x9x128xbf16> to vector<1x8x8x128xbf16>
    %130 = vector.shape_cast %129 : vector<1x8x8x128xbf16> to vector<8x8x128xbf16>
    %131 = vector.extract_strided_slice %13 {offsets = [3, 1, 1, 0], sizes = [1, 8, 8, 128], strides = [1, 1, 1, 1]} : vector<4x9x9x128xbf16> to vector<1x8x8x128xbf16>
    %132 = vector.shape_cast %131 : vector<1x8x8x128xbf16> to vector<8x8x128xbf16>
    %133 = tpu.concatenate %116, %118, %120, %122, %124, %126, %128, %130, %132 in 2 : vector<8x8x128xbf16>, vector<8x8x128xbf16>, vector<8x8x128xbf16>, vector<8x8x128xbf16>, vector<8x8x128xbf16>, vector<8x8x128xbf16>, vector<8x8x128xbf16>, vector<8x8x128xbf16>, vector<8x8x128xbf16> -> vector<8x8x1152xbf16>
    %134 = vector.shape_cast %133 : vector<8x8x1152xbf16> to vector<64x1152xbf16>
    %c0_52 = arith.constant 0 : index
    %c0_53 = arith.constant 0 : index
    %135 = vector.load %arg2[%c0_52, %c0_53] : memref<1152x128xbf16, #tpu.memory_space<vmem>>, vector<1152x128xbf16>
    %cst_54 = arith.constant dense<0.000000e+00> : vector<64x128xf32>
    %136 = tpu.matmul %134, %135, %cst_54 {dimension_numbers = #tpu.dot_dimension_numbers<[1], [0], [0], [1], [0, 0, 1, 1], [], []>} : vector<64x1152xbf16>, vector<1152x128xbf16>, vector<64x128xf32> -> vector<64x128xf32>
    %137 = vector.extract_strided_slice %14 {offsets = [3, 0], sizes = [1, 128], strides = [1, 1]} : vector<4x128xf32> to vector<1x128xf32>
    %138 = vector.broadcast %137 : vector<1x128xf32> to vector<64x128xf32>
    %139 = arith.mulf %136, %138 : vector<64x128xf32>
    %140 = vector.extract_strided_slice %15 {offsets = [3, 0], sizes = [1, 128], strides = [1, 1]} : vector<4x128xf32> to vector<1x128xf32>
    %141 = vector.broadcast %140 : vector<1x128xf32> to vector<64x128xf32>
    %142 = arith.addf %139, %141 : vector<64x128xf32>
    %cst_55 = arith.constant 0.000000e+00 : f32
    %143 = vector.broadcast %cst_55 : f32 to vector<64x128xf32>
    %144 = arith.maximumf %142, %143 : vector<64x128xf32>
    %145 = vector.shape_cast %144 : vector<64x128xf32> to vector<8x8x128xf32>
    %146 = arith.truncf %145 : vector<8x8x128xf32> to vector<8x8x128xbf16>
    %c1_56 = arith.constant 1 : index
    %c1_57 = arith.constant 1 : index
    %c384 = arith.constant 384 : index
    %147 = vector.load %arg13[%c1_56, %c1_57, %c384] : memref<10x10x512xbf16, #tpu.memory_space<vmem>>, vector<8x8x128xbf16>
    tpu.vector_store %arg13[%c1_56, %c1_57, %c384], %146 {strides = array<i32>} : memref<10x10x512xbf16, #tpu.memory_space<vmem>>, vector<8x8x128xbf16>,
    %c0_58 = arith.constant 0 : index
    %c0_59 = arith.constant 0 : index
    %c0_60 = arith.constant 0 : index
    %148 = vector.load %arg13[%c0_58, %c0_59, %c0_60] : memref<10x10x512xbf16, #tpu.memory_space<vmem>>, vector<8x8x512xbf16>
    %c0_61 = arith.constant 0 : index
    %c1_62 = arith.constant 1 : index
    %c0_63 = arith.constant 0 : index
    %149 = vector.load %arg13[%c0_61, %c1_62, %c0_63] : memref<10x10x512xbf16, #tpu.memory_space<vmem>>, vector<8x8x512xbf16>
    %c0_64 = arith.constant 0 : index
    %c2 = arith.constant 2 : index
    %c0_65 = arith.constant 0 : index
    %150 = vector.load %arg13[%c0_64, %c2, %c0_65] : memref<10x10x512xbf16, #tpu.memory_space<vmem>>, vector<8x8x512xbf16>
    %c1_66 = arith.constant 1 : index
    %c0_67 = arith.constant 0 : index
    %c0_68 = arith.constant 0 : index
    %151 = vector.load %arg13[%c1_66, %c0_67, %c0_68] : memref<10x10x512xbf16, #tpu.memory_space<vmem>>, vector<8x8x512xbf16>
    %c1_69 = arith.constant 1 : index
    %c1_70 = arith.constant 1 : index
    %c0_71 = arith.constant 0 : index
    %152 = vector.load %arg13[%c1_69, %c1_70, %c0_71] : memref<10x10x512xbf16, #tpu.memory_space<vmem>>, vector<8x8x512xbf16>
    %c1_72 = arith.constant 1 : index
    %c2_73 = arith.constant 2 : index
    %c0_74 = arith.constant 0 : index
    %153 = vector.load %arg13[%c1_72, %c2_73, %c0_74] : memref<10x10x512xbf16, #tpu.memory_space<vmem>>, vector<8x8x512xbf16>
    %c2_75 = arith.constant 2 : index
    %c0_76 = arith.constant 0 : index
    %c0_77 = arith.constant 0 : index
    %154 = vector.load %arg13[%c2_75, %c0_76, %c0_77] : memref<10x10x512xbf16, #tpu.memory_space<vmem>>, vector<8x8x512xbf16>
    %c2_78 = arith.constant 2 : index
    %c1_79 = arith.constant 1 : index
    %c0_80 = arith.constant 0 : index
    %155 = vector.load %arg13[%c2_78, %c1_79, %c0_80] : memref<10x10x512xbf16, #tpu.memory_space<vmem>>, vector<8x8x512xbf16>
    %c2_81 = arith.constant 2 : index
    %c2_82 = arith.constant 2 : index
    %c0_83 = arith.constant 0 : index
    %156 = vector.load %arg13[%c2_81, %c2_82, %c0_83] : memref<10x10x512xbf16, #tpu.memory_space<vmem>>, vector<8x8x512xbf16>
    %157 = tpu.concatenate %148, %149, %150, %151, %152, %153, %154, %155, %156 in 2 : vector<8x8x512xbf16>, vector<8x8x512xbf16>, vector<8x8x512xbf16>, vector<8x8x512xbf16>, vector<8x8x512xbf16>, vector<8x8x512xbf16>, vector<8x8x512xbf16>, vector<8x8x512xbf16>, vector<8x8x512xbf16> -> vector<8x8x4608xbf16>
    %158 = vector.shape_cast %157 : vector<8x8x4608xbf16> to vector<64x4608xbf16>
    %c0_84 = arith.constant 0 : index
    %c0_85 = arith.constant 0 : index
    %159 = vector.load %arg5[%c0_84, %c0_85] : memref<4608x128xbf16, #tpu.memory_space<vmem>>, vector<4608x128xbf16>
    %cst_86 = arith.constant dense<0.000000e+00> : vector<64x128xf32>
    %160 = tpu.matmul %158, %159, %cst_86 {dimension_numbers = #tpu.dot_dimension_numbers<[1], [0], [0], [1], [0, 0, 1, 1], [], []>} : vector<64x4608xbf16>, vector<4608x128xbf16>, vector<64x128xf32> -> vector<64x128xf32>
    %161 = vector.shape_cast %160 : vector<64x128xf32> to vector<8x8x128xf32>
    %162 = arith.truncf %161 : vector<8x8x128xf32> to vector<8x8x128xbf16>
    %c1_87 = arith.constant 1 : index
    %c1_88 = arith.constant 1 : index
    %c0_89 = arith.constant 0 : index
    %163 = vector.load %arg14[%c1_87, %c1_88, %c0_89] : memref<10x10x128xbf16, #tpu.memory_space<vmem>>, vector<8x8x128xbf16>
    tpu.vector_store %arg14[%c1_87, %c1_88, %c0_89], %162 {strides = array<i32>} : memref<10x10x128xbf16, #tpu.memory_space<vmem>>, vector<8x8x128xbf16>,
    %c0_90 = arith.constant 0 : index
    %c0_91 = arith.constant 0 : index
    %c0_92 = arith.constant 0 : index
    %164 = vector.load %arg14[%c0_90, %c0_91, %c0_92] : memref<10x10x128xbf16, #tpu.memory_space<vmem>>, vector<8x8x128xbf16>
    %c0_93 = arith.constant 0 : index
    %c1_94 = arith.constant 1 : index
    %c0_95 = arith.constant 0 : index
    %165 = vector.load %arg14[%c0_93, %c1_94, %c0_95] : memref<10x10x128xbf16, #tpu.memory_space<vmem>>, vector<8x8x128xbf16>
    %c0_96 = arith.constant 0 : index
    %c2_97 = arith.constant 2 : index
    %c0_98 = arith.constant 0 : index
    %166 = vector.load %arg14[%c0_96, %c2_97, %c0_98] : memref<10x10x128xbf16, #tpu.memory_space<vmem>>, vector<8x8x128xbf16>
    %c1_99 = arith.constant 1 : index
    %c0_100 = arith.constant 0 : index
    %c0_101 = arith.constant 0 : index
    %167 = vector.load %arg14[%c1_99, %c0_100, %c0_101] : memref<10x10x128xbf16, #tpu.memory_space<vmem>>, vector<8x8x128xbf16>
    %c1_102 = arith.constant 1 : index
    %c1_103 = arith.constant 1 : index
    %c0_104 = arith.constant 0 : index
    %168 = vector.load %arg14[%c1_102, %c1_103, %c0_104] : memref<10x10x128xbf16, #tpu.memory_space<vmem>>, vector<8x8x128xbf16>
    %c1_105 = arith.constant 1 : index
    %c2_106 = arith.constant 2 : index
    %c0_107 = arith.constant 0 : index
    %169 = vector.load %arg14[%c1_105, %c2_106, %c0_107] : memref<10x10x128xbf16, #tpu.memory_space<vmem>>, vector<8x8x128xbf16>
    %c2_108 = arith.constant 2 : index
    %c0_109 = arith.constant 0 : index
    %c0_110 = arith.constant 0 : index
    %170 = vector.load %arg14[%c2_108, %c0_109, %c0_110] : memref<10x10x128xbf16, #tpu.memory_space<vmem>>, vector<8x8x128xbf16>
    %c2_111 = arith.constant 2 : index
    %c1_112 = arith.constant 1 : index
    %c0_113 = arith.constant 0 : index
    %171 = vector.load %arg14[%c2_111, %c1_112, %c0_113] : memref<10x10x128xbf16, #tpu.memory_space<vmem>>, vector<8x8x128xbf16>
    %c2_114 = arith.constant 2 : index
    %c2_115 = arith.constant 2 : index
    %c0_116 = arith.constant 0 : index
    %172 = vector.load %arg14[%c2_114, %c2_115, %c0_116] : memref<10x10x128xbf16, #tpu.memory_space<vmem>>, vector<8x8x128xbf16>
    %173 = tpu.concatenate %164, %165, %166, %167, %168, %169, %170, %171, %172 in 2 : vector<8x8x128xbf16>, vector<8x8x128xbf16>, vector<8x8x128xbf16>, vector<8x8x128xbf16>, vector<8x8x128xbf16>, vector<8x8x128xbf16>, vector<8x8x128xbf16>, vector<8x8x128xbf16>, vector<8x8x128xbf16> -> vector<8x8x1152xbf16>
    %174 = vector.shape_cast %173 : vector<8x8x1152xbf16> to vector<64x1152xbf16>
    %c0_117 = arith.constant 0 : index
    %c0_118 = arith.constant 0 : index
    %175 = vector.load %arg6[%c0_117, %c0_118] : memref<1152x128xbf16, #tpu.memory_space<vmem>>, vector<1152x128xbf16>
    %cst_119 = arith.constant dense<0.000000e+00> : vector<64x128xf32>
    %176 = tpu.matmul %174, %175, %cst_119 {dimension_numbers = #tpu.dot_dimension_numbers<[1], [0], [0], [1], [0, 0, 1, 1], [], []>} : vector<64x1152xbf16>, vector<1152x128xbf16>, vector<64x128xf32> -> vector<64x128xf32>
    %c0_120 = arith.constant 0 : index
    %c0_121 = arith.constant 0 : index
    %177 = vector.load %arg7[%c0_120, %c0_121] : memref<1x128xf32, #tpu.memory_space<vmem>>, vector<1x128xf32>
    %178 = vector.broadcast %177 : vector<1x128xf32> to vector<64x128xf32>
    %179 = arith.mulf %176, %178 : vector<64x128xf32>
    %c0_122 = arith.constant 0 : index
    %c0_123 = arith.constant 0 : index
    %180 = vector.load %arg8[%c0_122, %c0_123] : memref<1x128xf32, #tpu.memory_space<vmem>>, vector<1x128xf32>
    %181 = vector.broadcast %180 : vector<1x128xf32> to vector<64x128xf32>
    %182 = arith.addf %179, %181 : vector<64x128xf32>
    %183 = vector.extract_strided_slice %13 {offsets = [3, 0, 0, 0], sizes = [1, 8, 8, 128], strides = [1, 1, 1, 1]} : vector<4x9x9x128xbf16> to vector<1x8x8x128xbf16>
    %184 = vector.shape_cast %183 : vector<1x8x8x128xbf16> to vector<8x8x128xbf16>
    %185 = vector.shape_cast %184 : vector<8x8x128xbf16> to vector<64x128xbf16>
    %c0_124 = arith.constant 0 : index
    %c0_125 = arith.constant 0 : index
    %186 = vector.load %arg9[%c0_124, %c0_125] : memref<128x128xbf16, #tpu.memory_space<vmem>>, vector<128x128xbf16>
    %cst_126 = arith.constant dense<0.000000e+00> : vector<64x128xf32>
    %187 = tpu.matmul %185, %186, %cst_126 {dimension_numbers = #tpu.dot_dimension_numbers<[1], [0], [0], [1], [0, 0, 1, 1], [], []>} : vector<64x128xbf16>, vector<128x128xbf16>, vector<64x128xf32> -> vector<64x128xf32>
    %c0_127 = arith.constant 0 : index
    %c0_128 = arith.constant 0 : index
    %188 = vector.load %arg10[%c0_127, %c0_128] : memref<1x128xf32, #tpu.memory_space<vmem>>, vector<1x128xf32>
    %189 = vector.broadcast %188 : vector<1x128xf32> to vector<64x128xf32>
    %190 = arith.mulf %187, %189 : vector<64x128xf32>
    %c0_129 = arith.constant 0 : index
    %c0_130 = arith.constant 0 : index
    %191 = vector.load %arg11[%c0_129, %c0_130] : memref<1x128xf32, #tpu.memory_space<vmem>>, vector<1x128xf32>
    %192 = vector.broadcast %191 : vector<1x128xf32> to vector<64x128xf32>
    %193 = arith.addf %190, %192 : vector<64x128xf32>
    %194 = arith.addf %182, %193 : vector<64x128xf32>
    %cst_131 = arith.constant 0.000000e+00 : f32
    %195 = vector.broadcast %cst_131 : f32 to vector<64x128xf32>
    %196 = arith.maximumf %194, %195 : vector<64x128xf32>
    %197 = vector.shape_cast %196 : vector<64x128xf32> to vector<1x8x8x128xf32>
    %c0_132 = arith.constant 0 : index
    %c0_133 = arith.constant 0 : index
    %c0_134 = arith.constant 0 : index
    %c0_135 = arith.constant 0 : index
    %198 = vector.load %arg12[%c0_132, %c0_133, %c0_134, %c0_135] : memref<1x8x8x128xf32, #tpu.memory_space<vmem>>, vector<1x8x8x128xf32>
    tpu.vector_store %arg12[%c0_132, %c0_133, %c0_134, %c0_135], %197 {strides = array<i32>} : memref<1x8x8x128xf32, #tpu.memory_space<vmem>>, vector<1x8x8x128xf32>,
    return
  }
  func.func @transform_0(%arg0: i32) -> (i32, i32, i32, i32, i32) {
    %c0_i32 = arith.constant 0 : i32
    %c0_i32_0 = arith.constant 0 : i32
    %c0_i32_1 = arith.constant 0 : i32
    %c0_i32_2 = arith.constant 0 : i32
    %c0_i32_3 = arith.constant 0 : i32
    return %arg0, %c0_i32, %c0_i32_0, %c0_i32_1, %c0_i32_2 : i32, i32, i32, i32, i32
  }
  func.func @transform_1(%arg0: i32) -> (i32, i32) {
    %c0_i32 = arith.constant 0 : i32
    %c0_i32_0 = arith.constant 0 : i32
    %c0_i32_1 = arith.constant 0 : i32
    return %c0_i32, %c0_i32_0 : i32, i32
  }
  func.func @transform_2(%arg0: i32) -> (i32, i32) {
    %c0_i32 = arith.constant 0 : i32
    %c0_i32_0 = arith.constant 0 : i32
    %c0_i32_1 = arith.constant 0 : i32
    return %c0_i32, %c0_i32_0 : i32, i32
  }
  func.func @transform_3(%arg0: i32) -> (i32, i32) {
    %c0_i32 = arith.constant 0 : i32
    %c0_i32_0 = arith.constant 0 : i32
    %c0_i32_1 = arith.constant 0 : i32
    return %c0_i32, %c0_i32_0 : i32, i32
  }
  func.func @transform_4(%arg0: i32) -> (i32, i32) {
    %c0_i32 = arith.constant 0 : i32
    %c0_i32_0 = arith.constant 0 : i32
    %c0_i32_1 = arith.constant 0 : i32
    return %c0_i32, %c0_i32_0 : i32, i32
  }
  func.func @transform_5(%arg0: i32) -> (i32, i32) {
    %c0_i32 = arith.constant 0 : i32
    %c0_i32_0 = arith.constant 0 : i32
    %c0_i32_1 = arith.constant 0 : i32
    return %c0_i32, %c0_i32_0 : i32, i32
  }
  func.func @transform_6(%arg0: i32) -> (i32, i32) {
    %c0_i32 = arith.constant 0 : i32
    %c0_i32_0 = arith.constant 0 : i32
    %c0_i32_1 = arith.constant 0 : i32
    return %c0_i32, %c0_i32_0 : i32, i32
  }
  func.func @transform_7(%arg0: i32) -> (i32, i32) {
    %c0_i32 = arith.constant 0 : i32
    %c0_i32_0 = arith.constant 0 : i32
    %c0_i32_1 = arith.constant 0 : i32
    return %c0_i32, %c0_i32_0 : i32, i32
  }
  func.func @transform_8(%arg0: i32) -> (i32, i32) {
    %c0_i32 = arith.constant 0 : i32
    %c0_i32_0 = arith.constant 0 : i32
    %c0_i32_1 = arith.constant 0 : i32
    return %c0_i32, %c0_i32_0 : i32, i32
  }
  func.func @transform_9(%arg0: i32) -> (i32, i32) {
    %c0_i32 = arith.constant 0 : i32
    %c0_i32_0 = arith.constant 0 : i32
    %c0_i32_1 = arith.constant 0 : i32
    return %c0_i32, %c0_i32_0 : i32, i32
  }
  func.func @transform_10(%arg0: i32) -> (i32, i32) {
    %c0_i32 = arith.constant 0 : i32
    %c0_i32_0 = arith.constant 0 : i32
    %c0_i32_1 = arith.constant 0 : i32
    return %c0_i32, %c0_i32_0 : i32, i32
  }
  func.func @transform_11(%arg0: i32) -> (i32, i32, i32, i32) {
    %c0_i32 = arith.constant 0 : i32
    %c0_i32_0 = arith.constant 0 : i32
    %c0_i32_1 = arith.constant 0 : i32
    %c0_i32_2 = arith.constant 0 : i32
    return %arg0, %c0_i32, %c0_i32_0, %c0_i32_1 : i32, i32, i32, i32
  }
}

</mosaic_0001>

<bundles_post_ra>
// kernel: tpu_custom_call.1
= control target key start
LH: loop header
LB: loop body
LE: loop exit
PB: predicated region body
PF: predicated region fallthrough
CT: control target
= control target key end

     0   :  { %s21331_s0 = inlined_call_operand.vmem [shape: bf16[2,4,9,9,128], index: 0, kind: input, shape index: {}]   ;;  %s21332_s1 = inlined_call_operand.hbm [shape: bf16[1152,128], index: 1, kind: input, shape index: {}]   ;;  %s21333_s2 = inlined_call_operand.hbm [shape: f32[4,128], index: 2, kind: input, shape index: {}]   ;;  %s21334_s3 = inlined_call_operand.hbm [shape: f32[4,128], index: 3, kind: input, shape index: {}]   ;;  %s21335_s4 = inlined_call_operand.hbm [shape: bf16[4608,128], index: 4, kind: input, shape index: {}]   ;;  %s21336_s5 = inlined_call_operand.hbm [shape: bf16[1152,128], index: 5, kind: input, shape index: {}]   ;;  %s21337_s6 = inlined_call_operand.hbm [shape: f32[1,128], index: 6, kind: input, shape index: {}]   ;;  %s21338_s7 = inlined_call_operand.hbm [shape: f32[1,128], index: 7, kind: input, shape index: {}]   ;;  %s21339_s8 = inlined_call_operand.hbm [shape: bf16[128,128], index: 8, kind: input, shape index: {}]   ;;  %s21340_s9 = inlined_call_operand.hbm [shape: f32[1,128], index: 9, kind: input, shape index: {}]   ;;  %s21341_s10 = inlined_call_operand.hbm [shape: f32[1,128], index: 10, kind: input, shape index: {}]   ;;  %s21342_s11 = inlined_call_operand.hbm [shape: f32[2,8,8,128], index: 11, kind: output, shape index: {}]  }
   0x1   :  { %21394 = sst [smem:[#allocation73_spill]] %s21333_s2 }
   0x2   :  { %21395 = sst [smem:[#allocation74_spill]] %s21335_s4 }
   0x3   :  { %21396 = sst [smem:[#allocation75_spill]] %s21337_s6 }
   0x4   :  { %16 = vsyncpa [#allocation5], 0 }
   0x5   :  { %17 = vsyncpa [#allocation8], 0 }
   0x6   :  { %18 = vsyncpa [#allocation11], 0 }
   0x7   :  { %19 = vsyncpa [#allocation14], 0 }
   0x8   :  { %20 = vsyncpa [#allocation17], 0 }
   0x9   :  { %21 = vsyncpa [#allocation20], 0 }
   0xa   :  { %22 = vsyncpa [#allocation6], 0 }
   0xb   :  { %24 = vsyncpa [#allocation6 + $0x1], 0  ;;  %s17907_s17 = smov 0   ;;  %s17909_s18 = smov 0  }
   0xc   :  { %s17911_s19 = smov 0   ;;  %s17913_s20 = smov 0  }
   0xd LB: > { %21397 = sst [smem:[#allocation29_spill]] %s17817_s17  ;;  %s17928_s21 = sadd.s32 4294967295, %s17829_s20   ;;  %s17829_s20 = sphi %s17913_s20, %s21596_s20   ;;  %s17825_s19 = sphi %s17911_s19, %s21598_s19   ;;  %s17821_s18 = sphi %s17909_s18, %s21600_s18   ;;  %s17817_s17 = sphi %s17907_s17, %s21599_s17  }
   0xe   : > { %21398 = sst [smem:[#allocation30_spill]] %s17825_s19  ;;  %s13288_s22 = sadd.s32 4294967294, %s17829_s20  }
   0xf   : > { %s17932_s23 = sadd.s32 1, %s17829_s20   ;;  %s273_s24 = sadd.s32 1, %s17825_s19 }
  0x10   : > { %21399 = sst [smem:[#allocation31_spill]] %s17932_s23  ;;  %s270_s25 = ssub.s32 %s17829_s20, %s17932_s23 }
  0x11   : > { %p283_p0 = scmp.ne.s32.totalorder %s17825_s19, %s17821_s18  ;;  %p271_p1 = scmp.eq.s32.totalorder %s270_s25, 0 }
  0x12   : > { %p284_p2 = scmp.eq.s32.totalorder %s17928_s21, 1  ;;  %p289_p3 = scmp.ne.s32.totalorder %s17821_s18, %s17817_s17 }
  0x13   : > { %p290_p4 = scmp.eq.s32.totalorder %s13288_s22, 1  ;;  %p13289_p7 = scmp.ge.s32.totalorder %s17829_s20, 1 }
  0x14   : > { %s17943_s26 = scalar_select %p271_p1, %s17825_s19, %s273_s24  }
  0x15   : > { %p17945_p5 = por %p284_p2, %p283_p0  ;;  %p17949_p6 = por %p290_p4, %p289_p3 }
  0x16   : > { %21400 = sst [smem:[#allocation32_spill]] %s17943_s26  ;;  %p297_p8 = scmp.lt.s32.totalorder %s17829_s20, 3 }
  0x17   : > { %s21401_s27 = scalar_select %p17945_p5, 1, 0 }
  0x18   : > { %s21402_s28 = scalar_select %p17949_p6, 1, 0 }
  0x19   : > { %p21346_p9 = scmp.eq.s32.totalorder %s17928_s21, 0  ;;  %p17956_p10 = pnand %p13289_p7, %p297_p8 }
  0x1a   : > { %21403 = sst [smem:[#allocation33_spill]] %s21402_s28  ;;  %s17831_s30 = smov [#allocation7]  }
  0x1b   : > { %s21404_s29 = scalar_select %p17956_p10, 1, 0 }
  0x1c   : > { %s323_s12 = sshll.u32 %s17831_s30, 4  ;;  %p16359_p11 = pneg %p17956_p10  ;;  %s324_s12 = int_to_ptr.vmem [resolvable:$true] %s323_s12 }
  0x1d   : > { %s17832_s14 = smov [#allocation10]   ;;  %s17833_s16 = smov [#allocation13]  }
  0x1e   : > { %p17964_p12 = pnand %p21346_p9, %p16359_p11  ;;  %s344_s15 = sshll.u32 %s17832_s14, 4  ;;  %s17968_s15 = int_to_ptr.vmem [resolvable:$true] %s344_s15 }
  0x1f   : > { %s17970_s22 = sshll.u32 %s17833_s16, 4  ;;  %s21406_s2 = sld [smem:[#allocation73_spill]]  ;;  %s372_s22 = int_to_ptr.vmem [resolvable:$true] %s17970_s22 }
  0x20   : > { %p17980_p0 = pneg %p17964_p12 }
  0x25   : > { %s17463_s30 = scalar_lea.hbm %s21406_s2, 64 }
  0x26   : > { %p17464_p13 = scmp.ne.s32.totalorder %s21406_s2, %s17463_s30  ;;  %p17470_p3 = scmp.lt.u32.totalorder %s17463_s30, %s21406_s2 }
  0x28   : > { %p17466_p1 = pnand %p17980_p0, %p17464_p13 }
  0x2a   : > { %p17467_p2 = pneg %p17466_p1 }
  0x2c   : > { %p17472_p4 = pnand %p17470_p3, %p17467_p2 }
  0x2e   : > { %17475 = shalt.err (!%p17472_p4)
}
  0x2f   : > { %s17476_s24 = scalar_lea.vmem %s324_s12, 64  ;;  %p17484_p9 = scmp.lt.s32.totalorder %s324_s12, %s324_s12 }
  0x30   : > { %p17477_p7 = scmp.ne.s32.totalorder %s324_s12, %s17476_s24  ;;  %p17485_p6 = scmp.lt.s32.totalorder %s17476_s24, %s17476_s24 }
  0x32   : > { %p17479_p8 = pnand %p17477_p7, %p17980_p0  ;;  %p17486_p5 = por %p17485_p6, %p17484_p9 }
  0x34   : > { %p17480_p11 = pneg %p17479_p8 }
  0x36   : > { %p17487_p10 = pnand %p17486_p5, %p17480_p11 }
  0x38   : > { %17490 = shalt.err (!%p17487_p10)
}
  0x39   : > { %16365 = dma.hbm_to_vmem [thread:$0]  (!%p17964_p12), %s21406_s2, 64, %s324_s12, [#allocation8]  }
  0x3a   : > { %s21408_s4 = sld [smem:[#allocation74_spill]] }
  0x40   : > { %s17491_s14 = scalar_lea.hbm %s21408_s4, 36864 }
  0x41   : > { %p17492_p13 = scmp.ne.s32.totalorder %s21408_s4, %s17491_s14  ;;  %p17498_p5 = scmp.lt.u32.totalorder %s17491_s14, %s21408_s4 }
  0x43   : > { %p17494_p1 = pnand %p17492_p13, %p17980_p0 }
  0x45   : > { %p17495_p6 = pneg %p17494_p1 }
  0x47   : > { %p17500_p9 = pnand %p17498_p5, %p17495_p6 }
  0x49   : > { %17503 = shalt.err (!%p17500_p9)
}
  0x4a   : > { %s17504_s12 = scalar_lea.vmem %s17968_s15, 36864  ;;  %p17512_p4 = scmp.lt.s32.totalorder %s17968_s15, %s17968_s15 }
  0x4b   : > { %p17505_p10 = scmp.ne.s32.totalorder %s17968_s15, %s17504_s12  ;;  %p17513_p7 = scmp.lt.s32.totalorder %s17504_s12, %s17504_s12 }
  0x4d   : > { %p17507_p2 = pnand %p17505_p10, %p17980_p0  ;;  %p17514_p8 = por %p17513_p7, %p17512_p4 }
  0x4f   : > { %p17508_p3 = pneg %p17507_p2 }
  0x51   : > { %p17515_p11 = pnand %p17514_p8, %p17508_p3 }
  0x53   : > { %17518 = shalt.err (!%p17515_p11)
}
  0x54   : > { %s21351_s28 = smov 64   ;;  %s21353_s17 = smov 4  }
  0x55   : > { %16371 = dma.hbm_to_vmem [thread:$0]  (!%p17964_p12), %s21408_s4, 36864, %s17968_s15, [#allocation11], %s21351_s28, %s21351_s28, %s21353_s17  }
  0x56   : > { %s21409_s6 = sld [smem:[#allocation75_spill]] }
  0x5c   : > { %s17519_s14 = scalar_lea.hbm %s21409_s6, 16 }
  0x5d   : > { %p17520_p13 = scmp.ne.s32.totalorder %s21409_s6, %s17519_s14  ;;  %p17526_p5 = scmp.lt.u32.totalorder %s17519_s14, %s21409_s6 }
  0x5f   : > { %p17522_p1 = pnand %p17520_p13, %p17980_p0 }
  0x61   : > { %p17523_p6 = pneg %p17522_p1 }
  0x63   : > { %p17528_p9 = pnand %p17526_p5, %p17523_p6 }
  0x65   : > { %17531 = shalt.err (!%p17528_p9)
}
  0x66   : > { %s17532_s19 = scalar_lea.vmem %s372_s22, 16  ;;  %s17539_s15 = scalar_lea.vmem %s372_s22, 32 }
  0x67   : > { %p17533_p10 = scmp.ne.s32.totalorder %s372_s22, %s17532_s19  ;;  %p17540_p4 = scmp.lt.s32.totalorder %s372_s22, %s372_s22 }
  0x68   : > { %p17541_p7 = scmp.lt.s32.totalorder %s17539_s15, %s17532_s19 }
  0x69   : > { %p17535_p2 = pnand %p17533_p10, %p17980_p0 }
  0x6a   : > { %p17542_p8 = por %p17541_p7, %p17540_p4 }
  0x6b   : > { %p17536_p3 = pneg %p17535_p2 }
  0x6d   : > { %p17543_p11 = pnand %p17542_p8, %p17536_p3 }
  0x6f   : > { %17546 = shalt.err (!%p17543_p11)
}
  0x70   : > { %16377 = dma.hbm_to_vmem [thread:$0]  (!%p17964_p12), %s21409_s6, 16, %s372_s22, [#allocation14]  }
  0x71   : > { %s17836_s2 = smov [#allocation16]   ;;  %s17837_s14 = smov [#allocation4]  }
  0x72   : > { %s392_s30 = sshll.u32 %s17836_s2, 4  ;;  %s309_s16 = sshll.u32 %s17837_s14, 4  ;;  %s393_s30 = int_to_ptr.vmem [resolvable:$true] %s392_s30  ;;  %s310_s16 = int_to_ptr.vmem [resolvable:$true] %s309_s16 }
  0x73   : > { %s17547_s28 = scalar_lea.hbm %s21339_s8, 1024 }
  0x74   : > { %p17548_p13 = scmp.ne.s32.totalorder %s21339_s8, %s17547_s28  ;;  %p17554_p5 = scmp.lt.u32.totalorder %s17547_s28, %s21339_s8 }
  0x76   : > { %p17550_p1 = pnand %p17548_p13, %p17980_p0 }
  0x78   : > { %p17551_p6 = pneg %p17550_p1 }
  0x7a   : > { %p17556_p9 = pnand %p17554_p5, %p17551_p6 }
  0x7c   : > { %17559 = shalt.err (!%p17556_p9)
}
  0x7d   : > { %s17560_s22 = scalar_lea.vmem %s393_s30, 1024  ;;  %p17568_p4 = scmp.lt.s32.totalorder %s393_s30, %s393_s30 }
  0x7e   : > { %p17561_p10 = scmp.ne.s32.totalorder %s393_s30, %s17560_s22  ;;  %p17569_p7 = scmp.lt.s32.totalorder %s17560_s22, %s17560_s22 }
  0x80   : > { %p17563_p2 = pnand %p17561_p10, %p17980_p0  ;;  %p17570_p8 = por %p17569_p7, %p17568_p4 }
  0x82   : > { %p17564_p3 = pneg %p17563_p2 }
  0x84   : > { %p17571_p11 = pnand %p17570_p8, %p17564_p3 }
  0x86   : > { %17574 = shalt.err (!%p17571_p11)
}
  0x87   : > { %s21410_s25 = smov 4   ;;  %s21411_s2 = smov 64  }
  0x88   : > { %16383 = dma.hbm_to_vmem [thread:$0]  (!%p17964_p12), %s21339_s8, 1024, %s393_s30, [#allocation17], %s21411_s2, %s21411_s2, %s21410_s25  }
  0x89   : > { %s17575_s12 = scalar_lea.hbm %s21332_s1, 9216 }
  0x8a   : > { %p17576_p13 = scmp.ne.s32.totalorder %s21332_s1, %s17575_s12  ;;  %p17582_p5 = scmp.lt.u32.totalorder %s17575_s12, %s21332_s1 }
  0x8c   : > { %p17578_p1 = pnand %p17576_p13, %p17980_p0 }
  0x8e   : > { %p17579_p6 = pneg %p17578_p1 }
  0x90   : > { %p17584_p9 = pnand %p17582_p5, %p17579_p6 }
  0x92   : > { %17587 = shalt.err (!%p17584_p9)
}
  0x93   : > { %s17588_s17 = scalar_lea.vmem %s310_s16, 9216  ;;  %p17596_p4 = scmp.lt.s32.totalorder %s310_s16, %s310_s16 }
  0x94   : > { %p17589_p10 = scmp.ne.s32.totalorder %s310_s16, %s17588_s17  ;;  %p17597_p7 = scmp.lt.s32.totalorder %s17588_s17, %s17588_s17 }
  0x96   : > { %p17591_p2 = pnand %p17589_p10, %p17980_p0  ;;  %p17598_p8 = por %p17597_p7, %p17596_p4 }
  0x98   : > { %p17592_p3 = pneg %p17591_p2 }
  0x9a   : > { %p17599_p11 = pnand %p17598_p8, %p17592_p3 }
  0x9c   : > { %17602 = shalt.err (!%p17599_p11)
}
  0x9d   : > { %16362 = dma.hbm_to_vmem [thread:$0]  (!%p17964_p12), %s21332_s1, 9216, %s310_s16, [#allocation5], %s21411_s2, %s21411_s2, %s21410_s25  }
  0x9e   : > { %s17838_s14 = smov [#allocation9]   ;;  %s17839_s12 = smov [#allocation12]  }
  0x9f   : > { %s334_s24 = sshll.u32 %s17838_s14, 4  ;;  %s357_s19 = sshll.u32 %s17839_s12, 4  ;;  %s335_s24 = int_to_ptr.vmem [resolvable:$true] %s334_s24  ;;  %s358_s19 = int_to_ptr.vmem [resolvable:$true] %s357_s19 }
  0xa0   : > { %s17603_s22 = scalar_lea.hbm %s21334_s3, 64 }
  0xa1   : > { %p17604_p13 = scmp.ne.s32.totalorder %s21334_s3, %s17603_s22  ;;  %p17610_p5 = scmp.lt.u32.totalorder %s17603_s22, %s21334_s3 }
  0xa3   : > { %p17606_p1 = pnand %p17604_p13, %p17980_p0 }
  0xa5   : > { %p17607_p6 = pneg %p17606_p1 }
  0xa7   : > { %p17612_p9 = pnand %p17610_p5, %p17607_p6 }
  0xa9   : > { %17615 = shalt.err (!%p17612_p9)
}
  0xaa   : > { %s17616_s16 = scalar_lea.vmem %s335_s24, 64  ;;  %p17624_p4 = scmp.lt.s32.totalorder %s335_s24, %s335_s24 }
  0xab   : > { %p17617_p10 = scmp.ne.s32.totalorder %s335_s24, %s17616_s16  ;;  %p17625_p7 = scmp.lt.s32.totalorder %s17616_s16, %s17616_s16 }
  0xad   : > { %p17619_p2 = pnand %p17617_p10, %p17980_p0  ;;  %p17626_p8 = por %p17625_p7, %p17624_p4 }
  0xaf   : > { %p17620_p3 = pneg %p17619_p2 }
  0xb1   : > { %p17627_p11 = pnand %p17626_p8, %p17620_p3 }
  0xb3   : > { %17630 = shalt.err (!%p17627_p11)
}
  0xb4   : > { %16368 = dma.hbm_to_vmem [thread:$0]  (!%p17964_p12), %s21334_s3, 64, %s335_s24, [#allocation8]  }
  0xb5   : > { %s17631_s12 = scalar_lea.hbm %s21336_s5, 9216 }
  0xb6   : > { %p17632_p13 = scmp.ne.s32.totalorder %s21336_s5, %s17631_s12  ;;  %p17638_p5 = scmp.lt.u32.totalorder %s17631_s12, %s21336_s5 }
  0xb8   : > { %p17634_p1 = pnand %p17632_p13, %p17980_p0 }
  0xba   : > { %p17635_p6 = pneg %p17634_p1 }
  0xbc   : > { %p17640_p9 = pnand %p17638_p5, %p17635_p6 }
  0xbe   : > { %17643 = shalt.err (!%p17640_p9)
}
  0xbf   : > { %s17644_s30 = scalar_lea.vmem %s358_s19, 9216  ;;  %p17652_p4 = scmp.lt.s32.totalorder %s358_s19, %s358_s19 }
  0xc0   : > { %p17645_p10 = scmp.ne.s32.totalorder %s358_s19, %s17644_s30  ;;  %p17653_p7 = scmp.lt.s32.totalorder %s17644_s30, %s17644_s30 }
  0xc2   : > { %p17647_p2 = pnand %p17645_p10, %p17980_p0  ;;  %p17654_p8 = por %p17653_p7, %p17652_p4 }
  0xc4   : > { %p17648_p3 = pneg %p17647_p2 }
  0xc6   : > { %p17655_p11 = pnand %p17654_p8, %p17648_p3 }
  0xc8   : > { %17658 = shalt.err (!%p17655_p11)
}
  0xc9   : > { %16374 = dma.hbm_to_vmem [thread:$0]  (!%p17964_p12), %s21336_s5, 9216, %s358_s19, [#allocation11], %s21411_s2, %s21411_s2, %s21410_s25  }
  0xca   : > { %s17840_s4 = smov [#allocation15]   ;;  %s17841_s6 = smov [#allocation18]  }
  0xcb   : > { %s382_s28 = sshll.u32 %s17840_s4, 4  ;;  %s406_s14 = sshll.u32 %s17841_s6, 4  ;;  %s383_s28 = int_to_ptr.vmem [resolvable:$true] %s382_s28  ;;  %s407_s14 = int_to_ptr.vmem [resolvable:$true] %s406_s14 }
  0xcc   : > { %s17659_s26 = scalar_lea.hbm %s21338_s7, 16 }
  0xcd   : > { %p17660_p13 = scmp.ne.s32.totalorder %s21338_s7, %s17659_s26  ;;  %p17666_p5 = scmp.lt.u32.totalorder %s17659_s26, %s21338_s7 }
  0xcf   : > { %p17662_p1 = pnand %p17660_p13, %p17980_p0 }
  0xd1   : > { %p17663_p6 = pneg %p17662_p1 }
  0xd3   : > { %p17668_p9 = pnand %p17666_p5, %p17663_p6 }
  0xd5   : > { %17671 = shalt.err (!%p17668_p9)
}
  0xd6   : > { %s17672_s25 = scalar_lea.vmem %s383_s28, 16  ;;  %s17679_s2 = scalar_lea.vmem %s383_s28, 32 }
  0xd7   : > { %p17673_p10 = scmp.ne.s32.totalorder %s383_s28, %s17672_s25  ;;  %p17680_p4 = scmp.lt.s32.totalorder %s383_s28, %s383_s28 }
  0xd8   : > { %p17681_p7 = scmp.lt.s32.totalorder %s17679_s2, %s17672_s25 }
  0xd9   : > { %p17675_p2 = pnand %p17673_p10, %p17980_p0 }
  0xda   : > { %p17682_p8 = por %p17681_p7, %p17680_p4 }
  0xdb   : > { %p17676_p3 = pneg %p17675_p2 }
  0xdd   : > { %p17683_p11 = pnand %p17682_p8, %p17676_p3 }
  0xdf   : > { %17686 = shalt.err (!%p17683_p11)
}
  0xe0   : > { %16380 = dma.hbm_to_vmem [thread:$0]  (!%p17964_p12), %s21338_s7, 16, %s383_s28, [#allocation14]  }
  0xe1   : > { %s17687_s12 = scalar_lea.hbm %s21340_s9, 16 }
  0xe2   : > { %p17688_p13 = scmp.ne.s32.totalorder %s21340_s9, %s17687_s12  ;;  %p17694_p5 = scmp.lt.u32.totalorder %s17687_s12, %s21340_s9 }
  0xe4   : > { %p17690_p1 = pnand %p17688_p13, %p17980_p0 }
  0xe6   : > { %p17691_p6 = pneg %p17690_p1 }
  0xe8   : > { %p17696_p9 = pnand %p17694_p5, %p17691_p6 }
  0xea   : > { %17699 = shalt.err (!%p17696_p9)
}
  0xeb   : > { %s17700_s30 = scalar_lea.vmem %s407_s14, 16  ;;  %s17707_s28 = scalar_lea.vmem %s407_s14, 32 }
  0xec   : > { %p17701_p10 = scmp.ne.s32.totalorder %s407_s14, %s17700_s30  ;;  %p17708_p4 = scmp.lt.s32.totalorder %s407_s14, %s407_s14 }
  0xed   : > { %p17709_p7 = scmp.lt.s32.totalorder %s17707_s28, %s17700_s30 }
  0xee   : > { %p17703_p2 = pnand %p17701_p10, %p17980_p0 }
  0xef   : > { %p17710_p8 = por %p17709_p7, %p17708_p4 }
  0xf0   : > { %p17704_p3 = pneg %p17703_p2 }
  0xf2   : > { %p17711_p11 = pnand %p17710_p8, %p17704_p3 }
  0xf4   : > { %17714 = shalt.err (!%p17711_p11)
}
  0xf5   : > { %16386 = dma.hbm_to_vmem [thread:$0]  (!%p17964_p12), %s21340_s9, 16, %s407_s14, [#allocation17]  }
  0xf6   : > { %s17842_s2 = smov [#allocation19]   ;;  %s17715_s6 = scalar_lea.hbm %s21341_s10, 16 }
  0xf7   : > { %s417_s19 = sshll.u32 %s17842_s2, 4  ;;  %p17716_p13 = scmp.ne.s32.totalorder %s21341_s10, %s17715_s6  ;;  %s418_s19 = int_to_ptr.vmem [resolvable:$true] %s417_s19 }
  0xf8   : > { %p17722_p5 = scmp.lt.u32.totalorder %s17715_s6, %s21341_s10 }
  0xf9   : > { %p17718_p1 = pnand %p17716_p13, %p17980_p0 }
  0xfb   : > { %p17719_p6 = pneg %p17718_p1 }
  0xfd   : > { %p17724_p9 = pnand %p17722_p5, %p17719_p6 }
  0xff   : > { %17727 = shalt.err (!%p17724_p9)
}
 0x100   : > { %s17728_s14 = scalar_lea.vmem %s418_s19, 16  ;;  %s17735_s17 = scalar_lea.vmem %s418_s19, 32 }
 0x101   : > { %p17729_p10 = scmp.ne.s32.totalorder %s418_s19, %s17728_s14  ;;  %p17736_p4 = scmp.lt.s32.totalorder %s418_s19, %s418_s19 }
 0x102   : > { %p17737_p7 = scmp.lt.s32.totalorder %s17735_s17, %s17728_s14 }
 0x103   : > { %p17731_p2 = pnand %p17729_p10, %p17980_p0 }
 0x104   : > { %p17738_p8 = por %p17737_p7, %p17736_p4 }
 0x105   : > { %p17732_p3 = pneg %p17731_p2 }
 0x107   : > { %p17739_p11 = pnand %p17738_p8, %p17732_p3 }
 0x109   : > { %17742 = shalt.err (!%p17739_p11)
}
 0x10a   : > { %16389 = dma.hbm_to_vmem [thread:$0]  (!%p17964_p12), %s21341_s10, 16, %s418_s19, [#allocation20]  }
 0x10b   : > { %p21412_p13 = scmp.ne.s32.totalorder %s21404_s29, 0 }
 0x10d   : > { %438 = sbr.rel (%p21412_p13) target bundleno = 1694 (0x69e), region = 64 }
 0x114   : > { %p21413_p1 = scmp.eq.s32.totalorder %s17928_s21, 0 }
 0x116   : > { %17788 = dma.done.wait (%p21413_p1), [#allocation5], 9216   ;;  %p21414_p0 = pmov %p21413_p1 }
 0x118   : > { %17790 = vsyncadd (%p21414_p0), [#allocation5], 4294958080  ;;  %p21415_p6 = pmov %p21414_p0 }
 0x119   : > { %p21416_p5 = pmov %p21414_p0 }
 0x11a   : > { %17792 = dma.done.wait (%p21415_p6), [#allocation8], 128  }
 0x11b   : > { %17794 = vsyncadd (%p21416_p5), [#allocation8], 4294967168  ;;  %p21417_p9 = pmov %p21414_p0 }
 0x11c   : > { %p21418_p12 = pmov %p21414_p0 }
 0x11d   : > { %17796 = dma.done.wait (%p21417_p9), [#allocation11], 46080  }
 0x11e   : > { %17798 = vsyncadd (%p21418_p12), [#allocation11], 4294921216  ;;  %p21419_p10 = pmov %p21414_p0 }
 0x11f   : > { %p21420_p2 = pmov %p21414_p0 }
 0x120   : > { %17800 = dma.done.wait (%p21419_p10), [#allocation14], 32  }
 0x121   : > { %17802 = vsyncadd (%p21420_p2), [#allocation14], 4294967264  ;;  %p21421_p3 = pmov %p21414_p0 }
 0x122   : > { %p21422_p4 = pmov %p21414_p0 }
 0x123   : > { %17804 = dma.done.wait (%p21421_p3), [#allocation17], 1040  }
 0x124   : > { %17806 = vsyncadd (%p21422_p4), [#allocation17], 4294966256  ;;  %p21423_p7 = pmov %p21414_p0 }
 0x125   : > { %p21424_p8 = pmov %p21414_p0 }
 0x126   : > { %17808 = dma.done.wait (%p21423_p7), [#allocation20], 16  }
 0x127   : > { %17810 = vsyncadd (%p21424_p8), [#allocation20], 4294967280  ;;  %v16462_v0 = vld [vmem:[#allocation4 + $0x40] sm:$0xff]   ;;  %v16466_v4 = vld [vmem:[#allocation4 + $0x48] sm:$0xff]   ;;  %p514_p11 = scmp.lt.s32.totalorder %s17928_s21, 1  ;;  %vm529_vm0 = vcmask 1040384  }
 0x128   : > { %v16463_v1 = vld [vmem:[#allocation4 + $0xc0] sm:$0xff]   ;;  %14580 = vmatprep.subr.bf16.mxu0 %v16462_v0  ;;  %v16467_v5 = vld [vmem:[#allocation4 + $0xc8] sm:$0xff]   ;;  %v16470_v8 = vld [vmem:[#allocation4 + $0x50] sm:$0xff]   ;;  %vm532_vm1 = vcmask 1044484   ;;  %vm530_vm2 = vsmask.f32 256 }
 0x129   : > { %v16464_v2 = vld [vmem:[#allocation4] sm:$0xff]   ;;  %14620 = vmatprep.subr.bf16.mxu1 %v16463_v1  ;;  %v16468_v6 = vld [vmem:[#allocation4 + $0x8] sm:$0xff]   ;;  %v16471_v9 = vld [vmem:[#allocation4 + $0xd0] sm:$0xff]   ;;  %s515_s23 = scalar_select %p514_p11, %s17928_s21, 1  ;;  %vm533_vm4 = vsmask.f32 4352 }
 0x12a   : > { %v16465_v3 = vld [vmem:[#allocation4 + $0x80] sm:$0xff]   ;;  %14581 = vmatpush3.bf16.msra.mxu0 %v16464_v2  ;;  %v16469_v7 = vld [vmem:[#allocation4 + $0x88] sm:$0xff]   ;;  %v16472_v10 = vld [vmem:[#allocation4 + $0x10] sm:$0xff]   ;;  %vm596_vm5 = vsmask.f32 7938  ;;  %vm2173_vm12 = vcmask 1043456  }
 0x12b   : > { %14621 = vmatpush3.bf16.msra.mxu1 %v16465_v3  ;;  %14582 = vmatprep.subr.bf16.mxu0 %v16466_v4  ;;  %v16473_v11 = vld [vmem:[#allocation4 + $0x90] sm:$0xff]   ;;  %v16474_v12 = vld [vmem:[#allocation4 + $0x58] sm:$0xff]   ;;  %v16478_v16 = vld [vmem:[#allocation4 + $0x60] sm:$0xff]   ;;  %s16316_s29 = smul.u32 288, %s515_s23  ;;  %vm598_vm7 = vsmask.f32 7954 }
 0x12c   : > { %14622 = vmatprep.subr.bf16.mxu1 %v16467_v5  ;;  %v16475_v13 = vld [vmem:[#allocation4 + $0xd8] sm:$0xff]   ;;  %v16479_v17 = vld [vmem:[#allocation4 + $0xe0] sm:$0xff]   ;;  %v16482_v20 = vld [vmem:[#allocation4 + $0x68] sm:$0xff]   ;;  %s511_s2 = sand.u32 1, %s17821_s18   ;;  %s14579_s4 = sshll.u32 %s17928_s21, 10 }
 0x12d   : > { %v16476_v14 = vld [vmem:[#allocation4 + $0x18] sm:$0xff]   ;;  %v16480_v18 = vld [vmem:[#allocation4 + $0x20] sm:$0xff]   ;;  %v16483_v21 = vld [vmem:[#allocation4 + $0xe8] sm:$0xff]   ;;  %s18207_s25 = scalar_lea.vmem %s21331_s0, %s16316_s29  ;;  %s13312_s19 = sshll.u32 %s511_s2, 6 }
 0x12e   : > { %14583 = vmatpush3.bf16.msra.mxu0 %v16468_v6  ;;  %v16477_v15 = vld [vmem:[#allocation4 + $0x98] sm:$0xff]   ;;  %v16481_v19 = vld [vmem:[#allocation4 + $0xa0] sm:$0xff]   ;;  %v16484_v22 = vld [vmem:[#allocation4 + $0x28] sm:$0xff]   ;;  %s21256_s16 = scalar_lea.vmem [#allocation21], %s13312_s19  ;;  %s21281_s26 = scalar_lea.hbm %s21342_s11, %s14579_s4 }
 0x12f   : > { %14623 = vmatpush3.bf16.msra.mxu1 %v16469_v7  ;;  %14584 = vmatprep.subr.bf16.mxu0 %v16470_v8  ;;  %v16485_v23 = vld [vmem:[#allocation4 + $0xa8] sm:$0xff]   ;;  %v16486_v24 = vld [vmem:[#allocation4 + $0x70] sm:$0xff]   ;;  %v16490_v28 = vld [vmem:[#allocation4 + $0x78] sm:$0xff]   ;;  %s13128_s6 = sshll.u32 %s21256_s16, 4  ;;  %s21290_s21 = scalar_lea.sflag [#allocation6], %s511_s2  ;;  %s21283_s6 = int_to_ptr.vmem [resolvable:$true] %s13128_s6 }
 0x130   : > { %14624 = vmatprep.subr.bf16.mxu1 %v16471_v9  ;;  %v16487_v25 = vld [vmem:[#allocation4 + $0xf0] sm:$0xff]   ;;  %v16491_v29 = vld [vmem:[#allocation4 + $0xf8] sm:$0xff]   ;;  %v18212_v34 = vld [vmem:[%s18207_s25 + $0x50] sm:$0xf]  ;;  %s17743_s22 = scalar_lea.vmem %s21283_s6, 1024  ;;  %p21592_p1 = scmp.ne.s32.totalorder %s21401_s27, 0 }
 0x131   : > { %v16488_v26 = vld [vmem:[#allocation4 + $0x30] sm:$0xff]   ;;  %v16492_v30 = vld [vmem:[#allocation4 + $0x38] sm:$0xff]   ;;  %v747_v35 = vld [vmem:[%s18207_s25 + $0x54] sm:$0x1]  ;;  %p17744_p13 = scmp.ne.s32.totalorder %s21283_s6, %s17743_s22  ;;  %s17844_s14 = smov [#allocation21]  }
 0x132   : > { %14585 = vmatpush3.bf16.msra.mxu0 %v16472_v10  ;;  %v16489_v27 = vld [vmem:[#allocation4 + $0xb0] sm:$0xff]   ;;  %v16493_v31 = vld [vmem:[#allocation4 + $0xb8] sm:$0xff]   ;;  %v18219_v38 = vld [vmem:[%s18207_s25 + $0x90] sm:$0xf]  ;;  %v13541_v39 = vcombine.low %v18212_v34, %v747_v35  ;;  %s17747_s17 = sshll.u32 %s17844_s14, 4  ;;  %s17748_s17 = int_to_ptr.vmem [resolvable:$false] %s17747_s17 }
 0x133   : > { %14625 = vmatpush3.bf16.msra.mxu1 %v16473_v11  ;;  %14586 = vmatprep.subr.bf16.mxu0 %v16474_v12  ;;  %v744_v32 = vld [vmem:[%s18207_s25 + $0x48] sm:$0xf]  ;;  %v745_v33 = vld [vmem:[%s18207_s25 + $0x4c] sm:$0x1]  ;;  %v18223_v40 = vld [vmem:[%s18207_s25 + $0x98] sm:$0xf]  ;;  %p17745_p0 = pnand %p17744_p13, %p21592_p1  ;;  %p17750_p5 = scmp.lt.s32.totalorder %s21283_s6, %s17748_s17 }
 0x134   : > { %14626 = vmatprep.subr.bf16.mxu1 %v16475_v13  ;;  %v18216_v36 = vcombine.low %v744_v32, %v18212_v34  ;;  %v13540_v37 = vcombine.low %v744_v32, %v745_v33  ;;  %v3387_v43 = vshrl.u32 %v13541_v39, 16  ;;  %v3389_v44 = vshll.u32 %v13541_v39, 16  ;;  %v726_v46 = vld [vmem:[%s18207_s25] sm:$0xf]  ;;  %v727_v47 = vld [vmem:[%s18207_s25 + $0x4] sm:$0x1]  ;;  %vm18802_vm3 = vmand %vm529_vm0, %vm530_vm2 }
 0x135   : > { %v18228_v45 = vcombine.low %v18219_v38, %v18223_v40  ;;  %v18233_v49 = vld [vmem:[%s18207_s25 + $0xa0] sm:$0xf]  ;;  %v18236_v50 = vld [vmem:[%s18207_s25 + $0x8] sm:$0xf]  ;;  %v765_v52 = vld [vmem:[%s18207_s25 + $0x9c] sm:$0x1]  ;;  %v13314_v55 = vcombine.low %v726_v46, %v727_v47  ;;  %p17746_p6 = pneg %p17745_p0 }
 0x136   : > { %14587 = vmatpush3.bf16.msra.mxu0 %v16476_v14  ;;  %21425 = vst [vmem:[#allocation34_spill] sm:$0xff] %v18216_v36  ;;  %1735 = vmatprep.mubr.bf16.mxu0 %v18216_v36  ;;  %v3380_v41 = vshrl.u32 %v13540_v37, 16  ;;  %v3382_v42 = vshll.u32 %v13540_v37, 16  ;;  %v3391_v51 = vrot.slane %v3389_v44, 1  ;;  %v729_v54 = vld [vmem:[%s18207_s25 + $0xc] sm:$0x1]  ;;  %v13331_v58 = vcombine.low %v726_v46, %v18236_v50  ;;  %vm534_vm6 = vmand %vm532_vm1, %vm533_vm4 }
 0x137   : > { %14627 = vmatpush3.bf16.msra.mxu1 %v16477_v15  ;;  %14588 = vmatprep.subr.bf16.mxu0 %v16478_v16  ;;  %v13315_v57 = vcombine.low %v18236_v50, %v729_v54  ;;  %v16506_v59 = vld [vmem:[#allocation4 + $0x140] sm:$0xff]   ;;  %v843_v61 = vshll.u32 %v13314_v55, 16  ;;  %v841_v62 = vshrl.u32 %v13314_v55, 16  ;;  %v767_v3 = vld [vmem:[%s18207_s25 + $0xa4] sm:$0x1]  ;;  %v18256_v7 = vcombine.low %v18223_v40, %v765_v52  ;;  %v16510_v10 = vld [vmem:[#allocation4 + $0x148] sm:$0xff]  }
 0x138   : > { %14628 = vmatprep.subr.bf16.mxu1 %v16479_v17  ;;  %v3384_v48 = vrot.slane %v3382_v42, 1  ;;  %1800 = vmatprep.mubr.bf16.mxu1 %v18228_v45  ;;  %v18247_v60 = vor.u32 %v3391_v51, %v3387_v43  ;;  %v16507_v63 = vld [vmem:[#allocation4 + $0x1c0] sm:$0xff]   ;;  %v18253_v6 = vld [vmem:[%s18207_s25 + $0x58] sm:$0xf]  ;;  %v13324_v14 = vcombine.low %v18233_v49, %v767_v3  ;;  %v16522_v32 = vld [vmem:[#allocation4 + $0x150] sm:$0xff]   ;;  %s17749_s30 = scalar_lea.vmem %s17748_s17, 2048 }
 0x139   : > { %v848_v0 = vshrl.u32 %v13315_v57, 16  ;;  %v850_v1 = vshll.u32 %v13315_v57, 16  ;;  %v845_v4 = vrot.slane %v843_v61, 1  ;;  %v16508_v5 = vld [vmem:[#allocation4 + $0x100] sm:$0xff]   ;;  %v16512_v13 = vld [vmem:[#allocation4 + $0x108] sm:$0xff]   ;;  %v946_v15 = vshll.u32 %v18256_v7, 16  ;;  %vm18814_vm8 = vmor %vm534_vm6, %vm18802_vm3  ;;  %p17751_p9 = scmp.lt.s32.totalorder %s17749_s30, %s17743_s22 }
 0x13a   : > { %14589 = vmatpush3.bf16.msra.mxu0 %v16480_v18  ;;  %v18243_v56 = vor.u32 %v3384_v48, %v3380_v41  ;;  %21427 = vst [vmem:[#allocation36_spill] sm:$0xff] %v18247_v60  ;;  %v16509_v12 = vld [vmem:[#allocation4 + $0x180] sm:$0xff]   ;;  %v16511_v17 = vld [vmem:[#allocation4 + $0x1c8] sm:$0xff]   ;;  %v18266_v18 = vld [vmem:[%s18207_s25 + $0x60] sm:$0xf]  ;;  %v953_v37 = vshll.u32 %v13324_v14, 16 }
 0x13b   : > { %14629 = vmatpush3.bf16.msra.mxu1 %v16481_v19  ;;  %14590 = vmatprep.subr.bf16.mxu0 %v16482_v20  ;;  %v852_v8 = vrot.slane %v850_v1, 1  ;;  %v846_v9 = vor.u32 %v845_v4, %v841_v62  ;;  %v16513_v19 = vld [vmem:[#allocation4 + $0x188] sm:$0xff]   ;;  %v18270_v20 = vcombine.low %v18253_v6, %v18266_v18  ;;  %v763_v33 = vld [vmem:[%s18207_s25 + $0x94] sm:$0x1]  ;;  %v948_v35 = vrot.slane %v946_v15, 1  ;;  %v16523_v44 = vld [vmem:[#allocation4 + $0x1d0] sm:$0xff]   ;;  %p17752_p12 = por %p17751_p9, %p17750_p5 }
 0x13c   : > { %14630 = vmatprep.subr.bf16.mxu1 %v16483_v21  ;;  %21426 = vst [vmem:[#allocation35_spill] sm:$0xff] %v18243_v56  ;;  %v18273_v21 = vld [vmem:[%s18207_s25 + $0xa8] sm:$0xf]  ;;  %v16524_v46 = vld [vmem:[#allocation4 + $0x110] sm:$0xff]   ;;  %v951_v51 = vshrl.u32 %v13324_v14, 16  ;;  %v955_v57 = vrot.slane %v953_v37, 1  ;;  %vm18822_vm9 = vmand %vm529_vm0, %vm596_vm5 }
 0x13d   : > { %v18258_v11 = vor.u32 %v852_v8, %v848_v0  ;;  %21429 = vst [vmem:[#allocation38_spill] sm:$0xff] %v18270_v20  ;;  %v16525_v48 = vld [vmem:[#allocation4 + $0x190] sm:$0xff]   ;;  %v16526_v55 = vld [vmem:[#allocation4 + $0x158] sm:$0xff]   ;;  %v18316_v4 = vld [vmem:[%s18207_s25 + $0x70] sm:$0xf]  ;;  %p17753_p10 = pnand %p17752_p12, %p17746_p6 }
 0x13e   : > { %14591 = vmatpush3.bf16.msra.mxu0 %v16484_v22  ;;  %v769_v22 = vld [vmem:[%s18207_s25 + $0xac] sm:$0x1]  ;;  %v18334_v15 = vld [vmem:[%s18207_s25 + $0xb8] sm:$0xf]  ;;  %v773_v37 = vld [vmem:[%s18207_s25 + $0xbc] sm:$0x1] }
 0x13f   : > { %14631 = vmatpush3.bf16.msra.mxu1 %v16485_v23  ;;  %14592 = vmatprep.subr.bf16.mxu0 %v16486_v24  ;;  %v18263_v16 = vcombine.low %v846_v9, %v18258_v11  ;;  %v18277_v23 = vld [vmem:[%s18207_s25 + $0x10] sm:$0xf]  ;;  %v18282_v24 = vcombine.low %v18233_v49, %v18273_v21  ;;  %v18298_v47 = vcombine.low %v18273_v21, %v769_v22  ;;  %v16527_v62 = vld [vmem:[#allocation4 + $0x1d8] sm:$0xff]   ;;  %v757_v60 = vld [vmem:[%s18207_s25 + $0x7c] sm:$0x1] }
 0x140   : > { %14632 = vmatprep.subr.bf16.mxu1 %v16487_v25  ;;  %v731_v25 = vld [vmem:[%s18207_s25 + $0x14] sm:$0x1]  ;;  %v16528_v0 = vld [vmem:[#allocation4 + $0x118] sm:$0xff]   ;;  %21433 = vst [vmem:[#allocation42_spill] sm:$0xff] %v18334_v15  ;;  %vm599_vm10 = vmand %vm532_vm1, %vm598_vm7 }
 0x141   : > { %21428 = vst [vmem:[#allocation37_spill] sm:$0xff] %v18263_v16  ;;  %v16529_v3 = vld [vmem:[#allocation4 + $0x198] sm:$0xff]   ;;  %vm18832_vm11 = vmor %vm599_vm10, %vm18822_vm9 }
 0x142   : > { %14593 = vmatpush3.bf16.msra.mxu0 %v16488_v26  ;;  %v18286_v26 = vld [vmem:[%s18207_s25 + $0x18] sm:$0xf]  ;;  %vm18934_vm13 = vmand %vm2173_vm12, %vm596_vm5 }
 0x143   : > { %14633 = vmatpush3.bf16.msra.mxu1 %v16489_v27  ;;  %14594 = vmatprep.subr.bf16.mxu0 %v16490_v28  ;;  %v733_v27 = vld [vmem:[%s18207_s25 + $0x1c] sm:$0x1]  ;;  %v944_v28 = vshrl.u32 %v18256_v7, 16  ;;  %v18320_v7 = vor.u32 %v955_v57, %v951_v51 }
 0x144   : > { %14634 = vmatprep.subr.bf16.mxu1 %v16491_v29  ;;  %v13316_v29 = vcombine.low %v18277_v23, %v731_v25 }
 0x146   : > { %14595 = vmatpush3.bf16.msra.mxu0 %v16492_v30  ;;  %v13317_v30 = vcombine.low %v18286_v26, %v733_v27  ;;  %v855_v39 = vshrl.u32 %v13316_v29, 16  ;;  %v857_v41 = vshll.u32 %v13316_v29, 16  ;;  %v735_v27 = vld [vmem:[%s18207_s25 + $0x24] sm:$0x1]  ;;  %v737_v29 = vld [vmem:[%s18207_s25 + $0x2c] sm:$0x1] }
 0x147   : > { %14635 = vmatpush3.bf16.msra.mxu1 %v16493_v31  ;;  %14660 = vmatprep.subr.bf16.mxu0 %v16506_v59  ;;  %v13340_v31 = vcombine.low %v18277_v23, %v18286_v26 }
 0x148   : > { %14700 = vmatprep.subr.bf16.mxu1 %v16507_v63  ;;  %v862_v42 = vshrl.u32 %v13317_v30, 16  ;;  %v864_v43 = vshll.u32 %v13317_v30, 16  ;;  %v859_v52 = vrot.slane %v857_v41, 1  ;;  %v960_v63 = vshll.u32 %v18298_v47, 16  ;;  %v16539_v41 = vld [vmem:[#allocation4 + $0x160] sm:$0xff]  }
 0x149   : > { %1736 = vmatmul.mubr.bf16.vlgmr.msra.gmra.mrb[0].mxu0 %v13331_v58  ;;  %v18301_v58 = vcombine.low %v18219_v38, %v763_v33  ;;  %v18313_v38 = vld [vmem:[%s18207_s25 + $0x68] sm:$0xf] }
 0x14a   : > { %14661 = vmatpush3.bf16.msra.mxu0 %v16508_v5  ;;  %1801 = vmatmul.mubr.bf16.vlgmr.msra.gmra.mrb[0].mxu1 %v18263_v16  ;;  %v866_v54 = vrot.slane %v864_v43, 1  ;;  %v18303_v59 = vor.u32 %v859_v52, %v855_v39  ;;  %v18318_v5 = vor.u32 %v948_v35, %v944_v28  ;;  %v18326_v9 = vcombine.low %v18313_v38, %v18316_v4  ;;  %v18351_v28 = vld [vmem:[%s18207_s25 + $0x28] sm:$0xf]  ;;  %v742_v16 = vld [vmem:[%s18207_s25 + $0x40] sm:$0xf] }
 0x14b   : > { %14662 = vmatprep.subr.bf16.mxu0 %v16510_v10  ;;  %14701 = vmatpush3.bf16.msra.mxu1 %v16509_v12  ;;  %v939_v8 = vshll.u32 %v18301_v58, 16  ;;  %v18329_v10 = vld [vmem:[%s18207_s25 + $0xb0] sm:$0xf]  ;;  %v771_v12 = vld [vmem:[%s18207_s25 + $0xb4] sm:$0x1]  ;;  %v962_v14 = vrot.slane %v960_v63, 1  ;;  %v13319_v33 = vcombine.low %v18351_v28, %v737_v29  ;;  %v13327_v63 = vcombine.low %v18334_v15, %v773_v37 }
 0x14c   : > { %1743 = vmatprep.mubr.bf16.mxu0 %v18270_v20  ;;  %14702 = vmatprep.subr.bf16.mxu1 %v16511_v17  ;;  %v18305_v61 = vor.u32 %v866_v54, %v862_v42  ;;  %21431 = vst [vmem:[#allocation40_spill] sm:$0xff] %v18326_v9  ;;  %21432 = vst [vmem:[#allocation41_spill] sm:$0xff] %v18329_v10  ;;  %v13326_v17 = vcombine.low %v18329_v10, %v771_v12  ;;  %v937_v35 = vshrl.u32 %v18301_v58, 16  ;;  %v16540_v42 = vld [vmem:[#allocation4 + $0x1e0] sm:$0xff]   ;;  %v18387_v37 = vld [vmem:[%s18207_s25 + $0xc0] sm:$0xf] }
 0x14d   : > { %1808 = vmatprep.mubr.bf16.mxu1 %v18282_v24  ;;  %v18342_v22 = vcombine.low %v18318_v5, %v18320_v7  ;;  %v18347_v25 = vcombine.low %v18329_v10, %v18334_v15  ;;  %v941_v43 = vrot.slane %v939_v8, 1  ;;  %v878_v51 = vshll.u32 %v13319_v33, 16  ;;  %v16541_v54 = vld [vmem:[#allocation4 + $0x120] sm:$0xff]   ;;  %21435 = vst [vmem:[#allocation44_spill] sm:$0xff] %v18387_v37  ;;  %v16578_v20 = vld [vmem:[#allocation4 + $0x58] sm:$0xff]  }
 0x14e   : > { %14663 = vmatpush3.bf16.msra.mxu0 %v16512_v13  ;;  %v18310_v1 = vcombine.low %v18303_v59, %v18305_v61  ;;  %v958_v13 = vshrl.u32 %v18298_v47, 16  ;;  %v965_v30 = vshrl.u32 %v13326_v17, 16  ;;  %v759_v15 = vld [vmem:[%s18207_s25 + $0x84] sm:$0x1]  ;;  %v16597_v10 = vld [vmem:[#allocation4 + $0x238] sm:$0xff]  }
 0x14f   : > { %14664 = vmatprep.subr.bf16.mxu0 %v16522_v32  ;;  %14703 = vmatpush3.bf16.msra.mxu1 %v16513_v19  ;;  %v18338_v19 = vld [vmem:[%s18207_s25 + $0x20] sm:$0xf]  ;;  %v880_v58 = vrot.slane %v878_v51, 1 }
 0x150   : > { %14704 = vmatprep.subr.bf16.mxu1 %v16523_v44  ;;  %21430 = vst [vmem:[#allocation39_spill] sm:$0xff] %v18310_v1  ;;  %v13318_v32 = vcombine.low %v18338_v19, %v735_v27  ;;  %v13349_v39 = vcombine.low %v18338_v19, %v18351_v28  ;;  %v942_v27 = vor.u32 %v941_v43, %v937_v35 }
 0x151   : > { %1744 = vmatmul.mubr.bf16.gmra.mrb[4].mxu0 %v13340_v31  ;;  %v967_v31 = vshll.u32 %v13326_v17, 16  ;;  %v16545_v17 = vld [vmem:[#allocation4 + $0x128] sm:$0xff]  }
 0x152   : > { %14665 = vmatpush3.bf16.msra.mxu0 %v16524_v46  ;;  %1809 = vmatmul.mubr.bf16.gmra.mrb[4].mxu1 %v18310_v1  ;;  %v869_v46 = vshrl.u32 %v13318_v32, 16  ;;  %v871_v47 = vshll.u32 %v13318_v32, 16  ;;  %v974_v32 = vshll.u32 %v13327_v63, 16 }
 0x153   : > { %14666 = vmatprep.subr.bf16.mxu0 %v16526_v55  ;;  %14705 = vmatpush3.bf16.msra.mxu1 %v16525_v48  ;;  %v969_v44 = vrot.slane %v967_v31, 1  ;;  %v876_v48 = vshrl.u32 %v13319_v33, 16  ;;  %v18361_v55 = vor.u32 %v962_v14, %v958_v13  ;;  %v16544_v14 = vld [vmem:[#allocation4 + $0x1e8] sm:$0xff]   ;;  %v18384_v33 = vld [vmem:[%s18207_s25 + $0x80] sm:$0xf] }
 0x154   : > { %14706 = vmatprep.subr.bf16.mxu1 %v16527_v62  ;;  %1751 = vmatprep.mubr.bf16.mxu0 %v18326_v9  ;;  %v873_v52 = vrot.slane %v871_v47, 1  ;;  %v16542_v62 = vld [vmem:[#allocation4 + $0x1a0] sm:$0xff]   ;;  %v18381_v31 = vld [vmem:[%s18207_s25 + $0x78] sm:$0xf] }
 0x155   : > { %1816 = vmatprep.mubr.bf16.mxu1 %v18347_v25  ;;  %v18363_v57 = vor.u32 %v969_v44, %v965_v30  ;;  %v18374_v13 = vor.u32 %v880_v58, %v876_v48  ;;  %v16546_v30 = vld [vmem:[#allocation4 + $0x1a8] sm:$0xff]   ;;  %v18392_v35 = vcombine.low %v18381_v31, %v18384_v33  ;;  %v18401_v44 = vld [vmem:[%s18207_s25 + $0x30] sm:$0xf]  ;;  %v972_v58 = vshrl.u32 %v13327_v63, 16 }
 0x156   : > { %14667 = vmatpush3.bf16.msra.mxu0 %v16528_v0  ;;  %v18366_v0 = vor.u32 %v873_v52, %v869_v46  ;;  %v739_v46 = vld [vmem:[%s18207_s25 + $0x34] sm:$0x1]  ;;  %v18405_v47 = vld [vmem:[%s18207_s25 + $0x38] sm:$0xf]  ;;  %v741_v48 = vld [vmem:[%s18207_s25 + $0x3c] sm:$0x1] }
 0x157   : > { %14707 = vmatpush3.bf16.msra.mxu1 %v16529_v3  ;;  %14668 = vmatprep.subr.bf16.mxu0 %v16539_v41  ;;  %v16543_v3 = vld [vmem:[#allocation4 + $0x168] sm:$0xff]   ;;  %v18370_v8 = vcombine.low %v18361_v55, %v18363_v57  ;;  %21436 = vst [vmem:[#allocation45_spill] sm:$0xff] %v18392_v35  ;;  %v776_v41 = vld [vmem:[%s18207_s25 + $0xc8] sm:$0xf]  ;;  %v13320_v51 = vcombine.low %v18401_v44, %v739_v46 }
 0x158   : > { %14708 = vmatprep.subr.bf16.mxu1 %v16540_v42  ;;  %v18378_v29 = vcombine.low %v18366_v0, %v18374_v13  ;;  %v18398_v43 = vcombine.low %v18387_v37, %v776_v41  ;;  %v13358_v52 = vcombine.low %v18401_v44, %v18405_v47 }
 0x159   : > { %1752 = vmatmul.mubr.bf16.gmra.mrb[8].mxu0 %v13349_v39  ;;  %v775_v39 = vld [vmem:[%s18207_s25 + $0xc4] sm:$0x1]  ;;  %v883_v2 = vshrl.u32 %v13320_v51, 16  ;;  %v885_v46 = vshll.u32 %v13320_v51, 16 }
 0x15a   : > { %14669 = vmatpush3.bf16.msra.mxu0 %v16541_v54  ;;  %21434 = vst [vmem:[#allocation43_spill] sm:$0xff] %v18378_v29  ;;  %1817 = vmatmul.mubr.bf16.gmra.mrb[8].mxu1 %v18378_v29  ;;  %v13328_v42 = vcombine.low %v18387_v37, %v775_v39  ;;  %v18413_v54 = vcombine.low %v942_v27, %v18318_v5  ;;  %v755_v29 = vld [vmem:[%s18207_s25 + $0x74] sm:$0x1]  ;;  %v743_v37 = vld [vmem:[%s18207_s25 + $0x44] sm:$0x1] }
 0x15b   : > { %14709 = vmatpush3.bf16.msra.mxu1 %v16542_v62  ;;  %14670 = vmatprep.subr.bf16.mxu0 %v16543_v3  ;;  %v976_v62 = vrot.slane %v974_v32, 1  ;;  %v13321_v39 = vcombine.low %v18405_v47, %v741_v48  ;;  %v887_v5 = vrot.slane %v885_v46, 1  ;;  %v16558_v32 = vld [vmem:[#allocation4 + $0x130] sm:$0xff]   ;;  %v16562_v46 = vld [vmem:[#allocation4 + $0x138] sm:$0xff]  }
 0x15c   : > { %14710 = vmatprep.subr.bf16.mxu1 %v16544_v14  ;;  %1759 = vmatprep.mubr.bf16.mxu0 %v18392_v35  ;;  %v979_v3 = vshrl.u32 %v13328_v42, 16  ;;  %v981_v14 = vshll.u32 %v13328_v42, 16  ;;  %v16559_v42 = vld [vmem:[#allocation4 + $0x1b0] sm:$0xff]  }
 0x15d   : > { %1824 = vmatprep.mubr.bf16.mxu1 %v18398_v43  ;;  %v890_v63 = vshrl.u32 %v13321_v39, 16  ;;  %v892_v27 = vshll.u32 %v13321_v39, 16  ;;  %v977_v35 = vor.u32 %v976_v62, %v972_v58  ;;  %v18423_v9 = vor.u32 %v887_v5, %v883_v2  ;;  %v16563_v2 = vld [vmem:[#allocation4 + $0x1b8] sm:$0xff]   ;;  %v780_v58 = vld [vmem:[%s18207_s25 + $0xd8] sm:$0xf] }
 0x15e   : > { %14671 = vmatpush3.bf16.msra.mxu0 %v16545_v17  ;;  %v16556_v17 = vld [vmem:[#allocation4 + $0x170] sm:$0xff]   ;;  %v983_v53 = vrot.slane %v981_v14, 1  ;;  %v16560_v14 = vld [vmem:[#allocation4 + $0x178] sm:$0xff]  }
 0x15f   : > { %14711 = vmatpush3.bf16.msra.mxu1 %v16546_v30  ;;  %v16557_v30 = vld [vmem:[#allocation4 + $0x1f0] sm:$0xff]   ;;  %14672 = vmatprep.subr.bf16.mxu0 %v16556_v17  ;;  %v894_v51 = vrot.slane %v892_v27, 1  ;;  %v16561_v17 = vld [vmem:[#allocation4 + $0x1f8] sm:$0xff]   ;;  %v16565_v27 = vld [vmem:[#allocation4 + $0x200] sm:$0xff]  }
 0x160   : > { %14712 = vmatprep.subr.bf16.mxu1 %v16557_v30  ;;  %v18420_v48 = vor.u32 %v983_v53, %v979_v3  ;;  %v18432_v53 = vcombine.low %v18212_v34, %v18253_v6  ;;  %v18440_v3 = vld [vmem:[%s18207_s25 + $0xe0] sm:$0xf]  ;;  %v18447_v34 = vcombine.low %v18320_v7, %v18361_v55  ;;  %v16566_v6 = vld [vmem:[#allocation4 + $0x40] sm:$0xff]   ;;  %v18456_v7 = vcombine.low %v18236_v50, %v18277_v23 }
 0x161   : > { %1760 = vmatmul.mubr.bf16.gmra.mrb[12].mxu0 %v13358_v52  ;;  %v777_v52 = vld [vmem:[%s18207_s25 + $0xcc] sm:$0x1]  ;;  %v18428_v39 = vor.u32 %v894_v51, %v890_v63  ;;  %v18443_v63 = vcombine.low %v780_v58, %v18440_v3  ;;  %v16567_v55 = vld [vmem:[#allocation4] sm:$0xff]  }
 0x162   : > { %1865 = vmatprep.mubr.bf16.mxu0 %v18413_v54  ;;  %14673 = vmatpush3.bf16.msra.mxu0 %v16558_v32  ;;  %v18426_v30 = vcombine.low %v977_v35, %v18420_v48  ;;  %v13329_v5 = vcombine.low %v776_v41, %v777_v52  ;;  %v16568_v41 = vld [vmem:[#allocation4 + $0x208] sm:$0xff]   ;;  %v18459_v52 = vld [vmem:[%s18207_s25 + $0xe8] sm:$0xf]  ;;  %v18462_v51 = vld [vmem:[%s18207_s25 + $0xf0] sm:$0xf] }
 0x163   : > { %14713 = vmatpush3.bf16.msra.mxu1 %v16559_v42  ;;  %14674 = vmatprep.subr.bf16.mxu0 %v16560_v14  ;;  %v18437_v62 = vcombine.low %v18423_v9, %v18428_v39  ;;  %21438 = vst [vmem:[#allocation47_spill] sm:$0xff] %v18443_v63  ;;  %v751_v42 = vld [vmem:[%s18207_s25 + $0x64] sm:$0x1]  ;;  %v18466_v14 = vcombine.low %v18459_v52, %v18462_v51  ;;  %v753_v58 = vld [vmem:[%s18207_s25 + $0x6c] sm:$0x1] }
 0x164   : > { %14714 = vmatprep.subr.bf16.mxu1 %v16561_v17  ;;  %v988_v32 = vshll.u32 %v13329_v5, 16  ;;  %v16573_v17 = vld [vmem:[#allocation4 + $0x210] sm:$0xff]   ;;  %v986_v50 = vshrl.u32 %v13329_v5, 16  ;;  %v13543_v12 = vcombine.low %v18266_v18, %v751_v42  ;;  %v16582_v42 = vld [vmem:[#allocation4 + $0x220] sm:$0xff]  }
 0x165   : > { %21437 = vst [vmem:[#allocation46_spill] sm:$0xff] %v18437_v62  ;;  %1825 = vmatmul.mubr.bf16.gmra.mrb[12].mxu1 %v18437_v62  ;;  %21439 = vst [vmem:[#allocation48_spill] sm:$0xff] %v18466_v14  ;;  %v16570_v62 = vld [vmem:[#allocation4 + $0x8] sm:$0xff]   ;;  %v16574_v5 = vld [vmem:[#allocation4 + $0x50] sm:$0xff]  }
 0x166   : > { %14675 = vmatpush3.bf16.msra.mxu0 %v16562_v46  ;;  %1930 = vmatprep.mubr.bf16.mxu1 %v18432_v53  ;;  %v16569_v46 = vld [vmem:[#allocation4 + $0x48] sm:$0xff]   ;;  %v990_v23 = vrot.slane %v988_v32, 1  ;;  %v18493_v32 = vcombine.low %v18286_v26, %v18338_v19 }
 0x167   : > { %14715 = vmatpush3.bf16.msra.mxu1 %v16563_v2  ;;  %16172 = vmatprep.subr.bf16.mxu0 %v16565_v27  ;;  %v18470_v2 = vcombine.low %v18266_v18, %v18313_v38  ;;  %v13544_v18 = vcombine.low %v18313_v38, %v753_v58  ;;  %v13545_v38 = vcombine.low %v18316_v4, %v755_v29  ;;  %v16586_v19 = vld [vmem:[#allocation4 + $0x228] sm:$0xff]   ;;  %v16579_v58 = vld [vmem:[#allocation4 + $0x18] sm:$0xff]  }
 0x168   : > { %14752 = vmatprep.subr.bf16.mxu1 %v16566_v6  ;;  %v16577_v6 = vld [vmem:[#allocation4 + $0x218] sm:$0xff]  }
 0x169   : > { %1866 = vmatmul.mubr.bf16.vlgmr.msra.gmra.mrb[16].mxu0 %v18443_v63  ;;  %v18512_v29 = vld [vmem:[%s18207_s25 + $0x108] sm:$0xf]  ;;  %v3408_v56 = vshrl.u32 %v13544_v18, 16 }
 0x16a   : > { %16173 = vmatpush3.bf16.msra.mxu0 %v16565_v27  ;;  %1873 = vmatprep.mubr.bf16.mxu0 %v18447_v34  ;;  %v18474_v27 = vcombine.low %v18363_v57, %v977_v35  ;;  %v18483_v57 = vld [vmem:[%s18207_s25 + $0xf8] sm:$0xf]  ;;  %v18486_v35 = vld [vmem:[%s18207_s25 + $0x100] sm:$0xf] }
 0x16b   : > { %16174 = vmatprep.subr.bf16.mxu0 %v16568_v41 }
 0x16d   : > { %1931 = vmatmul.mubr.bf16.vlgmr.msra.gmra.mrb[16].mxu1 %v18456_v7 }
 0x16e   : > { %16175 = vmatpush3.bf16.msra.mxu0 %v16568_v41  ;;  %14753 = vmatpush3.bf16.msra.mxu1 %v16567_v55  ;;  %v18488_v41 = vor.u32 %v990_v23, %v986_v50  ;;  %v16576_v55 = vld [vmem:[#allocation4 + $0x10] sm:$0xff]   ;;  %v18501_v50 = vcombine.low %v18316_v4, %v18381_v31  ;;  %v16583_v23 = vld [vmem:[#allocation4 + $0x60] sm:$0xff]  }
 0x16f   : > { %16176 = vmatprep.subr.bf16.mxu0 %v16573_v17  ;;  %14754 = vmatprep.subr.bf16.mxu1 %v16569_v46  ;;  %v3403_v46 = vshll.u32 %v13543_v12, 16 }
 0x170   : > { %1938 = vmatprep.mubr.bf16.mxu1 %v18470_v2  ;;  %21440 = vst [vmem:[#allocation49_spill] sm:$0xff] %v18488_v41  ;;  %v18506_v26 = vcombine.low %v18420_v48, %v18488_v41  ;;  %v18515_v48 = vld [vmem:[%s18207_s25 + $0x110] sm:$0xf] }
 0x171   : > { %1874 = vmatmul.mubr.bf16.gmra.mrb[20].mxu0 %v18466_v14  ;;  %v3405_v4 = vrot.slane %v3403_v46, 1  ;;  %21442 = vst [vmem:[#allocation51_spill] sm:$0xff] %v18515_v48  ;;  %v16592_v46 = vld [vmem:[#allocation4 + $0x230] sm:$0xff]   ;;  %v18528_v36 = vcombine.low %v18512_v29, %v18515_v48 }
 0x172   : > { %16177 = vmatpush3.bf16.msra.mxu0 %v16573_v17  ;;  %1881 = vmatprep.mubr.bf16.mxu0 %v18474_v27  ;;  %v18497_v17 = vcombine.low %v18483_v57, %v18486_v35 }
 0x173   : > { %16178 = vmatprep.subr.bf16.mxu0 %v16577_v6  ;;  %14755 = vmatpush3.bf16.msra.mxu1 %v16570_v62  ;;  %v3410_v62 = vshll.u32 %v13544_v18, 16  ;;  %21443 = vst [vmem:[#allocation52_spill] sm:$0xff] %v18528_v36  ;;  %v16587_v18 = vld [vmem:[#allocation4 + $0x68] sm:$0xff]  }
 0x174   : > { %21441 = vst [vmem:[#allocation50_spill] sm:$0xff] %v18497_v17  ;;  %14756 = vmatprep.subr.bf16.mxu1 %v16574_v5  ;;  %v3401_v5 = vshrl.u32 %v13543_v12, 16  ;;  %v3417_v12 = vshll.u32 %v13545_v38, 16 }
 0x175   : > { %1939 = vmatmul.mubr.bf16.gmra.mrb[20].mxu1 %v18493_v32  ;;  %v3412_v1 = vrot.slane %v3410_v62, 1  ;;  %v3415_v62 = vshrl.u32 %v13545_v38, 16  ;;  %v18560_v38 = vcombine.low %v18405_v47, %v742_v16 }
 0x176   : > { %16179 = vmatpush3.bf16.msra.mxu0 %v16577_v6  ;;  %1946 = vmatprep.mubr.bf16.mxu1 %v18501_v50  ;;  %v18518_v6 = vld [vmem:[%s18207_s25 + $0x88] sm:$0xf]  ;;  %v3419_v48 = vrot.slane %v3417_v12, 1 }
 0x177   : > { %16180 = vmatprep.subr.bf16.mxu0 %v16582_v42  ;;  %14757 = vmatpush3.bf16.msra.mxu1 %v16576_v55  ;;  %v16585_v55 = vld [vmem:[#allocation4 + $0x20] sm:$0xff]   ;;  %v18537_v41 = vcombine.low %v18384_v33, %v18518_v6 }
 0x178   : > { %14758 = vmatprep.subr.bf16.mxu1 %v16578_v20  ;;  %v18524_v20 = vcombine.low %v18351_v28, %v18401_v44  ;;  %v13330_v28 = vcombine.low %v742_v16, %v743_v37  ;;  %v18539_v44 = vor.u32 %v3412_v1, %v3408_v56  ;;  %v18552_v56 = vor.u32 %v3419_v48, %v3415_v62  ;;  %v16596_v1 = vld [vmem:[#allocation4 + $0x30] sm:$0xff]   ;;  %v16600_v48 = vld [vmem:[#allocation4 + $0xc0] sm:$0xff]   ;;  %v16604_v62 = vld [vmem:[#allocation4 + $0xc8] sm:$0xff]  }
 0x179   : > { %1882 = vmatmul.mubr.bf16.gmra.mrb[24].mxu0 %v18497_v17 }
 0x17a   : > { %16181 = vmatpush3.bf16.msra.mxu0 %v16582_v42  ;;  %1889 = vmatprep.mubr.bf16.mxu0 %v18506_v26  ;;  %v18532_v42 = vor.u32 %v3405_v4, %v3401_v5  ;;  %v13546_v5 = vcombine.low %v18381_v31, %v757_v60  ;;  %v1000_v4 = vshll.u32 %v13330_v28, 16  ;;  %v13547_v60 = vcombine.low %v18384_v33, %v759_v15  ;;  %v16602_v33 = vld [vmem:[#allocation4 + $0x80] sm:$0xff]  }
 0x17b   : > { %16182 = vmatprep.subr.bf16.mxu0 %v16586_v19  ;;  %14759 = vmatpush3.bf16.msra.mxu1 %v16579_v58  ;;  %v18543_v58 = vcombine.low %v18258_v11, %v18303_v59  ;;  %v16593_v11 = vld [vmem:[#allocation4 + $0x70] sm:$0xff]   ;;  %v998_v59 = vshrl.u32 %v13330_v28, 16  ;;  %v13563_v31 = vcombine.low %v18539_v44, %v18552_v56  ;;  %v18564_v15 = vcombine.low %v18305_v61, %v18366_v0 }
 0x17c   : > { %14760 = vmatprep.subr.bf16.mxu1 %v16583_v23  ;;  %v16588_v23 = vld [vmem:[#allocation4 + $0x28] sm:$0xff]   ;;  %v18549_v37 = vcombine.low %v18532_v42, %v18539_v44  ;;  %v1002_v12 = vrot.slane %v1000_v4, 1  ;;  %v18568_v28 = vcombine.low %v18374_v13, %v18423_v9  ;;  %v3429_v16 = vshrl.u32 %v13547_v60, 16  ;;  %v16608_v4 = vld [vmem:[#allocation4 + $0xd0] sm:$0xff]   ;;  %v16727_v44 = vld [vmem:[#allocation4 + $0x138] sm:$0xff]  }
 0x17d   : > { %1947 = vmatmul.mubr.bf16.gmra.mrb[24].mxu1 %v18524_v20  ;;  %v3431_v47 = vshll.u32 %v13547_v60, 16  ;;  %v16606_v9 = vld [vmem:[#allocation4 + $0x88] sm:$0xff]  }
 0x17e   : > { %16183 = vmatpush3.bf16.msra.mxu0 %v16586_v19  ;;  %1954 = vmatprep.mubr.bf16.mxu1 %v18537_v41  ;;  %v16598_v19 = vld [vmem:[#allocation4 + $0x78] sm:$0xff]  }
 0x17f   : > { %16184 = vmatprep.subr.bf16.mxu0 %v16592_v46  ;;  %14761 = vmatpush3.bf16.msra.mxu1 %v16585_v55  ;;  %v3424_v55 = vshll.u32 %v13546_v5, 16  ;;  %v3433_v0 = vrot.slane %v3431_v47, 1  ;;  %v16615_v47 = vld [vmem:[#allocation4 + $0x118] sm:$0xff]  }
 0x180   : > { %14762 = vmatprep.subr.bf16.mxu1 %v16587_v18  ;;  %v3422_v18 = vshrl.u32 %v13546_v5, 16  ;;  %v16599_v5 = vld [vmem:[#allocation4 + $0x38] sm:$0xff]  }
 0x181   : > { %1890 = vmatmul.mubr.bf16.gmra.mrb[28].mxu0 %v18528_v36  ;;  %v18576_v13 = vor.u32 %v3433_v0, %v3429_v16  ;;  %v16620_v16 = vld [vmem:[#allocation4 + $0xe8] sm:$0xff]   ;;  %v16619_v0 = vld [vmem:[#allocation4 + $0x120] sm:$0xff]  }
 0x182   : > { %16185 = vmatpush3.bf16.msra.mxu0 %v16592_v46  ;;  %16188 = vmatprep.mubr.bf16.mxu0 %v18543_v58  ;;  %v3426_v46 = vrot.slane %v3424_v55, 1  ;;  %v16607_v55 = vld [vmem:[#allocation4 + $0x108] sm:$0xff]  }
 0x183   : > { %16186 = vmatprep.subr.bf16.mxu0 %v16597_v10  ;;  %14763 = vmatpush3.bf16.msra.mxu1 %v16588_v23  ;;  %v1003_v23 = vor.u32 %v1002_v12, %v998_v59  ;;  %v16610_v59 = vld [vmem:[#allocation4 + $0x90] sm:$0xff]  }
 0x184   : > { %14764 = vmatprep.subr.bf16.mxu1 %v16593_v11  ;;  %v18572_v61 = vor.u32 %v3426_v46, %v3422_v18  ;;  %v16603_v11 = vld [vmem:[#allocation4 + $0x100] sm:$0xff]   ;;  %v16609_v12 = vld [vmem:[#allocation4 + $0x150] sm:$0xff]   ;;  %v16614_v18 = vld [vmem:[#allocation4 + $0x98] sm:$0xff]  }
 0x185   : > { %1955 = vmatmul.mubr.bf16.gmra.mrb[28].mxu1 %v18560_v38  ;;  %v16618_v46 = vld [vmem:[#allocation4 + $0xa0] sm:$0xff]  }
 0x186   : > { %16187 = vmatpush3.bf16.msra.mxu0 %v16597_v10  ;;  %2870 = vmatprep.mubr.bf16.mxu1 %v18443_v63  ;;  %v16601_v10 = vld [vmem:[#allocation4 + $0x140] sm:$0xff]   ;;  %v13566_v60 = vcombine.low %v18572_v61, %v18576_v13 }
 0x187   : > { %14792 = vmatprep.subr.bf16.mxu0 %v16600_v48  ;;  %14765 = vmatpush3.bf16.msra.mxu1 %v16596_v1  ;;  %v16605_v1 = vld [vmem:[#allocation4 + $0x148] sm:$0xff]   ;;  %v16612_v48 = vld [vmem:[#allocation4 + $0xd8] sm:$0xff]  }
 0x188   : > { %14766 = vmatprep.subr.bf16.mxu1 %v16598_v19  ;;  %v18581_v19 = vcombine.low %v18428_v39, %v1003_v23  ;;  %v16616_v39 = vld [vmem:[#allocation4 + $0xe0] sm:$0xff]   ;;  %v16626_v23 = vld [vmem:[#allocation4 + $0xb0] sm:$0xff]  }
 0x189   : > { %16189 = vmatmul.mubr.bf16.vlgmr.msra.gmra.mrb[32].mxu0 %v18564_v15 }
 0x18a   : > { %14793 = vmatpush3.bf16.msra.mxu0 %v16602_v33  ;;  %16192 = vmatprep.mubr.bf16.mxu0 %v18568_v28  ;;  %v16611_v33 = vld [vmem:[#allocation4 + $0x110] sm:$0xff]  }
 0x18b   : > { %14794 = vmatprep.subr.bf16.mxu0 %v16604_v62  ;;  %14767 = vmatpush3.bf16.msra.mxu1 %v16599_v5  ;;  %v16617_v62 = vld [vmem:[#allocation4 + $0x160] sm:$0xff]   ;;  %v16624_v5 = vld [vmem:[#allocation4 + $0xf0] sm:$0xff]  }
 0x18c   : > { %14832 = vmatprep.subr.bf16.mxu1 %v16601_v10  ;;  %v16621_v10 = vld [vmem:[#allocation4 + $0x168] sm:$0xff]  }
 0x18e   : > { %14795 = vmatpush3.bf16.msra.mxu0 %v16606_v9  ;;  %2871 = vmatmul.mubr.bf16.vlgmr.msra.gmra.mrb[32].mxu1 %v18228_v45  ;;  %v16613_v45 = vld [vmem:[#allocation4 + $0x158] sm:$0xff]   ;;  %v16623_v9 = vld [vmem:[#allocation4 + $0x128] sm:$0xff]  }
 0x18f   : > { %14796 = vmatprep.subr.bf16.mxu0 %v16608_v4  ;;  %14833 = vmatpush3.bf16.msra.mxu1 %v16603_v11  ;;  %v16625_v4 = vld [vmem:[#allocation4 + $0x170] sm:$0xff]   ;;  %v16630_v11 = vld [vmem:[#allocation4 + $0xb8] sm:$0xff]  }
 0x190   : > { %2878 = vmatprep.mubr.bf16.mxu1 %v18466_v14  ;;  %14834 = vmatprep.subr.bf16.mxu1 %v16605_v1  ;;  %v16632_v1 = vld [vmem:[#allocation4 + $0x1c0] sm:$0xff]  }
 0x191   : > { %16193 = vmatmul.mubr.bf16.gmra.mrb[36].mxu0 %v18581_v19 }
 0x192   : > { %14797 = vmatpush3.bf16.msra.mxu0 %v16610_v59  ;;  %2935 = vmatprep.mubr.bf16.mxu0 %v18456_v7  ;;  %v16622_v7 = vld [vmem:[#allocation4 + $0xa8] sm:$0xff]   ;;  %v16627_v59 = vld [vmem:[#allocation4 + $0x130] sm:$0xff]  }
 0x193   : > { %14798 = vmatprep.subr.bf16.mxu0 %v16612_v48  ;;  %14835 = vmatpush3.bf16.msra.mxu1 %v16607_v55  ;;  %v16629_v48 = vld [vmem:[#allocation4 + $0x178] sm:$0xff]  }
 0x194   : > { %14836 = vmatprep.subr.bf16.mxu1 %v16609_v12  ;;  %v761_v55 = vld [vmem:[%s18207_s25 + $0x8c] sm:$0x1]  ;;  %v16635_v12 = vld [vmem:[#allocation4 + $0x1c8] sm:$0xff]  }
 0x196   : > { %14799 = vmatpush3.bf16.msra.mxu0 %v16614_v18  ;;  %2879 = vmatmul.mubr.bf16.gmra.mrb[36].mxu1 %v18282_v24  ;;  %v16628_v24 = vld [vmem:[#allocation4 + $0xf8] sm:$0xff]  }
 0x197   : > { %14800 = vmatprep.subr.bf16.mxu0 %v16616_v39  ;;  %14837 = vmatpush3.bf16.msra.mxu1 %v16611_v33  ;;  %v16631_v18 = vld [vmem:[#allocation4 + $0x138] sm:$0xff]   ;;  %v16633_v39 = vld [vmem:[#allocation4 + $0x200] sm:$0xff]   ;;  %v16637_v33 = vld [vmem:[#allocation4 + $0x188] sm:$0xff]  }
 0x198   : > { %2886 = vmatprep.mubr.bf16.mxu1 %v18497_v17  ;;  %14838 = vmatprep.subr.bf16.mxu1 %v16613_v45  ;;  %v13556_v45 = vcombine.low %v18518_v6, %v761_v55  ;;  %v16652_v55 = vld [vmem:[#allocation4 + $0x1b0] sm:$0xff]  }
 0x19a   : > { %14801 = vmatpush3.bf16.msra.mxu0 %v16618_v46  ;;  %v16638_v46 = vld [vmem:[#allocation4 + $0x1d0] sm:$0xff]   ;;  %v3519_v6 = vshrl.u32 %v13556_v45, 16 }
 0x19b   : > { %14802 = vmatprep.subr.bf16.mxu0 %v16620_v16  ;;  %14839 = vmatpush3.bf16.msra.mxu1 %v16615_v47  ;;  %v16640_v16 = vld [vmem:[#allocation4 + $0x190] sm:$0xff]   ;;  %v16641_v47 = vld [vmem:[#allocation4 + $0x1d8] sm:$0xff]  }
 0x19c   : > { %14840 = vmatprep.subr.bf16.mxu1 %v16617_v62  ;;  %v3521_v62 = vshll.u32 %v13556_v45, 16  ;;  %v16661_v45 = vld [vmem:[#allocation4 + $0x48] sm:$0xff]  }
 0x19e   : > { %14803 = vmatpush3.bf16.msra.mxu0 %v16622_v7  ;;  %2887 = vmatmul.mubr.bf16.gmra.mrb[40].mxu1 %v18347_v25  ;;  %v16634_v25 = vld [vmem:[#allocation4 + $0x180] sm:$0xff]   ;;  %v16643_v7 = vld [vmem:[#allocation4 + $0x198] sm:$0xff]  }
 0x19f   : > { %14804 = vmatprep.subr.bf16.mxu0 %v16624_v5  ;;  %14841 = vmatpush3.bf16.msra.mxu1 %v16619_v0  ;;  %v18603_v5 = vcombine.low %v18552_v56, %v18572_v61  ;;  %v3523_v0 = vrot.slane %v3521_v62, 1  ;;  %v778_v62 = vld [vmem:[%s18207_s25 + $0xd0] sm:$0xf] }
 0x1a0   : > { %2894 = vmatprep.mubr.bf16.mxu1 %v18528_v36  ;;  %14842 = vmatprep.subr.bf16.mxu1 %v16621_v10  ;;  %v16644_v10 = vld [vmem:[#allocation4 + $0x1e0] sm:$0xff]  }
 0x1a1   : > { %v16733_v61 = vld [vmem:[#allocation4 + $0x40] sm:$0xff]  }
 0x1a2   : > { %14805 = vmatpush3.bf16.msra.mxu0 %v16626_v23  ;;  %v3524_v23 = vor.u32 %v3523_v0, %v3519_v6  ;;  %v16669_v6 = vld [vmem:[#allocation4 + $0x10] sm:$0xff]   ;;  %v16664_v0 = vld [vmem:[#allocation4 + $0x88] sm:$0xff]  }
 0x1a3   : > { %14806 = vmatprep.subr.bf16.mxu0 %v16628_v24  ;;  %14843 = vmatpush3.bf16.msra.mxu1 %v16623_v9  ;;  %v16642_v24 = vld [vmem:[#allocation4 + $0x218] sm:$0xff]   ;;  %v16646_v9 = vld [vmem:[#allocation4 + $0x1a0] sm:$0xff]  }
 0x1a4   : > { %14844 = vmatprep.subr.bf16.mxu1 %v16625_v4  ;;  %v18606_v4 = vcombine.low %v18576_v13, %v3524_v23  ;;  %v17444_v13 = vld [vmem:[%s18207_s25 + $0x100] sm:$0xf] }
 0x1a6   : > { %14807 = vmatpush3.bf16.msra.mxu0 %v16630_v11  ;;  %2895 = vmatmul.mubr.bf16.gmra.mrb[44].mxu1 %v18398_v43  ;;  %v16636_v43 = vld [vmem:[#allocation4 + $0x208] sm:$0xff]   ;;  %v16645_v11 = vld [vmem:[#allocation4 + $0x220] sm:$0xff]  }
 0x1a7   : > { %14872 = vmatprep.subr.bf16.mxu0 %v16632_v1  ;;  %14845 = vmatpush3.bf16.msra.mxu1 %v16627_v59  ;;  %v16649_v1 = vld [vmem:[#allocation4 + $0x1a8] sm:$0xff]   ;;  %v16650_v59 = vld [vmem:[#allocation4 + $0x1f0] sm:$0xff]  }
 0x1a8   : > { %3000 = vmatprep.mubr.bf16.mxu1 %v18543_v58  ;;  %14846 = vmatprep.subr.bf16.mxu1 %v16629_v48  ;;  %v16648_v48 = vld [vmem:[#allocation4 + $0x228] sm:$0xff]  }
 0x1a9   : > { %2936 = vmatmul.mubr.bf16.vlgmr.msra.gmra.mrb[40].mxu0 %v18413_v54 }
 0x1aa   : > { %14873 = vmatpush3.bf16.msra.mxu0 %v16634_v25  ;;  %2943 = vmatprep.mubr.bf16.mxu0 %v18493_v32  ;;  %v16639_v32 = vld [vmem:[#allocation4 + $0x210] sm:$0xff]   ;;  %v18614_v25 = vcombine.low %v18440_v3, %v18459_v52  ;;  %v16654_v3 = vld [vmem:[#allocation4 + $0x238] sm:$0xff]   ;;  %v16659_v52 = vld [vmem:[#allocation4] sm:$0xff]  }
 0x1ab   : > { %14874 = vmatprep.subr.bf16.mxu0 %v16635_v12  ;;  %14847 = vmatpush3.bf16.msra.mxu1 %v16631_v18  ;;  %v16653_v12 = vld [vmem:[#allocation4 + $0x1f8] sm:$0xff]  }
 0x1ac   : > { %16196 = vmatprep.subr.bf16.mxu1 %v16633_v39  ;;  %v16655_v18 = vld [vmem:[#allocation4 + $0x1b8] sm:$0xff]  }
 0x1ae   : > { %14875 = vmatpush3.bf16.msra.mxu0 %v16637_v33  ;;  %3001 = vmatmul.mubr.bf16.vlgmr.msra.gmra.mrb[48].mxu1 %v18432_v53  ;;  %v18622_v33 = vcombine.low %v18462_v51, %v18483_v57  ;;  %v16667_v51 = vld [vmem:[#allocation4 + $0x50] sm:$0xff]   ;;  %v16662_v57 = vld [vmem:[#allocation4 + $0xc8] sm:$0xff]  }
 0x1af   : > { %14876 = vmatprep.subr.bf16.mxu0 %v16638_v46  ;;  %16197 = vmatpush3.bf16.msra.mxu1 %v16633_v39  ;;  %v16657_v39 = vld [vmem:[#allocation4 + $0x40] sm:$0xff]   ;;  %v21444_v46 = vcombine.low %v18223_v40, %v18233_v49  ;;  %v16671_v49 = vld [vmem:[#allocation4 + $0x58] sm:$0xff]  }
 0x1b0   : > { %3008 = vmatprep.mubr.bf16.mxu1 %v18564_v15  ;;  %16198 = vmatprep.subr.bf16.mxu1 %v16636_v43 }
 0x1b1   : > { %2944 = vmatmul.mubr.bf16.gmra.mrb[44].mxu0 %v18447_v34 }
 0x1b2   : > { %14877 = vmatpush3.bf16.msra.mxu0 %v16640_v16  ;;  %2951 = vmatprep.mubr.bf16.mxu0 %v18524_v20  ;;  %v16647_v20 = vld [vmem:[#allocation4 + $0x1e8] sm:$0xff]   ;;  %v16660_v16 = vld [vmem:[#allocation4 + $0x80] sm:$0xff]  }
 0x1b3   : > { %14878 = vmatprep.subr.bf16.mxu0 %v16641_v47  ;;  %16199 = vmatpush3.bf16.msra.mxu1 %v16636_v43  ;;  %v16658_v43 = vld [vmem:[#allocation4 + $0xc0] sm:$0xff]   ;;  %v16663_v47 = vld [vmem:[#allocation4 + $0x8] sm:$0xff]  }
 0x1b4   : > { %16200 = vmatprep.subr.bf16.mxu1 %v16639_v32 }
 0x1b6   : > { %14879 = vmatpush3.bf16.msra.mxu0 %v16643_v7  ;;  %3009 = vmatmul.mubr.bf16.gmra.mrb[52].mxu1 %v18470_v2  ;;  %v18634_v7 = vcombine.low %v18486_v35, %v18512_v29  ;;  %v16670_v35 = vld [vmem:[#allocation4 + $0x90] sm:$0xff]   ;;  %v16673_v29 = vld [vmem:[#allocation4 + $0x18] sm:$0xff]  }
 0x1b7   : > { %14880 = vmatprep.subr.bf16.mxu0 %v16644_v10  ;;  %16201 = vmatpush3.bf16.msra.mxu1 %v16639_v32  ;;  %v779_v32 = vld [vmem:[%s18207_s25 + $0xd4] sm:$0x1] }
 0x1b8   : > { %3016 = vmatprep.mubr.bf16.mxu1 %v18568_v28  ;;  %16202 = vmatprep.subr.bf16.mxu1 %v16642_v24  ;;  %v13447_v40 = vcombine.low %v778_v62, %v779_v32  ;;  %v16683_v32 = vld [vmem:[#allocation4 + $0xe8] sm:$0xff]  }
 0x1b9   : > { %2952 = vmatmul.mubr.bf16.gmra.mrb[48].mxu0 %v18474_v27 }
 0x1ba   : > { %14881 = vmatpush3.bf16.msra.mxu0 %v16646_v9  ;;  %2959 = vmatprep.mubr.bf16.mxu0 %v18560_v38  ;;  %v16651_v38 = vld [vmem:[#allocation4 + $0x230] sm:$0xff]   ;;  %v2229_v10 = vshrl.u32 %v13447_v40, 16  ;;  %v2231_v23 = vshll.u32 %v13447_v40, 16 }
 0x1bb   : > { %14882 = vmatprep.subr.bf16.mxu0 %v16647_v20  ;;  %16203 = vmatpush3.bf16.msra.mxu1 %v16642_v24  ;;  %v21445_v24 = vld [vmem:[#allocation41_spill] sm:$0xff]  ;;  %v16668_v20 = vld [vmem:[#allocation4 + $0xd0] sm:$0xff]  }
 0x1bc   : > { %16204 = vmatprep.subr.bf16.mxu1 %v16645_v11  ;;  %v21446_v9 = vcombine.low %v18273_v21, %v21445_v24  ;;  %v16695_v24 = vld [vmem:[#allocation4 + $0x38] sm:$0xff]  }
 0x1be   : > { %14883 = vmatpush3.bf16.msra.mxu0 %v16649_v1  ;;  %3017 = vmatmul.mubr.bf16.gmra.mrb[56].mxu1 %v18501_v50  ;;  %v16677_v1 = vld [vmem:[#allocation4 + $0x60] sm:$0xff]  }
 0x1bf   : > { %14884 = vmatprep.subr.bf16.mxu0 %v16650_v59  ;;  %16205 = vmatpush3.bf16.msra.mxu1 %v16645_v11  ;;  %v2233_v11 = vrot.slane %v2231_v23, 1  ;;  %v16690_v23 = vld [vmem:[#allocation4 + $0xf0] sm:$0xff]  }
 0x1c0   : > { %3024 = vmatprep.mubr.bf16.mxu1 %v18581_v19  ;;  %16206 = vmatprep.subr.bf16.mxu1 %v16648_v48 }
 0x1c1   : > { %2960 = vmatmul.mubr.bf16.gmra.mrb[52].mxu0 %v18506_v26  ;;  %v2234_v59 = vor.u32 %v2233_v11, %v2229_v10  ;;  %v16693_v10 = vld [vmem:[#allocation4 + $0x78] sm:$0xff]  }
 0x1c2   : > { %14885 = vmatpush3.bf16.msra.mxu0 %v16652_v55  ;;  %3065 = vmatprep.mubr.bf16.mxu0 %v18614_v25  ;;  %v16672_v55 = vld [vmem:[#allocation4 + $0xd8] sm:$0xff]  }
 0x1c3   : > { %14886 = vmatprep.subr.bf16.mxu0 %v16653_v12  ;;  %16207 = vmatpush3.bf16.msra.mxu1 %v16648_v48  ;;  %v18643_v48 = vld [vmem:[%s18207_s25 + $0x118] sm:$0xf]  ;;  %v16679_v12 = vld [vmem:[#allocation4 + $0x20] sm:$0xff]  }
 0x1c4   : > { %16208 = vmatprep.subr.bf16.mxu1 %v16651_v38 }
 0x1c6   : > { %14887 = vmatpush3.bf16.msra.mxu0 %v16655_v18  ;;  %3025 = vmatmul.mubr.bf16.gmra.mrb[60].mxu1 %v18537_v41  ;;  %v16682_v18 = vld [vmem:[#allocation4 + $0x68] sm:$0xff]  }
 0x1c7   : > { %14924 = vmatprep.subr.bf16.mxu0 %v16657_v39  ;;  %16209 = vmatpush3.bf16.msra.mxu1 %v16651_v38  ;;  %v21447_v38 = vld [vmem:[#allocation49_spill] sm:$0xff]  ;;  %v21448_v39 = vld [vmem:[#allocation51_spill] sm:$0xff] }
 0x1c8   : > { %16212 = vmatprep.mubr.bf16.mxu1 %v18342_v22  ;;  %16210 = vmatprep.subr.bf16.mxu1 %v16654_v3  ;;  %v18646_v21 = vcombine.low %v21447_v38, %v2234_v59  ;;  %v16698_v59 = vld [vmem:[#allocation4 + $0x100] sm:$0xff]  }
 0x1c9   : > { %3066 = vmatmul.mubr.bf16.vlgmr.msra.gmra.mrb[56].mxu0 %v21444_v46  ;;  %v21450_v46 = vld [vmem:[#allocation44_spill] sm:$0xff] }
 0x1ca   : > { %14925 = vmatpush3.bf16.msra.mxu0 %v16659_v52  ;;  %3073 = vmatprep.mubr.bf16.mxu0 %v18622_v33  ;;  %v16674_v52 = vld [vmem:[#allocation4 + $0x98] sm:$0xff]  }
 0x1cb   : > { %14926 = vmatprep.subr.bf16.mxu0 %v16661_v45  ;;  %16211 = vmatpush3.bf16.msra.mxu1 %v16654_v3  ;;  %v18650_v3 = vcombine.low %v21448_v39, %v18643_v48  ;;  %v21449_v45 = vld [vmem:[#allocation42_spill] sm:$0xff] }
 0x1cc   : > { %14964 = vmatprep.subr.bf16.mxu1 %v16658_v43  ;;  %v21451_v43 = vcombine.low %v21449_v45, %v21450_v46  ;;  %v21453_v39 = vld [vmem:[#allocation34_spill] sm:$0xff]  ;;  %v21454_v45 = vld [vmem:[#allocation39_spill] sm:$0xff] }
 0x1cd   : > { %v16706_v46 = vld [vmem:[#allocation4 + $0x150] sm:$0xff]  }
 0x1ce   : > { %14927 = vmatpush3.bf16.msra.mxu0 %v16663_v47  ;;  %16213 = vmatmul.mubr.bf16.vlgmr.msra.gmra.mrb[64].mxu1 %v18370_v8  ;;  %v16684_v47 = vld [vmem:[#allocation4 + $0x28] sm:$0xff]  }
 0x1cf   : > { %14928 = vmatprep.subr.bf16.mxu0 %v16667_v51  ;;  %14965 = vmatpush3.bf16.msra.mxu1 %v16660_v16  ;;  %v16678_v16 = vld [vmem:[#allocation4 + $0xe0] sm:$0xff]   ;;  %v16689_v51 = vld [vmem:[#allocation4 + $0x70] sm:$0xff]  }
 0x1d0   : > { %16216 = vmatprep.mubr.bf16.mxu1 %v18426_v30  ;;  %14966 = vmatprep.subr.bf16.mxu1 %v16662_v57  ;;  %v16680_v57 = vld [vmem:[#allocation4 + $0xa0] sm:$0xff]  }
 0x1d1   : > { %3074 = vmatmul.mubr.bf16.gmra.mrb[60].mxu0 %v21446_v9  ;;  %v21452_v9 = vld [vmem:[#allocation37_spill] sm:$0xff] }
 0x1d2   : > { %14929 = vmatpush3.bf16.msra.mxu0 %v16669_v6  ;;  %3081 = vmatprep.mubr.bf16.mxu0 %v18634_v7  ;;  %v17437_v6 = vld [vmem:[%s18207_s25 + $0xc8] sm:$0xf] }
 0x1d3   : > { %14930 = vmatprep.subr.bf16.mxu0 %v16671_v49  ;;  %14967 = vmatpush3.bf16.msra.mxu1 %v16664_v0  ;;  %v13457_v40 = vcombine.low %v17437_v6, %v778_v62  ;;  %v16685_v49 = vld [vmem:[#allocation4 + $0xa8] sm:$0xff]   ;;  %v16691_v0 = vld [vmem:[#allocation4 + $0x30] sm:$0xff]   ;;  %v21456_v6 = vld [vmem:[#allocation36_spill] sm:$0xff] }
 0x1d4   : > { %14968 = vmatprep.subr.bf16.mxu1 %v16668_v20  ;;  %v749_v20 = vld [vmem:[%s18207_s25 + $0x5c] sm:$0x1]  ;;  %v16692_v62 = vld [vmem:[#allocation4 + $0xb0] sm:$0xff]  }
 0x1d6   : > { %14931 = vmatpush3.bf16.msra.mxu0 %v16673_v29  ;;  %16217 = vmatmul.mubr.bf16.gmra.mrb[68].mxu1 %v18646_v21  ;;  %v17438_v29 = vld [vmem:[%s18207_s25 + $0x58] sm:$0xf] }
 0x1d7   : > { %14932 = vmatprep.subr.bf16.mxu0 %v16677_v1  ;;  %14969 = vmatpush3.bf16.msra.mxu1 %v16670_v35  ;;  %v16697_v35 = vld [vmem:[#allocation4 + $0x140] sm:$0xff]   ;;  %v13542_v11 = vcombine.low %v17438_v29, %v749_v20  ;;  %v16694_v1 = vld [vmem:[#allocation4 + $0xf8] sm:$0xff]  }
 0x1d8   : > { %14970 = vmatprep.subr.bf16.mxu1 %v16672_v55  ;;  %4239 = vmatprep.mubr.bf16.mxu1 %v18443_v63  ;;  %v16696_v55 = vld [vmem:[#allocation4 + $0xb8] sm:$0xff]   ;;  %v16714_v29 = vld [vmem:[#allocation4 + $0x160] sm:$0xff]  }
 0x1d9   : > { %3082 = vmatmul.mubr.bf16.gmra.mrb[64].mxu0 %v21451_v43  ;;  %v3396_v38 = vshll.u32 %v13542_v11, 16  ;;  %v3394_v43 = vshrl.u32 %v13542_v11, 16  ;;  %v21459_v20 = vld [vmem:[#allocation43_spill] sm:$0xff]  ;;  %v16709_v11 = vld [vmem:[#allocation4 + $0x190] sm:$0xff]  }
 0x1da   : > { %14933 = vmatpush3.bf16.msra.mxu0 %v16679_v12  ;;  %3089 = vmatprep.mubr.bf16.mxu0 %v18650_v3  ;;  %v16701_v12 = vld [vmem:[#allocation4 + $0x148] sm:$0xff]  }
 0x1db   : > { %14934 = vmatprep.subr.bf16.mxu0 %v16682_v18  ;;  %14971 = vmatpush3.bf16.msra.mxu1 %v16674_v52  ;;  %v16699_v18 = vld [vmem:[#allocation4 + $0x1c0] sm:$0xff]   ;;  %v16702_v52 = vld [vmem:[#allocation4 + $0x108] sm:$0xff]  }
 0x1dc   : > { %14972 = vmatprep.subr.bf16.mxu1 %v16678_v16  ;;  %v3398_v16 = vrot.slane %v3396_v38, 1  ;;  %v781_v38 = vld [vmem:[%s18207_s25 + $0xdc] sm:$0x1] }
 0x1de   : > { %14935 = vmatpush3.bf16.msra.mxu0 %v16684_v47  ;;  %v16700_v47 = vld [vmem:[#allocation4 + $0x180] sm:$0xff]  }
 0x1df   : > { %14936 = vmatprep.subr.bf16.mxu0 %v16689_v51  ;;  %14973 = vmatpush3.bf16.msra.mxu1 %v16680_v57  ;;  %v16703_v51 = vld [vmem:[#allocation4 + $0x1c8] sm:$0xff]   ;;  %v16707_v57 = vld [vmem:[#allocation4 + $0x110] sm:$0xff]  }
 0x1e0   : > { %14974 = vmatprep.subr.bf16.mxu1 %v16683_v32  ;;  %v21455_v32 = vld [vmem:[#allocation35_spill] sm:$0xff] }
 0x1e1   : > { %3090 = vmatmul.mubr.bf16.gmra.mrb[68].mxu0 %v13457_v40  ;;  %v21457_v40 = vcombine.low %v21455_v32, %v21456_v6 }
 0x1e2   : > { %14937 = vmatpush3.bf16.msra.mxu0 %v16691_v0  ;;  %4174 = vmatprep.mubr.bf16.mxu0 %v21452_v9  ;;  %v16710_v0 = vld [vmem:[#allocation4 + $0x158] sm:$0xff]  }
 0x1e3   : > { %14938 = vmatprep.subr.bf16.mxu0 %v16693_v10  ;;  %14975 = vmatpush3.bf16.msra.mxu1 %v16685_v49  ;;  %v18667_v49 = vor.u32 %v3398_v16, %v3394_v43  ;;  %v16704_v10 = vld [vmem:[#allocation4 + $0x188] sm:$0xff]   ;;  %v16711_v9 = vld [vmem:[#allocation4 + $0x118] sm:$0xff]   ;;  %v17440_v16 = vld [vmem:[%s18207_s25 + $0xe0] sm:$0xf] }
 0x1e4   : > { %14976 = vmatprep.subr.bf16.mxu1 %v16690_v23  ;;  %v21458_v23 = vld [vmem:[#allocation38_spill] sm:$0xff] }
 0x1e6   : > { %14939 = vmatpush3.bf16.msra.mxu0 %v16695_v24  ;;  %v16708_v24 = vld [vmem:[#allocation4 + $0x1d0] sm:$0xff]  }
 0x1e7   : > { %15004 = vmatprep.subr.bf16.mxu0 %v16697_v35  ;;  %14977 = vmatpush3.bf16.msra.mxu1 %v16692_v62  ;;  %v13560_v35 = vcombine.low %v18667_v49, %v18532_v42  ;;  %v16712_v62 = vld [vmem:[#allocation4 + $0x1d8] sm:$0xff]   ;;  %v21460_v42 = vld [vmem:[#allocation40_spill] sm:$0xff] }
 0x1e8   : > { %14978 = vmatprep.subr.bf16.mxu1 %v16694_v1  ;;  %v16715_v1 = vld [vmem:[#allocation4 + $0x120] sm:$0xff]  }
 0x1e9   : > { %4175 = vmatmul.mubr.bf16.vlgmr.msra.gmra.mrb[72].mxu0 %v21453_v39  ;;  %v16717_v39 = vld [vmem:[#allocation4 + $0x1a0] sm:$0xff]  }
 0x1ea   : > { %15005 = vmatpush3.bf16.msra.mxu0 %v16698_v59  ;;  %4182 = vmatprep.mubr.bf16.mxu0 %v21454_v45  ;;  %v16718_v59 = vld [vmem:[#allocation4 + $0x168] sm:$0xff]   ;;  %v21461_v45 = vld [vmem:[#allocation46_spill] sm:$0xff] }
 0x1eb   : > { %15006 = vmatprep.subr.bf16.mxu0 %v16701_v12  ;;  %14979 = vmatpush3.bf16.msra.mxu1 %v16696_v55  ;;  %v16713_v55 = vld [vmem:[#allocation4 + $0x198] sm:$0xff]   ;;  %v16716_v12 = vld [vmem:[#allocation4 + $0x1e0] sm:$0xff]  }
 0x1ec   : > { %15044 = vmatprep.subr.bf16.mxu1 %v16699_v18  ;;  %v783_v18 = vld [vmem:[%s18207_s25 + $0xe4] sm:$0x1] }
 0x1ee   : > { %15007 = vmatpush3.bf16.msra.mxu0 %v16702_v52  ;;  %4240 = vmatmul.mubr.bf16.vlgmr.msra.gmra.mrb[72].mxu1 %v21457_v40  ;;  %v16719_v52 = vld [vmem:[#allocation4 + $0x128] sm:$0xff]  }
 0x1ef   : > { %15008 = vmatprep.subr.bf16.mxu0 %v16706_v46  ;;  %15045 = vmatpush3.bf16.msra.mxu1 %v16700_v47  ;;  %v17439_v46 = vld [vmem:[%s18207_s25 + $0xd8] sm:$0xf]  ;;  %v13549_v47 = vcombine.low %v17440_v16, %v783_v18 }
 0x1f0   : > { %4247 = vmatprep.mubr.bf16.mxu1 %v18466_v14  ;;  %15046 = vmatprep.subr.bf16.mxu1 %v16703_v51  ;;  %v13548_v43 = vcombine.low %v17439_v46, %v781_v38  ;;  %v16722_v51 = vld [vmem:[#allocation4 + $0x170] sm:$0xff]  }
 0x1f1   : > { %4183 = vmatmul.mubr.bf16.gmra.mrb[76].mxu0 %v21458_v23  ;;  %v3467_v40 = vshrl.u32 %v13549_v47, 16  ;;  %v16721_v23 = vld [vmem:[#allocation4 + $0x1a8] sm:$0xff]  }
 0x1f2   : > { %15009 = vmatpush3.bf16.msra.mxu0 %v16707_v57  ;;  %4190 = vmatprep.mubr.bf16.mxu0 %v21459_v20  ;;  %v3460_v57 = vshrl.u32 %v13548_v43, 16  ;;  %v3462_v32 = vshll.u32 %v13548_v43, 16 }
 0x1f3   : > { %15010 = vmatprep.subr.bf16.mxu0 %v16710_v0  ;;  %15047 = vmatpush3.bf16.msra.mxu1 %v16704_v10  ;;  %v3469_v0 = vshll.u32 %v13549_v47, 16  ;;  %v16720_v10 = vld [vmem:[#allocation4 + $0x1e8] sm:$0xff]  }
 0x1f4   : > { %15048 = vmatprep.subr.bf16.mxu1 %v16708_v24  ;;  %v16723_v24 = vld [vmem:[#allocation4 + $0x130] sm:$0xff]   ;;  %v3464_v20 = vrot.slane %v3462_v32, 1  ;;  %v16731_v32 = vld [vmem:[#allocation4 + $0x1b8] sm:$0xff]  }
 0x1f6   : > { %15011 = vmatpush3.bf16.msra.mxu0 %v16711_v9  ;;  %4248 = vmatmul.mubr.bf16.gmra.mrb[76].mxu1 %v13560_v35  ;;  %v16726_v9 = vld [vmem:[#allocation4 + $0x178] sm:$0xff]   ;;  %v3471_v35 = vrot.slane %v3469_v0, 1  ;;  %v16735_v0 = vld [vmem:[#allocation4 + $0x208] sm:$0xff]  }
 0x1f7   : > { %15012 = vmatprep.subr.bf16.mxu0 %v16714_v29  ;;  %15049 = vmatpush3.bf16.msra.mxu1 %v16709_v11  ;;  %v797_v29 = vld [vmem:[%s18207_s25 + $0x11c] sm:$0x1]  ;;  %v16724_v11 = vld [vmem:[#allocation4 + $0x1f0] sm:$0xff]  }
 0x1f8   : > { %4255 = vmatprep.mubr.bf16.mxu1 %v18497_v17  ;;  %15050 = vmatprep.subr.bf16.mxu1 %v16712_v62  ;;  %v3465_v62 = vor.u32 %v3464_v20, %v3460_v57  ;;  %v18698_v47 = vcombine.low %v18643_v48, %v797_v29 }
 0x1f9   : > { %4191 = vmatmul.mubr.bf16.gmra.mrb[80].mxu0 %v21460_v42  ;;  %v787_v42 = vld [vmem:[%s18207_s25 + $0xf4] sm:$0x1] }
 0x1fa   : > { %15013 = vmatpush3.bf16.msra.mxu0 %v16715_v1  ;;  %4198 = vmatprep.mubr.bf16.mxu0 %v21461_v45  ;;  %v18686_v1 = vor.u32 %v3471_v35, %v3467_v40  ;;  %v4665_v35 = vshll.u32 %v18698_v47, 16 }
 0x1fb   : > { %15014 = vmatprep.subr.bf16.mxu0 %v16718_v59  ;;  %15051 = vmatpush3.bf16.msra.mxu1 %v16713_v55  ;;  %v785_v59 = vld [vmem:[%s18207_s25 + $0xec] sm:$0x1]  ;;  %v21462_v55 = vld [vmem:[#allocation45_spill] sm:$0xff] }
 0x1fc   : > { %15052 = vmatprep.subr.bf16.mxu1 %v16716_v12  ;;  %v17441_v12 = vld [vmem:[%s18207_s25 + $0xe8] sm:$0xf]  ;;  %v18693_v56 = vcombine.low %v3465_v62, %v18686_v1 }
 0x1fd   : > { %v13550_v38 = vcombine.low %v17441_v12, %v785_v59  ;;  %v16740_v12 = vld [vmem:[#allocation4 + $0x210] sm:$0xff]  }
 0x1fe   : > { %15015 = vmatpush3.bf16.msra.mxu0 %v16719_v52  ;;  %4256 = vmatmul.mubr.bf16.gmra.mrb[80].mxu1 %v13563_v31  ;;  %v17442_v31 = vld [vmem:[%s18207_s25 + $0xf0] sm:$0xf] }
 0x1ff   : > { %15016 = vmatprep.subr.bf16.mxu0 %v16722_v51  ;;  %15053 = vmatpush3.bf16.msra.mxu1 %v16717_v39  ;;  %v13551_v18 = vcombine.low %v17442_v31, %v787_v42  ;;  %v16725_v39 = vld [vmem:[#allocation4 + $0x1b0] sm:$0xff]   ;;  %v16732_v52 = vld [vmem:[#allocation4 + $0x200] sm:$0xff]   ;;  %v3474_v45 = vshrl.u32 %v13550_v38, 16  ;;  %v3476_v46 = vshll.u32 %v13550_v38, 16  ;;  %v16728_v51 = vld [vmem:[#allocation4 + $0x1f8] sm:$0xff]   ;;  %v4663_v42 = vshrl.u32 %v18698_v47, 16 }
 0x200   : > { %4263 = vmatprep.mubr.bf16.mxu1 %v18528_v36  ;;  %15054 = vmatprep.subr.bf16.mxu1 %v16720_v10 }
 0x201   : > { %4199 = vmatmul.mubr.bf16.gmra.mrb[84].mxu0 %v21462_v55  ;;  %v3481_v43 = vshrl.u32 %v13551_v18, 16  ;;  %v3483_v16 = vshll.u32 %v13551_v18, 16  ;;  %v3478_v57 = vrot.slane %v3476_v46, 1 }
 0x202   : > { %15017 = vmatpush3.bf16.msra.mxu0 %v16723_v24  ;;  %4304 = vmatprep.mubr.bf16.mxu0 %v18693_v56  ;;  %v791_v24 = vld [vmem:[%s18207_s25 + $0x104] sm:$0x1] }
 0x203   : > { %15018 = vmatprep.subr.bf16.mxu0 %v16726_v9  ;;  %15055 = vmatpush3.bf16.msra.mxu1 %v16721_v23  ;;  %v3485_v40 = vrot.slane %v3483_v16, 1  ;;  %v18703_v10 = vor.u32 %v3478_v57, %v3474_v45  ;;  %v789_v23 = vld [vmem:[%s18207_s25 + $0xfc] sm:$0x1]  ;;  %v17443_v9 = vld [vmem:[%s18207_s25 + $0xf8] sm:$0xf] }
 0x204   : > { %15056 = vmatprep.subr.bf16.mxu1 %v16724_v11  ;;  %v13552_v20 = vcombine.low %v17443_v9, %v789_v23  ;;  %v16734_v11 = vld [vmem:[#allocation4] sm:$0xff]   ;;  %v17445_v9 = vld [vmem:[%s18207_s25 + $0x108] sm:$0xf] }
 0x205   : > { %v18707_v48 = vor.u32 %v3485_v40, %v3481_v43  ;;  %v16739_v43 = vld [vmem:[#allocation4 + $0x8] sm:$0xff]   ;;  %v793_v40 = vld [vmem:[%s18207_s25 + $0x10c] sm:$0x1]  ;;  %v795_v23 = vld [vmem:[%s18207_s25 + $0x114] sm:$0x1] }
 0x206   : > { %15019 = vmatpush3.bf16.msra.mxu0 %v16727_v44  ;;  %4264 = vmatmul.mubr.bf16.gmra.mrb[84].mxu1 %v13566_v60  ;;  %v13553_v60 = vcombine.low %v17444_v13, %v791_v24  ;;  %v3488_v59 = vshrl.u32 %v13552_v20, 16  ;;  %v3490_v55 = vshll.u32 %v13552_v20, 16  ;;  %v13554_v20 = vcombine.low %v17445_v9, %v793_v40 }
 0x207   : > { %16220 = vmatprep.subr.bf16.mxu0 %v16732_v52  ;;  %15057 = vmatpush3.bf16.msra.mxu1 %v16725_v39  ;;  %v18718_v62 = vcombine.low %v18703_v10, %v18707_v48 }
 0x208   : > { %4369 = vmatprep.mubr.bf16.mxu1 %v18543_v58  ;;  %15058 = vmatprep.subr.bf16.mxu1 %v16728_v51  ;;  %v3495_v38 = vshrl.u32 %v13553_v60, 16  ;;  %v3497_v44 = vshll.u32 %v13553_v60, 16  ;;  %v3492_v18 = vrot.slane %v3490_v55, 1  ;;  %v16743_v51 = vld [vmem:[#allocation4 + $0x218] sm:$0xff]   ;;  %v17446_v60 = vld [vmem:[%s18207_s25 + $0x110] sm:$0xf] }
 0x209   : > { %4305 = vmatmul.mubr.bf16.vlgmr.msra.gmra.mrb[88].mxu0 %v18413_v54  ;;  %v4667_v55 = vrot.slane %v4665_v35, 1 }
 0x20a   : > { %16221 = vmatpush3.bf16.msra.mxu0 %v16732_v52  ;;  %4312 = vmatprep.mubr.bf16.mxu0 %v18718_v62  ;;  %v16736_v52 = vld [vmem:[#allocation4 + $0x48] sm:$0xff]   ;;  %v3499_v45 = vrot.slane %v3497_v44, 1  ;;  %v18722_v16 = vor.u32 %v3492_v18, %v3488_v59  ;;  %v13555_v59 = vcombine.low %v17446_v60, %v795_v23  ;;  %v3504_v44 = vshll.u32 %v13554_v20, 16  ;;  %v16748_v18 = vld [vmem:[#allocation4 + $0x220] sm:$0xff]  }
 0x20b   : > { %16222 = vmatprep.subr.bf16.mxu0 %v16735_v0  ;;  %15059 = vmatpush3.bf16.msra.mxu1 %v16731_v32  ;;  %v18740_v35 = vor.u32 %v4667_v55, %v4663_v42  ;;  %v16787_v55 = vld [vmem:[#allocation4 + $0xb0] sm:$0xff]  }
 0x20c   : > { %15096 = vmatprep.subr.bf16.mxu1 %v16733_v61  ;;  %v18725_v57 = vor.u32 %v3499_v45, %v3495_v38  ;;  %v16741_v61 = vld [vmem:[#allocation4 + $0x50] sm:$0xff]   ;;  %v3502_v38 = vshrl.u32 %v13554_v20, 16  ;;  %v3511_v45 = vshll.u32 %v13555_v59, 16 }
 0x20e   : > { %16223 = vmatpush3.bf16.msra.mxu0 %v16735_v0  ;;  %4370 = vmatmul.mubr.bf16.vlgmr.msra.gmra.mrb[88].mxu1 %v18432_v53  ;;  %v18736_v13 = vcombine.low %v18722_v16, %v18725_v57  ;;  %v3513_v23 = vrot.slane %v3511_v45, 1 }
 0x20f   : > { %16224 = vmatprep.subr.bf16.mxu0 %v16740_v12  ;;  %15097 = vmatpush3.bf16.msra.mxu1 %v16734_v11  ;;  %v16742_v11 = vld [vmem:[#allocation4 + $0x10] sm:$0xff]  }
 0x210   : > { %4377 = vmatprep.mubr.bf16.mxu1 %v18564_v15  ;;  %15098 = vmatprep.subr.bf16.mxu1 %v16736_v52  ;;  %v3509_v52 = vshrl.u32 %v13555_v59, 16  ;;  %v16751_v59 = vld [vmem:[#allocation4 + $0x228] sm:$0xff]  }
 0x211   : > { %4313 = vmatmul.mubr.bf16.gmra.mrb[92].mxu0 %v18447_v34 }
 0x212   : > { %16225 = vmatpush3.bf16.msra.mxu0 %v16740_v12  ;;  %4320 = vmatprep.mubr.bf16.mxu0 %v18736_v13  ;;  %v18747_v29 = vor.u32 %v3513_v23, %v3509_v52  ;;  %v16755_v23 = vld [vmem:[#allocation4 + $0x28] sm:$0xff]  }
 0x213   : > { %16226 = vmatprep.subr.bf16.mxu0 %v16743_v51  ;;  %15099 = vmatpush3.bf16.msra.mxu1 %v16739_v43 }
 0x214   : > { %15100 = vmatprep.subr.bf16.mxu1 %v16741_v61 }
 0x216   : > { %16227 = vmatpush3.bf16.msra.mxu0 %v16743_v51  ;;  %4378 = vmatmul.mubr.bf16.gmra.mrb[92].mxu1 %v18470_v2 }
 0x217   : > { %16228 = vmatprep.subr.bf16.mxu0 %v16748_v18  ;;  %15101 = vmatpush3.bf16.msra.mxu1 %v16742_v11 }
 0x218   : > { %4385 = vmatprep.mubr.bf16.mxu1 %v18568_v28 }
 0x219   : > { %4321 = vmatmul.mubr.bf16.gmra.mrb[96].mxu0 %v18474_v27 }
 0x21a   : > { %16229 = vmatpush3.bf16.msra.mxu0 %v16748_v18  ;;  %v16759_v18 = vld [vmem:[#allocation4 + $0x238] sm:$0xff]  }
 0x21b   : > { %16230 = vmatprep.subr.bf16.mxu0 %v16751_v59 }
 0x21c   : > { %v14596_v31 = vpop.f32.mrb[0].mxu0 }
 0x21d   : > { %v14597_v39 = vpop.f32.mrb[1].mxu0 }
 0x21e   : > { %v14598_v46 = vadd.f32 %v14597_v39, %v14596_v31  ;;  %v14599_v47 = vpop.f32.mrb[2].mxu0  ;;  %v16744_v31 = vld [vmem:[#allocation4 + $0x58] sm:$0xff]   ;;  %v14636_v39 = vpop.f32.mrb[0].mxu1  ;;  %16231 = vmatpush3.bf16.msra.mxu0 %v16751_v59  ;;  %4386 = vmatmul.mubr.bf16.gmra.mrb[96].mxu1 %v18501_v50  ;;  %v16757_v59 = vld [vmem:[#allocation4 + $0x70] sm:$0xff]  }
 0x21f   : > { %v14600_v32 = vpop.f32.mrb[3].mxu0  ;;  %15102 = vmatprep.subr.bf16.mxu1 %v16744_v31  ;;  %v16750_v31 = vld [vmem:[#allocation4 + $0x20] sm:$0xff]   ;;  %4393 = vmatprep.mubr.bf16.mxu1 %v18581_v19 }
 0x220   : > { %v14601_v24 = vadd.f32 %v14600_v32, %v14599_v47  ;;  %v14637_v47 = vpop.f32.mrb[1].mxu1  ;;  %v3506_v32 = vrot.slane %v3504_v44, 1  ;;  %v16747_v44 = vld [vmem:[#allocation4 + $0x18] sm:$0xff]  }
 0x221   : > { %v14638_v40 = vadd.f32 %v14637_v47, %v14636_v39  ;;  %v14639_v9 = vpop.f32.mrb[2].mxu1  ;;  %v16756_v47 = vld [vmem:[#allocation4 + $0x230] sm:$0xff]   ;;  %15103 = vmatpush3.bf16.msra.mxu1 %v16747_v44 }
 0x222   : > { %v14640_v12 = vpop.f32.mrb[3].mxu1  ;;  %v18742_v20 = vor.u32 %v3506_v32, %v3502_v38  ;;  %v16749_v38 = vld [vmem:[#allocation4 + $0x60] sm:$0xff]   ;;  %v16752_v32 = vld [vmem:[#allocation4 + $0x68] sm:$0xff]   ;;  %16232 = vmatprep.subr.bf16.mxu0 %v16756_v47  ;;  %v16758_v44 = vld [vmem:[#allocation4 + $0x30] sm:$0xff]  }
 0x223   : > { %v18745_v0 = vadd.f32 %v14638_v40, %v14598_v46  ;;  %v14641_v43 = vadd.f32 %v14640_v12, %v14639_v9  ;;  %15104 = vmatprep.subr.bf16.mxu1 %v16749_v38  ;;  %v18764_v40 = vcombine.low %v21456_v6, %v18667_v49  ;;  %16233 = vmatpush3.bf16.msra.mxu0 %v16756_v47  ;;  %v16762_v49 = vld [vmem:[#allocation4 + $0xc0] sm:$0xff]  }
 0x224   : > { %v14602_v60 = vpop.f32.mrb[4].mxu0  ;;  %v18757_v39 = vcombine.low %v18742_v20, %v18747_v29  ;;  %16234 = vmatprep.subr.bf16.mxu0 %v16759_v18 }
 0x225   : > { %v14603_v61 = vpop.f32.mrb[5].mxu0  ;;  %v18753_v46 = vadd.f32 %v14641_v43, %v14601_v24  ;;  %v14642_v24 = vpop.f32.mrb[4].mxu1  ;;  %15105 = vmatpush3.bf16.msra.mxu1 %v16750_v31 }
 0x226   : > { %v14604_v42 = vadd.f32 %v14603_v61, %v14602_v60  ;;  %v14605_v51 = vpop.f32.mrb[6].mxu0  ;;  %4328 = vmatprep.mubr.bf16.mxu0 %v18757_v39  ;;  %v14643_v9 = vpop.f32.mrb[5].mxu1  ;;  %15106 = vmatprep.subr.bf16.mxu1 %v16752_v32  ;;  %v16763_v32 = vld [vmem:[#allocation4 + $0x80] sm:$0xff]  }
 0x227   : > { %v14606_v52 = vpop.f32.mrb[7].mxu0  ;;  %v14644_v12 = vadd.f32 %v14643_v9, %v14642_v24  ;;  %v14645_v60 = vpop.f32.mrb[6].mxu1  ;;  %4329 = vmatmul.mubr.bf16.gmra.mrb[100].mxu0 %v18506_v26  ;;  %4394 = vmatmul.mubr.bf16.gmra.mrb[100].mxu1 %v18537_v41 }
 0x228   : > { %v14607_v45 = vadd.f32 %v14606_v52, %v14605_v51  ;;  %v14646_v43 = vpop.f32.mrb[7].mxu1  ;;  %16236 = vmatprep.mubr.bf16.mxu0 %v18764_v40  ;;  %v16760_v52 = vld [vmem:[#allocation4 + $0x78] sm:$0xff]   ;;  %16235 = vmatpush3.bf16.msra.mxu0 %v16759_v18  ;;  %v16770_v18 = vld [vmem:[#allocation4 + $0xd0] sm:$0xff]  }
 0x229   : > { %v18769_v61 = vadd.f32 %v14644_v12, %v14604_v42  ;;  %v14647_v6 = vadd.f32 %v14646_v43, %v14645_v60  ;;  %15107 = vmatpush3.bf16.msra.mxu1 %v16755_v23  ;;  %15136 = vmatprep.subr.bf16.mxu0 %v16762_v49  ;;  %v16766_v42 = vld [vmem:[#allocation4 + $0xc8] sm:$0xff]   ;;  %v16761_v12 = vld [vmem:[#allocation4 + $0x38] sm:$0xff]   ;;  %v16765_v43 = vld [vmem:[#allocation4 + $0x100] sm:$0xff]  }
 0x22a   : > { %15108 = vmatprep.subr.bf16.mxu1 %v16757_v59  ;;  %5286 = vmatprep.mubr.bf16.mxu1 %v18413_v54  ;;  %v16767_v60 = vld [vmem:[#allocation4 + $0x88] sm:$0xff]   ;;  %v16771_v54 = vld [vmem:[#allocation4 + $0x90] sm:$0xff]  }
 0x22b   : > { %v18772_v51 = vadd.f32 %v14647_v6, %v14607_v45  ;;  %v16764_v45 = vld [vmem:[#allocation4 + $0x140] sm:$0xff]   ;;  %v16768_v49 = vld [vmem:[#allocation4 + $0x148] sm:$0xff]  }
 0x22c   : > { %v14608_v38 = vpop.f32.mrb[8].mxu0 }
 0x22d   : > { %v14609_v31 = vpop.f32.mrb[9].mxu0  ;;  %15109 = vmatpush3.bf16.msra.mxu1 %v16758_v44  ;;  %v14648_v59 = vpop.f32.mrb[8].mxu1 }
 0x22e   : > { %v14610_v24 = vadd.f32 %v14609_v31, %v14608_v38  ;;  %v14611_v9 = vpop.f32.mrb[10].mxu0  ;;  %15110 = vmatprep.subr.bf16.mxu1 %v16760_v52  ;;  %v14649_v6 = vpop.f32.mrb[9].mxu1  ;;  %v16774_v31 = vld [vmem:[#allocation4 + $0xd8] sm:$0xff]  }
 0x22f   : > { %v14612_v47 = vpop.f32.mrb[11].mxu0  ;;  %16237 = vmatmul.mubr.bf16.vlgmr.msra.gmra.mrb[104].mxu0 %v18549_v37  ;;  %v14650_v44 = vadd.f32 %v14649_v6, %v14648_v59  ;;  %v14651_v38 = vpop.f32.mrb[10].mxu1 }
 0x230   : > { %v14613_v23 = vadd.f32 %v14612_v47, %v14611_v9  ;;  %15137 = vmatpush3.bf16.msra.mxu0 %v16763_v32  ;;  %16240 = vmatprep.mubr.bf16.mxu0 %v18603_v5  ;;  %v14652_v52 = vpop.f32.mrb[11].mxu1 }
 0x231   : > { %15138 = vmatprep.subr.bf16.mxu0 %v16766_v42  ;;  %15111 = vmatpush3.bf16.msra.mxu1 %v16761_v12  ;;  %v18779_v32 = vadd.f32 %v14650_v44, %v14610_v24  ;;  %v14653_v9 = vadd.f32 %v14652_v52, %v14651_v38  ;;  %v16769_v42 = vld [vmem:[#allocation4 + $0x108] sm:$0xff]   ;;  %v16772_v12 = vld [vmem:[#allocation4 + $0x150] sm:$0xff]   ;;  %v17843_v38 = vmov 0   ;;  %v16780_v52 = vld [vmem:[#allocation4 + $0x160] sm:$0xff]  }
 0x232   : > { %15176 = vmatprep.subr.bf16.mxu1 %v16764_v45  ;;  %v16773_v44 = vld [vmem:[#allocation4 + $0x110] sm:$0xff]   ;;  %520 = vst [vmem:[#allocation2] sm:$0xff] %v17843_v38  ;;  %522 = vst [vmem:[#allocation2 + $0x10] sm:$0x11] %v17843_v38 }
 0x233   : > { %521 = vst [vmem:[#allocation2 + $0x8] sm:$0xff] %v17843_v38  ;;  %523 = vst [vmem:[#allocation2 + $0x18] sm:$0x11] %v17843_v38 }
 0x234   : > { %15139 = vmatpush3.bf16.msra.mxu0 %v16767_v60  ;;  %5287 = vmatmul.mubr.bf16.vlgmr.msra.gmra.mrb[104].mxu1 %v18443_v63  ;;  %v14614_v47 = vpop.f32.mrb[12].mxu0  ;;  %v18783_v60 = vadd.f32 %v14653_v9, %v14613_v23  ;;  %525 = vst [vmem:[#allocation2 + $0x120] sm:$0xff] %v17843_v38  ;;  %526 = vst [vmem:[#allocation2 + $0x128] sm:$0xff] %v17843_v38  ;;  %v16782_v23 = vld [vmem:[#allocation4 + $0xe8] sm:$0xff]   ;;  %v16781_v9 = vld [vmem:[#allocation4 + $0x120] sm:$0xff]  }
 0x235   : > { %15140 = vmatprep.subr.bf16.mxu0 %v16770_v18  ;;  %15177 = vmatpush3.bf16.msra.mxu1 %v16765_v43  ;;  %v14615_v45 = vpop.f32.mrb[13].mxu0  ;;  %v16775_v18 = vld [vmem:[#allocation4 + $0x98] sm:$0xff]   ;;  %v16778_v43 = vld [vmem:[#allocation4 + $0xe0] sm:$0xff]   ;;  %527 = vst [vmem:[#allocation2 + $0x130] sm:$0x11] %v17843_v38 }
 0x236   : > { %5294 = vmatprep.mubr.bf16.mxu1 %v18447_v34  ;;  %15178 = vmatprep.subr.bf16.mxu1 %v16768_v49  ;;  %v14616_v59 = vadd.f32 %v14615_v45, %v14614_v47  ;;  %v14617_v6 = vpop.f32.mrb[14].mxu0  ;;  %v16776_v49 = vld [vmem:[#allocation4 + $0x158] sm:$0xff]   ;;  %528 = vst [vmem:[#allocation2 + $0x138] sm:$0x11] %v17843_v38  ;;  %661 = vst [vmem:[#allocation3] sm:$0xf] %v17843_v38 }
 0x237   : > { %16241 = vmatmul.mubr.bf16.gmra.mrb[108].mxu0 %v18606_v4  ;;  %v14618_v24 = vpop.f32.mrb[15].mxu0  ;;  %662 = vst [vmem:[#allocation3 + $0x4] sm:$0x1] %v17843_v38  ;;  %664 = vst [vmem:[#allocation3 + $0x48] sm:$0xf] %v17843_v38  ;;  %v16784_v45 = vld [vmem:[#allocation4 + $0x168] sm:$0xff]  }
 0x238   : > { %15141 = vmatpush3.bf16.msra.mxu0 %v16771_v54  ;;  %5351 = vmatprep.mubr.bf16.mxu0 %v18432_v53  ;;  %v14619_v34 = vadd.f32 %v14618_v24, %v14617_v6  ;;  %665 = vst [vmem:[#allocation3 + $0x4c] sm:$0x1] %v17843_v38  ;;  %v16779_v53 = vld [vmem:[#allocation4 + $0xa0] sm:$0xff]   ;;  %v16777_v54 = vld [vmem:[#allocation4 + $0x118] sm:$0xff]   ;;  %v16786_v6 = vld [vmem:[#allocation4 + $0xf0] sm:$0xff]  }
 0x239   : > { %15142 = vmatprep.subr.bf16.mxu0 %v16774_v31  ;;  %15179 = vmatpush3.bf16.msra.mxu1 %v16769_v42  ;;  %v14654_v31 = vpop.f32.mrb[12].mxu1  ;;  %v16783_v42 = vld [vmem:[#allocation4 + $0xa8] sm:$0xff]  }
 0x23a   : > { %15180 = vmatprep.subr.bf16.mxu1 %v16772_v12  ;;  %v14655_v47 = vpop.f32.mrb[13].mxu1 }
 0x23b   : > { %v14657_v24 = vpop.f32.mrb[14].mxu1 }
 0x23c   : > { %15143 = vmatpush3.bf16.msra.mxu0 %v16775_v18  ;;  %5295 = vmatmul.mubr.bf16.gmra.mrb[108].mxu1 %v18466_v14  ;;  %v14676_v12 = vpop.f32.mrb[16].mxu0  ;;  %v14656_v18 = vadd.f32 %v14655_v47, %v14654_v31  ;;  %v14658_v38 = vpop.f32.mrb[15].mxu1  ;;  %v16790_v31 = vld [vmem:[#allocation4 + $0xf8] sm:$0xff]  }
 0x23d   : > { %15144 = vmatprep.subr.bf16.mxu0 %v16778_v43  ;;  %15181 = vmatpush3.bf16.msra.mxu1 %v16773_v44  ;;  %v14677_v43 = vpop.f32.mrb[17].mxu0 }
 0x23e   : > { %5302 = vmatprep.mubr.bf16.mxu1 %v18474_v27  ;;  %15182 = vmatprep.subr.bf16.mxu1 %v16776_v49  ;;  %v14678_v44 = vadd.f32 %v14677_v43, %v14676_v12  ;;  %v14679_v11 = vpop.f32.mrb[18].mxu0  ;;  %v18788_v27 = vadd.f32 %v14656_v18, %v14616_v59  ;;  %v14659_v49 = vadd.f32 %v14658_v38, %v14657_v24  ;;  %v16791_v12 = vld [vmem:[#allocation4 + $0xb8] sm:$0xff]  }
 0x240   : > { %15145 = vmatpush3.bf16.msra.mxu0 %v16779_v53  ;;  %v14680_v53 = vpop.f32.mrb[19].mxu0  ;;  %v18792_v47 = vadd.f32 %v14659_v49, %v14619_v34  ;;  %v16797_v49 = vld [vmem:[#allocation4 + $0x1c8] sm:$0xff]  }
 0x241   : > { %15146 = vmatprep.subr.bf16.mxu0 %v16782_v23  ;;  %15183 = vmatpush3.bf16.msra.mxu1 %v16777_v54  ;;  %v1868_v23 = vadd.f32 %v14678_v44, %v18745_v0  ;;  %v14681_v14 = vadd.f32 %v14680_v53, %v14679_v11  ;;  %v16785_v54 = vld [vmem:[#allocation4 + $0x128] sm:$0xff]   ;;  %v16789_v11 = vld [vmem:[#allocation4 + $0x130] sm:$0xff]  }
 0x242   : > { %15184 = vmatprep.subr.bf16.mxu1 %v16780_v52  ;;  %v16788_v52 = vld [vmem:[#allocation4 + $0x170] sm:$0xff]  }
 0x243   : > { %v1871_v59 = vadd.f32 %v14681_v14, %v18753_v46  ;;  %v16792_v14 = vld [vmem:[#allocation4 + $0x178] sm:$0xff]   ;;  %v16795_v46 = vld [vmem:[#allocation4 + $0x180] sm:$0xff]  }
 0x244   : > { %15147 = vmatpush3.bf16.msra.mxu0 %v16783_v42  ;;  %5303 = vmatmul.mubr.bf16.gmra.mrb[112].mxu1 %v18497_v17  ;;  %v14716_v42 = vpop.f32.mrb[16].mxu1  ;;  %v14682_v0 = vpop.f32.mrb[20].mxu0 }
 0x245   : > { %15148 = vmatprep.subr.bf16.mxu0 %v16786_v6  ;;  %15185 = vmatpush3.bf16.msra.mxu1 %v16781_v9  ;;  %v14717_v18 = vpop.f32.mrb[17].mxu1  ;;  %v16794_v6 = vld [vmem:[#allocation4 + $0x1c0] sm:$0xff]   ;;  %v14683_v9 = vpop.f32.mrb[21].mxu0 }
 0x246   : > { %5310 = vmatprep.mubr.bf16.mxu1 %v18506_v26  ;;  %15186 = vmatprep.subr.bf16.mxu1 %v16784_v45  ;;  %v14718_v34 = vadd.f32 %v14717_v18, %v14716_v42  ;;  %v14719_v24 = vpop.f32.mrb[18].mxu1  ;;  %v14684_v26 = vadd.f32 %v14683_v9, %v14682_v0  ;;  %v14685_v38 = vpop.f32.mrb[22].mxu0  ;;  %v16800_v0 = vld [vmem:[#allocation4 + $0x1d0] sm:$0xff]   ;;  %v21469_v9 = vmov 0 }
 0x247   : > { %v14720_v43 = vpop.f32.mrb[19].mxu1  ;;  %v14686_v44 = vpop.f32.mrb[23].mxu0  ;;  %v21470_v9 = vsel %vm18822_vm9, 4294967295, %v21469_v9 }
 0x248   : > { %15149 = vmatpush3.bf16.msra.mxu0 %v16787_v55  ;;  %v14721_v45 = vadd.f32 %v14720_v43, %v14719_v24  ;;  %v16793_v55 = vld [vmem:[#allocation4 + $0x138] sm:$0xff]   ;;  %v18796_v53 = vadd.f32 %v14718_v34, %v1868_v23  ;;  %v14687_v42 = vadd.f32 %v14686_v44, %v14685_v38  ;;  %21471 = vst [vmem:[#allocation51_spill] sm:$0xff] %v21470_v9  ;;  %v607_v43 = vld [vmem:[#allocation2 + $0x30] sm:$0x11] }
 0x249   : > { %15150 = vmatprep.subr.bf16.mxu0 %v16790_v31  ;;  %15187 = vmatpush3.bf16.msra.mxu1 %v16785_v54  ;;  %v1876_v31 = vadd.f32 %v14684_v26, %v18769_v61  ;;  %v16796_v54 = vld [vmem:[#allocation4 + $0x200] sm:$0xff]   ;;  %v16798_v61 = vld [vmem:[#allocation4 + $0x188] sm:$0xff]  }
 0x24a   : > { %15188 = vmatprep.subr.bf16.mxu1 %v16788_v52  ;;  %v21463_v52 = vmov 0  ;;  %v18806_v23 = vadd.f32 %v14721_v45, %v1871_v59  ;;  %v1879_v18 = vadd.f32 %v14687_v42, %v18772_v51  ;;  %v619_v59 = vld [vmem:[#allocation2 + $0x70] sm:$0x11]  ;;  %v542_v51 = vld [vmem:[#allocation2 + $0x20] sm:$0x11]  ;;  %v21472_v42 = vmov 0 }
 0x24b   : > { %v21464_v52 = vsel %vm18802_vm3, 4294967295, %v21463_v52  ;;  %v21473_v42 = vsel %vm18832_vm11, 4294967295, %v21472_v42 }
 0x24c   : > { %15151 = vmatpush3.bf16.msra.mxu0 %v16791_v12  ;;  %5311 = vmatmul.mubr.bf16.gmra.mrb[116].mxu1 %v18528_v36  ;;  %21465 = vst [vmem:[#allocation41_spill] sm:$0xff] %v21464_v52  ;;  %v554_v12 = vld [vmem:[#allocation2 + $0x60] sm:$0x11]  ;;  %v14688_v34 = vpop.f32.mrb[24].mxu0  ;;  %21474 = vst [vmem:[#allocation42_spill] sm:$0xff] %v21473_v42 }
 0x24d   : > { %15216 = vmatprep.subr.bf16.mxu0 %v16794_v6  ;;  %15189 = vmatpush3.bf16.msra.mxu1 %v16789_v11  ;;  %v21466_v11 = vmov 0  ;;  %v555_v24 = vsel %vm18814_vm8, 0, %v554_v12  ;;  %v2028_v12 = vlaneseq }
 0x24e   : > { %5416 = vmatprep.mubr.bf16.mxu1 %v18764_v40  ;;  %15190 = vmatprep.subr.bf16.mxu1 %v16792_v14  ;;  %v14722_v40 = vpop.f32.mrb[20].mxu1  ;;  %v21467_v11 = vsel %vm18814_vm8, 4294967295, %v21466_v11  ;;  %v14689_v14 = vpop.f32.mrb[25].mxu0  ;;  %556 = vst [vmem:[#allocation2 + $0x60] sm:$0x11] %v555_v24  ;;  %v620_v24 = vsel %vm18832_vm11, 0, %v619_v59 }
 0x24f   : > { %5352 = vmatmul.mubr.bf16.vlgmr.msra.gmra.mrb[112].mxu0 %v18693_v56  ;;  %21468 = vst [vmem:[#allocation49_spill] sm:$0xff] %v21467_v11  ;;  %v14723_v6 = vpop.f32.mrb[21].mxu1  ;;  %v16799_v56 = vld [vmem:[#allocation4 + $0x208] sm:$0xff]   ;;  %v14690_v45 = vadd.f32 %v14689_v14, %v14688_v34  ;;  %v14691_v44 = vpop.f32.mrb[26].mxu0  ;;  %v608_v34 = vsel %vm18832_vm11, 0, %v607_v43 }
 0x250   : > { %15217 = vmatpush3.bf16.msra.mxu0 %v16795_v46  ;;  %5359 = vmatprep.mubr.bf16.mxu0 %v18470_v2  ;;  %v543_v2 = vsel %vm18814_vm8, 0, %v542_v51  ;;  %v14724_v26 = vadd.f32 %v14723_v6, %v14722_v40  ;;  %v14725_v38 = vpop.f32.mrb[22].mxu1  ;;  %v560_v40 = vld [vmem:[#allocation2 + $0x80] sm:$0x11]  ;;  %v14692_v51 = vpop.f32.mrb[27].mxu0  ;;  %v16803_v6 = vld [vmem:[#allocation4 + $0x1d8] sm:$0xff]  }
 0x251   : > { %15218 = vmatprep.subr.bf16.mxu0 %v16797_v49  ;;  %15191 = vmatpush3.bf16.msra.mxu1 %v16793_v55  ;;  %544 = vst [vmem:[#allocation2 + $0x20] sm:$0x11] %v543_v2  ;;  %v14726_v46 = vpop.f32.mrb[23].mxu1  ;;  %v16801_v49 = vld [vmem:[#allocation4 + $0x190] sm:$0xff]   ;;  %v625_v14 = vld [vmem:[#allocation2 + $0x90] sm:$0x11]  ;;  %v1884_v36 = vadd.f32 %v14690_v45, %v18779_v32  ;;  %v14693_v17 = vadd.f32 %v14692_v51, %v14691_v44 }
 0x252   : > { %16244 = vmatprep.subr.bf16.mxu1 %v16796_v54  ;;  %v14727_v55 = vadd.f32 %v14726_v46, %v14725_v38  ;;  %v18838_v2 = vadd.f32 %v14724_v26, %v1876_v31  ;;  %621 = vst [vmem:[#allocation2 + $0x70] sm:$0x11] %v620_v24  ;;  %609 = vst [vmem:[#allocation2 + $0x30] sm:$0x11] %v608_v34  ;;  %v626_v59 = vsel %vm18832_vm11, 0, %v625_v14  ;;  %v14728_v38 = vpop.f32.mrb[24].mxu1 }
 0x253   : > { %627 = vst [vmem:[#allocation2 + $0x90] sm:$0x11] %v626_v59  ;;  %v613_v43 = vld [vmem:[#allocation2 + $0x50] sm:$0x11]  ;;  %v1887_v32 = vadd.f32 %v14693_v17, %v18783_v60  ;;  %v16805_v17 = vld [vmem:[#allocation4 + $0x218] sm:$0xff]   ;;  %v16809_v59 = vld [vmem:[#allocation4 + $0x1e8] sm:$0xff]  }
 0x254   : > { %15219 = vmatpush3.bf16.msra.mxu0 %v16798_v61  ;;  %5417 = vmatmul.mubr.bf16.vlgmr.msra.gmra.mrb[120].mxu1 %v18543_v58  ;;  %v561_v61 = vsel %vm18814_vm8, 0, %v560_v40  ;;  %v18849_v31 = vadd.f32 %v14727_v55, %v1879_v18  ;;  %v548_v58 = vld [vmem:[#allocation2 + $0x40] sm:$0x11]  ;;  %v14729_v18 = vpop.f32.mrb[25].mxu1  ;;  %v14694_v46 = vpop.f32.mrb[28].mxu0  ;;  %v16806_v60 = vld [vmem:[#allocation4 + $0x1e0] sm:$0xff]  }
 0x255   : > { %15220 = vmatprep.subr.bf16.mxu0 %v16800_v0  ;;  %16245 = vmatpush3.bf16.msra.mxu1 %v16796_v54  ;;  %562 = vst [vmem:[#allocation2 + $0x80] sm:$0x11] %v561_v61  ;;  %v16802_v0 = vld [vmem:[#allocation4 + $0x210] sm:$0xff]   ;;  %v549_v26 = vsel %vm18814_vm8, 0, %v548_v58  ;;  %v614_v54 = vsel %vm18832_vm11, 0, %v613_v43  ;;  %v14730_v45 = vadd.f32 %v14729_v18, %v14728_v38  ;;  %v14731_v44 = vpop.f32.mrb[26].mxu1 }
 0x256   : > { %5424 = vmatprep.mubr.bf16.mxu1 %v18549_v37  ;;  %16246 = vmatprep.subr.bf16.mxu1 %v16799_v56  ;;  %v16804_v37 = vld [vmem:[#allocation4 + $0x198] sm:$0xff]   ;;  %550 = vst [vmem:[#allocation2 + $0x40] sm:$0x11] %v549_v26  ;;  %615 = vst [vmem:[#allocation2 + $0x50] sm:$0x11] %v614_v54  ;;  %v14695_v40 = vpop.f32.mrb[29].mxu0 }
 0x257   : > { %5360 = vmatmul.mubr.bf16.gmra.mrb[116].mxu0 %v18718_v62  ;;  %v18858_v62 = vshrl.u32 %v2028_v12, 7  ;;  %v14732_v55 = vpop.f32.mrb[27].mxu1  ;;  %v14696_v51 = vadd.f32 %v14695_v40, %v14694_v46  ;;  %v16807_v34 = vld [vmem:[#allocation4 + $0x1a0] sm:$0xff]   ;;  %v18860_v14 = vadd.f32 %v14730_v45, %v1884_v36  ;;  %v578_v58 = vld [vmem:[#allocation2 + $0xe0] sm:$0x11] }
 0x258   : > { %15221 = vmatpush3.bf16.msra.mxu0 %v16801_v49  ;;  %5367 = vmatprep.mubr.bf16.mxu0 %v18501_v50  ;;  %v14697_v49 = vpop.f32.mrb[30].mxu0  ;;  %v14733_v24 = vadd.f32 %v14732_v55, %v14731_v44  ;;  %v18864_v61 = vld [vmem:[#allocation7] sm:$0xf]  ;;  %v579_v43 = vsel %vm18814_vm8, 0, %v578_v58  ;;  %v566_v26 = vld [vmem:[#allocation2 + $0xa0] sm:$0x11] }
 0x259   : > { %15222 = vmatprep.subr.bf16.mxu0 %v16803_v6  ;;  %16247 = vmatpush3.bf16.msra.mxu1 %v16799_v56  ;;  %v14698_v50 = vpop.f32.mrb[31].mxu0  ;;  %v1892_v6 = vadd.f32 %v14696_v51, %v18788_v27  ;;  %v2030_v56 = vsub.s32 0, %v18858_v62  ;;  %v643_v36 = vld [vmem:[#allocation2 + $0xf0] sm:$0x11]  ;;  %580 = vst [vmem:[#allocation2 + $0xe0] sm:$0x11] %v579_v43 }
 0x25a   : > { %16248 = vmatprep.subr.bf16.mxu1 %v16802_v0  ;;  %v14699_v12 = vadd.f32 %v14698_v50, %v14697_v49  ;;  %v18870_v54 = vadd.f32 %v14733_v24, %v1887_v32  ;;  %v16808_v27 = vld [vmem:[#allocation4 + $0x220] sm:$0xff]   ;;  %v14734_v18 = vpop.f32.mrb[28].mxu1  ;;  %v16812_v32 = vld [vmem:[#allocation4 + $0x1f0] sm:$0xff]   ;;  %v16811_v51 = vld [vmem:[#allocation4 + $0x228] sm:$0xff]  }
 0x25b   : > { %v18874_v38 = vld [vmem:[#allocation9] sm:$0xf]  ;;  %v18882_v46 = vrot.slane %v18864_v61, %v2030_v56  ;;  %v584_v45 = vld [vmem:[#allocation2 + $0x100] sm:$0x11] }
 0x25c   : > { %15223 = vmatpush3.bf16.msra.mxu0 %v16804_v37  ;;  %5425 = vmatmul.mubr.bf16.gmra.mrb[124].mxu1 %v18564_v15  ;;  %v1895_v15 = vadd.f32 %v14699_v12, %v18792_v47  ;;  %v16810_v37 = vld [vmem:[#allocation4 + $0x1a8] sm:$0xff]   ;;  %v631_v47 = vld [vmem:[#allocation2 + $0xb0] sm:$0x11]  ;;  %v16190_v55 = vpop.f32.mrb[32].mxu0 }
 0x25d   : > { %15224 = vmatprep.subr.bf16.mxu0 %v16806_v60  ;;  %16249 = vmatpush3.bf16.msra.mxu1 %v16802_v0  ;;  %v567_v0 = vsel %vm18814_vm8, 0, %v566_v26  ;;  %v632_v60 = vsel %vm18832_vm11, 0, %v631_v47  ;;  %v649_v49 = vld [vmem:[#allocation2 + $0x110] sm:$0x11]  ;;  %v2006_v50 = vadd.f32 %v16190_v55, %v18838_v2  ;;  %v1997_v12 = vpop.f32.mrb[33].mxu0  ;;  %v16818_v55 = vld [vmem:[#allocation10 + $0x40] sm:$0xff]  }
 0x25e   : > { %5432 = vmatprep.mubr.bf16.mxu1 %v18603_v5  ;;  %16250 = vmatprep.subr.bf16.mxu1 %v16805_v17  ;;  %v644_v5 = vsel %vm18832_vm11, 0, %v643_v36  ;;  %568 = vst [vmem:[#allocation2 + $0xa0] sm:$0x11] %v567_v0  ;;  %633 = vst [vmem:[#allocation2 + $0xb0] sm:$0x11] %v632_v60  ;;  %v1998_v43 = vadd.f32 %v1997_v12, %v18796_v53  ;;  %v16191_v36 = vpop.f32.mrb[34].mxu0 }
 0x25f   : > { %5368 = vmatmul.mubr.bf16.gmra.mrb[120].mxu0 %v18736_v13  ;;  %645 = vst [vmem:[#allocation2 + $0xf0] sm:$0x11] %v644_v5  ;;  %v14735_v13 = vpop.f32.mrb[29].mxu1  ;;  %v16815_v5 = vld [vmem:[#allocation4 + $0x1f8] sm:$0xff]   ;;  %v572_v0 = vld [vmem:[#allocation2 + $0xc0] sm:$0x11]  ;;  %v2034_v2 = vmul.f32 %v18882_v46, %v2006_v50 }
 0x260   : > { %15225 = vmatpush3.bf16.msra.mxu0 %v16807_v34  ;;  %5375 = vmatprep.mubr.bf16.mxu0 %v18537_v41  ;;  %v14736_v44 = vadd.f32 %v14735_v13, %v14734_v18  ;;  %v14737_v40 = vpop.f32.mrb[30].mxu1  ;;  %v585_v41 = vsel %vm18814_vm8, 0, %v584_v45  ;;  %v18890_v34 = vrot.slane %v18874_v38, %v2030_v56  ;;  %v2009_v56 = vadd.f32 %v16191_v36, %v18849_v31  ;;  %v2000_v18 = vpop.f32.mrb[35].mxu0  ;;  %v637_v13 = vld [vmem:[#allocation2 + $0xd0] sm:$0x11]  ;;  %v16819_v36 = vld [vmem:[#allocation10] sm:$0xff]  }
 0x261   : > { %15226 = vmatprep.subr.bf16.mxu0 %v16809_v59  ;;  %16251 = vmatpush3.bf16.msra.mxu1 %v16805_v17  ;;  %v14738_v24 = vpop.f32.mrb[31].mxu1  ;;  %v16813_v59 = vld [vmem:[#allocation4 + $0x1b0] sm:$0xff]   ;;  %586 = vst [vmem:[#allocation2 + $0x100] sm:$0x11] %v585_v41  ;;  %v650_v17 = vsel %vm18832_vm11, 0, %v649_v49  ;;  %v573_v47 = vsel %vm18814_vm8, 0, %v572_v0  ;;  %v2032_v53 = vmul.f32 %v18882_v46, %v1998_v43 }
 0x262   : > { %16252 = vmatprep.subr.bf16.mxu1 %v16808_v27  ;;  %v14739_v58 = vadd.f32 %v14738_v24, %v14737_v40  ;;  %v1957_v26 = vadd.f32 %v14736_v44, %v1892_v6  ;;  %651 = vst [vmem:[#allocation2 + $0x110] sm:$0x11] %v650_v17  ;;  %v2001_v6 = vadd.f32 %v2000_v18, %v18806_v23  ;;  %574 = vst [vmem:[#allocation2 + $0xc0] sm:$0x11] %v573_v47  ;;  %v14768_v23 = vpop.f32.mrb[32].mxu1  ;;  %v16817_v43 = vld [vmem:[#allocation4 + $0x238] sm:$0xff]  }
 0x263   : > { %v2046_v31 = vadd.f32 %v18890_v34, %v2034_v2  ;;  %v2044_v60 = vadd.f32 %v18890_v34, %v2032_v53  ;;  %v14769_v40 = vpop.f32.mrb[33].mxu1 }
 0x264   : > { %15227 = vmatpush3.bf16.msra.mxu0 %v16810_v37  ;;  %5433 = vmatmul.mubr.bf16.gmra.mrb[128].mxu1 %v18568_v28  ;;  %v18903_v37 = vadd.f32 %v14739_v58, %v1895_v15  ;;  %v638_v28 = vsel %vm18832_vm11, 0, %v637_v13  ;;  %v16816_v15 = vld [vmem:[#allocation4 + $0x1b8] sm:$0xff]   ;;  %v18915_v49 = vadd.f32 %v14769_v40, %v14768_v23  ;;  %v14771_v24 = vpop.f32.mrb[34].mxu1  ;;  %v16194_v50 = vpop.f32.mrb[36].mxu0 }
 0x265   : > { %15228 = vmatprep.subr.bf16.mxu0 %v16812_v32  ;;  %16253 = vmatpush3.bf16.msra.mxu1 %v16808_v27  ;;  %v2035_v32 = vmul.f32 %v18882_v46, %v2009_v56  ;;  %v16814_v27 = vld [vmem:[#allocation4 + $0x230] sm:$0xff]   ;;  %639 = vst [vmem:[#allocation2 + $0xd0] sm:$0x11] %v638_v28  ;;  %v2054_v45 = vmax.f32 %v2046_v31, 0.0  ;;  %v2052_v41 = vmax.f32 %v2044_v60, 0.0  ;;  %v14772_v17 = vpop.f32.mrb[35].mxu1 }
 0x266   : > { %5440 = vmatprep.mubr.bf16.mxu1 %v18606_v4  ;;  %16254 = vmatprep.subr.bf16.mxu1 %v16811_v51  ;;  %v2033_v4 = vmul.f32 %v18882_v46, %v2001_v6  ;;  %v2013_v58 = vpop.f32.mrb[37].mxu0  ;;  %v18917_v2 = vadd.f32 %v14772_v17, %v14771_v24  ;;  %v16820_v6 = vld [vmem:[#allocation10 + $0x48] sm:$0xff]   ;;  %v2190_v31 = vld [vmem:[#allocation2 + $0x70] sm:$0x1] }
 0x267   : > { %5376 = vmatmul.mubr.bf16.gmra.mrb[124].mxu0 %v18757_v39  ;;  %v2047_v44 = vadd.f32 %v18890_v34, %v2035_v32  ;;  %v14541_v12 = vpack.c.bf16 %v2054_v45, %v2054_v45  ;;  %v14539_v0 = vpack.c.bf16 %v2052_v41, %v2052_v41  ;;  %v2014_v56 = vadd.f32 %v2013_v58, %v18860_v14  ;;  %v18920_v18 = vpop.f32.mrb[38].mxu0  ;;  %v2187_v28 = vld [vmem:[#allocation2 + $0x60] sm:$0xf]  ;;  %v2178_v45 = vld [vmem:[#allocation2 + $0x30] sm:$0x1] }
 0x268   : > { %15229 = vmatpush3.bf16.msra.mxu0 %v16813_v59  ;;  %5481 = vmatprep.mubr.bf16.mxu0 %v18342_v22  ;;  %v2045_v39 = vadd.f32 %v18890_v34, %v2033_v4  ;;  %v2022_v22 = vadd.f32 %v16194_v50, %v1957_v26  ;;  %v18924_v26 = vpop.f32.mrb[39].mxu0  ;;  %v21475_v4 = vcombine.low %v18686_v1, %v18703_v10  ;;  %v16821_v41 = vld [vmem:[#allocation10 + $0x8] sm:$0xff]   ;;  %v2196_v10 = vld [vmem:[#allocation2 + $0x90] sm:$0x1] }
 0x269   : > { %15230 = vmatprep.subr.bf16.mxu0 %v16815_v5  ;;  %16255 = vmatpush3.bf16.msra.mxu1 %v16811_v51  ;;  %v2055_v59 = vmax.f32 %v2047_v44, 0.0  ;;  %v2109_v51 = vshrl.u32 %v14541_v12, 16  ;;  %v2112_v47 = vshll.u32 %v14541_v12, 16  ;;  %v2093_v32 = vshrl.u32 %v14539_v0, 16  ;;  %v2193_v1 = vld [vmem:[#allocation2 + $0x80] sm:$0xf] }
 0x26a   : > { %16256 = vmatprep.subr.bf16.mxu1 %v16814_v27  ;;  %v2053_v5 = vmax.f32 %v2045_v39, 0.0  ;;  %v2038_v53 = vmul.f32 %v18882_v46, %v2022_v22  ;;  %v2096_v60 = vshll.u32 %v14539_v0, 16  ;;  %v2036_v14 = vmul.f32 %v18882_v46, %v2014_v56  ;;  %v2181_v58 = vld [vmem:[#allocation2 + $0x40] sm:$0xf]  ;;  %v2184_v0 = vld [vmem:[#allocation2 + $0x50] sm:$0x1] }
 0x26b   : > { %v14542_v13 = vpack.c.bf16 %v2055_v59, %v2055_v59  ;;  %v2095_v39 = vrot.slane %v2093_v32, 7  ;;  %v14774_v59 = vpop.f32.mrb[36].mxu1 }
 0x26c   : > { %15231 = vmatpush3.bf16.msra.mxu0 %v16816_v15  ;;  %5441 = vmatmul.mubr.bf16.gmra.mrb[132].mxu1 %v18581_v19  ;;  %v14540_v23 = vpack.c.bf16 %v2053_v5, %v2053_v5  ;;  %v2111_v15 = vrot.slane %v2109_v51, 7  ;;  %v2175_v19 = vld [vmem:[#allocation2 + $0x20] sm:$0xf]  ;;  %v2048_v12 = vadd.f32 %v18890_v34, %v2036_v14  ;;  %v14775_v56 = vpop.f32.mrb[37].mxu1 }
 0x26d   : > { %15268 = vmatprep.subr.bf16.mxu0 %v16818_v55  ;;  %16257 = vmatpush3.bf16.msra.mxu1 %v16814_v27  ;;  %v2117_v44 = vshrl.u32 %v14542_v13, 16  ;;  %v2120_v40 = vshll.u32 %v14542_v13, 16  ;;  %v2050_v55 = vadd.f32 %v18890_v34, %v2038_v53  ;;  %v21476_v27 = vmov 0 }
 0x26e   : > { %16260 = vmatprep.mubr.bf16.mxu1 %v21475_v4  ;;  %16258 = vmatprep.subr.bf16.mxu1 %v16817_v43  ;;  %v21477_v27 = vsel %vm18934_vm13, 4294967295, %v21476_v27  ;;  %v2101_v24 = vshrl.u32 %v14540_v23, 16  ;;  %v2104_v50 = vshll.u32 %v14540_v23, 16  ;;  %v2114_v17 = vor.u32 %v2112_v47, %v2111_v15  ;;  %v14777_v4 = vpop.f32.mrb[38].mxu1 }
 0x26f   : > { %5482 = vmatmul.mubr.bf16.vlgmr.msra.gmra.mrb[128].mxu0 %v18614_v25  ;;  %21478 = vst [vmem:[#allocation44_spill] sm:$0xff] %v21477_v27  ;;  %v2115_v25 = vrot.slane %v2111_v15, 4  ;;  %v2119_v22 = vrot.slane %v2117_v44, 7  ;;  %v2058_v5 = vmax.f32 %v2050_v55, 0.0  ;;  %v2098_v51 = vor.u32 %v2096_v60, %v2095_v39  ;;  %v14778_v14 = vpop.f32.mrb[39].mxu1  ;;  %v16822_v15 = vld [vmem:[#allocation10 + $0x50] sm:$0xff]  }
 0x270   : > { %5489 = vmatprep.mubr.bf16.mxu0 %v18370_v8  ;;  %15269 = vmatpush3.bf16.msra.mxu0 %v16819_v36  ;;  %v2099_v13 = vrot.slane %v2095_v39, 4  ;;  %v2103_v53 = vrot.slane %v2101_v24, 7  ;;  %v2056_v32 = vmax.f32 %v2048_v12, 0.0  ;;  %v2188_v23 = vsel %vm18934_vm13, %v2114_v17, %v2187_v28  ;;  %v16824_v24 = vld [vmem:[#allocation10 + $0x58] sm:$0xff]   ;;  %v2211_v17 = vld [vmem:[#allocation2 + $0xe0] sm:$0xf] }
 0x271   : > { %15270 = vmatprep.subr.bf16.mxu0 %v16820_v6  ;;  %16259 = vmatpush3.bf16.msra.mxu1 %v16817_v43  ;;  %v2191_v8 = vsel %vm18802_vm3, %v2115_v25, %v2190_v31  ;;  %v2122_v36 = vor.u32 %v2120_v40, %v2119_v22  ;;  %v2123_v47 = vrot.slane %v2119_v22, 4  ;;  %2189 = vst [vmem:[#allocation2 + $0x60] sm:$0xf] %v2188_v23  ;;  %v2214_v25 = vld [vmem:[#allocation2 + $0xf0] sm:$0x1] }
 0x272   : > { %2192 = vst [vmem:[#allocation2 + $0x70] sm:$0x1] %v2191_v8  ;;  %v2176_v6 = vsel %vm18934_vm13, %v2098_v51, %v2175_v19  ;;  %v2179_v60 = vsel %vm18802_vm3, %v2099_v13, %v2178_v45  ;;  %v2106_v44 = vor.u32 %v2104_v50, %v2103_v53  ;;  %v2107_v43 = vrot.slane %v2103_v53, 4  ;;  %v16823_v19 = vld [vmem:[#allocation10 + $0x10] sm:$0xff]   ;;  %v2199_v22 = vld [vmem:[#allocation2 + $0xa0] sm:$0xf] }
 0x273   : > { %2177 = vst [vmem:[#allocation2 + $0x20] sm:$0xf] %v2176_v6  ;;  %2180 = vst [vmem:[#allocation2 + $0x30] sm:$0x1] %v2179_v60  ;;  %v2194_v28 = vsel %vm18934_vm13, %v2122_v36, %v2193_v1  ;;  %v2197_v31 = vsel %vm18802_vm3, %v2123_v47, %v2196_v10  ;;  %v14545_v40 = vpack.c.bf16 %v2058_v5, %v2058_v5 }
 0x274   : > { %15271 = vmatpush3.bf16.msra.mxu0 %v16821_v41  ;;  %v14543_v55 = vpack.c.bf16 %v2056_v32, %v2056_v32  ;;  %v21479_v39 = vcombine.low %v18707_v48, %v18722_v16  ;;  %2195 = vst [vmem:[#allocation2 + $0x80] sm:$0xf] %v2194_v28  ;;  %2198 = vst [vmem:[#allocation2 + $0x90] sm:$0x1] %v2197_v31  ;;  %v2182_v45 = vsel %vm18934_vm13, %v2106_v44, %v2181_v58  ;;  %v2202_v58 = vld [vmem:[#allocation2 + $0xb0] sm:$0x1] }
 0x275   : > { %v2185_v41 = vsel %vm18802_vm3, %v2107_v43, %v2184_v0  ;;  %v2025_v1 = vadd.f32 %v18920_v18, %v18903_v37  ;;  %v2017_v10 = vadd.f32 %v18924_v26, %v18870_v54  ;;  %v21480_v48 = vcombine.low %v18725_v57, %v18742_v20  ;;  %2183 = vst [vmem:[#allocation2 + $0x40] sm:$0xf] %v2182_v45  ;;  %v14780_v20 = vpop.f32.mrb[40].mxu1  ;;  %v16827_v31 = vld [vmem:[#allocation10 + $0x20] sm:$0xff]   ;;  %v2205_v45 = vld [vmem:[#allocation2 + $0xc0] sm:$0xf] }
 0x276   : > { %16261 = vmatmul.mubr.bf16.vlgmr.msra.gmra.mrb[136].mxu1 %v21479_v39  ;;  %2186 = vst [vmem:[#allocation2 + $0x50] sm:$0x1] %v2185_v41  ;;  %v2141_v16 = vshrl.u32 %v14545_v40, 16  ;;  %v2144_v50 = vshll.u32 %v14545_v40, 16  ;;  %v2125_v12 = vshrl.u32 %v14543_v55, 16  ;;  %15272 = vmatprep.subr.bf16.mxu0 %v16822_v15  ;;  %v18969_v18 = vadd.f32 %v14775_v56, %v14774_v59  ;;  %v16828_v40 = vld [vmem:[#allocation10 + $0x68] sm:$0xff]  }
 0x277   : > { %16264 = vmatprep.mubr.bf16.mxu1 %v21480_v48  ;;  %5490 = vmatmul.mubr.bf16.gmra.mrb[132].mxu0 %v18622_v33  ;;  %v2039_v37 = vmul.f32 %v18882_v46, %v2025_v1  ;;  %v2037_v54 = vmul.f32 %v18882_v46, %v2017_v10  ;;  %v18971_v57 = vadd.f32 %v14778_v14, %v14777_v4  ;;  %v2128_v5 = vshll.u32 %v14543_v55, 16  ;;  %v14781_v33 = vpop.f32.mrb[41].mxu1  ;;  %v16825_v46 = vld [vmem:[#allocation10 + $0x18] sm:$0xff]   ;;  %v16829_v10 = vld [vmem:[#allocation10 + $0x28] sm:$0xff]  }
 0x278   : > { %5497 = vmatprep.mubr.bf16.mxu0 %v18426_v30  ;;  %v2143_v26 = vrot.slane %v2141_v16, 7  ;;  %v2127_v0 = vrot.slane %v2125_v12, 7  ;;  %15273 = vmatpush3.bf16.msra.mxu0 %v16823_v19  ;;  %v18976_v53 = vadd.f32 %v14781_v33, %v14780_v20  ;;  %v14783_v32 = vpop.f32.mrb[42].mxu1  ;;  %v16826_v30 = vld [vmem:[#allocation10 + $0x60] sm:$0xff]   ;;  %v21481_v44 = vcombine.low %v18747_v29, %v18740_v35  ;;  %v2217_v29 = vld [vmem:[#allocation2 + $0x100] sm:$0xf] }
 0x279   : > { %v2051_v51 = vadd.f32 %v18890_v34, %v2039_v37  ;;  %v2049_v13 = vadd.f32 %v18890_v34, %v2037_v54  ;;  %15274 = vmatprep.subr.bf16.mxu0 %v16824_v24  ;;  %v14784_v8 = vpop.f32.mrb[43].mxu1  ;;  %v2220_v35 = vld [vmem:[#allocation2 + $0x110] sm:$0x1] }
 0x27a   : > { %v2146_v59 = vor.u32 %v2144_v50, %v2143_v26  ;;  %v2147_v56 = vrot.slane %v2143_v26, 4  ;;  %v2130_v4 = vor.u32 %v2128_v5, %v2127_v0  ;;  %v2131_v23 = vrot.slane %v2127_v0, 4  ;;  %v14786_v19 = vpop.f32.mrb[44].mxu1  ;;  %v2208_v41 = vld [vmem:[#allocation2 + $0xd0] sm:$0x1]  ;;  %v16831_v0 = vld [vmem:[#allocation10 + $0x30] sm:$0xff]  }
 0x27b   : > { %v2059_v36 = vmax.f32 %v2051_v51, 0.0  ;;  %v2057_v47 = vmax.f32 %v2049_v13, 0.0  ;;  %v18978_v14 = vadd.f32 %v14784_v8, %v14783_v32  ;;  %v14787_v1 = vpop.f32.mrb[45].mxu1  ;;  %v16832_v13 = vld [vmem:[#allocation10 + $0x78] sm:$0xff]  }
 0x27c   : > { %v2212_v15 = vsel %vm18934_vm13, %v2146_v59, %v2211_v17  ;;  %v2215_v34 = vsel %vm18802_vm3, %v2147_v56, %v2214_v25  ;;  %v2200_v6 = vsel %vm18934_vm13, %v2130_v4, %v2199_v22  ;;  %v2203_v60 = vsel %vm18802_vm3, %v2131_v23, %v2202_v58  ;;  %15275 = vmatpush3.bf16.msra.mxu0 %v16825_v46  ;;  %v14808_v17 = vpop.f32.mrb[40].mxu0  ;;  %v16830_v25 = vld [vmem:[#allocation10 + $0x70] sm:$0xff]   ;;  %v536_v4 = vld [vmem:[#allocation2] sm:$0x11]  ;;  %v601_v23 = vld [vmem:[#allocation2 + $0x10] sm:$0x11] }
 0x27d   : > { %2213 = vst [vmem:[#allocation2 + $0xe0] sm:$0xf] %v2212_v15  ;;  %2216 = vst [vmem:[#allocation2 + $0xf0] sm:$0x1] %v2215_v34  ;;  %v14546_v43 = vpack.c.bf16 %v2059_v36, %v2059_v36  ;;  %v14544_v28 = vpack.c.bf16 %v2057_v47, %v2057_v47  ;;  %15276 = vmatprep.subr.bf16.mxu0 %v16826_v30  ;;  %v18993_v12 = vadd.f32 %v14787_v1, %v14786_v19  ;;  %v14809_v58 = vpop.f32.mrb[41].mxu0 }
 0x27e   : > { %16265 = vmatmul.mubr.bf16.gmra.mrb[140].mxu1 %v21481_v44  ;;  %2201 = vst [vmem:[#allocation2 + $0xa0] sm:$0xf] %v2200_v6  ;;  %2204 = vst [vmem:[#allocation2 + $0xb0] sm:$0x1] %v2203_v60  ;;  %v14811_v26 = vpop.f32.mrb[42].mxu0  ;;  %v14810_v33 = vadd.f32 %v14809_v58, %v14808_v17  ;;  %v537_v36 = vsel %vm18814_vm8, 0, %v536_v4 }
 0x27f   : > { %5498 = vmatmul.mubr.bf16.gmra.mrb[136].mxu0 %v18634_v7  ;;  %v2149_v55 = vshrl.u32 %v14546_v43, 16  ;;  %v2133_v39 = vshrl.u32 %v14544_v28, 16  ;;  %v2152_v24 = vshll.u32 %v14546_v43, 16  ;;  %v2136_v50 = vshll.u32 %v14544_v28, 16  ;;  %v14789_v7 = vpop.f32.mrb[46].mxu1  ;;  %v14812_v51 = vpop.f32.mrb[43].mxu0 }
 0x280   : > { %5505 = vmatprep.mubr.bf16.mxu0 %v18646_v21  ;;  %15277 = vmatpush3.bf16.msra.mxu0 %v16827_v31  ;;  %v14790_v22 = vpop.f32.mrb[47].mxu1  ;;  %v2938_v8 = vadd.f32 %v14810_v33, %v18915_v49  ;;  %v14813_v30 = vadd.f32 %v14812_v51, %v14811_v26  ;;  %v602_v47 = vsel %vm18832_vm11, 0, %v601_v23  ;;  %538 = vst [vmem:[#allocation2] sm:$0x11] %v537_v36  ;;  %v16833_v60 = vld [vmem:[#allocation10 + $0x38] sm:$0xff]   ;;  %v16836_v31 = vld [vmem:[#allocation10 + $0x140] sm:$0xff]  }
 0x281   : > { %v2151_v48 = vrot.slane %v2149_v55, 7  ;;  %v2135_v16 = vrot.slane %v2133_v39, 7  ;;  %15278 = vmatprep.subr.bf16.mxu0 %v16828_v40  ;;  %v18995_v5 = vadd.f32 %v14790_v22, %v14789_v7  ;;  %v14848_v15 = vpop.f32.mrb[48].mxu1  ;;  %603 = vst [vmem:[#allocation2 + $0x10] sm:$0x11] %v602_v47 }
 0x282   : > { %v2941_v34 = vadd.f32 %v14813_v30, %v18917_v2  ;;  %v14849_v6 = vpop.f32.mrb[49].mxu1 }
 0x283   : > { %v2154_v21 = vor.u32 %v2152_v24, %v2151_v48  ;;  %v2155_v37 = vrot.slane %v2151_v48, 4  ;;  %v2138_v54 = vor.u32 %v2136_v50, %v2135_v16  ;;  %v2139_v20 = vrot.slane %v2135_v16, 4  ;;  %v14851_v43 = vpop.f32.mrb[50].mxu1 }
 0x284   : > { %15279 = vmatpush3.bf16.msra.mxu0 %v16829_v10  ;;  %v14850_v44 = vadd.f32 %v14849_v6, %v14848_v15  ;;  %v14814_v49 = vpop.f32.mrb[44].mxu0  ;;  %v14852_v28 = vpop.f32.mrb[51].mxu1 }
 0x285   : > { %v2218_v32 = vsel %vm18934_vm13, %v2154_v21, %v2217_v29  ;;  %v2221_v46 = vsel %vm18802_vm3, %v2155_v37, %v2220_v35  ;;  %v2206_v59 = vsel %vm18934_vm13, %v2138_v54, %v2205_v45  ;;  %v2209_v56 = vsel %vm18802_vm3, %v2139_v20, %v2208_v41  ;;  %15280 = vmatprep.subr.bf16.mxu0 %v16830_v25 }
 0x286   : > { %2219 = vst [vmem:[#allocation2 + $0x100] sm:$0xf] %v2218_v32  ;;  %2222 = vst [vmem:[#allocation2 + $0x110] sm:$0x1] %v2221_v46  ;;  %v3003_v40 = vadd.f32 %v14850_v44, %v2938_v8  ;;  %v14853_v55 = vadd.f32 %v14852_v28, %v14851_v43 }
 0x287   : > { %2207 = vst [vmem:[#allocation2 + $0xc0] sm:$0xf] %v2206_v59  ;;  %2210 = vst [vmem:[#allocation2 + $0xd0] sm:$0x1] %v2209_v56  ;;  %5506 = vmatmul.mubr.bf16.gmra.mrb[140].mxu0 %v18650_v3  ;;  %v14815_v3 = vpop.f32.mrb[45].mxu0 }
 0x288   : > { %15281 = vmatpush3.bf16.msra.mxu0 %v16831_v0  ;;  %v14816_v39 = vadd.f32 %v14815_v3, %v14814_v49  ;;  %v14817_v19 = vpop.f32.mrb[46].mxu0  ;;  %v3006_v29 = vadd.f32 %v14853_v55, %v2941_v34 }
 0x289   : > { %15282 = vmatprep.subr.bf16.mxu0 %v16832_v13  ;;  %v14818_v24 = vpop.f32.mrb[47].mxu0  ;;  %v14854_v2 = vpop.f32.mrb[52].mxu1 }
 0x28a   : > { %v2946_v35 = vadd.f32 %v14816_v39, %v18969_v18  ;;  %v14819_v45 = vadd.f32 %v14818_v24, %v14817_v19  ;;  %v14855_v1 = vpop.f32.mrb[53].mxu1 }
 0x28b   : > { %v14856_v10 = vadd.f32 %v14855_v1, %v14854_v2  ;;  %v14857_v48 = vpop.f32.mrb[54].mxu1 }
 0x28c   : > { %15283 = vmatpush3.bf16.msra.mxu0 %v16833_v60  ;;  %v2949_v41 = vadd.f32 %v14819_v45, %v18971_v57  ;;  %v14820_v16 = vpop.f32.mrb[48].mxu0  ;;  %v14858_v50 = vpop.f32.mrb[55].mxu1 }
 0x28d   : > { %15348 = vmatprep.subr.bf16.mxu0 %v16836_v31  ;;  %v14821_v7 = vpop.f32.mrb[49].mxu0  ;;  %v19014_v17 = vadd.f32 %v14856_v10, %v2946_v35  ;;  %v14859_v25 = vadd.f32 %v14858_v50, %v14857_v48  ;;  %v3165_v31 = vsub.s32 1, %v18858_v62  ;;  %v557_v48 = vld [vmem:[#allocation2 + $0x68] sm:$0x11] }
 0x28e   : > { %v14822_v22 = vadd.f32 %v14821_v7, %v14820_v16  ;;  %v14823_v58 = vpop.f32.mrb[50].mxu0  ;;  %v558_v7 = vsel %vm18814_vm8, 0, %v557_v48 }
 0x28f   : > { %v14824_v21 = vpop.f32.mrb[51].mxu0  ;;  %v19016_v37 = vadd.f32 %v14859_v25, %v2949_v41  ;;  %v19035_v41 = vrot.slane %v18874_v38, %v3165_v31  ;;  %559 = vst [vmem:[#allocation2 + $0x68] sm:$0x11] %v558_v7 }
 0x290   : > { %v2954_v18 = vadd.f32 %v14822_v22, %v18976_v53  ;;  %v14825_v54 = vadd.f32 %v14824_v21, %v14823_v58  ;;  %v545_v58 = vld [vmem:[#allocation2 + $0x28] sm:$0x11] }
 0x291   : > { %v14860_v20 = vpop.f32.mrb[56].mxu1 }
 0x292   : > { %v2957_v57 = vadd.f32 %v14825_v54, %v18978_v14  ;;  %v14861_v26 = vpop.f32.mrb[57].mxu1  ;;  %v610_v54 = vld [vmem:[#allocation2 + $0x38] sm:$0x11] }
 0x293   : > { %v14862_v0 = vadd.f32 %v14861_v26, %v14860_v20  ;;  %v14863_v33 = vpop.f32.mrb[58].mxu1 }
 0x294   : > { %v14826_v51 = vpop.f32.mrb[52].mxu0  ;;  %v14864_v13 = vpop.f32.mrb[59].mxu1 }
 0x295   : > { %v14827_v32 = vpop.f32.mrb[53].mxu0  ;;  %v19020_v46 = vadd.f32 %v14862_v0, %v2954_v18  ;;  %v14865_v59 = vadd.f32 %v14864_v13, %v14863_v33  ;;  %v546_v18 = vsel %vm18814_vm8, 0, %v545_v58  ;;  %v563_v33 = vld [vmem:[#allocation2 + $0x88] sm:$0x11]  ;;  %v611_v13 = vsel %vm18832_vm11, 0, %v610_v54 }
 0x296   : > { %v14828_v56 = vadd.f32 %v14827_v32, %v14826_v51  ;;  %v14829_v4 = vpop.f32.mrb[54].mxu0  ;;  %547 = vst [vmem:[#allocation2 + $0x28] sm:$0x11] %v546_v18  ;;  %v628_v51 = vld [vmem:[#allocation2 + $0x98] sm:$0x11]  ;;  %v564_v32 = vsel %vm18814_vm8, 0, %v563_v33 }
 0x297   : > { %v14830_v23 = vpop.f32.mrb[55].mxu0  ;;  %v19022_v8 = vadd.f32 %v14865_v59, %v2957_v57  ;;  %v629_v59 = vsel %vm18832_vm11, 0, %v628_v51  ;;  %612 = vst [vmem:[#allocation2 + $0x38] sm:$0x11] %v611_v13  ;;  %565 = vst [vmem:[#allocation2 + $0x88] sm:$0x11] %v564_v32 }
 0x298   : > { %v2962_v53 = vadd.f32 %v14828_v56, %v18993_v12  ;;  %v14831_v30 = vadd.f32 %v14830_v23, %v14829_v4  ;;  %630 = vst [vmem:[#allocation2 + $0x98] sm:$0x11] %v629_v59  ;;  %v3313_v18 = vld [vmem:[#allocation2 + $0x44] sm:$0xf]  ;;  %v3316_v54 = vld [vmem:[#allocation2 + $0x54] sm:$0x1] }
 0x299   : > { %v14866_v36 = vpop.f32.mrb[60].mxu1 }
 0x29a   : > { %v2965_v14 = vadd.f32 %v14831_v30, %v18995_v5  ;;  %v14867_v47 = vpop.f32.mrb[61].mxu1  ;;  %v19032_v5 = vrot.slane %v18864_v61, %v3165_v31  ;;  %v616_v30 = vld [vmem:[#allocation2 + $0x58] sm:$0x11] }
 0x29b   : > { %v14868_v15 = vadd.f32 %v14867_v47, %v14866_v36  ;;  %v14869_v34 = vpop.f32.mrb[62].mxu1 }
 0x29c   : > { %v14888_v6 = vpop.f32.mrb[56].mxu0  ;;  %v14870_v60 = vpop.f32.mrb[63].mxu1 }
 0x29d   : > { %v14889_v44 = vpop.f32.mrb[57].mxu0  ;;  %v19026_v43 = vadd.f32 %v14868_v15, %v2962_v53  ;;  %v14871_v49 = vadd.f32 %v14870_v60, %v14869_v34  ;;  %v551_v53 = vld [vmem:[#allocation2 + $0x48] sm:$0x11] }
 0x29e   : > { %v14890_v28 = vadd.f32 %v14889_v44, %v14888_v6  ;;  %v14891_v3 = vpop.f32.mrb[58].mxu0  ;;  %v552_v36 = vsel %vm18814_vm8, 0, %v551_v53 }
 0x29f   : > { %v14892_v55 = vpop.f32.mrb[59].mxu0  ;;  %v19029_v39 = vadd.f32 %v14871_v49, %v2965_v14  ;;  %v617_v14 = vsel %vm18832_vm11, 0, %v616_v30  ;;  %553 = vst [vmem:[#allocation2 + $0x48] sm:$0x11] %v552_v36  ;;  %v3319_v36 = vld [vmem:[#allocation2 + $0x64] sm:$0xf] }
 0x2a0   : > { %v14893_v12 = vadd.f32 %v14892_v55, %v14891_v3  ;;  %v3068_v19 = vadd.f32 %v14890_v28, %v3003_v40  ;;  %618 = vst [vmem:[#allocation2 + $0x58] sm:$0x11] %v617_v14  ;;  %v3322_v14 = vld [vmem:[#allocation2 + $0x74] sm:$0x1] }
 0x2a1   : > { %v16214_v24 = vpop.f32.mrb[64].mxu1 }
 0x2a2   : > { %v3071_v35 = vadd.f32 %v14893_v12, %v3006_v29  ;;  %v3132_v45 = vpop.f32.mrb[65].mxu1  ;;  %v622_v29 = vld [vmem:[#allocation2 + $0x78] sm:$0x11] }
 0x2a3   : > { %v3133_v2 = vadd.f32 %v3132_v45, %v3068_v19  ;;  %v16215_v1 = vpop.f32.mrb[66].mxu1  ;;  %v623_v38 = vsel %vm18832_vm11, 0, %v622_v29 }
 0x2a4   : > { %v14894_v10 = vpop.f32.mrb[60].mxu0  ;;  %v3135_v16 = vpop.f32.mrb[67].mxu1  ;;  %624 = vst [vmem:[#allocation2 + $0x78] sm:$0x11] %v623_v38  ;;  %v581_v38 = vld [vmem:[#allocation2 + $0xe8] sm:$0x11] }
 0x2a5   : > { %v14895_v50 = vpop.f32.mrb[61].mxu0  ;;  %v3167_v40 = vmul.f32 %v19032_v5, %v3133_v2  ;;  %v3136_v25 = vadd.f32 %v3135_v16, %v3071_v35  ;;  %v3307_v16 = vld [vmem:[#allocation2 + $0x24] sm:$0xf] }
 0x2a6   : > { %v14896_v22 = vadd.f32 %v14895_v50, %v14894_v10  ;;  %v14897_v61 = vpop.f32.mrb[62].mxu0  ;;  %v3310_v50 = vld [vmem:[#allocation2 + $0x34] sm:$0x1] }
 0x2a7   : > { %v14898_v21 = vpop.f32.mrb[63].mxu0  ;;  %v3179_v20 = vadd.f32 %v19035_v41, %v3167_v40  ;;  %v3168_v57 = vmul.f32 %v19032_v5, %v3136_v25 }
 0x2a8   : > { %v3076_v26 = vadd.f32 %v14896_v22, %v19014_v17  ;;  %v14899_v0 = vadd.f32 %v14898_v21, %v14897_v61 }
 0x2a9   : > { %v3187_v56 = vmax.f32 %v3179_v20, 0.0  ;;  %v3180_v4 = vadd.f32 %v19035_v41, %v3168_v57  ;;  %v19060_v44 = vpop.f32.mrb[68].mxu1 }
 0x2aa   : > { %v3141_v23 = vadd.f32 %v16214_v24, %v3076_v26  ;;  %v3079_v17 = vadd.f32 %v14899_v0, %v19016_v37  ;;  %v3148_v55 = vpop.f32.mrb[69].mxu1  ;;  %v582_v0 = vsel %vm18814_vm8, 0, %v581_v38 }
 0x2ab   : > { %v14547_v47 = vpack.c.bf16 %v3187_v56, %v3187_v56  ;;  %v3188_v15 = vmax.f32 %v3180_v4, 0.0  ;;  %v19064_v35 = vpop.f32.mrb[70].mxu1  ;;  %583 = vst [vmem:[#allocation2 + $0xe8] sm:$0x11] %v582_v0 }
 0x2ac   : > { %v3169_v34 = vmul.f32 %v19032_v5, %v3141_v23  ;;  %v3144_v6 = vadd.f32 %v16215_v1, %v3079_v17  ;;  %v14900_v60 = vpop.f32.mrb[64].mxu0  ;;  %v3151_v48 = vpop.f32.mrb[71].mxu1  ;;  %v646_v17 = vld [vmem:[#allocation2 + $0xf8] sm:$0x11] }
 0x2ad   : > { %v14901_v37 = vpop.f32.mrb[65].mxu0  ;;  %v3228_v49 = vshrl.u32 %v14547_v47, 16  ;;  %v14548_v28 = vpack.c.bf16 %v3188_v15, %v3188_v15  ;;  %v3231_v2 = vshll.u32 %v14547_v47, 16 }
 0x2ae   : > { %v3181_v3 = vadd.f32 %v19035_v41, %v3169_v34  ;;  %v14903_v31 = vpop.f32.mrb[66].mxu0  ;;  %v3170_v12 = vmul.f32 %v19032_v5, %v3144_v6  ;;  %v14902_v19 = vadd.f32 %v14901_v37, %v14900_v60  ;;  %v569_v6 = vld [vmem:[#allocation2 + $0xa8] sm:$0x11] }
 0x2af   : > { %v14904_v24 = vpop.f32.mrb[67].mxu0  ;;  %v3230_v45 = vrot.slane %v3228_v49, 7  ;;  %v3236_v1 = vshrl.u32 %v14548_v28, 16  ;;  %v3239_v7 = vshll.u32 %v14548_v28, 16 }
 0x2b0   : > { %v3189_v10 = vmax.f32 %v3181_v3, 0.0  ;;  %v3182_v40 = vadd.f32 %v19035_v41, %v3170_v12  ;;  %v14905_v25 = vadd.f32 %v14904_v24, %v14903_v31  ;;  %v3084_v22 = vadd.f32 %v14902_v19, %v19020_v46  ;;  %v3325_v31 = vld [vmem:[#allocation2 + $0x84] sm:$0xf] }
 0x2b1   : > { %v3233_v61 = vor.u32 %v3231_v2, %v3230_v45  ;;  %v3234_v29 = vrot.slane %v3230_v45, 4  ;;  %v3238_v58 = vrot.slane %v3236_v1, 7  ;;  %v647_v45 = vsel %vm18832_vm11, 0, %v646_v17 }
 0x2b2   : > { %v14549_v21 = vpack.c.bf16 %v3189_v10, %v3189_v10  ;;  %v3190_v20 = vmax.f32 %v3182_v40, 0.0  ;;  %v3149_v57 = vadd.f32 %v3148_v55, %v3084_v22  ;;  %v3087_v26 = vadd.f32 %v14905_v25, %v19022_v8  ;;  %v3328_v55 = vld [vmem:[#allocation2 + $0x94] sm:$0x1]  ;;  %648 = vst [vmem:[#allocation2 + $0xf8] sm:$0x11] %v647_v45  ;;  %v19088_v40 = vld [vmem:[#allocation2] sm:$0xff] }
 0x2b3   : > { %v3308_v33 = vsel %vm18934_vm13, %v3233_v61, %v3307_v16  ;;  %v3311_v46 = vsel %vm18802_vm3, %v3234_v29, %v3310_v50  ;;  %v3241_v51 = vor.u32 %v3239_v7, %v3238_v58  ;;  %v3242_v13 = vrot.slane %v3238_v58, 4 }
 0x2b4   : > { %v14906_v32 = vpop.f32.mrb[68].mxu0  ;;  %3309 = vst [vmem:[#allocation2 + $0x24] sm:$0xf] %v3308_v33  ;;  %3312 = vst [vmem:[#allocation2 + $0x34] sm:$0x1] %v3311_v46  ;;  %v3244_v59 = vshrl.u32 %v14549_v21, 16  ;;  %v14550_v4 = vpack.c.bf16 %v3190_v20, %v3190_v20  ;;  %v3171_v8 = vmul.f32 %v19032_v5, %v3149_v57  ;;  %v3152_v47 = vadd.f32 %v3151_v48, %v3087_v26 }
 0x2b5   : > { %v3247_v56 = vshll.u32 %v14549_v21, 16  ;;  %v14907_v23 = vpop.f32.mrb[69].mxu0  ;;  %v3314_v53 = vsel %vm18934_vm13, %v3241_v51, %v3313_v18  ;;  %v3317_v30 = vsel %vm18802_vm3, %v3242_v13, %v3316_v54  ;;  %v3331_v51 = vld [vmem:[#allocation2 + $0xa4] sm:$0xf]  ;;  %v3334_v13 = vld [vmem:[#allocation2 + $0xb4] sm:$0x1] }
 0x2b6   : > { %v14908_v15 = vadd.f32 %v14907_v23, %v14906_v32  ;;  %v14909_v34 = vpop.f32.mrb[70].mxu0  ;;  %3315 = vst [vmem:[#allocation2 + $0x44] sm:$0xf] %v3314_v53  ;;  %3318 = vst [vmem:[#allocation2 + $0x54] sm:$0x1] %v3317_v30  ;;  %v3246_v60 = vrot.slane %v3244_v59, 7  ;;  %v3183_v28 = vadd.f32 %v19035_v41, %v3171_v8  ;;  %v3172_v12 = vmul.f32 %v19032_v5, %v3152_v47 }
 0x2b7   : > { %v3252_v37 = vshrl.u32 %v14550_v4, 16  ;;  %v3255_v49 = vshll.u32 %v14550_v4, 16  ;;  %v14910_v3 = vpop.f32.mrb[71].mxu0  ;;  %v16837_v53 = vld [vmem:[#allocation10 + $0x100] sm:$0xff]  }
 0x2b8   : > { %v3092_v19 = vadd.f32 %v14908_v15, %v19026_v43  ;;  %v14911_v24 = vadd.f32 %v14910_v3, %v14909_v34  ;;  %v3249_v2 = vor.u32 %v3247_v56, %v3246_v60  ;;  %v3250_v1 = vrot.slane %v3246_v60, 4  ;;  %v16838_v15 = vld [vmem:[#allocation10 + $0x148] sm:$0xff]   ;;  %v3340_v3 = vld [vmem:[#allocation2 + $0xd4] sm:$0x1] }
 0x2b9   : > { %v3254_v10 = vrot.slane %v3252_v37, 7  ;;  %v3191_v48 = vmax.f32 %v3183_v28, 0.0  ;;  %v3184_v16 = vadd.f32 %v19035_v41, %v3172_v12  ;;  %v570_v43 = vsel %vm18814_vm8, 0, %v569_v6  ;;  %v3337_v28 = vld [vmem:[#allocation2 + $0xc4] sm:$0xf] }
 0x2ba   : > { %v3157_v50 = vadd.f32 %v19060_v44, %v3092_v19  ;;  %v3095_v7 = vadd.f32 %v14911_v24, %v19029_v39  ;;  %v3320_v25 = vsel %vm18934_vm13, %v3249_v2, %v3319_v36  ;;  %v3323_v22 = vsel %vm18802_vm3, %v3250_v1, %v3322_v14  ;;  %571 = vst [vmem:[#allocation2 + $0xa8] sm:$0x11] %v570_v43  ;;  %v16839_v2 = vld [vmem:[#allocation10 + $0x108] sm:$0xff]  }
 0x2bb   : > { %v3257_v61 = vor.u32 %v3255_v49, %v3254_v10  ;;  %v3258_v29 = vrot.slane %v3254_v10, 4  ;;  %3321 = vst [vmem:[#allocation2 + $0x64] sm:$0xf] %v3320_v25  ;;  %3324 = vst [vmem:[#allocation2 + $0x74] sm:$0x1] %v3323_v22  ;;  %v14551_v58 = vpack.c.bf16 %v3191_v48, %v3191_v48  ;;  %v3192_v44 = vmax.f32 %v3184_v16, 0.0 }
 0x2bc   : > { %v3173_v39 = vmul.f32 %v19032_v5, %v3157_v50  ;;  %v3160_v21 = vadd.f32 %v19064_v35, %v3095_v7  ;;  %v14940_v38 = vpop.f32.mrb[72].mxu0  ;;  %v19098_v18 = vld [vmem:[#allocation2 + $0x20] sm:$0xff]  ;;  %v19111_v49 = vld [vmem:[#allocation2 + $0x10] sm:$0x11]  ;;  %v16840_v25 = vld [vmem:[#allocation10 + $0x150] sm:$0xff]  }
 0x2bd   : > { %v3326_v54 = vsel %vm18934_vm13, %v3257_v61, %v3325_v31  ;;  %v3329_v20 = vsel %vm18802_vm3, %v3258_v29, %v3328_v55  ;;  %v14941_v57 = vpop.f32.mrb[73].mxu0  ;;  %v13927_v26 = vcombine.high %v19088_v40, %v19098_v18  ;;  %v3260_v0 = vshrl.u32 %v14551_v58, 16 }
 0x2be   : > { %3327 = vst [vmem:[#allocation2 + $0x84] sm:$0xf] %v3326_v54  ;;  %3330 = vst [vmem:[#allocation2 + $0x94] sm:$0x1] %v3329_v20  ;;  %v14552_v33 = vpack.c.bf16 %v3192_v44, %v3192_v44  ;;  %v3185_v46 = vadd.f32 %v19035_v41, %v3173_v39  ;;  %v14943_v35 = vpop.f32.mrb[74].mxu0  ;;  %v3174_v32 = vmul.f32 %v19032_v5, %v3160_v21  ;;  %v3263_v8 = vshll.u32 %v14551_v58, 16 }
 0x2bf   : > { %v14942_v59 = vadd.f32 %v14941_v57, %v14940_v38  ;;  %10124 = vmatprep.mubr.bf16.mxu0 %v13927_v26  ;;  %v14944_v56 = vpop.f32.mrb[75].mxu0  ;;  %v3262_v4 = vrot.slane %v3260_v0, 7  ;;  %v13926_v14 = vcombine.low %v19088_v40, %v19098_v18  ;;  %v19121_v22 = vcombine.high %v19088_v40, %v19111_v49  ;;  %v3343_v58 = vld [vmem:[#allocation2 + $0xe4] sm:$0xf]  ;;  %v3346_v44 = vld [vmem:[#allocation2 + $0xf4] sm:$0x1] }
 0x2c0   : > { %v3268_v23 = vshrl.u32 %v14552_v33, 16  ;;  %v3193_v17 = vmax.f32 %v3185_v46, 0.0  ;;  %v3271_v30 = vshll.u32 %v14552_v33, 16  ;;  %v3186_v36 = vadd.f32 %v19035_v41, %v3174_v32  ;;  %v19127_v39 = vld [vmem:[#allocation2 + $0x30] sm:$0x11]  ;;  %v19129_v54 = vld [vmem:[#allocation2 + $0x40] sm:$0xff] }
 0x2c1   : > { %v14945_v47 = vadd.f32 %v14944_v56, %v14943_v35  ;;  %v3265_v34 = vor.u32 %v3263_v8, %v3262_v4  ;;  %v3266_v6 = vrot.slane %v3262_v4, 4  ;;  %v14980_v37 = vpop.f32.mrb[72].mxu1  ;;  %10125 = vmatmul.mubr.bf16.vlgmr.msra.gmra.mrb[144].mxu0 %v13926_v14  ;;  %v16841_v57 = vld [vmem:[#allocation10 + $0x110] sm:$0xff]   ;;  %v19141_v14 = vcombine.high %v19098_v18, %v19127_v39 }
 0x2c2   : > { %v3270_v60 = vrot.slane %v3268_v23, 7  ;;  %v14553_v5 = vpack.c.bf16 %v3193_v17, %v3193_v17  ;;  %v3194_v31 = vmax.f32 %v3186_v36, 0.0  ;;  %v14981_v55 = vpop.f32.mrb[73].mxu1  ;;  %15349 = vmatpush3.bf16.msra.mxu0 %v16837_v53  ;;  %v19117_v43 = vld [vmem:[#allocation2 + $0x60] sm:$0xff] }
 0x2c3   : > { %v3332_v41 = vsel %vm18934_vm13, %v3265_v34, %v3331_v51  ;;  %v3335_v12 = vsel %vm18802_vm3, %v3266_v6, %v3334_v13  ;;  %v14983_v45 = vpop.f32.mrb[74].mxu1  ;;  %v14982_v16 = vadd.f32 %v14981_v55, %v14980_v37  ;;  %15350 = vmatprep.subr.bf16.mxu0 %v16838_v15  ;;  %v3349_v51 = vld [vmem:[#allocation2 + $0x104] sm:$0xf]  ;;  %v13963_v32 = vcombine.high %v19129_v54, %v19117_v43 }
 0x2c4   : > { %v3273_v19 = vor.u32 %v3271_v30, %v3270_v60  ;;  %v3274_v24 = vrot.slane %v3270_v60, 4  ;;  %v14946_v1 = vpop.f32.mrb[76].mxu0  ;;  %3333 = vst [vmem:[#allocation2 + $0xa4] sm:$0xf] %v3332_v41  ;;  %3336 = vst [vmem:[#allocation2 + $0xb4] sm:$0x1] %v3335_v12  ;;  %v14554_v48 = vpack.c.bf16 %v3194_v31, %v3194_v31  ;;  %v13962_v56 = vcombine.low %v19129_v54, %v19117_v43 }
 0x2c5   : > { %v3276_v10 = vshrl.u32 %v14553_v5, 16  ;;  %v14984_v50 = vpop.f32.mrb[75].mxu1  ;;  %v14947_v7 = vpop.f32.mrb[77].mxu0  ;;  %v3279_v0 = vshll.u32 %v14553_v5, 16  ;;  %v19131_v46 = vadd.f32 %v14982_v16, %v14942_v59  ;;  %v16842_v30 = vld [vmem:[#allocation10 + $0x158] sm:$0xff]   ;;  %10132 = vmatprep.mubr.bf16.mxu0 %v13963_v32  ;;  %v19147_v31 = vld [vmem:[#allocation2 + $0x80] sm:$0xff] }
 0x2c6   : > { %v3338_v61 = vsel %vm18934_vm13, %v3273_v19, %v3337_v28  ;;  %v3341_v29 = vsel %vm18802_vm3, %v3274_v24, %v3340_v3  ;;  %v14985_v21 = vadd.f32 %v14984_v50, %v14983_v45  ;;  %v14948_v38 = vadd.f32 %v14947_v7, %v14946_v1  ;;  %v14949_v20 = vpop.f32.mrb[78].mxu0  ;;  %15351 = vmatpush3.bf16.msra.mxu0 %v16839_v2  ;;  %v3352_v59 = vld [vmem:[#allocation2 + $0x114] sm:$0x1]  ;;  %v16844_v2 = vld [vmem:[#allocation10 + $0x160] sm:$0xff]  }
 0x2c7   : > { %3339 = vst [vmem:[#allocation2 + $0xc4] sm:$0xf] %v3338_v61  ;;  %3342 = vst [vmem:[#allocation2 + $0xd4] sm:$0x1] %v3341_v29  ;;  %v3278_v26 = vrot.slane %v3276_v10, 7  ;;  %v3284_v33 = vshrl.u32 %v14554_v48, 16  ;;  %15352 = vmatprep.subr.bf16.mxu0 %v16840_v25  ;;  %v19165_v61 = vcombine.low %v19088_v40, %v19111_v49 }
 0x2c8   : > { %v14950_v35 = vpop.f32.mrb[79].mxu0  ;;  %v19133_v13 = vadd.f32 %v14985_v21, %v14945_v47  ;;  %v3287_v53 = vshll.u32 %v14554_v48, 16  ;;  %v16843_v28 = vld [vmem:[#allocation10 + $0x118] sm:$0xff]   ;;  %v6054_v1 = vshll.u32 %v19121_v22, 16  ;;  %v6082_v7 = vshll.u32 %v19141_v14, 16 }
 0x2c9   : > { %v14951_v4 = vadd.f32 %v14950_v35, %v14949_v20  ;;  %v3281_v8 = vor.u32 %v3279_v0, %v3278_v26  ;;  %v3282_v23 = vrot.slane %v3278_v26, 4  ;;  %v3286_v17 = vrot.slane %v3284_v33, 7  ;;  %v14986_v36 = vpop.f32.mrb[76].mxu1  ;;  %10133 = vmatmul.mubr.bf16.gmra.mrb[148].mxu0 %v13962_v56  ;;  %v19161_v25 = vld [vmem:[#allocation2 + $0x70] sm:$0x11]  ;;  %v16846_v26 = vld [vmem:[#allocation10 + $0x168] sm:$0xff]  }
 0x2ca   : > { %v14987_v60 = vpop.f32.mrb[77].mxu1  ;;  %15353 = vmatpush3.bf16.msra.mxu0 %v16841_v57  ;;  %v19171_v20 = vld [vmem:[#allocation2 + $0x50] sm:$0x11]  ;;  %v19175_v57 = vcombine.low %v19098_v18, %v19127_v39  ;;  %v6052_v40 = vshrl.u32 %v19121_v22, 16  ;;  %v6056_v0 = vrot.slane %v6054_v1, 1  ;;  %v19180_v33 = vcombine.high %v19117_v43, %v19161_v25 }
 0x2cb   : > { %v3344_v47 = vsel %vm18934_vm13, %v3281_v8, %v3343_v58  ;;  %v3347_v15 = vsel %vm18802_vm3, %v3282_v23, %v3346_v44  ;;  %v3289_v34 = vor.u32 %v3287_v53, %v3286_v17  ;;  %v3290_v6 = vrot.slane %v3286_v17, 4  ;;  %v14989_v37 = vpop.f32.mrb[78].mxu1  ;;  %v19149_v55 = vld [vmem:[#allocation2 + $0xa0] sm:$0xff]  ;;  %15354 = vmatprep.subr.bf16.mxu0 %v16842_v30  ;;  %v16845_v44 = vld [vmem:[#allocation10 + $0x120] sm:$0xff]   ;;  %v19208_v1 = vld [vmem:[#allocation2 + $0x90] sm:$0x11] }
 0x2cc   : > { %3345 = vst [vmem:[#allocation2 + $0xe4] sm:$0xf] %v3344_v47  ;;  %3348 = vst [vmem:[#allocation2 + $0xf4] sm:$0x1] %v3347_v15  ;;  %v14988_v5 = vadd.f32 %v14987_v60, %v14986_v36  ;;  %v14952_v3 = vpop.f32.mrb[80].mxu0  ;;  %v14990_v19 = vpop.f32.mrb[79].mxu1  ;;  %v13999_v45 = vcombine.high %v19147_v31, %v19149_v55  ;;  %v13998_v29 = vcombine.low %v19147_v31, %v19149_v55 }
 0x2cd   : > { %v3350_v41 = vsel %vm18934_vm13, %v3289_v34, %v3349_v51  ;;  %v3353_v12 = vsel %vm18802_vm3, %v3290_v6, %v3352_v59  ;;  %v14953_v24 = vpop.f32.mrb[81].mxu0  ;;  %v14991_v48 = vadd.f32 %v14990_v19, %v14989_v37  ;;  %v6084_v51 = vrot.slane %v6082_v7, 1  ;;  %v16847_v8 = vld [vmem:[#allocation10 + $0x128] sm:$0xff]   ;;  %v16848_v36 = vld [vmem:[#allocation10 + $0x170] sm:$0xff]   ;;  %v19195_v15 = vld [vmem:[#allocation2 + $0xb0] sm:$0x11] }
 0x2ce   : > { %3351 = vst [vmem:[#allocation2 + $0x104] sm:$0xf] %v3350_v41  ;;  %3354 = vst [vmem:[#allocation2 + $0x114] sm:$0x1] %v3353_v12  ;;  %v19158_v10 = vadd.f32 %v14988_v5, %v14948_v38  ;;  %v14954_v16 = vadd.f32 %v14953_v24, %v14952_v3  ;;  %v14955_v50 = vpop.f32.mrb[82].mxu0  ;;  %10140 = vmatprep.mubr.bf16.mxu0 %v13999_v45  ;;  %15355 = vmatpush3.bf16.msra.mxu0 %v16843_v28  ;;  %v6045_v32 = vshrl.u32 %v19165_v61, 16 }
 0x2cf   : > { %v14956_v58 = vpop.f32.mrb[83].mxu0  ;;  %v19169_v21 = vadd.f32 %v14991_v48, %v14951_v4  ;;  %15356 = vmatprep.subr.bf16.mxu0 %v16844_v2  ;;  %v6047_v56 = vshll.u32 %v19165_v61, 16  ;;  %v19184_v18 = vld [vmem:[#allocation2 + $0xc0] sm:$0xff]  ;;  %v19190_v22 = vcombine.high %v19129_v54, %v19171_v20  ;;  %v6080_v47 = vshrl.u32 %v19141_v14, 16  ;;  %v16849_v7 = vld [vmem:[#allocation10 + $0x130] sm:$0xff]  }
 0x2d0   : > { %v14957_v38 = vadd.f32 %v14956_v58, %v14955_v50  ;;  %v6075_v34 = vshll.u32 %v19175_v57, 16  ;;  %v6057_v5 = vor.u32 %v6056_v0, %v6052_v40  ;;  %v6138_v37 = vshll.u32 %v19180_v33, 16  ;;  %v16852_v58 = vld [vmem:[#allocation10 + $0x178] sm:$0xff]  }
 0x2d1   : > { %v14992_v35 = vpop.f32.mrb[80].mxu1  ;;  %10141 = vmatmul.mubr.bf16.gmra.mrb[152].mxu0 %v13998_v29  ;;  %v6085_v19 = vor.u32 %v6084_v51, %v6080_v47  ;;  %v6110_v45 = vshll.u32 %v19190_v22, 16  ;;  %v19206_v2 = vcombine.low %v19117_v43, %v19161_v25  ;;  %v6049_v48 = vrot.slane %v6047_v56, 1  ;;  %v16853_v0 = vld [vmem:[#allocation10 + $0x138] sm:$0xff]  }
 0x2d2   : > { %v14993_v4 = vpop.f32.mrb[81].mxu1  ;;  %15357 = vmatpush3.bf16.msra.mxu0 %v16845_v44  ;;  %v19214_v61 = vcombine.low %v19129_v54, %v19171_v20  ;;  %v6077_v29 = vrot.slane %v6075_v34, 1  ;;  %v6140_v44 = vrot.slane %v6138_v37, 1  ;;  %v19218_v43 = vcombine.high %v19149_v55, %v19195_v15  ;;  %v16854_v54 = vld [vmem:[#allocation10 + $0x240] sm:$0xff]   ;;  %v19229_v47 = vld [vmem:[#allocation2 + $0xd0] sm:$0x11] }
 0x2d3   : > { %v19186_v23 = vld [vmem:[#allocation2 + $0xe0] sm:$0xff]  ;;  %v14994_v17 = vadd.f32 %v14993_v4, %v14992_v35  ;;  %v14995_v53 = vpop.f32.mrb[82].mxu1  ;;  %15358 = vmatprep.subr.bf16.mxu0 %v16846_v26  ;;  %v6073_v26 = vshrl.u32 %v19175_v57, 16  ;;  %v19223_v35 = vcombine.high %v19147_v31, %v19208_v1  ;;  %v6112_v56 = vrot.slane %v6110_v45, 1 }
 0x2d4   : > { %v14958_v30 = vpop.f32.mrb[84].mxu0  ;;  %v14035_v59 = vcombine.high %v19184_v18, %v19186_v23  ;;  %v14996_v6 = vpop.f32.mrb[83].mxu1  ;;  %v14034_v14 = vcombine.low %v19184_v18, %v19186_v23  ;;  %v6136_v4 = vshrl.u32 %v19180_v33, 16  ;;  %v6129_v33 = vshrl.u32 %v19206_v2, 16 }
 0x2d5   : > { %v14959_v60 = vpop.f32.mrb[85].mxu0  ;;  %v19199_v28 = vadd.f32 %v14994_v17, %v14954_v16  ;;  %v14997_v3 = vadd.f32 %v14996_v6, %v14995_v53  ;;  %v6194_v37 = vshll.u32 %v19218_v43, 16 }
 0x2d6   : > { %v14960_v41 = vadd.f32 %v14959_v60, %v14958_v30  ;;  %10148 = vmatprep.mubr.bf16.mxu0 %v14035_v59  ;;  %v14961_v12 = vpop.f32.mrb[86].mxu0  ;;  %15359 = vmatpush3.bf16.msra.mxu0 %v16847_v8  ;;  %v6131_v8 = vshll.u32 %v19206_v2, 16  ;;  %v6050_v30 = vor.u32 %v6049_v48, %v6045_v32  ;;  %v6108_v59 = vshrl.u32 %v19190_v22, 16  ;;  %v16858_v48 = vld [vmem:[#allocation10 + $0x248] sm:$0xff]   ;;  %v634_v2 = vld [vmem:[#allocation2 + $0xb8] sm:$0x11] }
 0x2d7   : > { %v14962_v24 = vpop.f32.mrb[87].mxu0  ;;  %v19210_v16 = vadd.f32 %v14997_v3, %v14957_v38  ;;  %15360 = vmatprep.subr.bf16.mxu0 %v16848_v36  ;;  %v13931_v38 = vcombine.low %v6057_v5, %v6085_v19  ;;  %v6103_v36 = vshll.u32 %v19214_v61, 16  ;;  %v6078_v60 = vor.u32 %v6077_v29, %v6073_v26 }
 0x2d8   : > { %v14963_v50 = vadd.f32 %v14962_v24, %v14961_v12  ;;  %v6141_v5 = vor.u32 %v6140_v44, %v6136_v4  ;;  %v6166_v22 = vshll.u32 %v19223_v35, 16  ;;  %v6113_v45 = vor.u32 %v6112_v56, %v6108_v59 }
 0x2d9   : > { %v14998_v40 = vpop.f32.mrb[84].mxu1  ;;  %10149 = vmatmul.mubr.bf16.gmra.mrb[156].mxu0 %v14034_v14  ;;  %v16857_v14 = vld [vmem:[#allocation10 + $0x200] sm:$0xff]   ;;  %v19238_v29 = vcombine.low %v19147_v31, %v19208_v1  ;;  %v6105_v56 = vrot.slane %v6103_v36, 1  ;;  %v6196_v4 = vrot.slane %v6194_v37, 1  ;;  %v19251_v31 = vcombine.high %v19184_v18, %v19229_v47 }
 0x2da   : > { %v14999_v51 = vpop.f32.mrb[85].mxu1  ;;  %15361 = vmatpush3.bf16.msra.mxu0 %v16849_v7  ;;  %10254 = vmatprep.mubr.bf16.mxu0 %v13931_v38  ;;  %v6133_v7 = vrot.slane %v6131_v8, 1  ;;  %v587_v38 = vld [vmem:[#allocation2 + $0x108] sm:$0x11]  ;;  %v6168_v59 = vrot.slane %v6166_v22, 1  ;;  %v6192_v36 = vshrl.u32 %v19218_v43, 16 }
 0x2db   : > { %v15000_v17 = vadd.f32 %v14999_v51, %v14998_v40  ;;  %v15001_v53 = vpop.f32.mrb[86].mxu1  ;;  %15362 = vmatprep.subr.bf16.mxu0 %v16852_v58  ;;  %v19240_v58 = vld [vmem:[#allocation2 + $0xf0] sm:$0x11]  ;;  %v19247_v40 = vcombine.low %v19149_v55, %v19195_v15  ;;  %v13930_v51 = vcombine.low %v6050_v30, %v6078_v60  ;;  %v6164_v30 = vshrl.u32 %v19223_v35, 16 }
 0x2dc   : > { %v15020_v57 = vpop.f32.mrb[88].mxu0  ;;  %v15002_v34 = vpop.f32.mrb[87].mxu1  ;;  %v19257_v55 = vcombine.high %v19186_v23, %v19240_v58  ;;  %v6197_v43 = vor.u32 %v6196_v4, %v6192_v36  ;;  %v6222_v22 = vshll.u32 %v19251_v31, 16 }
 0x2dd   : > { %v15021_v6 = vpop.f32.mrb[89].mxu0  ;;  %v19233_v3 = vadd.f32 %v15000_v17, %v14960_v41  ;;  %v15003_v12 = vadd.f32 %v15002_v34, %v15001_v53  ;;  %v16859_v17 = vld [vmem:[#allocation10 + $0x208] sm:$0xff]   ;;  %v652_v53 = vld [vmem:[#allocation2 + $0x118] sm:$0x11]  ;;  %v575_v34 = vld [vmem:[#allocation2 + $0xc8] sm:$0x11] }
 0x2de   : > { %v15022_v19 = vadd.f32 %v15021_v6, %v15020_v57  ;;  %v15023_v32 = vpop.f32.mrb[90].mxu0  ;;  %15363 = vmatpush3.bf16.msra.mxu0 %v16853_v0  ;;  %v13967_v0 = vcombine.low %v6113_v45, %v6141_v5  ;;  %v6134_v57 = vor.u32 %v6133_v7, %v6129_v33  ;;  %v6159_v5 = vshll.u32 %v19238_v29, 16  ;;  %v640_v33 = vld [vmem:[#allocation2 + $0xd8] sm:$0x11] }
 0x2df   : > { %v15024_v24 = vpop.f32.mrb[91].mxu0  ;;  %v19242_v44 = vadd.f32 %v15003_v12, %v14963_v50  ;;  %15428 = vmatprep.subr.bf16.mxu0 %v16854_v54  ;;  %v6187_v37 = vshll.u32 %v19247_v40, 16  ;;  %v635_v12 = vsel %vm18832_vm11, 0, %v634_v2 }
 0x2e0   : > { %v4307_v41 = vadd.f32 %v15022_v19, %v19131_v46  ;;  %v15025_v26 = vadd.f32 %v15024_v24, %v15023_v32  ;;  %v6101_v46 = vshrl.u32 %v19214_v61, 16  ;;  %v16862_v61 = vld [vmem:[#allocation10 + $0x250] sm:$0xff]   ;;  %636 = vst [vmem:[#allocation2 + $0xb8] sm:$0x11] %v635_v12  ;;  %v6248_v12 = vshrl.u32 %v19257_v55, 16 }
 0x2e1   : > { %v15060_v8 = vpop.f32.mrb[88].mxu1  ;;  %10255 = vmatmul.mubr.bf16.vlgmr.msra.gmra.mrb[160].mxu0 %v13930_v51  ;;  %v6189_v36 = vrot.slane %v6187_v37, 1  ;;  %v6224_v37 = vrot.slane %v6222_v22, 1 }
 0x2e2   : > { %v4310_v50 = vadd.f32 %v15025_v26, %v19133_v13  ;;  %v15061_v54 = vpop.f32.mrb[89].mxu1  ;;  %10262 = vmatprep.mubr.bf16.mxu0 %v13967_v0  ;;  %15429 = vmatpush3.bf16.msra.mxu0 %v16857_v14  ;;  %v6106_v32 = vor.u32 %v6105_v56, %v6101_v46  ;;  %v588_v14 = vsel %vm18814_vm8, 0, %v587_v38  ;;  %v6250_v26 = vshll.u32 %v19257_v55, 16  ;;  %v16865_v46 = vld [vmem:[#allocation10 + $0x210] sm:$0xff]  }
 0x2e3   : > { %v15062_v6 = vadd.f32 %v15061_v54, %v15060_v8  ;;  %v15063_v13 = vpop.f32.mrb[90].mxu1  ;;  %15430 = vmatprep.subr.bf16.mxu0 %v16858_v48  ;;  %589 = vst [vmem:[#allocation2 + $0x108] sm:$0x11] %v588_v14  ;;  %v6169_v48 = vor.u32 %v6168_v59, %v6164_v30  ;;  %v653_v56 = vsel %vm18832_vm11, 0, %v652_v53  ;;  %v576_v54 = vsel %vm18814_vm8, 0, %v575_v34  ;;  %v16867_v59 = vld [vmem:[#allocation10 + $0x218] sm:$0xff]  }
 0x2e4   : > { %v15026_v60 = vpop.f32.mrb[92].mxu0  ;;  %v15064_v19 = vpop.f32.mrb[91].mxu1  ;;  %v13966_v2 = vcombine.low %v6106_v32, %v6134_v57  ;;  %654 = vst [vmem:[#allocation2 + $0x118] sm:$0x11] %v653_v56  ;;  %v6185_v57 = vshrl.u32 %v19247_v40, 16  ;;  %v19281_v30 = vcombine.low %v19186_v23, %v19240_v58  ;;  %v19288_v40 = vcombine.low %v19184_v18, %v19229_v47  ;;  %v16870_v32 = vld [vmem:[#allocation10 + $0x260] sm:$0xff]  }
 0x2e5   : > { %v15027_v35 = vpop.f32.mrb[93].mxu0  ;;  %v15065_v24 = vadd.f32 %v15064_v19, %v15063_v13  ;;  %v19269_v51 = vadd.f32 %v15062_v6, %v4307_v41  ;;  %v16866_v41 = vld [vmem:[#allocation10 + $0x258] sm:$0xff]   ;;  %577 = vst [vmem:[#allocation2 + $0xc8] sm:$0x11] %v576_v54  ;;  %v14003_v53 = vcombine.low %v6169_v48, %v6197_v43  ;;  %v6252_v6 = vrot.slane %v6250_v26, 1  ;;  %v16934_v54 = vld [vmem:[#allocation10 + $0xc0] sm:$0xff]  }
 0x2e6   : > { %v15028_v45 = vadd.f32 %v15027_v35, %v15026_v60  ;;  %v15029_v7 = vpop.f32.mrb[94].mxu0  ;;  %15431 = vmatpush3.bf16.msra.mxu0 %v16859_v17  ;;  %v6161_v13 = vrot.slane %v6159_v5, 1  ;;  %v6157_v35 = vshrl.u32 %v19238_v29, 16  ;;  %v6190_v5 = vor.u32 %v6189_v36, %v6185_v57  ;;  %v5805_v48 = vld [vmem:[#allocation2 + $0x20] sm:$0xee]  ;;  %15308 = vmatprep.subr.bf16.mxu1 %v16934_v54  ;;  %v16879_v54 = vld [vmem:[#allocation10 + $0x230] sm:$0xff]  }
 0x2e7   : > { %v15030_v8 = vpop.f32.mrb[95].mxu0  ;;  %v19274_v38 = vadd.f32 %v15065_v24, %v4310_v50  ;;  %15432 = vmatprep.subr.bf16.mxu0 %v16862_v61  ;;  %v6220_v18 = vshrl.u32 %v19251_v31, 16  ;;  %v6243_v43 = vshll.u32 %v19281_v30, 16 }
 0x2e8   : > { %v4315_v4 = vadd.f32 %v15028_v45, %v19158_v10  ;;  %v15031_v0 = vadd.f32 %v15030_v8, %v15029_v7  ;;  %v641_v10 = vsel %vm18832_vm11, 0, %v640_v33  ;;  %v6253_v7 = vor.u32 %v6252_v6, %v6248_v12  ;;  %v19311_v6 = vld [vmem:[#allocation2 + $0x40] sm:$0xee] }
 0x2e9   : > { %v15066_v17 = vpop.f32.mrb[92].mxu1  ;;  %642 = vst [vmem:[#allocation2 + $0xd8] sm:$0x11] %v641_v10  ;;  %10263 = vmatmul.mubr.bf16.gmra.mrb[164].mxu0 %v13966_v2  ;;  %v6162_v55 = vor.u32 %v6161_v13, %v6157_v35  ;;  %v16873_v2 = vld [vmem:[#allocation10 + $0x220] sm:$0xff]   ;;  %v6215_v8 = vshll.u32 %v19288_v40, 16  ;;  %v6245_v57 = vrot.slane %v6243_v43, 1 }
 0x2ea   : > { %v4318_v50 = vadd.f32 %v15031_v0, %v19169_v21  ;;  %v15067_v34 = vpop.f32.mrb[93].mxu1  ;;  %10270 = vmatprep.mubr.bf16.mxu0 %v14003_v53  ;;  %15433 = vmatpush3.bf16.msra.mxu0 %v16865_v46  ;;  %v19291_v21 = vld [vmem:[#allocation2] sm:$0xee]  ;;  %v6225_v0 = vor.u32 %v6224_v37, %v6220_v18  ;;  %v4469_v10 = vsub.s32 2, %v18858_v62 }
 0x2eb   : > { %v15068_v23 = vadd.f32 %v15067_v34, %v15066_v17  ;;  %v15069_v60 = vpop.f32.mrb[94].mxu1  ;;  %15434 = vmatprep.subr.bf16.mxu0 %v16866_v41  ;;  %v19302_v46 = vld [vmem:[#allocation2 + $0x60] sm:$0xee]  ;;  %v14002_v41 = vcombine.low %v6162_v55, %v6190_v5  ;;  %v13767_v36 = vcombine.high %v19291_v21, %v19111_v49  ;;  %v6213_v5 = vshrl.u32 %v19288_v40, 16 }
 0x2ec   : > { %v15032_v61 = vpop.f32.mrb[96].mxu0  ;;  %v15070_v33 = vpop.f32.mrb[95].mxu1  ;;  %v16875_v13 = vld [vmem:[#allocation10 + $0x228] sm:$0xff]  }
 0x2ed   : > { %v15033_v19 = vpop.f32.mrb[97].mxu0  ;;  %v15071_v14 = vadd.f32 %v15070_v33, %v15069_v60  ;;  %v19296_v22 = vadd.f32 %v15068_v23, %v4315_v4  ;;  %v16874_v4 = vld [vmem:[#allocation10 + $0x268] sm:$0xff]   ;;  %v6217_v23 = vrot.slane %v6215_v8, 1  ;;  %v6241_v60 = vshrl.u32 %v19281_v30, 16  ;;  %v16936_v33 = vld [vmem:[#allocation10 + $0x80] sm:$0xff]  }
 0x2ee   : > { %v15034_v24 = vadd.f32 %v15033_v19, %v15032_v61  ;;  %v15035_v45 = vpop.f32.mrb[98].mxu0  ;;  %15435 = vmatpush3.bf16.msra.mxu0 %v16867_v59  ;;  %v13771_v59 = vcombine.high %v5805_v48, %v19127_v39  ;;  %v13770_v61 = vcombine.low %v5805_v48, %v19127_v39  ;;  %v6349_v18 = vrot.slane %v13767_v36, 1  ;;  %15309 = vmatpush3.bf16.msra.mxu1 %v16936_v33  ;;  %v16940_v48 = vld [vmem:[#allocation10 + $0xc8] sm:$0xff]   ;;  %v16884_v36 = vld [vmem:[#allocation10 + $0x278] sm:$0xff]  }
 0x2ef   : > { %v15036_v26 = vpop.f32.mrb[99].mxu0  ;;  %v19300_v31 = vadd.f32 %v15071_v14, %v4318_v50  ;;  %15436 = vmatprep.subr.bf16.mxu0 %v16870_v32  ;;  %v13766_v50 = vcombine.low %v19291_v21, %v19111_v49  ;;  %v16878_v21 = vld [vmem:[#allocation10 + $0x270] sm:$0xff]   ;;  %v6246_v32 = vor.u32 %v6245_v57, %v6241_v60  ;;  %v13775_v39 = vcombine.high %v19311_v6, %v19171_v20 }
 0x2f0   : > { %v4323_v29 = vadd.f32 %v15034_v24, %v19199_v28  ;;  %v15037_v56 = vadd.f32 %v15036_v26, %v15035_v45  ;;  %v14039_v28 = vcombine.low %v6225_v0, %v6253_v7  ;;  %v6353_v24 = vrot.slane %v13771_v59, 1  ;;  %v19322_v7 = vld [vmem:[#allocation2 + $0x80] sm:$0xee]  ;;  %15310 = vmatprep.subr.bf16.mxu1 %v16940_v48 }
 0x2f1   : > { %v15072_v17 = vpop.f32.mrb[96].mxu1  ;;  %10271 = vmatmul.mubr.bf16.gmra.mrb[168].mxu0 %v14002_v41  ;;  %v6218_v55 = vor.u32 %v6217_v23, %v6213_v5  ;;  %v19326_v8 = vrot.slane %v13770_v61, 1  ;;  %v17447_v23 = vld [vmem:[#allocation7] sm:$0xf]  ;;  %v16886_v61 = vld [vmem:[#allocation10 + $0x340] sm:$0xff]  }
 0x2f2   : > { %v4326_v53 = vadd.f32 %v15037_v56, %v19210_v16  ;;  %v15073_v34 = vpop.f32.mrb[97].mxu1  ;;  %v13779_v16 = vcombine.high %v19302_v46, %v19161_v25  ;;  %10278 = vmatprep.mubr.bf16.mxu0 %v14039_v28  ;;  %15437 = vmatpush3.bf16.msra.mxu0 %v16873_v2  ;;  %v19324_v2 = vrot.slane %v13766_v50, 1  ;;  %v13774_v28 = vcombine.low %v19311_v6, %v19171_v20  ;;  %v17448_v20 = vld [vmem:[#allocation9] sm:$0xf] }
 0x2f3   : > { %v15074_v37 = vadd.f32 %v15073_v34, %v15072_v17  ;;  %v15075_v49 = vpop.f32.mrb[98].mxu1  ;;  %15438 = vmatprep.subr.bf16.mxu0 %v16874_v4  ;;  %v5813_v4 = vld [vmem:[#allocation2 + $0xa0] sm:$0xee]  ;;  %v14038_v57 = vcombine.low %v6218_v55, %v6246_v32  ;;  %v19335_v17 = vrot.slane %v13775_v39, 1  ;;  %v13783_v50 = vcombine.high %v19322_v7, %v19208_v1 }
 0x2f4   : > { %v15076_v19 = vpop.f32.mrb[99].mxu1  ;;  %v19328_v40 = vrot.slane %v13779_v16, 1  ;;  %v16942_v34 = vld [vmem:[#allocation10 + $0x88] sm:$0xff]   ;;  %v19346_v60 = vrot.slane %v17447_v23, %v4469_v10  ;;  %v19350_v6 = vrot.slane %v17448_v20, %v4469_v10  ;;  %v13787_v16 = vcombine.high %v5813_v4, %v19195_v15  ;;  %v16952_v23 = vld [vmem:[#allocation10 + $0xd8] sm:$0xff]  }
 0x2f5   : > { %v15077_v30 = vadd.f32 %v15076_v19, %v15075_v49  ;;  %v19320_v45 = vadd.f32 %v15074_v37, %v4323_v29  ;;  %v13778_v29 = vcombine.low %v19302_v46, %v19161_v25  ;;  %v13935_v46 = vcombine.low %v6349_v18, %v6353_v24  ;;  %v19360_v10 = vld [vmem:[#allocation2 + $0xe0] sm:$0xee]  ;;  %15311 = vmatpush3.bf16.msra.mxu1 %v16942_v34 }
 0x2f6   : > { %15439 = vmatpush3.bf16.msra.mxu0 %v16875_v13  ;;  %v13934_v49 = vcombine.low %v19324_v2, %v19326_v8  ;;  %v13971_v33 = vcombine.low %v19335_v17, %v19328_v40  ;;  %v19363_v18 = vrot.slane %v13774_v28, 1  ;;  %v19365_v39 = vrot.slane %v13783_v50, 1  ;;  %v16889_v40 = vld [vmem:[#allocation10 + $0x300] sm:$0xff]  }
 0x2f7   : > { %v19333_v41 = vadd.f32 %v15077_v30, %v4326_v53  ;;  %15440 = vmatprep.subr.bf16.mxu0 %v16878_v21  ;;  %v16885_v53 = vld [vmem:[#allocation10 + $0x238] sm:$0xff]   ;;  %v19358_v19 = vrot.slane %v13778_v29, 1  ;;  %v13782_v30 = vcombine.low %v19322_v7, %v19208_v1  ;;  %v19374_v48 = vrot.slane %v13787_v16, 1  ;;  %v16890_v29 = vld [vmem:[#allocation10 + $0x348] sm:$0xff]  }
 0x2f9   : > { %10279 = vmatmul.mubr.bf16.gmra.mrb[172].mxu0 %v14038_v57  ;;  %v13795_v57 = vcombine.high %v19360_v10, %v19240_v58  ;;  %v14007_v34 = vcombine.low %v19365_v39, %v19374_v48 }
 0x2fa   : > { %v15038_v12 = vpop.f32.mrb[100].mxu0  ;;  %v15078_v59 = vpop.f32.mrb[100].mxu1  ;;  %15441 = vmatpush3.bf16.msra.mxu0 %v16879_v54  ;;  %10384 = vmatprep.mubr.bf16.mxu0 %v13935_v46 }
 0x2fb   : > { %v15039_v35 = vpop.f32.mrb[101].mxu0  ;;  %v15079_v13 = vpop.f32.mrb[101].mxu1  ;;  %15442 = vmatprep.subr.bf16.mxu0 %v16884_v36  ;;  %v16948_v36 = vld [vmem:[#allocation10 + $0x90] sm:$0xff]  }
 0x2fc   : > { %v15040_v43 = vadd.f32 %v15039_v35, %v15038_v12  ;;  %v15041_v14 = vpop.f32.mrb[102].mxu0  ;;  %v15080_v37 = vadd.f32 %v15079_v13, %v15078_v59  ;;  %v15081_v12 = vpop.f32.mrb[102].mxu1  ;;  %v16944_v35 = vld [vmem:[#allocation10 + $0xd0] sm:$0xff]   ;;  %v13794_v13 = vcombine.low %v19360_v10, %v19240_v58 }
 0x2fd   : > { %v15042_v26 = vpop.f32.mrb[103].mxu0  ;;  %v15082_v5 = vpop.f32.mrb[103].mxu1  ;;  %15312 = vmatprep.subr.bf16.mxu1 %v16944_v35 }
 0x2fe   : > { %v4331_v56 = vadd.f32 %v15040_v43, %v19233_v3  ;;  %v15043_v0 = vadd.f32 %v15042_v26, %v15041_v14  ;;  %v19341_v3 = vld [vmem:[#allocation2 + $0xc0] sm:$0xee]  ;;  %v15083_v43 = vadd.f32 %v15082_v5, %v15081_v12  ;;  %15443 = vmatpush3.bf16.msra.mxu0 %v16885_v53  ;;  %15313 = vmatpush3.bf16.msra.mxu1 %v16948_v36 }
 0x2ff   : > { %v13791_v26 = vcombine.high %v19341_v3, %v19229_v47  ;;  %15508 = vmatprep.subr.bf16.mxu0 %v16886_v61  ;;  %15314 = vmatprep.subr.bf16.mxu1 %v16952_v23 }
 0x300   : > { %v4334_v25 = vadd.f32 %v15043_v0, %v19242_v44  ;;  %v13786_v44 = vcombine.low %v5813_v4, %v19195_v15  ;;  %v4396_v55 = vadd.f32 %v15080_v37, %v4331_v56  ;;  %v13970_v56 = vcombine.low %v19363_v18, %v19358_v19  ;;  %v16891_v37 = vld [vmem:[#allocation10 + $0x308] sm:$0xff]  }
 0x301   : > { %v19386_v4 = vrot.slane %v13782_v30, 1  ;;  %v19392_v50 = vrot.slane %v13791_v26, 1  ;;  %10385 = vmatmul.mubr.bf16.vlgmr.msra.gmra.mrb[176].mxu0 %v13934_v49  ;;  %v16894_v30 = vld [vmem:[#allocation10 + $0x350] sm:$0xff]  }
 0x302   : > { %v16238_v21 = vpop.f32.mrb[104].mxu0  ;;  %v19376_v0 = vrot.slane %v13786_v44, 1  ;;  %v19380_v7 = vadd.f32 %v15083_v43, %v4334_v25  ;;  %10392 = vmatprep.mubr.bf16.mxu0 %v13971_v33  ;;  %15509 = vmatpush3.bf16.msra.mxu0 %v16889_v40  ;;  %v19406_v43 = vrot.slane %v13795_v57, 1 }
 0x303   : > { %v4445_v15 = vadd.f32 %v16238_v21, %v19296_v22  ;;  %v4436_v32 = vpop.f32.mrb[105].mxu0  ;;  %15510 = vmatprep.subr.bf16.mxu0 %v16890_v29  ;;  %v4626_v29 = vld [vmem:[#allocation2 + $0x78] sm:$0x1] }
 0x304   : > { %v4437_v14 = vadd.f32 %v4436_v32, %v19269_v51  ;;  %v16239_v24 = vpop.f32.mrb[106].mxu0 }
 0x305   : > { %v4473_v22 = vmul.f32 %v19346_v60, %v4445_v15  ;;  %v4448_v2 = vadd.f32 %v16239_v24, %v19300_v31  ;;  %v4439_v8 = vpop.f32.mrb[107].mxu0 }
 0x306   : > { %v4471_v1 = vmul.f32 %v19346_v60, %v4437_v14  ;;  %v4440_v51 = vadd.f32 %v4439_v8, %v19274_v38  ;;  %15511 = vmatpush3.bf16.msra.mxu0 %v16891_v37  ;;  %v16899_v37 = vld [vmem:[#allocation10 + $0x318] sm:$0xff]  }
 0x307   : > { %v4485_v54 = vadd.f32 %v19350_v6, %v4473_v22  ;;  %v4474_v31 = vmul.f32 %v19346_v60, %v4448_v2  ;;  %v15112_v38 = vpop.f32.mrb[104].mxu1  ;;  %v16897_v2 = vld [vmem:[#allocation10 + $0x310] sm:$0xff]   ;;  %15512 = vmatprep.subr.bf16.mxu0 %v16894_v30 }
 0x308   : > { %v4483_v17 = vadd.f32 %v19350_v6, %v4471_v1  ;;  %v4472_v28 = vmul.f32 %v19346_v60, %v4440_v51  ;;  %v15113_v53 = vpop.f32.mrb[105].mxu1 }
 0x309   : > { %v4493_v25 = vmax.f32 %v4485_v54, 0.0  ;;  %v4486_v46 = vadd.f32 %v19350_v6, %v4474_v31  ;;  %v19402_v16 = vadd.f32 %v15113_v53, %v15112_v38  ;;  %v15115_v44 = vpop.f32.mrb[106].mxu1  ;;  %v16898_v54 = vld [vmem:[#allocation10 + $0x358] sm:$0xff]   ;;  %v4623_v31 = vld [vmem:[#allocation2 + $0x68] sm:$0xf]  ;;  %10393 = vmatmul.mubr.bf16.gmra.mrb[180].mxu0 %v13970_v56 }
 0x30a   : > { %v4491_v20 = vmax.f32 %v4483_v17, 0.0  ;;  %v4484_v61 = vadd.f32 %v19350_v6, %v4472_v28  ;;  %v16242_v12 = vpop.f32.mrb[108].mxu0  ;;  %v15116_v5 = vpop.f32.mrb[107].mxu1  ;;  %v4611_v28 = vld [vmem:[#allocation2 + $0x28] sm:$0xf]  ;;  %10400 = vmatprep.mubr.bf16.mxu0 %v14007_v34  ;;  %15513 = vmatpush3.bf16.msra.mxu0 %v16897_v2 }
 0x30b   : > { %v14557_v21 = vpack.c.bf16 %v4493_v25, %v4493_v25  ;;  %v4494_v35 = vmax.f32 %v4486_v46, 0.0  ;;  %v4461_v15 = vadd.f32 %v16242_v12, %v4396_v55  ;;  %v4452_v32 = vpop.f32.mrb[109].mxu0  ;;  %v19408_v33 = vadd.f32 %v15116_v5, %v15115_v44  ;;  %v4614_v25 = vld [vmem:[#allocation2 + $0x38] sm:$0x1]  ;;  %v4629_v44 = vld [vmem:[#allocation2 + $0x88] sm:$0xf]  ;;  %15514 = vmatprep.subr.bf16.mxu0 %v16898_v54 }
 0x30c   : > { %v14555_v14 = vpack.c.bf16 %v4491_v20, %v4491_v20  ;;  %v4492_v24 = vmax.f32 %v4484_v61, 0.0  ;;  %v4453_v26 = vadd.f32 %v4452_v32, %v19320_v45  ;;  %v19411_v22 = vpop.f32.mrb[110].mxu0  ;;  %v16954_v20 = vld [vmem:[#allocation10 + $0x98] sm:$0xff]   ;;  %v4632_v12 = vld [vmem:[#allocation2 + $0x98] sm:$0x1] }
 0x30d   : > { %v4548_v8 = vshrl.u32 %v14557_v21, 16  ;;  %v4551_v40 = vshll.u32 %v14557_v21, 16  ;;  %v14558_v1 = vpack.c.bf16 %v4494_v35, %v4494_v35  ;;  %v4477_v51 = vmul.f32 %v19346_v60, %v4461_v15  ;;  %v19414_v55 = vpop.f32.mrb[111].mxu0  ;;  %15315 = vmatpush3.bf16.msra.mxu1 %v16954_v20  ;;  %v16905_v20 = vld [vmem:[#allocation10 + $0x320] sm:$0xff]  }
 0x30e   : > { %v4532_v57 = vshrl.u32 %v14555_v14, 16  ;;  %v4535_v36 = vshll.u32 %v14555_v14, 16  ;;  %v14556_v17 = vpack.c.bf16 %v4492_v24, %v4492_v24  ;;  %v4475_v38 = vmul.f32 %v19346_v60, %v4453_v26  ;;  %v4617_v26 = vld [vmem:[#allocation2 + $0x48] sm:$0xf]  ;;  %15515 = vmatpush3.bf16.msra.mxu0 %v16899_v37 }
 0x30f   : > { %v4550_v45 = vrot.slane %v4548_v8, 7  ;;  %v4556_v46 = vshrl.u32 %v14558_v1, 16  ;;  %v4559_v53 = vshll.u32 %v14558_v1, 16  ;;  %v4489_v23 = vadd.f32 %v19350_v6, %v4477_v51  ;;  %v15118_v15 = vpop.f32.mrb[108].mxu1  ;;  %v4620_v8 = vld [vmem:[#allocation2 + $0x58] sm:$0x1] }
 0x310   : > { %v4534_v61 = vrot.slane %v4532_v57, 7  ;;  %v4540_v21 = vshrl.u32 %v14556_v17, 16  ;;  %v4543_v35 = vshll.u32 %v14556_v17, 16  ;;  %v4487_v5 = vadd.f32 %v19350_v6, %v4475_v38  ;;  %v15119_v30 = vpop.f32.mrb[109].mxu1  ;;  %v16902_v1 = vld [vmem:[#allocation10 + $0x360] sm:$0xff]  }
 0x311   : > { %v4553_v32 = vor.u32 %v4551_v40, %v4550_v45  ;;  %v4554_v14 = vrot.slane %v4550_v45, 4  ;;  %v4558_v24 = vrot.slane %v4556_v46, 7  ;;  %v4497_v59 = vmax.f32 %v4489_v23, 0.0  ;;  %v15121_v40 = vpop.f32.mrb[110].mxu1  ;;  %v16956_v46 = vld [vmem:[#allocation10 + $0xe0] sm:$0xff]   ;;  %15516 = vmatprep.subr.bf16.mxu0 %v16902_v1 }
 0x312   : > { %v4537_v51 = vor.u32 %v4535_v36, %v4534_v61  ;;  %v4538_v57 = vrot.slane %v4534_v61, 4  ;;  %v4542_v17 = vrot.slane %v4540_v21, 7  ;;  %v4495_v49 = vmax.f32 %v4487_v5, 0.0  ;;  %v15122_v45 = vpop.f32.mrb[111].mxu1  ;;  %15316 = vmatprep.subr.bf16.mxu1 %v16956_v46  ;;  %15517 = vmatpush3.bf16.msra.mxu0 %v16905_v20 }
 0x313   : > { %v4624_v38 = vsel %vm18934_vm13, %v4553_v32, %v4623_v31  ;;  %v4627_v19 = vsel %vm18802_vm3, %v4554_v14, %v4626_v29  ;;  %v4561_v18 = vor.u32 %v4559_v53, %v4558_v24  ;;  %v4562_v56 = vrot.slane %v4558_v24, 4  ;;  %v16960_v32 = vld [vmem:[#allocation10 + $0xa0] sm:$0xff]  }
 0x314   : > { %4625 = vst [vmem:[#allocation2 + $0x68] sm:$0xf] %v4624_v38  ;;  %4628 = vst [vmem:[#allocation2 + $0x78] sm:$0x1] %v4627_v19  ;;  %v4612_v36 = vsel %vm18934_vm13, %v4537_v51, %v4611_v28  ;;  %v4615_v39 = vsel %vm18802_vm3, %v4538_v57, %v4614_v25  ;;  %v4545_v48 = vor.u32 %v4543_v35, %v4542_v17  ;;  %v4546_v34 = vrot.slane %v4542_v17, 4  ;;  %v16964_v51 = vld [vmem:[#allocation10 + $0xe8] sm:$0xff]  }
 0x315   : > { %4613 = vst [vmem:[#allocation2 + $0x28] sm:$0xf] %v4612_v36  ;;  %4616 = vst [vmem:[#allocation2 + $0x38] sm:$0x1] %v4615_v39  ;;  %v4630_v2 = vsel %vm18934_vm13, %v4561_v18, %v4629_v44  ;;  %v4633_v31 = vsel %vm18802_vm3, %v4562_v56, %v4632_v12  ;;  %v14561_v29 = vpack.c.bf16 %v4497_v59, %v4497_v59  ;;  %v16906_v44 = vld [vmem:[#allocation10 + $0x368] sm:$0xff]   ;;  %v19450_v12 = vrot.slane %v13794_v13, 1 }
 0x316   : > { %v14559_v54 = vpack.c.bf16 %v4495_v49, %v4495_v49  ;;  %4631 = vst [vmem:[#allocation2 + $0x88] sm:$0xf] %v4630_v2  ;;  %4634 = vst [vmem:[#allocation2 + $0x98] sm:$0x1] %v4633_v31  ;;  %v4618_v28 = vsel %vm18934_vm13, %v4545_v48, %v4617_v26  ;;  %v4621_v25 = vsel %vm18802_vm3, %v4546_v34, %v4620_v8  ;;  %v16910_v8 = vld [vmem:[#allocation10 + $0x370] sm:$0xff]   ;;  %15518 = vmatprep.subr.bf16.mxu0 %v16906_v44  ;;  %v19474_v48 = vld [vmem:[#allocation2 + $0x40] sm:$0xff] }
 0x317   : > { %v4464_v53 = vadd.f32 %v19411_v22, %v19380_v7  ;;  %v4456_v23 = vadd.f32 %v19414_v55, %v19333_v41  ;;  %4619 = vst [vmem:[#allocation2 + $0x48] sm:$0xf] %v4618_v28  ;;  %4622 = vst [vmem:[#allocation2 + $0x58] sm:$0x1] %v4621_v25  ;;  %v4580_v59 = vshrl.u32 %v14561_v29, 16  ;;  %v14043_v61 = vcombine.low %v19392_v50, %v19406_v43  ;;  %v15124_v50 = vpop.f32.mrb[112].mxu1 }
 0x318   : > { %v4564_v49 = vshrl.u32 %v14559_v54, 16  ;;  %v4647_v7 = vld [vmem:[#allocation2 + $0xe8] sm:$0xf]  ;;  %v4650_v22 = vld [vmem:[#allocation2 + $0xf8] sm:$0x1]  ;;  %v19454_v5 = vadd.f32 %v15119_v30, %v15118_v15  ;;  %v19456_v37 = vadd.f32 %v15122_v45, %v15121_v40  ;;  %v16907_v43 = vld [vmem:[#allocation10 + $0x328] sm:$0xff]   ;;  %v21482_v24 = vcombine.low %v19386_v4, %v19376_v0  ;;  %15317 = vmatpush3.bf16.msra.mxu1 %v16960_v32 }
 0x319   : > { %v4635_v41 = vld [vmem:[#allocation2 + $0xa8] sm:$0xf]  ;;  %v4638_v55 = vld [vmem:[#allocation2 + $0xb8] sm:$0x1]  ;;  %v4478_v21 = vmul.f32 %v19346_v60, %v4464_v53  ;;  %v4476_v35 = vmul.f32 %v19346_v60, %v4456_v23  ;;  %v4582_v14 = vrot.slane %v4580_v59, 7  ;;  %v4583_v58 = vshll.u32 %v14561_v29, 16  ;;  %15318 = vmatprep.subr.bf16.mxu1 %v16964_v51  ;;  %15519 = vmatpush3.bf16.msra.mxu0 %v16907_v43 }
 0x31a   : > { %v4566_v10 = vrot.slane %v4564_v49, 7  ;;  %v4567_v13 = vshll.u32 %v14559_v54, 16  ;;  %10401 = vmatmul.mubr.bf16.gmra.mrb[184].mxu0 %v21482_v24  ;;  %v15125_v26 = vpop.f32.mrb[113].mxu1  ;;  %v19465_v0 = vld [vmem:[#allocation2 + $0x20] sm:$0xff]  ;;  %v19467_v4 = vld [vmem:[#allocation2 + $0x30] sm:$0x11]  ;;  %v21483_v45 = vcombine.low %v19341_v3, %v19229_v47  ;;  %15520 = vmatprep.subr.bf16.mxu0 %v16910_v8 }
 0x31b   : > { %v4490_v1 = vadd.f32 %v19350_v6, %v4478_v21  ;;  %v4488_v60 = vadd.f32 %v19350_v6, %v4476_v35  ;;  %v19463_v15 = vadd.f32 %v15125_v26, %v15124_v50  ;;  %10408 = vmatprep.mubr.bf16.mxu0 %v14043_v61  ;;  %v15127_v30 = vpop.f32.mrb[114].mxu1  ;;  %v4585_v57 = vor.u32 %v4583_v58, %v4582_v14  ;;  %v16911_v39 = vld [vmem:[#allocation10 + $0x330] sm:$0xff]   ;;  %v16966_v54 = vld [vmem:[#allocation10 + $0xa8] sm:$0xff]   ;;  %v16914_v25 = vld [vmem:[#allocation10 + $0x378] sm:$0xff]  }
 0x31c   : > { %v4586_v17 = vrot.slane %v4582_v14, 4  ;;  %v4569_v40 = vor.u32 %v4567_v13, %v4566_v10  ;;  %v4570_v38 = vrot.slane %v4566_v10, 4  ;;  %v15128_v19 = vpop.f32.mrb[115].mxu1  ;;  %v6372_v36 = vrot.slane %v21483_v45, 1  ;;  %v19489_v59 = vld [vmem:[#allocation2 + $0x50] sm:$0x11]  ;;  %15319 = vmatpush3.bf16.msra.mxu1 %v16966_v54 }
 0x31d   : > { %v4498_v18 = vmax.f32 %v4490_v1, 0.0  ;;  %v4496_v56 = vmax.f32 %v4488_v60, 0.0  ;;  %v19469_v6 = vadd.f32 %v15128_v19, %v15127_v30  ;;  %v4648_v34 = vsel %vm18934_vm13, %v4585_v57, %v4647_v7  ;;  %v16915_v61 = vld [vmem:[#allocation10 + $0x338] sm:$0xff]   ;;  %v16968_v44 = vld [vmem:[#allocation10 + $0xf0] sm:$0xff]   ;;  %v16916_v21 = vld [vmem:[#allocation10 + $0x440] sm:$0xff]   ;;  %15521 = vmatpush3.bf16.msra.mxu0 %v16911_v39 }
 0x31e   : > { %v4651_v2 = vsel %vm18802_vm3, %v4586_v17, %v4650_v22  ;;  %v4636_v31 = vsel %vm18934_vm13, %v4569_v40, %v4635_v41  ;;  %v4639_v29 = vsel %vm18802_vm3, %v4570_v38, %v4638_v55  ;;  %4649 = vst [vmem:[#allocation2 + $0xe8] sm:$0xf] %v4648_v34  ;;  %v14042_v46 = vcombine.low %v6372_v36, %v19450_v12  ;;  %v4653_v22 = vld [vmem:[#allocation2 + $0x108] sm:$0xf]  ;;  %v4656_v12 = vld [vmem:[#allocation2 + $0x118] sm:$0x1] }
 0x31f   : > { %4652 = vst [vmem:[#allocation2 + $0xf8] sm:$0x1] %v4651_v2  ;;  %4637 = vst [vmem:[#allocation2 + $0xa8] sm:$0xf] %v4636_v31  ;;  %v14562_v47 = vpack.c.bf16 %v4498_v18, %v4498_v18  ;;  %v14560_v3 = vpack.c.bf16 %v4496_v56, %v4496_v56  ;;  %v19487_v28 = vcombine.low %v19465_v0, %v19467_v4  ;;  %v15130_v20 = vpop.f32.mrb[116].mxu1  ;;  %v16972_v10 = vld [vmem:[#allocation10 + $0xb0] sm:$0xff]   ;;  %15522 = vmatprep.subr.bf16.mxu0 %v16914_v25 }
 0x320   : > { %4640 = vst [vmem:[#allocation2 + $0xb8] sm:$0x1] %v4639_v29  ;;  %v13939_v49 = vcombine.high %v19465_v0, %v19474_v48  ;;  %v4641_v41 = vld [vmem:[#allocation2 + $0xc8] sm:$0xf]  ;;  %v15131_v55 = vpop.f32.mrb[117].mxu1  ;;  %v19497_v24 = vcombine.low %v19474_v48, %v19489_v59  ;;  %v19500_v60 = vld [vmem:[#allocation2 + $0x80] sm:$0xff]  ;;  %15320 = vmatprep.subr.bf16.mxu1 %v16968_v44  ;;  %v13938_v36 = vcombine.low %v19465_v0, %v19474_v48 }
 0x321   : > { %v4588_v53 = vshrl.u32 %v14562_v47, 16  ;;  %v4572_v23 = vshrl.u32 %v14560_v3, 16  ;;  %v4591_v7 = vshll.u32 %v14562_v47, 16  ;;  %v4575_v43 = vshll.u32 %v14560_v3, 16  ;;  %v15133_v14 = vpop.f32.mrb[118].mxu1  ;;  %v19502_v38 = vld [vmem:[#allocation2 + $0x60] sm:$0xff]  ;;  %15321 = vmatpush3.bf16.msra.mxu1 %v16972_v10  ;;  %15523 = vmatpush3.bf16.msra.mxu0 %v16915_v61 }
 0x322   : > { %10409 = vmatmul.mubr.bf16.gmra.mrb[188].mxu0 %v14042_v46  ;;  %v19493_v32 = vadd.f32 %v15131_v55, %v15130_v20  ;;  %v15152_v58 = vpop.f32.mrb[112].mxu0  ;;  %v4644_v13 = vld [vmem:[#allocation2 + $0xd8] sm:$0x1]  ;;  %v6511_v26 = vshll.u32 %v19487_v28, 16  ;;  %v15134_v8 = vpop.f32.mrb[119].mxu1  ;;  %v19512_v34 = vcombine.high %v19465_v0, %v19467_v4  ;;  %v16978_v31 = vld [vmem:[#allocation10 + $0xf8] sm:$0xff]   ;;  %15588 = vmatprep.subr.bf16.mxu0 %v16916_v21 }
 0x323   : > { %v4590_v35 = vrot.slane %v4588_v53, 7  ;;  %v4574_v50 = vrot.slane %v4572_v23, 7  ;;  %10514 = vmatprep.mubr.bf16.mxu0 %v13939_v49  ;;  %v15153_v1 = vpop.f32.mrb[113].mxu0  ;;  %v16917_v19 = vld [vmem:[#allocation10 + $0x400] sm:$0xff]   ;;  %v19504_v18 = vld [vmem:[#allocation2 + $0x70] sm:$0x11]  ;;  %v19506_v56 = vadd.f32 %v15134_v8, %v15133_v14  ;;  %v19528_v23 = vcombine.high %v19474_v48, %v19489_v59  ;;  %15322 = vmatprep.subr.bf16.mxu1 %v16978_v31 }
 0x324   : > { %v15155_v40 = vpop.f32.mrb[114].mxu0  ;;  %v15154_v45 = vadd.f32 %v15153_v1, %v15152_v58  ;;  %v19514_v2 = vld [vmem:[#allocation2 + $0x90] sm:$0x11]  ;;  %v6539_v0 = vshll.u32 %v19497_v24, 16  ;;  %v16918_v53 = vld [vmem:[#allocation10 + $0x448] sm:$0xff]   ;;  %v13975_v49 = vcombine.high %v19502_v38, %v19500_v60 }
 0x325   : > { %v4593_v30 = vor.u32 %v4591_v7, %v4590_v35  ;;  %v4594_v51 = vrot.slane %v4590_v35, 4  ;;  %v4577_v57 = vor.u32 %v4575_v43, %v4574_v50  ;;  %v4578_v17 = vrot.slane %v4574_v50, 4  ;;  %v15156_v39 = vpop.f32.mrb[115].mxu0  ;;  %v16919_v61 = vld [vmem:[#allocation10 + $0x408] sm:$0xff]   ;;  %v16980_v44 = vld [vmem:[#allocation10 + $0xb8] sm:$0xff]   ;;  %v16920_v50 = vld [vmem:[#allocation10 + $0x450] sm:$0xff]  }
 0x326   : > { %v5354_v46 = vadd.f32 %v15154_v45, %v19402_v16  ;;  %v15157_v25 = vadd.f32 %v15156_v39, %v15155_v40  ;;  %v6518_v16 = vshll.u32 %v19512_v34, 16  ;;  %v19540_v48 = vcombine.high %v19500_v60, %v19514_v2  ;;  %15323 = vmatpush3.bf16.msra.mxu1 %v16980_v44  ;;  %v16984_v40 = vld [vmem:[#allocation10 + $0x1c0] sm:$0xff]   ;;  %v19554_v45 = vld [vmem:[#allocation2 + $0xa0] sm:$0xff] }
 0x327   : > { %v4654_v29 = vsel %vm18934_vm13, %v4593_v30, %v4653_v22  ;;  %v4657_v47 = vsel %vm18802_vm3, %v4594_v51, %v4656_v12  ;;  %v4642_v3 = vsel %vm18934_vm13, %v4577_v57, %v4641_v41  ;;  %v4645_v54 = vsel %vm18802_vm3, %v4578_v17, %v4644_v13  ;;  %v15192_v20 = vpop.f32.mrb[120].mxu1  ;;  %v19548_v13 = vld [vmem:[#allocation2 + $0xc0] sm:$0xff]  ;;  %v16921_v17 = vld [vmem:[#allocation10 + $0x410] sm:$0xff]   ;;  %15388 = vmatprep.subr.bf16.mxu1 %v16984_v40 }
 0x328   : > { %4655 = vst [vmem:[#allocation2 + $0x108] sm:$0xf] %v4654_v29  ;;  %4658 = vst [vmem:[#allocation2 + $0x118] sm:$0x1] %v4657_v47  ;;  %v5357_v7 = vadd.f32 %v15157_v25, %v19408_v33  ;;  %v15193_v22 = vpop.f32.mrb[121].mxu1  ;;  %v19536_v12 = vcombine.high %v19502_v38, %v19504_v18  ;;  %v19543_v33 = vrot.slane %v6511_v26, 1  ;;  %v14011_v44 = vcombine.high %v19554_v45, %v19548_v13 }
 0x329   : > { %4643 = vst [vmem:[#allocation2 + $0xc8] sm:$0xf] %v4642_v3  ;;  %4646 = vst [vmem:[#allocation2 + $0xd8] sm:$0x1] %v4645_v54  ;;  %v15194_v55 = vadd.f32 %v15193_v22, %v15192_v20  ;;  %v15195_v21 = vpop.f32.mrb[122].mxu1  ;;  %v19546_v14 = vrot.slane %v6539_v0, 1 }
 0x32a   : > { %10515 = vmatmul.mubr.bf16.vlgmr.msra.gmra.mrb[192].mxu0 %v13938_v36  ;;  %v15158_v35 = vpop.f32.mrb[116].mxu0  ;;  %v15196_v58 = vpop.f32.mrb[123].mxu1  ;;  %v6546_v8 = vshll.u32 %v19528_v23, 16  ;;  %v6516_v26 = vshrl.u32 %v19512_v34, 16  ;;  %v16922_v36 = vld [vmem:[#allocation10 + $0x458] sm:$0xff]   ;;  %v19556_v39 = vrot.slane %v6518_v16, 1 }
 0x32b   : > { %10522 = vmatprep.mubr.bf16.mxu0 %v13975_v49  ;;  %15589 = vmatpush3.bf16.msra.mxu0 %v16917_v19  ;;  %v15159_v10 = vpop.f32.mrb[117].mxu0  ;;  %v19551_v1 = vadd.f32 %v15194_v55, %v5354_v46  ;;  %v15197_v30 = vadd.f32 %v15196_v58, %v15195_v21  ;;  %v6544_v31 = vshrl.u32 %v19528_v23, 16  ;;  %v6574_v29 = vshll.u32 %v19536_v12, 16  ;;  %v16924_v16 = vld [vmem:[#allocation10 + $0x460] sm:$0xff]   ;;  %v539_v40 = vld [vmem:[#allocation2 + $0x8] sm:$0x11] }
 0x32c   : > { %15590 = vmatprep.subr.bf16.mxu0 %v16918_v53  ;;  %v15160_v51 = vadd.f32 %v15159_v10, %v15158_v35  ;;  %v15161_v57 = vpop.f32.mrb[118].mxu0  ;;  %v6602_v47 = vshll.u32 %v19540_v48, 16  ;;  %v13974_v46 = vcombine.low %v19502_v38, %v19500_v60  ;;  %v19566_v25 = vrot.slane %v6546_v8, 1  ;;  %v19588_v8 = vld [vmem:[#allocation2 + $0xd0] sm:$0x11]  ;;  %v16929_v34 = vld [vmem:[#allocation10 + $0x430] sm:$0xff]  }
 0x32d   : > { %v15162_v19 = vpop.f32.mrb[119].mxu0  ;;  %v19561_v3 = vadd.f32 %v15197_v30, %v5357_v7  ;;  %v16923_v7 = vld [vmem:[#allocation10 + $0x418] sm:$0xff]   ;;  %v19577_v55 = vrot.slane %v6574_v29, 1  ;;  %v14010_v53 = vcombine.low %v19554_v45, %v19548_v13 }
 0x32e   : > { %v5362_v54 = vadd.f32 %v15160_v51, %v19454_v5  ;;  %v15163_v0 = vadd.f32 %v15162_v19, %v15161_v57  ;;  %v19575_v5 = vcombine.low %v19502_v38, %v19504_v18  ;;  %v19580_v35 = vrot.slane %v6602_v47, 1  ;;  %v19586_v38 = vld [vmem:[#allocation2 + $0xb0] sm:$0x11]  ;;  %v19590_v57 = vld [vmem:[#allocation2 + $0x100] sm:$0xff]  ;;  %v604_v19 = vld [vmem:[#allocation2 + $0x18] sm:$0x11] }
 0x32f   : > { %15591 = vmatpush3.bf16.msra.mxu0 %v16919_v61  ;;  %v15198_v20 = vpop.f32.mrb[124].mxu1  ;;  %v16932_v23 = vld [vmem:[#allocation10 + $0x478] sm:$0xff]  }
 0x330   : > { %15592 = vmatprep.subr.bf16.mxu0 %v16920_v50  ;;  %v5365_v49 = vadd.f32 %v15163_v0, %v19456_v37  ;;  %v15199_v22 = vpop.f32.mrb[125].mxu1  ;;  %v19584_v37 = vcombine.low %v19500_v60, %v19514_v2 }
 0x331   : > { %v15200_v50 = vadd.f32 %v15199_v22, %v15198_v20  ;;  %v15201_v58 = vpop.f32.mrb[126].mxu1  ;;  %v16926_v22 = vld [vmem:[#allocation10 + $0x468] sm:$0xff]  }
 0x332   : > { %10523 = vmatmul.mubr.bf16.gmra.mrb[196].mxu0 %v13974_v46  ;;  %v15164_v10 = vpop.f32.mrb[120].mxu0  ;;  %v15202_v30 = vpop.f32.mrb[127].mxu1  ;;  %v16925_v46 = vld [vmem:[#allocation10 + $0x420] sm:$0xff]   ;;  %v6595_v61 = vshll.u32 %v19584_v37, 16 }
 0x333   : > { %10530 = vmatprep.mubr.bf16.mxu0 %v14011_v44  ;;  %15593 = vmatpush3.bf16.msra.mxu0 %v16921_v17  ;;  %v15165_v51 = vpop.f32.mrb[121].mxu0  ;;  %v19592_v29 = vadd.f32 %v15200_v50, %v5362_v54  ;;  %v15203_v60 = vadd.f32 %v15202_v30, %v15201_v58  ;;  %v6567_v17 = vshll.u32 %v19575_v5, 16  ;;  %v19595_v44 = vld [vmem:[#allocation2 + $0xe0] sm:$0xff]  ;;  %v540_v54 = vsel %vm18814_vm8, 0, %v539_v40 }
 0x334   : > { %15594 = vmatprep.subr.bf16.mxu0 %v16922_v36  ;;  %v15166_v47 = vadd.f32 %v15165_v51, %v15164_v10  ;;  %v15167_v0 = vpop.f32.mrb[122].mxu0  ;;  %v19600_v36 = vcombine.high %v19554_v45, %v19586_v38  ;;  %v605_v50 = vsel %vm18832_vm11, 0, %v604_v19  ;;  %v19611_v51 = vcombine.high %v19548_v13, %v19588_v8  ;;  %541 = vst [vmem:[#allocation2 + $0x8] sm:$0x11] %v540_v54 }
 0x335   : > { %v15168_v20 = vpop.f32.mrb[123].mxu0  ;;  %v19606_v58 = vadd.f32 %v15203_v60, %v5365_v49  ;;  %606 = vst [vmem:[#allocation2 + $0x18] sm:$0x11] %v605_v50  ;;  %v19617_v49 = vld [vmem:[#allocation2 + $0xf0] sm:$0x11]  ;;  %v14047_v60 = vcombine.high %v19595_v44, %v19590_v57  ;;  %v16928_v50 = vld [vmem:[#allocation10 + $0x470] sm:$0xff]  }
 0x336   : > { %v5370_v10 = vadd.f32 %v15166_v47, %v19463_v15  ;;  %v15169_v30 = vadd.f32 %v15168_v20, %v15167_v0  ;;  %v16927_v47 = vld [vmem:[#allocation10 + $0x428] sm:$0xff]   ;;  %v19622_v0 = vrot.slane %v6567_v17, 1  ;;  %v19626_v20 = vcombine.low %v19554_v45, %v19586_v38 }
 0x337   : > { %15595 = vmatpush3.bf16.msra.mxu0 %v16923_v7  ;;  %v15204_v7 = vpop.f32.mrb[128].mxu1  ;;  %v19630_v40 = vrot.slane %v6595_v61, 1  ;;  %v6630_v21 = vshll.u32 %v19600_v36, 16  ;;  %v6658_v17 = vshll.u32 %v19611_v51, 16  ;;  %v6549_v61 = vor.u32 %v19566_v25, %v6544_v31 }
 0x338   : > { %15596 = vmatprep.subr.bf16.mxu0 %v16924_v16  ;;  %v5373_v15 = vadd.f32 %v15169_v30, %v19469_v6  ;;  %v19628_v16 = vld [vmem:[#allocation2 + $0x110] sm:$0x11]  ;;  %v15205_v54 = vpop.f32.mrb[129].mxu1 }
 0x339   : > { %v15206_v19 = vadd.f32 %v15205_v54, %v15204_v7  ;;  %v15207_v6 = vpop.f32.mrb[130].mxu1  ;;  %v19646_v7 = vcombine.high %v19595_v44, %v19617_v49  ;;  %v19656_v63 = vcombine.high %v19590_v57, %v19628_v16  ;;  %v19668_v31 = vrot.slane %v6658_v17, 1 }
 0x33a   : > { %10531 = vmatmul.mubr.bf16.gmra.mrb[200].mxu0 %v14010_v53  ;;  %v15170_v30 = vpop.f32.mrb[124].mxu0  ;;  %v15208_v41 = vpop.f32.mrb[131].mxu1  ;;  %v6521_v53 = vor.u32 %v19556_v39, %v6516_v26  ;;  %v6623_v26 = vshll.u32 %v19626_v20, 16  ;;  %v19680_v17 = vcombine.low %v19595_v44, %v19617_v49 }
 0x33b   : > { %10538 = vmatprep.mubr.bf16.mxu0 %v14047_v60  ;;  %15597 = vmatpush3.bf16.msra.mxu0 %v16925_v46  ;;  %v15171_v45 = vpop.f32.mrb[125].mxu0  ;;  %v19642_v46 = vcombine.low %v19548_v13, %v19588_v8  ;;  %v19648_v60 = vadd.f32 %v15206_v19, %v5370_v10  ;;  %v14046_v19 = vcombine.low %v19595_v44, %v19590_v57  ;;  %v19666_v13 = vrot.slane %v6630_v21, 1  ;;  %v19694_v44 = vld [vmem:[#allocation2 + $0x40] sm:$0xee] }
 0x33c   : > { %15598 = vmatprep.subr.bf16.mxu0 %v16926_v22  ;;  %v15209_v22 = vadd.f32 %v15208_v41, %v15207_v6  ;;  %v15172_v54 = vadd.f32 %v15171_v45, %v15170_v30  ;;  %v15173_v43 = vpop.f32.mrb[126].mxu0  ;;  %v13943_v30 = vcombine.low %v6521_v53, %v6549_v61  ;;  %v21484_v45 = vshrl.u32 %v19497_v24, 16  ;;  %v16935_v53 = vld [vmem:[#allocation10 + $0x540] sm:$0xff]  }
 0x33d   : > { %v15174_v39 = vpop.f32.mrb[127].mxu0  ;;  %v21486_v24 = vshrl.u32 %v19540_v48, 16  ;;  %v21487_v48 = vsub.s32 3, %v18858_v62 }
 0x33e   : > { %v19658_v10 = vadd.f32 %v15209_v22, %v5373_v15  ;;  %v5378_v41 = vadd.f32 %v15172_v54, %v19493_v32  ;;  %v15175_v6 = vadd.f32 %v15174_v39, %v15173_v43  ;;  %v6542_v25 = vor.u32 %v19546_v14, %v21484_v45  ;;  %v16939_v32 = vld [vmem:[#allocation10 + $0x500] sm:$0xff]  }
 0x33f   : > { %15599 = vmatpush3.bf16.msra.mxu0 %v16927_v47  ;;  %v15210_v9 = vpop.f32.mrb[132].mxu1  ;;  %v16933_v47 = vld [vmem:[#allocation10 + $0x438] sm:$0xff]   ;;  %v19671_v22 = vrot.slane %v6623_v26, 1  ;;  %v6651_v43 = vshll.u32 %v19642_v46, 16  ;;  %v6686_v14 = vshll.u32 %v19646_v7, 16  ;;  %v6605_v21 = vor.u32 %v19580_v35, %v21486_v24  ;;  %v16941_v24 = vld [vmem:[#allocation10 + $0x548] sm:$0xff]  }
 0x340   : > { %15600 = vmatprep.subr.bf16.mxu0 %v16928_v50  ;;  %v5381_v15 = vadd.f32 %v15175_v6, %v19506_v56  ;;  %v15211_v50 = vpop.f32.mrb[133].mxu1  ;;  %v19682_v26 = vld [vmem:[#allocation2 + $0x20] sm:$0xee]  ;;  %v21485_v6 = vshrl.u32 %v19487_v28, 16  ;;  %v6714_v28 = vshll.u32 %v19656_v63, 16 }
 0x341   : > { %v15212_v56 = vadd.f32 %v15211_v50, %v15210_v9  ;;  %v15213_v61 = vpop.f32.mrb[134].mxu1  ;;  %v19692_v9 = vcombine.low %v19590_v57, %v19628_v16  ;;  %v21488_v57 = vshrl.u32 %v19584_v37, 16 }
 0x342   : > { %10539 = vmatmul.mubr.bf16.gmra.mrb[204].mxu0 %v14046_v19  ;;  %v15232_v54 = vpop.f32.mrb[128].mxu0  ;;  %v15214_v39 = vpop.f32.mrb[135].mxu1  ;;  %v6514_v45 = vor.u32 %v19543_v33, %v21485_v6  ;;  %v17449_v6 = vld [vmem:[#allocation7] sm:$0xf] }
 0x343   : > { %15601 = vmatpush3.bf16.msra.mxu0 %v16929_v34  ;;  %10644 = vmatprep.mubr.bf16.mxu0 %v13943_v30  ;;  %v15233_v19 = vpop.f32.mrb[129].mxu0  ;;  %v19696_v34 = vadd.f32 %v15212_v56, %v5378_v41  ;;  %v15215_v30 = vadd.f32 %v15214_v39, %v15213_v61  ;;  %v19701_v35 = vrot.slane %v17449_v6, %v21487_v48  ;;  %v6679_v41 = vshll.u32 %v19680_v17, 16 }
 0x344   : > { %15602 = vmatprep.subr.bf16.mxu0 %v16932_v23  ;;  %v15234_v50 = vadd.f32 %v15233_v19, %v15232_v54  ;;  %v15235_v23 = vpop.f32.mrb[130].mxu0  ;;  %v13942_v42 = vcombine.low %v6514_v45, %v6542_v25  ;;  %v19706_v11 = vor.u32 %v19630_v40, %v21488_v57  ;;  %v21489_v54 = vshrl.u32 %v19536_v12, 16 }
 0x345   : > { %v15236_v33 = vpop.f32.mrb[131].mxu0  ;;  %v19709_v56 = vadd.f32 %v15215_v30, %v5381_v15  ;;  %v21490_v19 = vshrl.u32 %v19575_v5, 16  ;;  %v6653_v45 = vrot.slane %v6651_v43, 1  ;;  %v6707_v40 = vshll.u32 %v19692_v9, 16  ;;  %v17450_v5 = vld [vmem:[#allocation9] sm:$0xf] }
 0x346   : > { %v15237_v61 = vadd.f32 %v15236_v33, %v15235_v23  ;;  %v5484_v25 = vadd.f32 %v15234_v50, %v19551_v1  ;;  %v6577_v39 = vor.u32 %v19577_v55, %v21489_v54  ;;  %v13830_v15 = vcombine.low %v19682_v26, %v19467_v4  ;;  %v16943_v1 = vld [vmem:[#allocation10 + $0x508] sm:$0xff]  }
 0x347   : > { %15603 = vmatpush3.bf16.msra.mxu0 %v16933_v47  ;;  %v6570_v37 = vor.u32 %v19622_v0, %v21490_v19  ;;  %v6688_v50 = vrot.slane %v6686_v14, 1  ;;  %v13834_v12 = vcombine.low %v19694_v44, %v19489_v59  ;;  %v21491_v0 = vmov %v21487_v48  ;;  %v16947_v48 = vld [vmem:[#allocation10 + $0x550] sm:$0xff]  }
 0x348   : > { %15668 = vmatprep.subr.bf16.mxu0 %v16935_v53  ;;  %v13979_v47 = vcombine.low %v6577_v39, %v6605_v21  ;;  %v5487_v23 = vadd.f32 %v15237_v61, %v19561_v3  ;;  %v19726_v43 = vrot.slane %v17450_v5, %v21491_v0  ;;  %v6716_v33 = vrot.slane %v6714_v28, 1 }
 0x349   : > { %v16262_v30 = vpop.f32.mrb[136].mxu1  ;;  %v13978_v53 = vcombine.low %v6570_v37, %v19706_v11  ;;  %v13835_v21 = vcombine.high %v19694_v44, %v19489_v59  ;;  %v6681_v57 = vrot.slane %v6679_v41, 1  ;;  %v6705_v61 = vshrl.u32 %v19692_v9, 16  ;;  %v16951_v9 = vld [vmem:[#allocation10 + $0x510] sm:$0xff]  }
 0x34a   : > { %10645 = vmatmul.mubr.bf16.vlgmr.msra.gmra.mrb[208].mxu0 %v13942_v42  ;;  %v5548_v55 = vpop.f32.mrb[137].mxu1  ;;  %v15238_v14 = vpop.f32.mrb[132].mxu0  ;;  %v6677_v42 = vshrl.u32 %v19680_v17, 16  ;;  %v21492_v11 = vshrl.u32 %v19600_v36, 16  ;;  %v21493_v59 = vshrl.u32 %v19611_v51, 16  ;;  %v19742_v37 = vrot.slane %v13834_v12, 1 }
 0x34b   : > { %v5549_v6 = vadd.f32 %v5548_v55, %v5484_v25  ;;  %10652 = vmatprep.mubr.bf16.mxu0 %v13979_v47  ;;  %15669 = vmatpush3.bf16.msra.mxu0 %v16939_v32  ;;  %v16263_v3 = vpop.f32.mrb[138].mxu1  ;;  %v15239_v54 = vpop.f32.mrb[133].mxu0  ;;  %v6709_v32 = vrot.slane %v6707_v40, 1  ;;  %v19739_v25 = vrot.slane %v13830_v15, 1  ;;  %v21494_v36 = vshrl.u32 %v19642_v46, 16  ;;  %v16953_v46 = vld [vmem:[#allocation10 + $0x558] sm:$0xff]  }
 0x34c   : > { %v5551_v62 = vpop.f32.mrb[139].mxu1  ;;  %15670 = vmatprep.subr.bf16.mxu0 %v16941_v24  ;;  %v6633_v28 = vor.u32 %v19666_v13, %v21492_v11  ;;  %v6661_v44 = vor.u32 %v19668_v31, %v21493_v59  ;;  %v15240_v41 = vadd.f32 %v15239_v54, %v15238_v14  ;;  %v15241_v19 = vpop.f32.mrb[134].mxu0  ;;  %v21495_v51 = vshrl.u32 %v19656_v63, 16  ;;  %v16955_v11 = vld [vmem:[#allocation10 + $0x518] sm:$0xff]  }
 0x34d   : > { %v5583_v39 = vmul.f32 %v19701_v35, %v5549_v6  ;;  %v5552_v17 = vadd.f32 %v5551_v62, %v5487_v23  ;;  %v15242_v24 = vpop.f32.mrb[135].mxu0  ;;  %v19746_v47 = vor.u32 %v6653_v45, %v21494_v36  ;;  %v13831_v31 = vcombine.high %v19682_v26, %v19467_v4  ;;  %v5723_v36 = vld [vmem:[#allocation2 + $0x2c] sm:$0xf] }
 0x34e   : > { %v19750_v13 = vor.u32 %v6716_v33, %v21495_v51  ;;  %v19754_v40 = vrot.slane %v13835_v21, 1  ;;  %v5492_v12 = vadd.f32 %v15240_v41, %v19592_v29  ;;  %v15243_v55 = vadd.f32 %v15242_v24, %v15241_v19  ;;  %v19770_v33 = vld [vmem:[#allocation2 + $0x60] sm:$0xee] }
 0x34f   : > { %v5595_v15 = vadd.f32 %v19726_v43, %v5583_v39  ;;  %v5584_v23 = vmul.f32 %v19701_v35, %v5552_v17  ;;  %15671 = vmatpush3.bf16.msra.mxu0 %v16943_v1  ;;  %v14015_v45 = vcombine.low %v6633_v28, %v6661_v44  ;;  %v21496_v63 = vshrl.u32 %v19626_v20, 16  ;;  %v19776_v20 = vld [vmem:[#allocation2 + $0x80] sm:$0xee]  ;;  %v16959_v44 = vld [vmem:[#allocation10 + $0x560] sm:$0xff]  }
 0x350   : > { %15672 = vmatprep.subr.bf16.mxu0 %v16947_v48  ;;  %v21497_v4 = vshrl.u32 %v19646_v7, 16  ;;  %v19768_v0 = vor.u32 %v6709_v32, %v6705_v61  ;;  %v5557_v21 = vadd.f32 %v16262_v30, %v5492_v12  ;;  %v5495_v6 = vadd.f32 %v15243_v55, %v19606_v58 }
 0x351   : > { %v19762_v5 = vor.u32 %v19671_v22, %v21496_v63  ;;  %v5603_v1 = vmax.f32 %v5595_v15, 0.0  ;;  %v5596_v29 = vadd.f32 %v19726_v43, %v5584_v23  ;;  %v19774_v14 = vpop.f32.mrb[140].mxu1  ;;  %v19782_v48 = vor.u32 %v6681_v57, %v6677_v42  ;;  %v5726_v63 = vld [vmem:[#allocation2 + $0x3c] sm:$0x1] }
 0x352   : > { %v19766_v26 = vor.u32 %v6688_v50, %v21497_v4  ;;  %10653 = vmatmul.mubr.bf16.gmra.mrb[212].mxu0 %v13978_v53  ;;  %v5564_v22 = vpop.f32.mrb[141].mxu1  ;;  %v19784_v61 = vrot.slane %v13831_v31, 1  ;;  %v5585_v58 = vmul.f32 %v19701_v35, %v5557_v21  ;;  %v5560_v54 = vadd.f32 %v16263_v3, %v5495_v6  ;;  %v15244_v53 = vpop.f32.mrb[136].mxu0  ;;  %v16963_v31 = vld [vmem:[#allocation10 + $0x520] sm:$0xff]   ;;  %v5729_v4 = vld [vmem:[#allocation2 + $0x4c] sm:$0xf] }
 0x353   : > { %v14014_v7 = vcombine.low %v19762_v5, %v19746_v47  ;;  %v14563_v62 = vpack.c.bf16 %v5603_v1, %v5603_v1  ;;  %v5604_v30 = vmax.f32 %v5596_v29, 0.0  ;;  %10660 = vmatprep.mubr.bf16.mxu0 %v14015_v45  ;;  %15673 = vmatpush3.bf16.msra.mxu0 %v16951_v9  ;;  %v19787_v28 = vpop.f32.mrb[142].mxu1  ;;  %v15245_v59 = vpop.f32.mrb[137].mxu0  ;;  %v14050_v42 = vcombine.low %v19782_v48, %v19768_v0  ;;  %v16965_v21 = vld [vmem:[#allocation10 + $0x568] sm:$0xff]  }
 0x354   : > { %v14051_v50 = vcombine.low %v19766_v26, %v19750_v13  ;;  %15674 = vmatprep.subr.bf16.mxu0 %v16953_v46  ;;  %v5567_v32 = vpop.f32.mrb[143].mxu1  ;;  %v13946_v57 = vcombine.low %v19739_v25, %v19742_v37  ;;  %v13947_v39 = vcombine.low %v19784_v61, %v19754_v40  ;;  %v13839_v3 = vcombine.high %v19770_v33, %v19504_v18  ;;  %v15247_v9 = vpop.f32.mrb[138].mxu0 }
 0x355   : > { %v5644_v17 = vshrl.u32 %v14563_v62, 16  ;;  %v14564_v41 = vpack.c.bf16 %v5604_v30, %v5604_v30  ;;  %v5597_v19 = vadd.f32 %v19726_v43, %v5585_v58  ;;  %v13843_v24 = vcombine.high %v19776_v20, %v19514_v2  ;;  %v15248_v13 = vpop.f32.mrb[139].mxu0 }
 0x356   : > { %v5586_v47 = vmul.f32 %v19701_v35, %v5560_v54  ;;  %v15246_v51 = vadd.f32 %v15245_v59, %v15244_v53  ;;  %v13838_v15 = vcombine.low %v19770_v33, %v19504_v18  ;;  %v13842_v23 = vcombine.low %v19776_v20, %v19514_v2  ;;  %v5732_v54 = vld [vmem:[#allocation2 + $0x5c] sm:$0x1]  ;;  %v16994_v2 = vld [vmem:[#allocation10 + $0x1d0] sm:$0xff]  }
 0x357   : > { %v5646_v12 = vrot.slane %v5644_v17, 7  ;;  %v5647_v55 = vshll.u32 %v14563_v62, 16  ;;  %v5652_v46 = vshrl.u32 %v14564_v41, 16  ;;  %v5605_v45 = vmax.f32 %v5597_v19, 0.0  ;;  %15675 = vmatpush3.bf16.msra.mxu0 %v16955_v11  ;;  %v16967_v17 = vld [vmem:[#allocation10 + $0x528] sm:$0xff]  }
 0x358   : > { %v5655_v5 = vshll.u32 %v14564_v41, 16  ;;  %v5598_v26 = vadd.f32 %v19726_v43, %v5586_v47  ;;  %15676 = vmatprep.subr.bf16.mxu0 %v16959_v44  ;;  %v15249_v1 = vadd.f32 %v15248_v13, %v15247_v9  ;;  %v5500_v29 = vadd.f32 %v15246_v51, %v19648_v60  ;;  %v16971_v51 = vld [vmem:[#allocation10 + $0x570] sm:$0xff]  }
 0x359   : > { %v5649_v6 = vor.u32 %v5647_v55, %v5646_v12  ;;  %v5650_v30 = vrot.slane %v5646_v12, 4  ;;  %v5654_v58 = vrot.slane %v5652_v46, 7  ;;  %v14565_v53 = vpack.c.bf16 %v5605_v45, %v5605_v45 }
 0x35a   : > { %v5606_v59 = vmax.f32 %v5598_v26, 0.0  ;;  %10661 = vmatmul.mubr.bf16.gmra.mrb[216].mxu0 %v14014_v7  ;;  %v5565_v62 = vadd.f32 %v5564_v22, %v5500_v29  ;;  %v5503_v11 = vadd.f32 %v15249_v1, %v19658_v10  ;;  %v19808_v41 = vrot.slane %v13839_v3, 1  ;;  %v15250_v47 = vpop.f32.mrb[140].mxu0 }
 0x35b   : > { %v5724_v44 = vsel %vm18934_vm13, %v5649_v6, %v5723_v36  ;;  %v5727_v60 = vsel %vm18802_vm3, %v5650_v30, %v5726_v63  ;;  %v5657_v19 = vor.u32 %v5655_v5, %v5654_v58  ;;  %v5658_v9 = vrot.slane %v5654_v58, 4  ;;  %10668 = vmatprep.mubr.bf16.mxu0 %v14051_v50  ;;  %15677 = vmatpush3.bf16.msra.mxu0 %v16963_v31  ;;  %v15251_v3 = vpop.f32.mrb[141].mxu0  ;;  %v5735_v50 = vld [vmem:[#allocation2 + $0x6c] sm:$0xf]  ;;  %v5738_v31 = vld [vmem:[#allocation2 + $0x7c] sm:$0x1] }
 0x35c   : > { %5725 = vst [vmem:[#allocation2 + $0x2c] sm:$0xf] %v5724_v44  ;;  %5728 = vst [vmem:[#allocation2 + $0x3c] sm:$0x1] %v5727_v60  ;;  %v5660_v7 = vshrl.u32 %v14565_v53, 16  ;;  %v14566_v22 = vpack.c.bf16 %v5606_v59, %v5606_v59  ;;  %v5587_v10 = vmul.f32 %v19701_v35, %v5565_v62  ;;  %15678 = vmatprep.subr.bf16.mxu0 %v16965_v21  ;;  %v19815_v13 = vrot.slane %v13843_v24, 1 }
 0x35d   : > { %v5730_v36 = vsel %vm18934_vm13, %v5657_v19, %v5729_v4  ;;  %v5733_v12 = vsel %vm18802_vm3, %v5658_v9, %v5732_v54  ;;  %v5568_v55 = vadd.f32 %v5567_v32, %v5503_v11  ;;  %v15252_v46 = vadd.f32 %v15251_v3, %v15250_v47  ;;  %v15253_v45 = vpop.f32.mrb[142].mxu0  ;;  %v16973_v63 = vld [vmem:[#allocation10 + $0x530] sm:$0xff]   ;;  %v5744_v4 = vld [vmem:[#allocation2 + $0x9c] sm:$0x1]  ;;  %v16979_v54 = vld [vmem:[#allocation10 + $0x578] sm:$0xff]  }
 0x35e   : > { %5731 = vst [vmem:[#allocation2 + $0x4c] sm:$0xf] %v5730_v36  ;;  %5734 = vst [vmem:[#allocation2 + $0x5c] sm:$0x1] %v5733_v12  ;;  %v5662_v5 = vrot.slane %v5660_v7, 7  ;;  %v5663_v26 = vshll.u32 %v14565_v53, 16  ;;  %v5599_v24 = vadd.f32 %v19726_v43, %v5587_v10 }
 0x35f   : > { %v5668_v1 = vshrl.u32 %v14566_v22, 16  ;;  %v15254_v29 = vpop.f32.mrb[143].mxu0  ;;  %v5671_v21 = vshll.u32 %v14566_v22, 16  ;;  %v5741_v6 = vld [vmem:[#allocation2 + $0x8c] sm:$0xf]  ;;  %v5588_v30 = vmul.f32 %v19701_v35, %v5568_v55  ;;  %15679 = vmatpush3.bf16.msra.mxu0 %v16967_v17  ;;  %v5508_v58 = vadd.f32 %v15252_v46, %v19696_v34  ;;  %v16981_v36 = vld [vmem:[#allocation10 + $0x538] sm:$0xff]  }
 0x360   : > { %v15255_v32 = vadd.f32 %v15254_v29, %v15253_v45  ;;  %v19824_v59 = vld [vmem:[#allocation2 + $0x18] sm:$0x11]  ;;  %v5665_v62 = vor.u32 %v5663_v26, %v5662_v5  ;;  %v5666_v11 = vrot.slane %v5662_v5, 4  ;;  %v5607_v53 = vmax.f32 %v5599_v24, 0.0  ;;  %15680 = vmatprep.subr.bf16.mxu0 %v16971_v51  ;;  %v5772_v60 = vld [vmem:[#allocation2 + $0x8] sm:$0xff]  ;;  %v16990_v29 = vld [vmem:[#allocation10 + $0x1c8] sm:$0xff]  }
 0x361   : > { %v5670_v44 = vrot.slane %v5668_v1, 7  ;;  %v5600_v19 = vadd.f32 %v19726_v43, %v5588_v30  ;;  %v5573_v9 = vadd.f32 %v19774_v14, %v5508_v58  ;;  %v13983_v17 = vcombine.low %v19808_v41, %v19815_v13  ;;  %v16986_v55 = vld [vmem:[#allocation10 + $0x180] sm:$0xff]   ;;  %v5747_v5 = vld [vmem:[#allocation2 + $0xac] sm:$0xf]  ;;  %v16991_v30 = vld [vmem:[#allocation10 + $0x648] sm:$0xff]  }
 0x362   : > { %v5511_v47 = vadd.f32 %v15255_v32, %v19709_v56  ;;  %v5736_v34 = vsel %vm18934_vm13, %v5665_v62, %v5735_v50  ;;  %v5739_v7 = vsel %vm18802_vm3, %v5666_v11, %v5738_v31  ;;  %10669 = vmatmul.mubr.bf16.gmra.mrb[220].mxu0 %v14050_v42  ;;  %v14567_v14 = vpack.c.bf16 %v5607_v53, %v5607_v53  ;;  %v19845_v50 = vld [vmem:[#allocation2 + $0xc0] sm:$0xee]  ;;  %v16985_v31 = vld [vmem:[#allocation10 + $0x640] sm:$0xff]   ;;  %v5753_v32 = vld [vmem:[#allocation2 + $0xcc] sm:$0xf] }
 0x363   : > { %v5673_v22 = vor.u32 %v5671_v21, %v5670_v44  ;;  %v5674_v10 = vrot.slane %v5670_v44, 4  ;;  %5737 = vst [vmem:[#allocation2 + $0x6c] sm:$0xf] %v5736_v34  ;;  %5740 = vst [vmem:[#allocation2 + $0x7c] sm:$0x1] %v5739_v7  ;;  %v5608_v3 = vmax.f32 %v5600_v19, 0.0  ;;  %v5589_v56 = vmul.f32 %v19701_v35, %v5573_v9  ;;  %15681 = vmatpush3.bf16.msra.mxu0 %v16973_v63 }
 0x364   : > { %v5576_v51 = vadd.f32 %v19787_v28, %v5511_v47  ;;  %10774 = vmatprep.mubr.bf16.mxu0 %v13947_v39  ;;  %v19843_v12 = vld [vmem:[#allocation2 + $0x28] sm:$0xff]  ;;  %15682 = vmatprep.subr.bf16.mxu0 %v16979_v54  ;;  %v19852_v42 = vcombine.low %v5772_v60, %v19824_v59  ;;  %v5676_v40 = vshrl.u32 %v14567_v14, 16  ;;  %v16989_v46 = vld [vmem:[#allocation10 + $0x600] sm:$0xff]   ;;  %v19859_v45 = vrot.slane %v13838_v15, 1  ;;  %v19861_v63 = vld [vmem:[#allocation2 + $0xa0] sm:$0xee] }
 0x365   : > { %v5742_v0 = vsel %vm18934_vm13, %v5673_v22, %v5741_v6  ;;  %v5745_v48 = vsel %vm18802_vm3, %v5674_v10, %v5744_v4  ;;  %v13929_v28 = vcombine.high %v5772_v60, %v19843_v12  ;;  %v14568_v61 = vpack.c.bf16 %v5608_v3, %v5608_v3  ;;  %v5750_v26 = vld [vmem:[#allocation2 + $0xbc] sm:$0x1]  ;;  %v16992_v58 = vld [vmem:[#allocation10 + $0x188] sm:$0xff]   ;;  %v16997_v34 = vld [vmem:[#allocation10 + $0x650] sm:$0xff]  }
 0x366   : > { %5743 = vst [vmem:[#allocation2 + $0x8c] sm:$0xf] %v5742_v0  ;;  %5746 = vst [vmem:[#allocation2 + $0x9c] sm:$0x1] %v5745_v48  ;;  %v5601_v39 = vadd.f32 %v19726_v43, %v5589_v56  ;;  %v5590_v1 = vmul.f32 %v19701_v35, %v5576_v51  ;;  %v13928_v24 = vcombine.low %v5772_v60, %v19843_v12  ;;  %v19868_v21 = vrot.slane %v13842_v23, 1  ;;  %v16993_v9 = vld [vmem:[#allocation10 + $0x608] sm:$0xff]  }
 0x367   : > { %10189 = vmatprep.mubr.bf16.mxu1 %v13929_v28  ;;  %v13851_v18 = vcombine.high %v19845_v50, %v19588_v8  ;;  %v5678_v33 = vrot.slane %v5676_v40, 7  ;;  %v5679_v15 = vshll.u32 %v14567_v14, 16  ;;  %v5684_v6 = vshrl.u32 %v14568_v61, 16  ;;  %15683 = vmatpush3.bf16.msra.mxu0 %v16981_v36  ;;  %v5756_v54 = vld [vmem:[#allocation2 + $0xdc] sm:$0x1]  ;;  %v19898_v3 = vld [vmem:[#allocation2 + $0x48] sm:$0xff] }
 0x368   : > { %v5609_v4 = vmax.f32 %v5601_v39, 0.0  ;;  %v5687_v35 = vshll.u32 %v14568_v61, 16  ;;  %v5602_v62 = vadd.f32 %v19726_v43, %v5590_v1  ;;  %10190 = vmatmul.mubr.bf16.vlgmr.msra.gmra.mrb[144].mxu1 %v13928_v24  ;;  %15748 = vmatprep.subr.bf16.mxu0 %v16985_v31  ;;  %v13847_v20 = vcombine.high %v19861_v63, %v19586_v38  ;;  %v19889_v10 = vld [vmem:[#allocation2 + $0x100] sm:$0xee]  ;;  %v19900_v51 = vld [vmem:[#allocation2 + $0x38] sm:$0x11] }
 0x369   : > { %v19876_v23 = vcombine.high %v5772_v60, %v19824_v59  ;;  %v5681_v11 = vor.u32 %v5679_v15, %v5678_v33  ;;  %v5682_v44 = vrot.slane %v5678_v33, 4  ;;  %v5686_v53 = vrot.slane %v5684_v6, 7  ;;  %15389 = vmatpush3.bf16.msra.mxu1 %v16986_v55  ;;  %v5759_v13 = vld [vmem:[#allocation2 + $0xec] sm:$0xf]  ;;  %v17002_v55 = vld [vmem:[#allocation10 + $0x1d8] sm:$0xff]  }
 0x36a   : > { %v14569_v19 = vpack.c.bf16 %v5609_v4, %v5609_v4  ;;  %v5610_v47 = vmax.f32 %v5602_v62, 0.0  ;;  %10775 = vmatmul.mubr.bf16.vlgmr.msra.gmra.mrb[224].mxu0 %v13946_v57  ;;  %15390 = vmatprep.subr.bf16.mxu1 %v16990_v29  ;;  %v19881_v43 = vld [vmem:[#allocation2 + $0x68] sm:$0xff]  ;;  %v19883_v7 = vrot.slane %v13851_v18, 1  ;;  %v13846_v60 = vcombine.low %v19861_v63, %v19586_v38  ;;  %v5768_v63 = vld [vmem:[#allocation2 + $0x11c] sm:$0x1]  ;;  %v17003_v24 = vld [vmem:[#allocation10 + $0x658] sm:$0xff]  }
 0x36b   : > { %v13850_v22 = vcombine.low %v19845_v50, %v19588_v8  ;;  %v5748_v14 = vsel %vm18934_vm13, %v5681_v11, %v5747_v5  ;;  %v5751_v25 = vsel %vm18802_vm3, %v5682_v44, %v5750_v26  ;;  %v5689_v37 = vor.u32 %v5687_v35, %v5686_v53  ;;  %10782 = vmatprep.mubr.bf16.mxu0 %v13983_v17  ;;  %v16998_v38 = vld [vmem:[#allocation10 + $0x190] sm:$0xff]   ;;  %v5762_v17 = vld [vmem:[#allocation2 + $0xfc] sm:$0x1]  ;;  %v19916_v29 = vld [vmem:[#allocation2 + $0xe0] sm:$0xee] }
 0x36c   : > { %v5690_v57 = vrot.slane %v5686_v53, 4  ;;  %15749 = vmatpush3.bf16.msra.mxu0 %v16989_v46  ;;  %5749 = vst [vmem:[#allocation2 + $0xac] sm:$0xf] %v5748_v14  ;;  %5752 = vst [vmem:[#allocation2 + $0xbc] sm:$0x1] %v5751_v25  ;;  %v5692_v8 = vshrl.u32 %v14569_v19, 16  ;;  %v14570_v56 = vpack.c.bf16 %v5610_v47, %v5610_v47  ;;  %v13965_v36 = vcombine.high %v19898_v3, %v19881_v43 }
 0x36d   : > { %15750 = vmatprep.subr.bf16.mxu0 %v16991_v30  ;;  %v6829_v50 = vrot.slane %v13847_v20, 1  ;;  %v5754_v0 = vsel %vm18934_vm13, %v5689_v37, %v5753_v32  ;;  %15391 = vmatpush3.bf16.msra.mxu1 %v16992_v58  ;;  %v13964_v48 = vcombine.low %v19898_v3, %v19881_v43  ;;  %v17001_v28 = vld [vmem:[#allocation10 + $0x610] sm:$0xff]   ;;  %v13859_v31 = vcombine.high %v19889_v10, %v19628_v16  ;;  %v17004_v30 = vld [vmem:[#allocation10 + $0x198] sm:$0xff]   ;;  %v17006_v11 = vld [vmem:[#allocation10 + $0x1e0] sm:$0xff]  }
 0x36e   : > { %v5757_v41 = vsel %vm18802_vm3, %v5690_v57, %v5756_v54  ;;  %5755 = vst [vmem:[#allocation2 + $0xcc] sm:$0xf] %v5754_v0  ;;  %v5694_v40 = vrot.slane %v5692_v8, 7  ;;  %v5695_v61 = vshll.u32 %v14569_v19, 16  ;;  %v5700_v39 = vshrl.u32 %v14570_v56, 16  ;;  %10197 = vmatprep.mubr.bf16.mxu1 %v13965_v36  ;;  %15392 = vmatprep.subr.bf16.mxu1 %v16994_v2  ;;  %v17005_v58 = vld [vmem:[#allocation10 + $0x618] sm:$0xff]  }
 0x36f   : > { %5758 = vst [vmem:[#allocation2 + $0xdc] sm:$0x1] %v5757_v41  ;;  %v5765_v46 = vld [vmem:[#allocation2 + $0x10c] sm:$0xf]  ;;  %v6061_v5 = vshll.u32 %v19852_v42, 16  ;;  %v13982_v26 = vcombine.low %v19859_v45, %v19868_v21  ;;  %v14019_v1 = vcombine.low %v6829_v50, %v19883_v7  ;;  %v19920_v18 = vcombine.high %v19843_v12, %v19900_v51  ;;  %v17009_v44 = vld [vmem:[#allocation10 + $0x660] sm:$0xff]  }
 0x370   : > { %15751 = vmatpush3.bf16.msra.mxu0 %v16993_v9  ;;  %v5697_v33 = vor.u32 %v5695_v61, %v5694_v40  ;;  %v5698_v15 = vrot.slane %v5694_v40, 4  ;;  %v5702_v6 = vrot.slane %v5700_v39, 7  ;;  %v5703_v4 = vshll.u32 %v14570_v56, 16  ;;  %10198 = vmatmul.mubr.bf16.gmra.mrb[148].mxu1 %v13964_v48  ;;  %v19933_v53 = vld [vmem:[#allocation2 + $0x88] sm:$0xff]  ;;  %v17010_v9 = vld [vmem:[#allocation10 + $0x1a0] sm:$0xff]   ;;  %v19961_v50 = vld [vmem:[#allocation2 + $0x60] sm:$0xff] }
 0x371   : > { %15752 = vmatprep.subr.bf16.mxu0 %v16997_v34  ;;  %15393 = vmatpush3.bf16.msra.mxu1 %v16998_v38  ;;  %v19922_v35 = vrot.slane %v13846_v60, 1  ;;  %v19924_v45 = vrot.slane %v13850_v22, 1  ;;  %v19926_v21 = vrot.slane %v13859_v31, 1  ;;  %v6068_v32 = vshll.u32 %v19876_v23, 16  ;;  %v19941_v60 = vld [vmem:[#allocation2 + $0x40] sm:$0xff] }
 0x372   : > { %v5760_v54 = vsel %vm18934_vm13, %v5697_v33, %v5759_v13  ;;  %v5763_v62 = vsel %vm18802_vm3, %v5698_v15, %v5762_v17  ;;  %v5705_v2 = vor.u32 %v5703_v4, %v5702_v6  ;;  %v5706_v20 = vrot.slane %v5702_v6, 4  ;;  %10783 = vmatmul.mubr.bf16.gmra.mrb[228].mxu0 %v13982_v26  ;;  %15394 = vmatprep.subr.bf16.mxu1 %v17002_v55  ;;  %v19943_v22 = vld [vmem:[#allocation2 + $0x50] sm:$0x11]  ;;  %v17014_v38 = vld [vmem:[#allocation10 + $0x1e8] sm:$0xff]   ;;  %v19955_v8 = vld [vmem:[#allocation2 + $0x78] sm:$0x11] }
 0x373   : > { %5761 = vst [vmem:[#allocation2 + $0xec] sm:$0xf] %v5760_v54  ;;  %5764 = vst [vmem:[#allocation2 + $0xfc] sm:$0x1] %v5763_v62  ;;  %10790 = vmatprep.mubr.bf16.mxu0 %v14019_v1  ;;  %v19935_v19 = vld [vmem:[#allocation2 + $0xa8] sm:$0xff]  ;;  %v13855_v47 = vcombine.high %v19916_v29, %v19617_v49  ;;  %v6066_v34 = vshrl.u32 %v19876_v23, 16  ;;  %v19959_v56 = vcombine.low %v19843_v12, %v19900_v51 }
 0x374   : > { %15753 = vmatpush3.bf16.msra.mxu0 %v17001_v28  ;;  %v6096_v7 = vshll.u32 %v19920_v18, 16  ;;  %v19945_v14 = vld [vmem:[#allocation2 + $0x70] sm:$0x11]  ;;  %v5766_v25 = vsel %vm18934_vm13, %v5705_v2, %v5765_v46  ;;  %v5769_v37 = vsel %vm18802_vm3, %v5706_v20, %v5768_v63  ;;  %v14001_v57 = vcombine.high %v19933_v53, %v19935_v19  ;;  %v19967_v13 = vld [vmem:[#allocation2 + $0x58] sm:$0x11]  ;;  %v17015_v28 = vld [vmem:[#allocation10 + $0x668] sm:$0xff]  }
 0x375   : > { %15754 = vmatprep.subr.bf16.mxu0 %v17003_v24  ;;  %v14000_v23 = vcombine.low %v19933_v53, %v19935_v19  ;;  %5767 = vst [vmem:[#allocation2 + $0x10c] sm:$0xf] %v5766_v25  ;;  %5770 = vst [vmem:[#allocation2 + $0x11c] sm:$0x1] %v5769_v37  ;;  %15395 = vmatpush3.bf16.msra.mxu1 %v17004_v30  ;;  %v6070_v36 = vrot.slane %v6068_v32, 1  ;;  %v13854_v0 = vcombine.low %v19916_v29, %v19617_v49  ;;  %v17013_v12 = vld [vmem:[#allocation10 + $0x620] sm:$0xff]  }
 0x376   : > { %10205 = vmatprep.mubr.bf16.mxu1 %v14001_v57  ;;  %15396 = vmatprep.subr.bf16.mxu1 %v17006_v11  ;;  %v13858_v41 = vcombine.low %v19889_v10, %v19628_v16  ;;  %v6059_v17 = vshrl.u32 %v19852_v42, 16  ;;  %v6837_v48 = vrot.slane %v13855_v47, 1  ;;  %v17016_v31 = vld [vmem:[#allocation10 + $0x1a8] sm:$0xff]   ;;  %v6098_v40 = vrot.slane %v6096_v7, 1  ;;  %v17018_v10 = vld [vmem:[#allocation10 + $0x1f0] sm:$0xff]  }
 0x377   : > { %v19972_v61 = vcombine.high %v19881_v43, %v19955_v8  ;;  %v19976_v49 = vrot.slane %v6061_v5, 1  ;;  %v14018_v16 = vcombine.low %v19922_v35, %v19924_v45  ;;  %v19982_v39 = vcombine.low %v19941_v60, %v19943_v22  ;;  %v19988_v46 = vld [vmem:[#allocation2 + $0x80] sm:$0xff]  ;;  %v19997_v29 = vld [vmem:[#allocation2 + $0x90] sm:$0x11]  ;;  %v19999_v33 = vld [vmem:[#allocation2 + $0xc8] sm:$0xff] }
 0x378   : > { %15755 = vmatpush3.bf16.msra.mxu0 %v17005_v58  ;;  %10206 = vmatmul.mubr.bf16.gmra.mrb[152].mxu1 %v14000_v23  ;;  %v19986_v55 = vcombine.low %v19961_v50, %v19945_v14  ;;  %v6089_v63 = vshll.u32 %v19959_v56, 16  ;;  %v14055_v5 = vcombine.low %v6837_v48, %v19926_v21  ;;  %v17017_v26 = vld [vmem:[#allocation10 + $0x628] sm:$0xff]   ;;  %v6094_v1 = vshrl.u32 %v19920_v18, 16  ;;  %v17021_v30 = vld [vmem:[#allocation10 + $0x670] sm:$0xff]   ;;  %v20011_v20 = vld [vmem:[#allocation2 + $0xb8] sm:$0x11] }
 0x379   : > { %15756 = vmatprep.subr.bf16.mxu0 %v17009_v44  ;;  %15397 = vmatpush3.bf16.msra.mxu1 %v17010_v9  ;;  %v19995_v24 = vcombine.high %v19898_v3, %v19967_v13  ;;  %v6836_v6 = vrot.slane %v13854_v0, 1  ;;  %v6840_v4 = vrot.slane %v13858_v41, 1  ;;  %v6071_v58 = vor.u32 %v6070_v36, %v6066_v34  ;;  %v17022_v45 = vld [vmem:[#allocation10 + $0x1b0] sm:$0xff]   ;;  %v17028_v9 = vld [vmem:[#allocation10 + $0x1f8] sm:$0xff]   ;;  %v20028_v48 = vld [vmem:[#allocation2 + $0xa0] sm:$0xff] }
 0x37a   : > { %10791 = vmatmul.mubr.bf16.gmra.mrb[232].mxu0 %v14018_v16  ;;  %15398 = vmatprep.subr.bf16.mxu1 %v17014_v38  ;;  %v20001_v15 = vld [vmem:[#allocation2 + $0xe8] sm:$0xff]  ;;  %v6087_v35 = vshrl.u32 %v19959_v56, 16  ;;  %v6099_v21 = vor.u32 %v6098_v40, %v6094_v1  ;;  %v6152_v32 = vshll.u32 %v19972_v61, 16  ;;  %v6975_v62 = vshll.u32 %v19982_v39, 16  ;;  %v17029_v38 = vld [vmem:[#allocation10 + $0x678] sm:$0xff]  }
 0x37b   : > { %10798 = vmatprep.mubr.bf16.mxu0 %v14055_v5  ;;  %v14037_v18 = vcombine.high %v19999_v33, %v20001_v15  ;;  %v14036_v54 = vcombine.low %v19999_v33, %v20001_v15  ;;  %v7003_v2 = vshll.u32 %v19986_v55, 16  ;;  %v6091_v11 = vrot.slane %v6089_v63, 1  ;;  %v17025_v44 = vld [vmem:[#allocation10 + $0x630] sm:$0xff]   ;;  %v20026_v56 = vld [vmem:[#allocation2 + $0x98] sm:$0x11]  ;;  %v17030_v0 = vld [vmem:[#allocation10 + $0x1b8] sm:$0xff]  }
 0x37c   : > { %15757 = vmatpush3.bf16.msra.mxu0 %v17013_v12  ;;  %v6124_v47 = vshll.u32 %v19995_v24, 16  ;;  %v20016_v34 = vcombine.low %v19988_v46, %v19997_v29  ;;  %v20020_v7 = vcombine.low %v19881_v43, %v19955_v8  ;;  %v14054_v25 = vcombine.low %v6836_v6, %v6840_v4  ;;  %v20030_v43 = vld [vmem:[#allocation2 + $0xb0] sm:$0x11]  ;;  %v17032_v5 = vld [vmem:[#allocation10 + $0x2c0] sm:$0xff]   ;;  %v20136_v27 = vld [vmem:[#allocation2 + $0x28] sm:$0xee] }
 0x37d   : > { %15758 = vmatprep.subr.bf16.mxu0 %v17015_v28  ;;  %15399 = vmatpush3.bf16.msra.mxu1 %v17016_v31  ;;  %v13951_v23 = vcombine.high %v19941_v60, %v19961_v50  ;;  %v13933_v36 = vcombine.low %v6071_v58, %v6099_v21  ;;  %v6154_v41 = vrot.slane %v6152_v32, 1  ;;  %v20034_v12 = vcombine.low %v19898_v3, %v19967_v13  ;;  %v17031_v63 = vld [vmem:[#allocation10 + $0x638] sm:$0xff]   ;;  %v17033_v4 = vld [vmem:[#allocation10 + $0x740] sm:$0xff]  }
 0x37e   : > { %10213 = vmatprep.mubr.bf16.mxu1 %v14037_v18  ;;  %15400 = vmatprep.subr.bf16.mxu1 %v17018_v10  ;;  %v20038_v28 = vcombine.high %v19935_v19, %v20011_v20  ;;  %v20040_v31 = vrot.slane %v6975_v62, 1  ;;  %v20042_v40 = vrot.slane %v7003_v2, 1  ;;  %v6122_v16 = vshrl.u32 %v19995_v24, 16  ;;  %v17036_v18 = vld [vmem:[#allocation10 + $0x280] sm:$0xff]  }
 0x37f   : > { %v6150_v10 = vshrl.u32 %v19972_v61, 16  ;;  %v6126_v3 = vrot.slane %v6124_v47, 1  ;;  %v6145_v1 = vshll.u32 %v20020_v7, 16  ;;  %v20050_v6 = vcombine.high %v19933_v53, %v20026_v56  ;;  %v20061_v42 = vld [vmem:[#allocation2 + $0xd8] sm:$0x11] }
 0x380   : > { %15759 = vmatpush3.bf16.msra.mxu0 %v17017_v26  ;;  %10214 = vmatmul.mubr.bf16.gmra.mrb[156].mxu1 %v14036_v54  ;;  %v6064_v24 = vor.u32 %v19976_v49, %v6059_v17  ;;  %v6092_v61 = vor.u32 %v6091_v11, %v6087_v35  ;;  %v6117_v21 = vshll.u32 %v20034_v12, 16  ;;  %v6208_v32 = vshll.u32 %v20038_v28, 16  ;;  %v17040_v54 = vld [vmem:[#allocation10 + $0x2c8] sm:$0xff]   ;;  %v20063_v17 = vld [vmem:[#allocation2 + $0xf8] sm:$0x11] }
 0x381   : > { %15760 = vmatprep.subr.bf16.mxu0 %v17021_v30  ;;  %15401 = vmatpush3.bf16.msra.mxu1 %v17022_v45  ;;  %v590_v30 = vld [vmem:[#allocation2 + $0x120] sm:$0x11]  ;;  %v6155_v58 = vor.u32 %v6154_v41, %v6150_v10  ;;  %v20057_v45 = vcombine.low %v20028_v48, %v20030_v43  ;;  %v13950_v49 = vcombine.low %v19941_v60, %v19961_v50  ;;  %v7031_v62 = vshll.u32 %v20016_v34, 16  ;;  %v17039_v2 = vld [vmem:[#allocation10 + $0x700] sm:$0xff]   ;;  %v20078_v26 = vld [vmem:[#allocation2 + $0xd0] sm:$0x11] }
 0x382   : > { %10319 = vmatprep.mubr.bf16.mxu1 %v13933_v36  ;;  %10799 = vmatmul.mubr.bf16.gmra.mrb[236].mxu0 %v14054_v25  ;;  %v6127_v35 = vor.u32 %v6126_v3, %v6122_v16  ;;  %v6180_v11 = vshll.u32 %v20050_v6, 16  ;;  %v13932_v47 = vcombine.low %v6064_v24, %v6092_v61  ;;  %v17041_v25 = vld [vmem:[#allocation10 + $0x748] sm:$0xff]   ;;  %v6210_v3 = vrot.slane %v6208_v32, 1  ;;  %v17046_v24 = vld [vmem:[#allocation10 + $0x2d0] sm:$0xff]  }
 0x383   : > { %15402 = vmatprep.subr.bf16.mxu1 %v17028_v9  ;;  %10904 = vmatprep.mubr.bf16.mxu0 %v13951_v23  ;;  %v655_v9 = vld [vmem:[#allocation2 + $0x130] sm:$0x11]  ;;  %v6147_v23 = vrot.slane %v6145_v1, 1  ;;  %v7059_v16 = vshll.u32 %v20057_v45, 16  ;;  %v17042_v10 = vld [vmem:[#allocation10 + $0x288] sm:$0xff]   ;;  %v6143_v1 = vshrl.u32 %v20020_v7, 16  ;;  %v20096_v7 = vcombine.high %v19999_v33, %v20061_v42 }
 0x384   : > { %15761 = vmatpush3.bf16.msra.mxu0 %v17025_v44  ;;  %v20069_v44 = vld [vmem:[#allocation2 + $0xc0] sm:$0xff]  ;;  %v13969_v41 = vcombine.low %v6127_v35, %v6155_v58  ;;  %v13987_v58 = vcombine.high %v19988_v46, %v20028_v48  ;;  %v6182_v35 = vrot.slane %v6180_v11, 1 }
 0x385   : > { %15762 = vmatprep.subr.bf16.mxu0 %v17029_v38  ;;  %15403 = vmatpush3.bf16.msra.mxu1 %v17030_v0  ;;  %v20073_v38 = vcombine.low %v19935_v19, %v20011_v20  ;;  %v591_v0 = vsel %vm18814_vm8, 0, %v590_v30  ;;  %v6119_v19 = vrot.slane %v6117_v21, 1  ;;  %v656_v30 = vsel %vm18832_vm11, 0, %v655_v9  ;;  %v17043_v32 = vld [vmem:[#allocation10 + $0x708] sm:$0xff]   ;;  %v17047_v9 = vld [vmem:[#allocation10 + $0x750] sm:$0xff]  }
 0x386   : > { %15468 = vmatprep.subr.bf16.mxu1 %v17032_v5  ;;  %v20082_v5 = vcombine.high %v20001_v15, %v20063_v17  ;;  %592 = vst [vmem:[#allocation2 + $0x120] sm:$0x11] %v591_v0  ;;  %657 = vst [vmem:[#allocation2 + $0x130] sm:$0x11] %v656_v30  ;;  %v6148_v21 = vor.u32 %v6147_v23, %v6143_v1  ;;  %v6178_v0 = vshrl.u32 %v20050_v6, 16  ;;  %v20111_v23 = vrot.slane %v7031_v62, 1 }
 0x387   : > { %v6201_v11 = vshll.u32 %v20073_v38, 16  ;;  %v17050_v30 = vld [vmem:[#allocation10 + $0x290] sm:$0xff]   ;;  %v20121_v62 = vcombine.low %v20001_v15, %v20063_v17  ;;  %v20131_v15 = vcombine.low %v19999_v33, %v20061_v42  ;;  %v17070_v61 = vld [vmem:[#allocation10 + $0x2a8] sm:$0xff]  }
 0x388   : > { %15763 = vmatpush3.bf16.msra.mxu0 %v17031_v63  ;;  %10320 = vmatmul.mubr.bf16.vlgmr.msra.gmra.mrb[160].mxu1 %v13932_v47  ;;  %v20087_v63 = vcombine.low %v19933_v53, %v20026_v56  ;;  %v6115_v53 = vshrl.u32 %v20034_v12, 16  ;;  %v20099_v47 = vld [vmem:[#allocation2 + $0xf0] sm:$0x11]  ;;  %v6264_v12 = vshll.u32 %v20082_v5, 16  ;;  %v17053_v6 = vld [vmem:[#allocation10 + $0x710] sm:$0xff]  }
 0x389   : > { %15828 = vmatprep.subr.bf16.mxu0 %v17033_v4  ;;  %10327 = vmatprep.mubr.bf16.mxu1 %v13969_v41  ;;  %v6206_v4 = vshrl.u32 %v20038_v28, 16  ;;  %v20113_v41 = vrot.slane %v7059_v16, 1  ;;  %v6199_v28 = vshrl.u32 %v20073_v38, 16  ;;  %v20144_v38 = vcombine.high %v19961_v50, %v19945_v14  ;;  %v17060_v14 = vld [vmem:[#allocation10 + $0x2e0] sm:$0xff]  }
 0x38a   : > { %15469 = vmatpush3.bf16.msra.mxu1 %v17036_v18  ;;  %v20103_v18 = vcombine.low %v20069_v44, %v20078_v26  ;;  %v6120_v1 = vor.u32 %v6119_v19, %v6115_v53  ;;  %v6173_v37 = vshll.u32 %v20087_v63, 16  ;;  %v17055_v19 = vld [vmem:[#allocation10 + $0x758] sm:$0xff]   ;;  %v6203_v53 = vrot.slane %v6201_v11, 1  ;;  %v17061_v50 = vld [vmem:[#allocation10 + $0x760] sm:$0xff]   ;;  %v17069_v11 = vld [vmem:[#allocation10 + $0x768] sm:$0xff]  }
 0x38b   : > { %10905 = vmatmul.mubr.bf16.vlgmr.msra.gmra.mrb[240].mxu0 %v13950_v49  ;;  %15470 = vmatprep.subr.bf16.mxu1 %v17040_v54  ;;  %v6211_v49 = vor.u32 %v6210_v3, %v6206_v4  ;;  %v20108_v54 = vld [vmem:[#allocation2 + $0xe0] sm:$0xff]  ;;  %v17054_v3 = vld [vmem:[#allocation10 + $0x2d8] sm:$0xff]   ;;  %v6236_v4 = vshll.u32 %v20096_v7, 16  ;;  %v6266_v57 = vrot.slane %v6264_v12, 1  ;;  %v6234_v12 = vshrl.u32 %v20096_v7, 16 }
 0x38c   : > { %10912 = vmatprep.mubr.bf16.mxu0 %v13987_v58  ;;  %15829 = vmatpush3.bf16.msra.mxu0 %v17039_v2  ;;  %v13986_v2 = vcombine.low %v19988_v46, %v20028_v48  ;;  %v6183_v58 = vor.u32 %v6182_v35, %v6178_v0  ;;  %v13968_v16 = vcombine.low %v6120_v1, %v6148_v21  ;;  %v17056_v0 = vld [vmem:[#allocation10 + $0x298] sm:$0xff]   ;;  %v6262_v21 = vshrl.u32 %v20082_v5, 16  ;;  %v20134_v1 = vld [vmem:[#allocation2 + $0x8] sm:$0xee] }
 0x38d   : > { %15830 = vmatprep.subr.bf16.mxu0 %v17041_v25  ;;  %v20125_v25 = vcombine.low %v20108_v54, %v20099_v47  ;;  %v14023_v33 = vcombine.high %v20069_v44, %v20108_v54  ;;  %v6257_v5 = vshll.u32 %v20121_v62, 16  ;;  %v20164_v7 = vld [vmem:[#allocation2 + $0x120] sm:$0xff] }
 0x38e   : > { %15471 = vmatpush3.bf16.msra.mxu1 %v17042_v10  ;;  %v7087_v10 = vshll.u32 %v20103_v18, 16  ;;  %v14005_v35 = vcombine.low %v6183_v58, %v6211_v49  ;;  %v17064_v58 = vld [vmem:[#allocation10 + $0x2a0] sm:$0xff]  }
 0x38f   : > { %15472 = vmatprep.subr.bf16.mxu1 %v17046_v24  ;;  %v6175_v24 = vrot.slane %v6173_v37, 1  ;;  %v17057_v37 = vld [vmem:[#allocation10 + $0x718] sm:$0xff]   ;;  %v7115_v49 = vshll.u32 %v20125_v25, 16 }
 0x390   : > { %15831 = vmatpush3.bf16.msra.mxu0 %v17043_v32  ;;  %10328 = vmatmul.mubr.bf16.gmra.mrb[164].mxu1 %v13968_v16  ;;  %v20140_v32 = vcombine.high %v19941_v60, %v19943_v22  ;;  %v6171_v60 = vshrl.u32 %v20087_v63, 16  ;;  %v6204_v22 = vor.u32 %v6203_v53, %v6199_v28  ;;  %v13773_v63 = vcombine.high %v20136_v27, %v19900_v51  ;;  %v17067_v53 = vld [vmem:[#allocation10 + $0x720] sm:$0xff]  }
 0x391   : > { %15832 = vmatprep.subr.bf16.mxu0 %v17047_v9  ;;  %10335 = vmatprep.mubr.bf16.mxu1 %v14005_v35  ;;  %v6238_v9 = vrot.slane %v6236_v4, 1  ;;  %v6229_v4 = vshll.u32 %v20131_v15, 16  ;;  %v20156_v35 = vld [vmem:[#allocation2 + $0x100] sm:$0xff] }
 0x392   : > { %15473 = vmatpush3.bf16.msra.mxu1 %v17050_v30  ;;  %v6267_v30 = vor.u32 %v6266_v57, %v6262_v21  ;;  %v6176_v16 = vor.u32 %v6175_v24, %v6171_v60  ;;  %v6982_v28 = vshll.u32 %v20140_v32, 16  ;;  %v17068_v21 = vld [vmem:[#allocation10 + $0x2e8] sm:$0xff]   ;;  %v6259_v24 = vrot.slane %v6257_v5, 1 }
 0x393   : > { %10913 = vmatmul.mubr.bf16.gmra.mrb[244].mxu0 %v13986_v2  ;;  %15474 = vmatprep.subr.bf16.mxu1 %v17054_v3  ;;  %v13769_v2 = vcombine.high %v20134_v1, %v19824_v59  ;;  %v20162_v3 = vrot.slane %v7087_v10, 1  ;;  %v6239_v57 = vor.u32 %v6238_v9, %v6234_v12  ;;  %v14022_v60 = vcombine.low %v20069_v44, %v20108_v54  ;;  %v17074_v12 = vld [vmem:[#allocation10 + $0x2f0] sm:$0xff]  }
 0x394   : > { %10920 = vmatprep.mubr.bf16.mxu0 %v14023_v33  ;;  %15833 = vmatpush3.bf16.msra.mxu0 %v17053_v6  ;;  %v7010_v6 = vshll.u32 %v20144_v38, 16  ;;  %v14004_v33 = vcombine.low %v6176_v16, %v6204_v22  ;;  %v6231_v10 = vrot.slane %v6229_v4, 1  ;;  %v6355_v36 = vrot.slane %v13773_v63, 1  ;;  %v17081_v63 = vld [vmem:[#allocation10 + $0x730] sm:$0xff]  }
 0x395   : > { %15834 = vmatprep.subr.bf16.mxu0 %v17055_v19  ;;  %21500 = vst [vmem:[#allocation37_spill] sm:$0xff] %v20162_v3  ;;  %v6227_v19 = vshrl.u32 %v20131_v15, 16  ;;  %v14041_v52 = vcombine.low %v6239_v57, %v6267_v30  ;;  %v6351_v9 = vrot.slane %v13769_v2, 1  ;;  %v6984_v3 = vrot.slane %v6982_v28, 1  ;;  %v17076_v2 = vld [vmem:[#allocation10 + $0x2b0] sm:$0xff]  }
 0x396   : > { %15475 = vmatpush3.bf16.msra.mxu1 %v17056_v0  ;;  %v6255_v0 = vshrl.u32 %v20121_v62, 16  ;;  %v7008_v15 = vshrl.u32 %v20144_v38, 16  ;;  %v7012_v5 = vrot.slane %v7010_v6, 1  ;;  %v14059_v22 = vcombine.high %v20156_v35, %v20164_v7  ;;  %v20181_v38 = vld [vmem:[#allocation2 + $0x68] sm:$0xee] }
 0x397   : > { %15476 = vmatprep.subr.bf16.mxu1 %v17060_v14  ;;  %v20173_v14 = vld [vmem:[#allocation2 + $0x48] sm:$0xee]  ;;  %v20177_v62 = vcombine.high %v20028_v48, %v20030_v43  ;;  %v13768_v30 = vcombine.low %v20134_v1, %v19824_v59  ;;  %v20189_v4 = vrot.slane %v7115_v49, 1  ;;  %v6232_v48 = vor.u32 %v6231_v10, %v6227_v19 }
 0x398   : > { %15835 = vmatpush3.bf16.msra.mxu0 %v17057_v37  ;;  %10336 = vmatmul.mubr.bf16.gmra.mrb[168].mxu1 %v14004_v33  ;;  %v17071_v37 = vld [vmem:[#allocation10 + $0x728] sm:$0xff]   ;;  %v17075_v43 = vld [vmem:[#allocation10 + $0x770] sm:$0xff]   ;;  %v6980_v16 = vshrl.u32 %v20140_v32, 16  ;;  %v21501_v59 = vshrl.u32 %v19986_v55, 16  ;;  %v7013_v28 = vor.u32 %v7012_v5, %v7008_v15  ;;  %v17084_v55 = vld [vmem:[#allocation10 + $0x2f8] sm:$0xff]   ;;  %v14058_v10 = vcombine.low %v20156_v35, %v20164_v7 }
 0x399   : > { %15836 = vmatprep.subr.bf16.mxu0 %v17061_v50  ;;  %10343 = vmatprep.mubr.bf16.mxu1 %v14041_v52  ;;  %v6260_v50 = vor.u32 %v6259_v24, %v6255_v0  ;;  %v20185_v52 = vcombine.high %v19988_v46, %v19997_v29  ;;  %v20197_v46 = vld [vmem:[#allocation2 + $0x110] sm:$0x11]  ;;  %v15284_v29 = vpop.f32.mrb[144].mxu0  ;;  %v20202_v32 = vrot.slane %v13768_v30, 1  ;;  %v17088_v0 = vld [vmem:[#allocation10 + $0x3c0] sm:$0xff]   ;;  %v7064_v15 = vshrl.u32 %v20177_v62, 16 }
 0x39a   : > { %15477 = vmatpush3.bf16.msra.mxu1 %v17064_v58  ;;  %v13772_v58 = vcombine.low %v20136_v27, %v19900_v51  ;;  %v20195_v1 = vor.u32 %v20042_v40, %v21501_v59  ;;  %v13777_v27 = vcombine.high %v20173_v14, %v19967_v13  ;;  %v7066_v51 = vshll.u32 %v20177_v62, 16  ;;  %v17085_v24 = vld [vmem:[#allocation10 + $0x778] sm:$0xff]   ;;  %v17089_v30 = vld [vmem:[#allocation10 + $0x840] sm:$0xff]  }
 0x39b   : > { %10921 = vmatmul.mubr.bf16.gmra.mrb[248].mxu0 %v14022_v60  ;;  %15478 = vmatprep.subr.bf16.mxu1 %v17068_v21  ;;  %v14040_v49 = vcombine.low %v6232_v48, %v6260_v50  ;;  %v13781_v40 = vcombine.high %v20181_v38, %v19955_v8  ;;  %v7038_v6 = vshll.u32 %v20185_v52, 16  ;;  %v13937_v21 = vcombine.low %v6351_v9, %v6355_v36  ;;  %v17086_v33 = vld [vmem:[#allocation10 + $0x2b8] sm:$0xff]  }
 0x39c   : > { %10928 = vmatprep.mubr.bf16.mxu0 %v14059_v22  ;;  %15837 = vmatpush3.bf16.msra.mxu0 %v17067_v53  ;;  %v6354_v53 = vrot.slane %v13772_v58, 1  ;;  %v6985_v19 = vor.u32 %v6984_v3, %v6980_v16  ;;  %v20215_v5 = vcombine.high %v20108_v54, %v20099_v47  ;;  %v17087_v3 = vld [vmem:[#allocation10 + $0x738] sm:$0xff]   ;;  %v6359_v9 = vrot.slane %v13777_v27, 1  ;;  %v20223_v58 = vld [vmem:[#allocation2 + $0x88] sm:$0xee]  ;;  %v17095_v27 = vld [vmem:[#allocation10 + $0x800] sm:$0xff]  }
 0x39d   : > { %15838 = vmatprep.subr.bf16.mxu0 %v17069_v11  ;;  %v15285_v11 = vpop.f32.mrb[145].mxu0  ;;  %v20221_v50 = vcombine.low %v20156_v35, %v20197_v46  ;;  %v6363_v62 = vrot.slane %v13781_v40, 1  ;;  %v21502_v54 = vshrl.u32 %v19982_v39, 16  ;;  %v20232_v16 = vcombine.high %v20069_v44, %v20078_v26 }
 0x39e   : > { %15479 = vmatpush3.bf16.msra.mxu1 %v17070_v61  ;;  %v20207_v57 = vadd.f32 %v15285_v11, %v15284_v29  ;;  %v15287_v61 = vpop.f32.mrb[146].mxu0  ;;  %v13955_v36 = vcombine.low %v6985_v19, %v7013_v28  ;;  %v13776_v59 = vcombine.low %v20173_v14, %v19967_v13  ;;  %v13780_v29 = vcombine.low %v20181_v38, %v19955_v8  ;;  %v20238_v28 = vld [vmem:[#allocation2 + $0xa8] sm:$0xee]  ;;  %v17096_v14 = vld [vmem:[#allocation10 + $0x3c8] sm:$0xff]  }
 0x39f   : > { %15480 = vmatprep.subr.bf16.mxu1 %v17074_v12  ;;  %v15288_v60 = vpop.f32.mrb[147].mxu0  ;;  %v7036_v12 = vshrl.u32 %v20185_v52, 16  ;;  %v7040_v52 = vrot.slane %v7038_v6, 1  ;;  %v6978_v48 = vor.u32 %v20040_v31, %v21502_v54  ;;  %v7143_v26 = vshll.u32 %v20221_v50, 16 }
 0x3a0   : > { %15839 = vmatpush3.bf16.msra.mxu0 %v17071_v37  ;;  %10344 = vmatmul.mubr.bf16.gmra.mrb[172].mxu1 %v14040_v49  ;;  %v20217_v22 = vadd.f32 %v15288_v60, %v15287_v61  ;;  %v7068_v37 = vrot.slane %v7066_v51, 1  ;;  %v15290_v31 = vpop.f32.mrb[148].mxu0  ;;  %v7122_v51 = vshll.u32 %v20215_v5, 16  ;;  %v13936_v44 = vcombine.low %v20202_v32, %v6354_v53  ;;  %v17097_v49 = vld [vmem:[#allocation10 + $0x848] sm:$0xff]  }
 0x3a1   : > { %15840 = vmatprep.subr.bf16.mxu0 %v17075_v43  ;;  %10449 = vmatprep.mubr.bf16.mxu1 %v13937_v21  ;;  %v20228_v43 = vld [vmem:[#allocation2 + $0x130] sm:$0x11]  ;;  %v13954_v39 = vcombine.low %v6978_v48, %v20195_v1  ;;  %v15291_v11 = vpop.f32.mrb[149].mxu0  ;;  %v13973_v13 = vcombine.low %v6359_v9, %v6363_v62  ;;  %v13785_v8 = vcombine.high %v20223_v58, %v20026_v56  ;;  %v7094_v6 = vshll.u32 %v20232_v16, 16  ;;  %v17098_v32 = vld [vmem:[#allocation10 + $0x388] sm:$0xff]   ;;  %v17106_v62 = vld [vmem:[#allocation10 + $0x390] sm:$0xff]  }
 0x3a2   : > { %15481 = vmatpush3.bf16.msra.mxu1 %v17076_v2  ;;  %v17092_v2 = vld [vmem:[#allocation10 + $0x380] sm:$0xff]   ;;  %v20246_v38 = vadd.f32 %v15291_v11, %v15290_v31  ;;  %v15293_v1 = vpop.f32.mrb[150].mxu0  ;;  %v13789_v40 = vcombine.high %v20238_v28, %v20011_v20  ;;  %v6358_v53 = vrot.slane %v13776_v59, 1  ;;  %v6362_v21 = vrot.slane %v13780_v29, 1  ;;  %v17109_v29 = vld [vmem:[#allocation10 + $0x810] sm:$0xff]  }
 0x3a3   : > { %10929 = vmatmul.mubr.bf16.gmra.mrb[252].mxu0 %v14058_v10  ;;  %15482 = vmatprep.subr.bf16.mxu1 %v17084_v55  ;;  %v7041_v55 = vor.u32 %v7040_v52, %v7036_v12  ;;  %v15294_v61 = vpop.f32.mrb[151].mxu0  ;;  %v20253_v19 = vcombine.high %v20156_v35, %v20197_v46  ;;  %v17099_v10 = vld [vmem:[#allocation10 + $0x808] sm:$0xff]   ;;  %v7124_v12 = vrot.slane %v7122_v51, 1  ;;  %v17103_v35 = vld [vmem:[#allocation10 + $0x850] sm:$0xff]   ;;  %v7092_v9 = vshrl.u32 %v20232_v16, 16 }
 0x3a4   : > { %15841 = vmatpush3.bf16.msra.mxu0 %v17081_v63  ;;  %11034 = vmatprep.mubr.bf16.mxu0 %v13955_v36  ;;  %v7069_v63 = vor.u32 %v7068_v37, %v7064_v15  ;;  %v21503_v15 = vshrl.u32 %v20057_v45, 16  ;;  %v7120_v37 = vshrl.u32 %v20215_v5, 16  ;;  %v7096_v52 = vrot.slane %v7094_v6, 1  ;;  %v20269_v45 = vld [vmem:[#allocation2 + $0xc8] sm:$0xee]  ;;  %v15296_v59 = vpop.f32.mrb[152].mxu0 }
 0x3a5   : > { %15842 = vmatprep.subr.bf16.mxu0 %v17085_v24  ;;  %v20257_v24 = vcombine.high %v20164_v7, %v20228_v43  ;;  %v21504_v54 = vshrl.u32 %v20016_v34, 16  ;;  %v20277_v34 = vcombine.low %v20164_v7, %v20228_v43  ;;  %v13788_v51 = vcombine.low %v20238_v28, %v20011_v20 }
 0x3a6   : > { %15483 = vmatpush3.bf16.msra.mxu1 %v17086_v33  ;;  %v20259_v33 = vadd.f32 %v15294_v61, %v15293_v1  ;;  %v13991_v60 = vcombine.low %v7041_v55, %v7069_v63  ;;  %v7062_v36 = vor.u32 %v20113_v41, %v21503_v15  ;;  %v20271_v41 = vld [vmem:[#allocation2 + $0xe8] sm:$0xee]  ;;  %v7125_v5 = vor.u32 %v7124_v12, %v7120_v37  ;;  %v17120_v37 = vld [vmem:[#allocation10 + $0x3a0] sm:$0xff]  }
 0x3a7   : > { %15548 = vmatprep.subr.bf16.mxu1 %v17088_v0  ;;  %v17102_v0 = vld [vmem:[#allocation10 + $0x3d0] sm:$0xff]   ;;  %v7034_v48 = vor.u32 %v20111_v23, %v21504_v54  ;;  %v7178_v16 = vshll.u32 %v20257_v24, 16  ;;  %v15297_v23 = vpop.f32.mrb[153].mxu0  ;;  %v13972_v63 = vcombine.low %v6358_v53, %v6362_v21  ;;  %v13784_v7 = vcombine.low %v20223_v58, %v20026_v56  ;;  %v17116_v53 = vld [vmem:[#allocation10 + $0x3e0] sm:$0xff]   ;;  %v17113_v56 = vld [vmem:[#allocation10 + $0x818] sm:$0xff]  }
 0x3a8   : > { %15843 = vmatpush3.bf16.msra.mxu0 %v17087_v3  ;;  %v6367_v3 = vrot.slane %v13785_v8, 1  ;;  %v15299_v11 = vpop.f32.mrb[154].mxu0  ;;  %v13797_v8 = vcombine.high %v20271_v41, %v20063_v17  ;;  %v13793_v61 = vcombine.high %v20269_v45, %v20061_v42  ;;  %v7171_v21 = vshll.u32 %v20277_v34, 16  ;;  %v20304_v54 = vld [vmem:[#allocation2 + $0x60] sm:$0xee] }
 0x3a9   : > { %10450 = vmatmul.mubr.bf16.vlgmr.msra.gmra.mrb[176].mxu1 %v13936_v44  ;;  %15908 = vmatprep.subr.bf16.mxu0 %v17089_v30  ;;  %v6371_v30 = vrot.slane %v13789_v40, 1  ;;  %v13990_v31 = vcombine.low %v7034_v48, %v7062_v36  ;;  %v20281_v44 = vadd.f32 %v15297_v23, %v15296_v59  ;;  %v15300_v1 = vpop.f32.mrb[155].mxu0  ;;  %v7176_v40 = vshrl.u32 %v20257_v24, 16  ;;  %v17117_v36 = vld [vmem:[#allocation10 + $0x860] sm:$0xff]  }
 0x3aa   : > { %10457 = vmatprep.mubr.bf16.mxu1 %v13973_v13  ;;  %15549 = vmatpush3.bf16.msra.mxu1 %v17092_v2  ;;  %v7150_v2 = vshll.u32 %v20253_v19, 16  ;;  %v7180_v20 = vrot.slane %v7178_v16, 1  ;;  %v20288_v28 = vadd.f32 %v15300_v1, %v15299_v11  ;;  %v6379_v58 = vrot.slane %v13797_v8, 1  ;;  %v17131_v8 = vld [vmem:[#allocation10 + $0x870] sm:$0xff]  }
 0x3ab   : > { %11035 = vmatmul.mubr.bf16.vlgmr.msra.gmra.mrb[0].mxu0 %v13954_v39  ;;  %15550 = vmatprep.subr.bf16.mxu1 %v17096_v14  ;;  %v17110_v39 = vld [vmem:[#allocation10 + $0x3d8] sm:$0xff]   ;;  %v14009_v13 = vcombine.low %v6367_v3, %v6371_v30  ;;  %v7097_v14 = vor.u32 %v7096_v52, %v7092_v9  ;;  %v7148_v24 = vshrl.u32 %v20253_v19, 16  ;;  %v7145_v12 = vrot.slane %v7143_v26, 1 }
 0x3ac   : > { %11042 = vmatprep.mubr.bf16.mxu0 %v13991_v60  ;;  %15909 = vmatpush3.bf16.msra.mxu0 %v17095_v27  ;;  %v17111_v27 = vld [vmem:[#allocation10 + $0x858] sm:$0xff]   ;;  %v7152_v55 = vrot.slane %v7150_v2, 1  ;;  %v7085_v60 = vshrl.u32 %v20103_v18, 16  ;;  %v6366_v15 = vrot.slane %v13784_v7, 1  ;;  %v15302_v3 = vpop.f32.mrb[156].mxu0  ;;  %v6375_v9 = vrot.slane %v13793_v61, 1 }
 0x3ad   : > { %15910 = vmatprep.subr.bf16.mxu0 %v17097_v49  ;;  %v17112_v49 = vld [vmem:[#allocation10 + $0x398] sm:$0xff]   ;;  %v14027_v6 = vcombine.low %v7097_v14, %v7125_v5  ;;  %v7181_v19 = vor.u32 %v7180_v20, %v7176_v40  ;;  %v15303_v52 = vpop.f32.mrb[157].mxu0  ;;  %v13796_v26 = vcombine.low %v20271_v41, %v20063_v17  ;;  %v7173_v48 = vrot.slane %v7171_v21, 1  ;;  %v17123_v5 = vld [vmem:[#allocation10 + $0x820] sm:$0xff]   ;;  %v20314_v20 = vld [vmem:[#allocation2 + $0x48] sm:$0xff] }
 0x3ae   : > { %15551 = vmatpush3.bf16.msra.mxu1 %v17098_v32  ;;  %v6370_v32 = vrot.slane %v13788_v51, 1  ;;  %v7153_v30 = vor.u32 %v7152_v55, %v7148_v24  ;;  %v20306_v2 = vadd.f32 %v15303_v52, %v15302_v3  ;;  %v15305_v16 = vpop.f32.mrb[158].mxu0  ;;  %v14045_v59 = vcombine.low %v6375_v9, %v6379_v58  ;;  %v17451_v51 = vld [vmem:[#allocation2 + $0x70] sm:$0x11]  ;;  %v20316_v61 = vld [vmem:[#allocation2 + $0x28] sm:$0xff]  ;;  %v17144_v52 = vld [vmem:[#allocation10 + $0x4c0] sm:$0xff]  }
 0x3af   : > { %15552 = vmatprep.subr.bf16.mxu1 %v17102_v0  ;;  %v13792_v23 = vcombine.low %v20269_v45, %v20061_v42  ;;  %v13899_v11 = vcombine.high %v20304_v54, %v17451_v51  ;;  %v6378_v14 = vrot.slane %v13796_v26, 1  ;;  %v17132_v42 = vld [vmem:[#allocation10 + $0x3b0] sm:$0xff]   ;;  %v17452_v45 = vld [vmem:[#allocation2 + $0x50] sm:$0x11]  ;;  %v20318_v58 = vld [vmem:[#allocation2 + $0x80] sm:$0xee]  ;;  %v13898_v3 = vcombine.low %v20304_v54, %v17451_v51 }
 0x3b0   : > { %15911 = vmatpush3.bf16.msra.mxu0 %v17099_v10  ;;  %v21505_v10 = vshrl.u32 %v20125_v25, 16  ;;  %v14008_v25 = vcombine.low %v6366_v15, %v6370_v32  ;;  %v14063_v41 = vcombine.low %v7153_v30, %v7181_v19  ;;  %v17141_v9 = vld [vmem:[#allocation10 + $0x878] sm:$0xff]  }
 0x3b1   : > { %10458 = vmatmul.mubr.bf16.gmra.mrb[180].mxu1 %v13972_v63  ;;  %15912 = vmatprep.subr.bf16.mxu0 %v17103_v35  ;;  %v7169_v35 = vshrl.u32 %v20277_v34, 16  ;;  %v17126_v34 = vld [vmem:[#allocation10 + $0x3a8] sm:$0xff]   ;;  %v6374_v40 = vrot.slane %v13792_v23, 1  ;;  %v7281_v32 = vrot.slane %v13899_v11, 1  ;;  %v17142_v19 = vld [vmem:[#allocation10 + $0x3b8] sm:$0xff]   ;;  %v13940_v23 = vcombine.low %v20316_v61, %v20314_v20 }
 0x3b2   : > { %10465 = vmatprep.mubr.bf16.mxu1 %v14009_v13  ;;  %15553 = vmatpush3.bf16.msra.mxu1 %v17106_v62  ;;  %v7118_v0 = vor.u32 %v20189_v4, %v21505_v10  ;;  %v21506_v62 = vld [vmem:[#allocation37_spill] sm:$0xff]  ;;  %v17124_v4 = vld [vmem:[#allocation10 + $0x3e8] sm:$0xff]   ;;  %v7141_v13 = vshrl.u32 %v20221_v50, 16  ;;  %v17135_v50 = vld [vmem:[#allocation10 + $0x830] sm:$0xff]   ;;  %v13941_v10 = vcombine.high %v20316_v61, %v20314_v20 }
 0x3b3   : > { %11043 = vmatmul.mubr.bf16.gmra.mrb[4].mxu0 %v13990_v31  ;;  %15554 = vmatprep.subr.bf16.mxu1 %v17110_v39  ;;  %v7090_v18 = vor.u32 %v21506_v62, %v7085_v60  ;;  %v15306_v31 = vpop.f32.mrb[159].mxu0  ;;  %v5900_v63 = vld [vmem:[#allocation2 + $0x40] sm:$0xee]  ;;  %v7174_v55 = vor.u32 %v7173_v48, %v7169_v35  ;;  %v14044_v21 = vcombine.low %v6374_v40, %v6378_v14  ;;  %v17453_v62 = vld [vmem:[#allocation2 + $0xb0] sm:$0x11]  ;;  %v7280_v48 = vrot.slane %v13898_v3, 1 }
 0x3b4   : > { %11050 = vmatprep.mubr.bf16.mxu0 %v14027_v6  ;;  %15913 = vmatpush3.bf16.msra.mxu0 %v17109_v29  ;;  %v17125_v29 = vld [vmem:[#allocation10 + $0x868] sm:$0xff]   ;;  %v20310_v17 = vadd.f32 %v15306_v31, %v15305_v16  ;;  %v13895_v1 = vcombine.high %v5900_v63, %v17452_v45  ;;  %v7146_v7 = vor.u32 %v7145_v12, %v7141_v13  ;;  %v15364_v6 = vpop.f32.mrb[160].mxu0  ;;  %v20331_v16 = vld [vmem:[#allocation2 + $0x68] sm:$0xff] }
 0x3b5   : > { %15914 = vmatprep.subr.bf16.mxu0 %v17111_v27  ;;  %v14026_v39 = vcombine.low %v7090_v18, %v7118_v0  ;;  %v17127_v27 = vld [vmem:[#allocation10 + $0x828] sm:$0xff]   ;;  %v13894_v35 = vcombine.low %v5900_v63, %v17452_v45 }
 0x3b6   : > { %15555 = vmatpush3.bf16.msra.mxu1 %v17112_v49  ;;  %v17130_v49 = vld [vmem:[#allocation10 + $0x3f0] sm:$0xff]   ;;  %v7277_v0 = vrot.slane %v13895_v1, 1  ;;  %v20324_v12 = vld [vmem:[#allocation2 + $0xa0] sm:$0xee]  ;;  %v14062_v15 = vcombine.low %v7146_v7, %v7174_v55 }
 0x3b7   : > { %15556 = vmatprep.subr.bf16.mxu1 %v17116_v53  ;;  %v15365_v53 = vpop.f32.mrb[161].mxu0  ;;  %v13907_v18 = vcombine.high %v20324_v12, %v17453_v62  ;;  %v7276_v54 = vrot.slane %v13894_v35, 1  ;;  %v13906_v13 = vcombine.low %v20324_v12, %v17453_v62  ;;  %v17151_v40 = vld [vmem:[#allocation10 + $0x488] sm:$0xff]  }
 0x3b8   : > { %15915 = vmatpush3.bf16.msra.mxu0 %v17113_v56  ;;  %v17140_v56 = vld [vmem:[#allocation10 + $0x3f8] sm:$0xff]   ;;  %v20320_v24 = vadd.f32 %v15365_v53, %v15364_v6  ;;  %v15367_v60 = vpop.f32.mrb[162].mxu0  ;;  %v13959_v30 = vcombine.low %v7277_v0, %v7281_v32  ;;  %v20351_v6 = vld [vmem:[#allocation2 + $0x58] sm:$0x11]  ;;  %v17152_v32 = vld [vmem:[#allocation10 + $0x4d0] sm:$0xff]  }
 0x3b9   : > { %10466 = vmatmul.mubr.bf16.gmra.mrb[184].mxu1 %v14008_v25  ;;  %15916 = vmatprep.subr.bf16.mxu0 %v17117_v36  ;;  %v15368_v36 = vpop.f32.mrb[163].mxu0  ;;  %v17143_v25 = vld [vmem:[#allocation10 + $0x838] sm:$0xff]   ;;  %v7289_v31 = vrot.slane %v13907_v18, 1  ;;  %v17153_v0 = vld [vmem:[#allocation10 + $0x490] sm:$0xff]   ;;  %v20361_v35 = vld [vmem:[#allocation2 + $0x100] sm:$0xee] }
 0x3ba   : > { %10473 = vmatprep.mubr.bf16.mxu1 %v14045_v59  ;;  %15557 = vmatpush3.bf16.msra.mxu1 %v17120_v37  ;;  %v20327_v37 = vadd.f32 %v15368_v36, %v15367_v60  ;;  %v20333_v59 = vld [vmem:[#allocation2 + $0x88] sm:$0xff]  ;;  %v17455_v53 = vld [vmem:[#allocation2 + $0xd0] sm:$0x11]  ;;  %v20363_v3 = vld [vmem:[#allocation2 + $0x120] sm:$0xee] }
 0x3bb   : > { %11051 = vmatmul.mubr.bf16.gmra.mrb[8].mxu0 %v14026_v39  ;;  %15558 = vmatprep.subr.bf16.mxu1 %v17124_v4  ;;  %v17454_v4 = vld [vmem:[#allocation2 + $0x90] sm:$0x11]  ;;  %v13977_v11 = vcombine.high %v20331_v16, %v20333_v59  ;;  %v20357_v60 = vld [vmem:[#allocation2 + $0xc8] sm:$0xff] }
 0x3bc   : > { %11058 = vmatprep.mubr.bf16.mxu0 %v14063_v41  ;;  %15917 = vmatpush3.bf16.msra.mxu0 %v17123_v5  ;;  %v13903_v26 = vcombine.high %v20318_v58, %v17454_v4  ;;  %v17145_v5 = vld [vmem:[#allocation10 + $0x480] sm:$0xff]   ;;  %v15370_v39 = vpop.f32.mrb[164].mxu0  ;;  %v13902_v63 = vcombine.low %v20318_v58, %v17454_v4  ;;  %v17150_v41 = vld [vmem:[#allocation10 + $0x4c8] sm:$0xff]   ;;  %v7288_v58 = vrot.slane %v13906_v13, 1  ;;  %v17158_v36 = vld [vmem:[#allocation10 + $0x4d8] sm:$0xff]  }
 0x3bd   : > { %15918 = vmatprep.subr.bf16.mxu0 %v17125_v29  ;;  %v20335_v29 = vld [vmem:[#allocation2 + $0xe0] sm:$0xee]  ;;  %v20389_v13 = vld [vmem:[#allocation2 + $0x108] sm:$0xff] }
 0x3be   : > { %15559 = vmatpush3.bf16.msra.mxu1 %v17126_v34  ;;  %v15371_v34 = vpop.f32.mrb[165].mxu0  ;;  %v7285_v14 = vrot.slane %v13903_v26, 1  ;;  %v13915_v1 = vcombine.high %v20335_v29, %v20099_v47  ;;  %v13914_v18 = vcombine.low %v20335_v29, %v20099_v47  ;;  %v13919_v47 = vcombine.high %v20361_v35, %v20197_v46 }
 0x3bf   : > { %15560 = vmatprep.subr.bf16.mxu1 %v17130_v49  ;;  %v15373_v51 = vpop.f32.mrb[166].mxu0  ;;  %v5908_v49 = vld [vmem:[#allocation2 + $0xc0] sm:$0xee]  ;;  %v13923_v29 = vcombine.high %v20363_v3, %v20228_v43 }
 0x3c0   : > { %15919 = vmatpush3.bf16.msra.mxu0 %v17127_v27  ;;  %v20340_v27 = vadd.f32 %v15371_v34, %v15370_v39  ;;  %v15374_v45 = vpop.f32.mrb[167].mxu0  ;;  %v13995_v55 = vcombine.low %v7285_v14, %v7289_v31  ;;  %v7297_v12 = vrot.slane %v13915_v1, 1  ;;  %v13910_v62 = vcombine.low %v5908_v49, %v17455_v53  ;;  %v17159_v31 = vld [vmem:[#allocation10 + $0x498] sm:$0xff]   ;;  %v17161_v1 = vld [vmem:[#allocation10 + $0x4a0] sm:$0xff]  }
 0x3c1   : > { %10474 = vmatmul.mubr.bf16.gmra.mrb[188].mxu1 %v14044_v21  ;;  %15920 = vmatprep.subr.bf16.mxu0 %v17131_v8  ;;  %v20345_v8 = vld [vmem:[#allocation2 + $0x38] sm:$0x11]  ;;  %v20349_v7 = vadd.f32 %v15374_v45, %v15373_v51  ;;  %v13911_v21 = vcombine.high %v5908_v49, %v17455_v53  ;;  %v20393_v49 = vcombine.low %v20314_v20, %v20351_v6 }
 0x3c2   : > { %15561 = vmatpush3.bf16.msra.mxu1 %v17132_v42  ;;  %10579 = vmatprep.mubr.bf16.mxu1 %v13941_v10  ;;  %v13958_v42 = vcombine.low %v7276_v54, %v7280_v48  ;;  %v20359_v10 = vld [vmem:[#allocation2 + $0xa8] sm:$0xff] }
 0x3c3   : > { %11059 = vmatmul.mubr.bf16.gmra.mrb[12].mxu0 %v14062_v15  ;;  %15562 = vmatprep.subr.bf16.mxu1 %v17140_v56  ;;  %v20355_v56 = vcombine.low %v20316_v61, %v20345_v8  ;;  %v14013_v54 = vcombine.high %v20359_v10, %v20357_v60 }
 0x3c4   : > { %15921 = vmatpush3.bf16.msra.mxu0 %v17135_v50  ;;  %11164 = vmatprep.mubr.bf16.mxu0 %v13959_v30  ;;  %v7284_v50 = vrot.slane %v13902_v63, 1  ;;  %v15376_v15 = vpop.f32.mrb[168].mxu0  ;;  %v7296_v63 = vrot.slane %v13914_v18, 1 }
 0x3c5   : > { %15922 = vmatprep.subr.bf16.mxu0 %v17141_v9  ;;  %v20367_v9 = vcombine.high %v20316_v61, %v20345_v8  ;;  %v15377_v30 = vpop.f32.mrb[169].mxu0  ;;  %v13805_v61 = vcombine.high %v20314_v20, %v20351_v6  ;;  %v17166_v20 = vld [vmem:[#allocation10 + $0x4e8] sm:$0xff]  }
 0x3c6   : > { %15563 = vmatpush3.bf16.msra.mxu1 %v17142_v19  ;;  %v13976_v19 = vcombine.low %v20331_v16, %v20333_v59  ;;  %v20374_v4 = vadd.f32 %v15377_v30, %v15376_v15  ;;  %v15379_v26 = vpop.f32.mrb[170].mxu0  ;;  %v13994_v48 = vcombine.low %v7284_v50, %v7288_v58  ;;  %v20403_v58 = vld [vmem:[#allocation2 + $0x78] sm:$0x11]  ;;  %v13922_v15 = vcombine.low %v20363_v3, %v20228_v43 }
 0x3c7   : > { %15628 = vmatprep.subr.bf16.mxu1 %v17144_v52  ;;  %v7293_v52 = vrot.slane %v13911_v21, 1  ;;  %v6532_v51 = vshll.u32 %v20367_v9, 16  ;;  %v6560_v14 = vshll.u32 %v13805_v61, 16  ;;  %v13918_v21 = vcombine.low %v20361_v35, %v20197_v46 }
 0x3c8   : > { %15923 = vmatpush3.bf16.msra.mxu0 %v17143_v25  ;;  %v6525_v25 = vshll.u32 %v20355_v56, 16  ;;  %v6530_v46 = vshrl.u32 %v20367_v9, 16  ;;  %v6558_v35 = vshrl.u32 %v13805_v61, 16  ;;  %v13809_v43 = vcombine.high %v20331_v16, %v20403_v58  ;;  %v20417_v9 = vld [vmem:[#allocation2 + $0xd8] sm:$0x11] }
 0x3c9   : > { %10580 = vmatmul.mubr.bf16.vlgmr.msra.gmra.mrb[192].mxu1 %v13940_v23  ;;  %v14031_v39 = vcombine.low %v7293_v52, %v7297_v12  ;;  %v7292_v23 = vrot.slane %v13910_v62, 1  ;;  %v7300_v3 = vrot.slane %v13918_v21, 1  ;;  %v6523_v61 = vshrl.u32 %v20355_v56, 16 }
 0x3ca   : > { %10587 = vmatprep.mubr.bf16.mxu1 %v13977_v11  ;;  %15629 = vmatpush3.bf16.msra.mxu1 %v17145_v5  ;;  %v15380_v5 = vpop.f32.mrb[171].mxu0  ;;  %v20387_v11 = vld [vmem:[#allocation2 + $0xe8] sm:$0xff] }
 0x3cb   : > { %11165 = vmatmul.mubr.bf16.vlgmr.msra.gmra.mrb[16].mxu0 %v13958_v42  ;;  %15630 = vmatprep.subr.bf16.mxu1 %v17150_v41  ;;  %v20380_v34 = vadd.f32 %v15380_v5, %v15379_v26  ;;  %v17160_v41 = vld [vmem:[#allocation10 + $0x4e0] sm:$0xff]   ;;  %v14049_v53 = vcombine.high %v20387_v11, %v20389_v13  ;;  %v14030_v62 = vcombine.low %v7292_v23, %v7296_v63  ;;  %v17168_v5 = vld [vmem:[#allocation10 + $0x4f0] sm:$0xff]  }
 0x3cc   : > { %11172 = vmatprep.mubr.bf16.mxu0 %v13995_v55  ;;  %v20395_v42 = vld [vmem:[#allocation2 + $0x98] sm:$0x11]  ;;  %v15382_v45 = vpop.f32.mrb[172].mxu0  ;;  %v7301_v55 = vrot.slane %v13919_v47, 1  ;;  %v17169_v63 = vld [vmem:[#allocation10 + $0x4b0] sm:$0xff]  }
 0x3cd   : > { %v15383_v50 = vpop.f32.mrb[173].mxu0  ;;  %v13813_v30 = vcombine.high %v20333_v59, %v20395_v42 }
 0x3ce   : > { %15631 = vmatpush3.bf16.msra.mxu1 %v17151_v40  ;;  %v7305_v40 = vrot.slane %v13923_v29, 1  ;;  %v15385_v12 = vpop.f32.mrb[174].mxu0 }
 0x3cf   : > { %15632 = vmatprep.subr.bf16.mxu1 %v17152_v32  ;;  %v14012_v32 = vcombine.low %v20359_v10, %v20357_v60  ;;  %v15386_v18 = vpop.f32.mrb[175].mxu0  ;;  %v6616_v47 = vshll.u32 %v13813_v30, 16 }
 0x3d0   : > { %v20413_v52 = vadd.f32 %v15386_v18, %v15385_v12  ;;  %v14067_v26 = vcombine.low %v7301_v55, %v7305_v40  ;;  %v20424_v55 = vcombine.low %v20333_v59, %v20395_v42  ;;  %v20426_v40 = vld [vmem:[#allocation2 + $0xb8] sm:$0x11]  ;;  %v6527_v12 = vrot.slane %v6525_v25, 1  ;;  %v17173_v59 = vld [vmem:[#allocation10 + $0x4b8] sm:$0xff]  }
 0x3d1   : > { %10588 = vmatmul.mubr.bf16.gmra.mrb[196].mxu1 %v13976_v19  ;;  %v6553_v19 = vshll.u32 %v20393_v49, 16  ;;  %v6618_v21 = vrot.slane %v6616_v47, 1  ;;  %v17174_v25 = vld [vmem:[#allocation10 + $0x5c0] sm:$0xff]  }
 0x3d2   : > { %10595 = vmatprep.mubr.bf16.mxu1 %v14013_v54  ;;  %15633 = vmatpush3.bf16.msra.mxu1 %v17153_v0  ;;  %v20405_v0 = vadd.f32 %v15383_v50, %v15382_v45  ;;  %21507 = vst [vmem:[#allocation34_spill] sm:$0xff] %v20413_v52  ;;  %v17167_v54 = vld [vmem:[#allocation10 + $0x4a8] sm:$0xff]   ;;  %v14048_v45 = vcombine.low %v20387_v11, %v20389_v13 }
 0x3d3   : > { %11173 = vmatmul.mubr.bf16.gmra.mrb[20].mxu0 %v13994_v48  ;;  %15634 = vmatprep.subr.bf16.mxu1 %v17158_v36  ;;  %v6562_v36 = vrot.slane %v6560_v14, 1  ;;  %v6534_v48 = vrot.slane %v6532_v51, 1  ;;  %v6555_v29 = vrot.slane %v6553_v19, 1  ;;  %v6588_v51 = vshll.u32 %v13809_v43, 16 }
 0x3d4   : > { %11180 = vmatprep.mubr.bf16.mxu0 %v14031_v39  ;;  %v7304_v39 = vrot.slane %v13922_v15, 1  ;;  %v15444_v23 = vpop.f32.mrb[176].mxu0  ;;  %v6551_v15 = vshrl.u32 %v20393_v49, 16  ;;  %v6609_v49 = vshll.u32 %v20424_v55, 16 }
 0x3d5   : > { %v15445_v14 = vpop.f32.mrb[177].mxu0 }
 0x3d6   : > { %15635 = vmatpush3.bf16.msra.mxu1 %v17159_v31  ;;  %v6563_v31 = vor.u32 %v6562_v36, %v6558_v35  ;;  %v20428_v50 = vadd.f32 %v15445_v14, %v15444_v23  ;;  %v14066_v36 = vcombine.low %v7300_v3, %v7304_v39  ;;  %v6614_v35 = vshrl.u32 %v13813_v30, 16  ;;  %v17177_v23 = vld [vmem:[#allocation10 + $0x580] sm:$0xff]  }
 0x3d7   : > { %15636 = vmatprep.subr.bf16.mxu1 %v17160_v41  ;;  %v6535_v41 = vor.u32 %v6534_v48, %v6530_v46  ;;  %v6590_v46 = vrot.slane %v6588_v51, 1  ;;  %v6556_v56 = vor.u32 %v6555_v29, %v6551_v15  ;;  %v13820_v29 = vcombine.low %v20357_v60, %v20417_v9 }
 0x3d8   : > { %21508 = vst [vmem:[#allocation39_spill] sm:$0xff] %v20428_v50  ;;  %v6619_v48 = vor.u32 %v6618_v21, %v6614_v35  ;;  %v17179_v21 = vld [vmem:[#allocation10 + $0x588] sm:$0xff]  }
 0x3d9   : > { %10596 = vmatmul.mubr.bf16.gmra.mrb[200].mxu1 %v14012_v32  ;;  %v15447_v32 = vpop.f32.mrb[178].mxu0  ;;  %v6665_v35 = vshll.u32 %v13820_v29, 16 }
 0x3da   : > { %10603 = vmatprep.mubr.bf16.mxu1 %v14049_v53  ;;  %15637 = vmatpush3.bf16.msra.mxu1 %v17161_v1  ;;  %v17172_v1 = vld [vmem:[#allocation10 + $0x4f8] sm:$0xff]   ;;  %v13945_v53 = vcombine.low %v6535_v41, %v6563_v31  ;;  %v15448_v19 = vpop.f32.mrb[179].mxu0  ;;  %v20442_v31 = vld [vmem:[#allocation2 + $0x118] sm:$0x11]  ;;  %v6607_v41 = vshrl.u32 %v20424_v55, 16 }
 0x3db   : > { %11181 = vmatmul.mubr.bf16.gmra.mrb[24].mxu0 %v14030_v62  ;;  %15638 = vmatprep.subr.bf16.mxu1 %v17166_v20  ;;  %v13821_v20 = vcombine.high %v20357_v60, %v20417_v9  ;;  %v13808_v62 = vcombine.low %v20331_v16, %v20403_v58  ;;  %v20437_v18 = vadd.f32 %v15448_v19, %v15447_v32  ;;  %v17182_v19 = vld [vmem:[#allocation10 + $0x5d0] sm:$0xff]  }
 0x3dc   : > { %11188 = vmatprep.mubr.bf16.mxu0 %v14067_v26  ;;  %v13817_v26 = vcombine.high %v20359_v10, %v20426_v40  ;;  %v15450_v47 = vpop.f32.mrb[180].mxu0  ;;  %v13829_v15 = vcombine.high %v20389_v13, %v20442_v31 }
 0x3dd   : > { %21509 = vst [vmem:[#allocation35_spill] sm:$0xff] %v20437_v18  ;;  %v6672_v3 = vshll.u32 %v13821_v20, 16  ;;  %v6579_v16 = vshrl.u32 %v13808_v62, 16  ;;  %v6581_v39 = vshll.u32 %v13808_v62, 16  ;;  %v15451_v14 = vpop.f32.mrb[181].mxu0  ;;  %v6670_v60 = vshrl.u32 %v13821_v20, 16 }
 0x3de   : > { %15639 = vmatpush3.bf16.msra.mxu1 %v17167_v54  ;;  %v6586_v54 = vshrl.u32 %v13809_v43, 16  ;;  %v6644_v51 = vshll.u32 %v13817_v26, 16  ;;  %v15453_v32 = vpop.f32.mrb[182].mxu0  ;;  %v17186_v20 = vld [vmem:[#allocation10 + $0x5d8] sm:$0xff]  }
 0x3df   : > { %15640 = vmatprep.subr.bf16.mxu1 %v17168_v5  ;;  %v6528_v5 = vor.u32 %v6527_v12, %v6523_v61  ;;  %v20447_v61 = vld [vmem:[#allocation2 + $0xf8] sm:$0x11]  ;;  %v6674_v12 = vrot.slane %v6672_v3, 1  ;;  %v15454_v55 = vpop.f32.mrb[183].mxu0 }
 0x3e0   : > { %v6591_v30 = vor.u32 %v6590_v46, %v6586_v54  ;;  %v20455_v62 = vadd.f32 %v15454_v55, %v15453_v32  ;;  %v6646_v46 = vrot.slane %v6644_v51, 1  ;;  %v6667_v51 = vrot.slane %v6665_v35, 1 }
 0x3e1   : > { %10604 = vmatmul.mubr.bf16.gmra.mrb[204].mxu1 %v14048_v45  ;;  %v13944_v43 = vcombine.low %v6528_v5, %v6556_v56  ;;  %v6611_v45 = vrot.slane %v6609_v49, 1  ;;  %v13825_v56 = vcombine.high %v20387_v11, %v20447_v61  ;;  %v6642_v49 = vshrl.u32 %v13817_v26, 16  ;;  %v17185_v5 = vld [vmem:[#allocation10 + $0x590] sm:$0xff]  }
 0x3e2   : > { %15641 = vmatpush3.bf16.msra.mxu1 %v17169_v63  ;;  %10709 = vmatprep.mubr.bf16.mxu1 %v13945_v53  ;;  %v17178_v63 = vld [vmem:[#allocation10 + $0x5c8] sm:$0xff]   ;;  %v13981_v53 = vcombine.low %v6591_v30, %v6619_v48  ;;  %21511 = vst [vmem:[#allocation38_spill] sm:$0xff] %v20455_v62  ;;  %v6675_v54 = vor.u32 %v6674_v12, %v6670_v60  ;;  %v6728_v48 = vshll.u32 %v13829_v15, 16 }
 0x3e3   : > { %11189 = vmatmul.mubr.bf16.gmra.mrb[28].mxu0 %v14066_v36  ;;  %15642 = vmatprep.subr.bf16.mxu1 %v17172_v1  ;;  %v20449_v1 = vadd.f32 %v15451_v14, %v15450_v47  ;;  %v6583_v36 = vrot.slane %v6581_v39, 1  ;;  %v6647_v30 = vor.u32 %v6646_v46, %v6642_v49  ;;  %v6700_v14 = vshll.u32 %v13825_v56, 16 }
 0x3e4   : > { %v13828_v32 = vcombine.low %v20389_v13, %v20442_v31  ;;  %v6726_v46 = vshrl.u32 %v13829_v15, 16 }
 0x3e5   : > { %21510 = vst [vmem:[#allocation36_spill] sm:$0xff] %v20449_v1  ;;  %v6584_v3 = vor.u32 %v6583_v36, %v6579_v16  ;;  %v6730_v16 = vrot.slane %v6728_v48, 1  ;;  %v6663_v36 = vshrl.u32 %v13820_v29, 16  ;;  %v17194_v29 = vld [vmem:[#allocation10 + $0x5e8] sm:$0xff]   ;;  %v17247_v1 = vld [vmem:[#allocation10 + $0x798] sm:$0xff]  }
 0x3e6   : > { %15643 = vmatpush3.bf16.msra.mxu1 %v17173_v59  ;;  %v13816_v59 = vcombine.low %v20359_v10, %v20426_v40  ;;  %v6721_v49 = vshll.u32 %v13828_v32, 16 }
 0x3e7   : > { %15708 = vmatprep.subr.bf16.mxu1 %v17174_v25  ;;  %v6612_v25 = vor.u32 %v6611_v45, %v6607_v41  ;;  %v14017_v41 = vcombine.low %v6647_v30, %v6675_v54  ;;  %v17187_v45 = vld [vmem:[#allocation10 + $0x598] sm:$0xff]   ;;  %v6668_v35 = vor.u32 %v6667_v51, %v6663_v36  ;;  %v6698_v54 = vshrl.u32 %v13825_v56, 16  ;;  %v5854_v30 = vld [vmem:[#allocation2 + $0x48] sm:$0xee]  ;;  %v17195_v51 = vld [vmem:[#allocation10 + $0x5a8] sm:$0xff]  }
 0x3e8   : > { %v6637_v39 = vshll.u32 %v13816_v59, 16  ;;  %v6731_v48 = vor.u32 %v6730_v16, %v6726_v46  ;;  %v6719_v56 = vshrl.u32 %v13828_v32, 16  ;;  %v13837_v16 = vcombine.high %v5854_v30, %v20351_v6  ;;  %v17198_v46 = vld [vmem:[#allocation10 + $0x5f0] sm:$0xff]  }
 0x3e9   : > { %10710 = vmatmul.mubr.bf16.vlgmr.msra.gmra.mrb[208].mxu1 %v13944_v43  ;;  %v17199_v32 = vld [vmem:[#allocation10 + $0x5b0] sm:$0xff]  }
 0x3ea   : > { %10717 = vmatprep.mubr.bf16.mxu1 %v13981_v53  ;;  %15709 = vmatpush3.bf16.msra.mxu1 %v17177_v23  ;;  %v13980_v23 = vcombine.low %v6584_v3, %v6612_v25  ;;  %v13824_v53 = vcombine.low %v20387_v11, %v20447_v61  ;;  %v6639_v55 = vrot.slane %v6637_v39, 1  ;;  %v17190_v25 = vld [vmem:[#allocation10 + $0x5e0] sm:$0xff]  }
 0x3eb   : > { %15710 = vmatprep.subr.bf16.mxu1 %v17178_v63  ;;  %v17193_v39 = vld [vmem:[#allocation10 + $0x5a0] sm:$0xff]  }
 0x3ec   : > { %v6693_v3 = vshll.u32 %v13824_v53, 16  ;;  %v6691_v36 = vshrl.u32 %v13824_v53, 16 }
 0x3ed   : > { %v15456_v47 = vpop.f32.mrb[184].mxu0 }
 0x3ee   : > { %15711 = vmatpush3.bf16.msra.mxu1 %v17179_v21  ;;  %v15457_v43 = vpop.f32.mrb[185].mxu0  ;;  %v6635_v21 = vshrl.u32 %v13816_v59, 16 }
 0x3ef   : > { %15712 = vmatprep.subr.bf16.mxu1 %v17182_v19  ;;  %v20461_v63 = vadd.f32 %v15457_v43, %v15456_v47  ;;  %v15459_v26 = vpop.f32.mrb[186].mxu0  ;;  %v6702_v19 = vrot.slane %v6700_v14, 1 }
 0x3f0   : > { %v15460_v12 = vpop.f32.mrb[187].mxu0  ;;  %v6640_v47 = vor.u32 %v6639_v55, %v6635_v21  ;;  %v6695_v21 = vrot.slane %v6693_v3, 1 }
 0x3f1   : > { %21512 = vst [vmem:[#allocation43_spill] sm:$0xff] %v20461_v63  ;;  %10718 = vmatmul.mubr.bf16.gmra.mrb[212].mxu1 %v13980_v23  ;;  %v20465_v60 = vadd.f32 %v15460_v12, %v15459_v26  ;;  %v6703_v59 = vor.u32 %v6702_v19, %v6698_v54  ;;  %v5852_v23 = vld [vmem:[#allocation2 + $0x28] sm:$0xee] }
 0x3f2   : > { %10725 = vmatprep.mubr.bf16.mxu1 %v14017_v41  ;;  %15713 = vmatpush3.bf16.msra.mxu1 %v17185_v5  ;;  %v14016_v41 = vcombine.low %v6640_v47, %v6668_v35  ;;  %v6723_v5 = vrot.slane %v6721_v49, 1  ;;  %v13833_v55 = vcombine.high %v5852_v23, %v20345_v8  ;;  %v6819_v35 = vrot.slane %v13837_v16, 1  ;;  %v5858_v49 = vld [vmem:[#allocation2 + $0x88] sm:$0xee] }
 0x3f3   : > { %21513 = vst [vmem:[#allocation40_spill] sm:$0xff] %v20465_v60  ;;  %15714 = vmatprep.subr.bf16.mxu1 %v17186_v20  ;;  %v14053_v14 = vcombine.low %v6703_v59, %v6731_v48  ;;  %v5856_v47 = vld [vmem:[#allocation2 + $0x68] sm:$0xee]  ;;  %v13836_v59 = vcombine.low %v5854_v30, %v20351_v6  ;;  %v17206_v6 = vld [vmem:[#allocation10 + $0x6c0] sm:$0xff]  }
 0x3f4   : > { %v6724_v19 = vor.u32 %v6723_v5, %v6719_v56  ;;  %v6815_v48 = vrot.slane %v13833_v55, 1  ;;  %v13841_v56 = vcombine.high %v5856_v47, %v20403_v58  ;;  %v5862_v55 = vld [vmem:[#allocation2 + $0xc8] sm:$0xee] }
 0x3f5   : > { %v15462_v43 = vpop.f32.mrb[188].mxu0  ;;  %v6818_v16 = vrot.slane %v13836_v59, 1  ;;  %v17460_v60 = vld [vmem:[#allocation2 + $0xe8] sm:$0xff] }
 0x3f6   : > { %15715 = vmatpush3.bf16.msra.mxu1 %v17187_v45  ;;  %v15463_v26 = vpop.f32.mrb[189].mxu0  ;;  %v13949_v53 = vcombine.low %v6815_v48, %v6819_v35 }
 0x3f7   : > { %15716 = vmatprep.subr.bf16.mxu1 %v17190_v25  ;;  %v20467_v15 = vadd.f32 %v15463_v26, %v15462_v43  ;;  %v15465_v20 = vpop.f32.mrb[190].mxu0  ;;  %v6696_v25 = vor.u32 %v6695_v21, %v6691_v36  ;;  %v17209_v21 = vld [vmem:[#allocation10 + $0x680] sm:$0xff]  }
 0x3f8   : > { %v15466_v12 = vpop.f32.mrb[191].mxu0 }
 0x3f9   : > { %21514 = vst [vmem:[#allocation46_spill] sm:$0xff] %v20467_v15  ;;  %10726 = vmatmul.mubr.bf16.gmra.mrb[216].mxu1 %v14016_v41  ;;  %v20470_v45 = vadd.f32 %v15466_v12, %v15465_v20  ;;  %v14052_v3 = vcombine.low %v6696_v25, %v6724_v19  ;;  %v13845_v41 = vcombine.high %v5858_v49, %v20395_v42  ;;  %v6823_v19 = vrot.slane %v13841_v56, 1  ;;  %v17248_v15 = vld [vmem:[#allocation10 + $0x7e0] sm:$0xff]  }
 0x3fa   : > { %10733 = vmatprep.mubr.bf16.mxu1 %v14053_v14  ;;  %15717 = vmatpush3.bf16.msra.mxu1 %v17193_v39  ;;  %v17204_v39 = vld [vmem:[#allocation10 + $0x5f8] sm:$0xff]   ;;  %v13832_v20 = vcombine.low %v5852_v23, %v20345_v8  ;;  %v17210_v23 = vld [vmem:[#allocation10 + $0x6c8] sm:$0xff]   ;;  %v13840_v25 = vcombine.low %v5856_v47, %v20403_v58  ;;  %v17214_v47 = vld [vmem:[#allocation10 + $0x6d0] sm:$0xff]  }
 0x3fb   : > { %21515 = vst [vmem:[#allocation45_spill] sm:$0xff] %v20470_v45  ;;  %15718 = vmatprep.subr.bf16.mxu1 %v17194_v29  ;;  %v6827_v30 = vrot.slane %v13845_v41, 1 }
 0x3fc   : > { %v6814_v12 = vrot.slane %v13832_v20, 1  ;;  %v6822_v41 = vrot.slane %v13840_v25, 1  ;;  %v593_v20 = vld [vmem:[#allocation2 + $0x128] sm:$0x11] }
 0x3fd   : > { %v15524_v54 = vpop.f32.mrb[192].mxu0 }
 0x3fe   : > { %15719 = vmatpush3.bf16.msra.mxu1 %v17195_v51  ;;  %v15525_v43 = vpop.f32.mrb[193].mxu0  ;;  %v17205_v51 = vld [vmem:[#allocation10 + $0x5b8] sm:$0xff]   ;;  %v13948_v35 = vcombine.low %v6814_v12, %v6818_v16  ;;  %v658_v12 = vld [vmem:[#allocation2 + $0x138] sm:$0x11] }
 0x3ff   : > { %15720 = vmatprep.subr.bf16.mxu1 %v17198_v46  ;;  %v20474_v26 = vadd.f32 %v15525_v43, %v15524_v54  ;;  %v15527_v29 = vpop.f32.mrb[194].mxu0  ;;  %v5860_v46 = vld [vmem:[#allocation2 + $0xa8] sm:$0xee]  ;;  %v13844_v54 = vcombine.low %v5858_v49, %v20395_v42  ;;  %v13985_v43 = vcombine.low %v6823_v19, %v6827_v30  ;;  %v17218_v16 = vld [vmem:[#allocation10 + $0x6d8] sm:$0xff]   ;;  %v594_v30 = vsel %vm18814_vm8, 0, %v593_v20 }
 0x400   : > { %v15528_v5 = vpop.f32.mrb[195].mxu0  ;;  %v17217_v49 = vld [vmem:[#allocation10 + $0x690] sm:$0xff]   ;;  %v13852_v19 = vcombine.low %v5862_v55, %v20417_v9  ;;  %595 = vst [vmem:[#allocation2 + $0x128] sm:$0x11] %v594_v30 }
 0x401   : > { %21516 = vst [vmem:[#allocation37_spill] sm:$0xff] %v20474_v26  ;;  %10734 = vmatmul.mubr.bf16.gmra.mrb[220].mxu1 %v14052_v3  ;;  %v20478_v14 = vadd.f32 %v15528_v5, %v15527_v29  ;;  %v13853_v3 = vcombine.high %v5862_v55, %v20417_v9  ;;  %v6826_v58 = vrot.slane %v13844_v54, 1  ;;  %v5866_v5 = vld [vmem:[#allocation2 + $0x108] sm:$0xee]  ;;  %v17219_v9 = vld [vmem:[#allocation10 + $0x698] sm:$0xff]  }
 0x402   : > { %15721 = vmatpush3.bf16.msra.mxu1 %v17199_v32  ;;  %10839 = vmatprep.mubr.bf16.mxu1 %v13949_v53  ;;  %v13849_v53 = vcombine.high %v5860_v46, %v20426_v40 }
 0x403   : > { %21517 = vst [vmem:[#allocation53_spill] sm:$0xff] %v20478_v14  ;;  %15722 = vmatprep.subr.bf16.mxu1 %v17204_v39  ;;  %v17211_v39 = vld [vmem:[#allocation10 + $0x688] sm:$0xff]   ;;  %v6835_v42 = vrot.slane %v13853_v3, 1 }
 0x404   : > { %v6831_v56 = vrot.slane %v13849_v53, 1  ;;  %v6834_v53 = vrot.slane %v13852_v19, 1  ;;  %v20507_v19 = vld [vmem:[#allocation2 + $0x58] sm:$0x11] }
 0x405   : > { %v15530_v36 = vpop.f32.mrb[196].mxu0 }
 0x406   : > { %15723 = vmatpush3.bf16.msra.mxu1 %v17205_v51  ;;  %v15531_v8 = vpop.f32.mrb[197].mxu0 }
 0x407   : > { %15788 = vmatprep.subr.bf16.mxu1 %v17206_v6  ;;  %v20483_v32 = vadd.f32 %v15531_v8, %v15530_v36  ;;  %v15533_v48 = vpop.f32.mrb[198].mxu0 }
 0x408   : > { %v15534_v59 = vpop.f32.mrb[199].mxu0 }
 0x409   : > { %21518 = vst [vmem:[#allocation54_spill] sm:$0xff] %v20483_v32  ;;  %10840 = vmatmul.mubr.bf16.vlgmr.msra.gmra.mrb[224].mxu1 %v13948_v35  ;;  %v20486_v29 = vadd.f32 %v15534_v59, %v15533_v48  ;;  %v5864_v35 = vld [vmem:[#allocation2 + $0xe8] sm:$0xee]  ;;  %v14021_v48 = vcombine.low %v6831_v56, %v6835_v42  ;;  %v13848_v59 = vcombine.low %v5860_v46, %v20426_v40  ;;  %v17226_v46 = vld [vmem:[#allocation10 + $0x6e8] sm:$0xff]  }
 0x40a   : > { %10847 = vmatprep.mubr.bf16.mxu1 %v13985_v43  ;;  %15789 = vmatpush3.bf16.msra.mxu1 %v17209_v21  ;;  %v13984_v21 = vcombine.low %v6822_v41, %v6826_v58  ;;  %v13861_v43 = vcombine.high %v5866_v5, %v20442_v31  ;;  %v13857_v55 = vcombine.high %v5864_v35, %v20447_v61  ;;  %v17222_v41 = vld [vmem:[#allocation10 + $0x6e0] sm:$0xff]  }
 0x40b   : > { %21519 = vst [vmem:[#allocation55_spill] sm:$0xff] %v20486_v29  ;;  %15790 = vmatprep.subr.bf16.mxu1 %v17210_v23  ;;  %v659_v23 = vsel %vm18832_vm11, 0, %v658_v12  ;;  %v13860_v56 = vcombine.low %v5866_v5, %v20442_v31  ;;  %v17227_v31 = vld [vmem:[#allocation10 + $0x6a8] sm:$0xff]  }
 0x40c   : > { %660 = vst [vmem:[#allocation2 + $0x138] sm:$0x11] %v659_v23  ;;  %v6843_v58 = vrot.slane %v13861_v43, 1  ;;  %v6839_v20 = vrot.slane %v13857_v55, 1  ;;  %v17230_v23 = vld [vmem:[#allocation10 + $0x6f0] sm:$0xff]  }
 0x40d   : > { %v15536_v51 = vpop.f32.mrb[200].mxu0  ;;  %v6842_v5 = vrot.slane %v13860_v56, 1  ;;  %v20526_v56 = vld [vmem:[#allocation2 + $0xb8] sm:$0x11] }
 0x40e   : > { %15791 = vmatpush3.bf16.msra.mxu1 %v17211_v39  ;;  %v15537_v36 = vpop.f32.mrb[201].mxu0  ;;  %v14057_v12 = vcombine.low %v6839_v20, %v6843_v58  ;;  %21528 = vst [vmem:[#allocation60_spill] sm:$0xff] %v20526_v56 }
 0x40f   : > { %15792 = vmatprep.subr.bf16.mxu1 %v17214_v47  ;;  %v20494_v25 = vadd.f32 %v15537_v36, %v15536_v51  ;;  %v15539_v54 = vpop.f32.mrb[202].mxu0  ;;  %v6830_v47 = vrot.slane %v13848_v59, 1  ;;  %v17225_v51 = vld [vmem:[#allocation10 + $0x6a0] sm:$0xff]  }
 0x410   : > { %v15540_v3 = vpop.f32.mrb[203].mxu0 }
 0x411   : > { %21522 = vst [vmem:[#allocation49_spill] sm:$0xff] %v20494_v25  ;;  %10848 = vmatmul.mubr.bf16.gmra.mrb[228].mxu1 %v13984_v21  ;;  %v20498_v39 = vadd.f32 %v15540_v3, %v15539_v54  ;;  %v14020_v40 = vcombine.low %v6830_v47, %v6834_v53  ;;  %v20505_v21 = vld [vmem:[#allocation2 + $0x48] sm:$0xff]  ;;  %v20511_v54 = vld [vmem:[#allocation2 + $0x78] sm:$0x11]  ;;  %v17234_v53 = vld [vmem:[#allocation10 + $0x6f8] sm:$0xff]  }
 0x412   : > { %10855 = vmatprep.mubr.bf16.mxu1 %v14021_v48  ;;  %15793 = vmatpush3.bf16.msra.mxu1 %v17217_v49  ;;  %v20515_v48 = vcombine.low %v20505_v21, %v20507_v19  ;;  %v17456_v3 = vld [vmem:[#allocation2 + $0x68] sm:$0xff]  ;;  %v17241_v25 = vld [vmem:[#allocation10 + $0x788] sm:$0xff]  }
 0x413   : > { %21523 = vst [vmem:[#allocation42_spill] sm:$0xff] %v20498_v39  ;;  %15794 = vmatprep.subr.bf16.mxu1 %v17218_v16  ;;  %v13856_v16 = vcombine.low %v5864_v35, %v20447_v61  ;;  %v17231_v35 = vld [vmem:[#allocation10 + $0x6b0] sm:$0xff]   ;;  %v20518_v59 = vcombine.low %v17456_v3, %v20511_v54  ;;  %v13953_v20 = vcombine.high %v20505_v21, %v17456_v3 }
 0x414   : > { %v20578_v29 = vcombine.high %v17456_v3, %v20511_v54 }
 0x415   : > { %v15542_v42 = vpop.f32.mrb[204].mxu0  ;;  %v6838_v43 = vrot.slane %v13856_v16, 1  ;;  %v20534_v16 = vld [vmem:[#allocation2 + $0xf8] sm:$0x11] }
 0x416   : > { %15795 = vmatpush3.bf16.msra.mxu1 %v17219_v9  ;;  %v15543_v6 = vpop.f32.mrb[205].mxu0  ;;  %21531 = vst [vmem:[#allocation63_spill] sm:$0xff] %v20534_v16  ;;  %v7022_v18 = vshrl.u32 %v20578_v29, 16 }
 0x417   : > { %15796 = vmatprep.subr.bf16.mxu1 %v17222_v41  ;;  %v20502_v30 = vadd.f32 %v15543_v6, %v15542_v42  ;;  %v15545_v49 = vpop.f32.mrb[206].mxu0  ;;  %v14056_v55 = vcombine.low %v6838_v43, %v6842_v5  ;;  %v20520_v41 = vld [vmem:[#allocation2 + $0x98] sm:$0x11]  ;;  %v20557_v42 = vld [vmem:[#allocation2 + $0xc8] sm:$0xff] }
 0x418   : > { %v15546_v36 = vpop.f32.mrb[207].mxu0  ;;  %21526 = vst [vmem:[#allocation58_spill] sm:$0xff] %v20520_v41 }
 0x419   : > { %21524 = vst [vmem:[#allocation56_spill] sm:$0xff] %v20502_v30  ;;  %10856 = vmatmul.mubr.bf16.gmra.mrb[232].mxu1 %v14020_v40  ;;  %v20509_v8 = vadd.f32 %v15546_v36, %v15545_v49  ;;  %v6989_v40 = vshll.u32 %v20515_v48, 16  ;;  %v20532_v36 = vld [vmem:[#allocation2 + $0xd8] sm:$0x11] }
 0x41a   : > { %10863 = vmatprep.mubr.bf16.mxu1 %v14057_v12  ;;  %15797 = vmatpush3.bf16.msra.mxu1 %v17225_v51  ;;  %v17235_v51 = vld [vmem:[#allocation10 + $0x6b8] sm:$0xff]   ;;  %v17236_v12 = vld [vmem:[#allocation10 + $0x7c0] sm:$0xff]   ;;  %21530 = vst [vmem:[#allocation62_spill] sm:$0xff] %v20532_v36  ;;  %v20561_v49 = vcombine.low %v20557_v42, %v20532_v36 }
 0x41b   : > { %21525 = vst [vmem:[#allocation57_spill] sm:$0xff] %v20509_v8  ;;  %15798 = vmatprep.subr.bf16.mxu1 %v17226_v46  ;;  %v20546_v43 = vrot.slane %v6989_v40, 1  ;;  %v17240_v40 = vld [vmem:[#allocation10 + $0x7c8] sm:$0xff]  }
 0x41d   : > { %v15604_v61 = vpop.f32.mrb[208].mxu0 }
 0x41e   : > { %15799 = vmatpush3.bf16.msra.mxu1 %v17227_v31  ;;  %v15605_v9 = vpop.f32.mrb[209].mxu0  ;;  %v20536_v31 = vld [vmem:[#allocation2 + $0x88] sm:$0xff] }
 0x41f   : > { %15800 = vmatprep.subr.bf16.mxu1 %v17230_v23  ;;  %v20522_v58 = vadd.f32 %v15605_v9, %v15604_v61  ;;  %v15607_v47 = vpop.f32.mrb[210].mxu0  ;;  %v20540_v5 = vcombine.low %v20536_v31, %v20520_v41  ;;  %v20544_v23 = vcombine.low %v20359_v10, %v20526_v56  ;;  %v7017_v61 = vshll.u32 %v20518_v59, 16 }
 0x420   : > { %v15608_v6 = vpop.f32.mrb[211].mxu0  ;;  %v20553_v9 = vcombine.high %v20505_v21, %v20507_v19 }
 0x421   : > { %21527 = vst [vmem:[#allocation59_spill] sm:$0xff] %v20522_v58  ;;  %10864 = vmatmul.mubr.bf16.gmra.mrb[236].mxu1 %v14056_v55  ;;  %v20529_v46 = vadd.f32 %v15608_v6, %v15607_v47  ;;  %v17458_v6 = vld [vmem:[#allocation2 + $0xa8] sm:$0xff]  ;;  %v20575_v30 = vrot.slane %v7017_v61, 1  ;;  %v7101_v61 = vshll.u32 %v20561_v49, 16 }
 0x422   : > { %15801 = vmatpush3.bf16.msra.mxu1 %v17231_v35  ;;  %10969 = vmatprep.mubr.bf16.mxu1 %v13953_v20  ;;  %v20549_v35 = vld [vmem:[#allocation2 + $0x118] sm:$0x11]  ;;  %v13952_v20 = vcombine.low %v20505_v21, %v17456_v3  ;;  %v13989_v10 = vcombine.high %v20536_v31, %v17458_v6  ;;  %v7045_v21 = vshll.u32 %v20540_v5, 16  ;;  %v20605_v14 = vcombine.high %v17458_v6, %v20526_v56 }
 0x423   : > { %21529 = vst [vmem:[#allocation61_spill] sm:$0xff] %v20529_v46  ;;  %15802 = vmatprep.subr.bf16.mxu1 %v17234_v53  ;;  %v17239_v53 = vld [vmem:[#allocation10 + $0x780] sm:$0xff]   ;;  %v20565_v46 = vcombine.low %v20387_v11, %v20534_v16  ;;  %v20573_v8 = vcombine.low %v20389_v13, %v20549_v35  ;;  %v17242_v13 = vld [vmem:[#allocation10 + $0x7d0] sm:$0xff]   ;;  %v20607_v45 = vrot.slane %v7101_v61, 1 }
 0x424   : > { %v20587_v32 = vrot.slane %v7045_v21, 1  ;;  %v17245_v21 = vld [vmem:[#allocation10 + $0x790] sm:$0xff]  }
 0x425   : > { %v15610_v55 = vpop.f32.mrb[212].mxu0  ;;  %v7157_v11 = vshll.u32 %v20573_v8, 16 }
 0x426   : > { %15803 = vmatpush3.bf16.msra.mxu1 %v17235_v51  ;;  %v15611_v47 = vpop.f32.mrb[213].mxu0 }
 0x427   : > { %15868 = vmatprep.subr.bf16.mxu1 %v17236_v12  ;;  %v20567_v51 = vadd.f32 %v15611_v47, %v15610_v55  ;;  %v15613_v58 = vpop.f32.mrb[214].mxu0  ;;  %v7073_v12 = vshll.u32 %v20544_v23, 16  ;;  %v13988_v47 = vcombine.low %v20536_v31, %v17458_v6 }
 0x428   : > { %v15614_v39 = vpop.f32.mrb[215].mxu0 }
 0x429   : > { %21532 = vst [vmem:[#allocation64_spill] sm:$0xff] %v20567_v51  ;;  %10970 = vmatmul.mubr.bf16.vlgmr.msra.gmra.mrb[240].mxu1 %v13952_v20  ;;  %v20581_v55 = vadd.f32 %v15614_v39, %v15613_v58  ;;  %v7129_v20 = vshll.u32 %v20565_v46, 16  ;;  %v20589_v3 = vrot.slane %v7073_v12, 1  ;;  %v6996_v39 = vshll.u32 %v20553_v9, 16  ;;  %v20593_v58 = vld [vmem:[#allocation2 + $0x128] sm:$0xff] }
 0x42a   : > { %10977 = vmatprep.mubr.bf16.mxu1 %v13989_v10  ;;  %15869 = vmatpush3.bf16.msra.mxu1 %v17239_v53  ;;  %v20595_v53 = vld [vmem:[#allocation2 + $0x138] sm:$0x11]  ;;  %v7024_v10 = vshll.u32 %v20578_v29, 16  ;;  %v20602_v12 = vcombine.high %v20536_v31, %v20520_v41  ;;  %v14025_v51 = vcombine.high %v20557_v42, %v17460_v60  ;;  %v7078_v29 = vshrl.u32 %v20605_v14, 16  ;;  %v17253_v41 = vld [vmem:[#allocation10 + $0x7a8] sm:$0xff]  }
 0x42b   : > { %21533 = vst [vmem:[#allocation65_spill] sm:$0xff] %v20581_v55  ;;  %15870 = vmatprep.subr.bf16.mxu1 %v17240_v40  ;;  %v17246_v55 = vld [vmem:[#allocation10 + $0x7d8] sm:$0xff]   ;;  %v20617_v31 = vcombine.low %v20593_v58, %v20595_v53 }
 0x42c   : > { %v7026_v50 = vrot.slane %v7024_v10, 1 }
 0x42d   : > { %v15616_v40 = vpop.f32.mrb[216].mxu0  ;;  %21535 = vst [vmem:[#allocation67_spill] sm:$0xff] %v20617_v31  ;;  %v7185_v6 = vshll.u32 %v20617_v31, 16 }
 0x42e   : > { %15871 = vmatpush3.bf16.msra.mxu1 %v17241_v25  ;;  %v15617_v26 = vpop.f32.mrb[217].mxu0  ;;  %v20610_v25 = vrot.slane %v7129_v20, 1  ;;  %v6998_v20 = vrot.slane %v6996_v39, 1  ;;  %v17252_v39 = vld [vmem:[#allocation10 + $0x7e8] sm:$0xff]  }
 0x42f   : > { %15872 = vmatprep.subr.bf16.mxu1 %v17242_v13  ;;  %v20613_v63 = vadd.f32 %v15617_v26, %v15616_v40  ;;  %v15619_v62 = vpop.f32.mrb[218].mxu0  ;;  %v20620_v13 = vrot.slane %v7157_v11, 1  ;;  %v7052_v26 = vshll.u32 %v20602_v12, 16  ;;  %v7080_v40 = vshll.u32 %v20605_v14, 16  ;;  %v17251_v11 = vld [vmem:[#allocation10 + $0x7a0] sm:$0xff]  }
 0x430   : > { %v15620_v61 = vpop.f32.mrb[219].mxu0  ;;  %v20638_v52 = vrot.slane %v7185_v6, 1 }
 0x431   : > { %21534 = vst [vmem:[#allocation66_spill] sm:$0xff] %v20613_v63  ;;  %21536 = vst [vmem:[#allocation68_spill] sm:$0xff] %v20620_v13  ;;  %10978 = vmatmul.mubr.bf16.gmra.mrb[244].mxu1 %v13988_v47  ;;  %v20623_v56 = vadd.f32 %v15620_v61, %v15619_v62  ;;  %v20633_v62 = vcombine.high %v20557_v42, %v20532_v36  ;;  %v7054_v10 = vrot.slane %v7052_v26, 1  ;;  %v7082_v61 = vrot.slane %v7080_v40, 1  ;;  %v17461_v47 = vld [vmem:[#allocation2 + $0x108] sm:$0xff] }
 0x432   : > { %10985 = vmatprep.mubr.bf16.mxu1 %v14025_v51  ;;  %15873 = vmatpush3.bf16.msra.mxu1 %v17245_v21  ;;  %21539 = vst [vmem:[#allocation71_spill] sm:$0xff] %v20638_v52  ;;  %v14061_v14 = vcombine.high %v17461_v47, %v20593_v58  ;;  %v17254_v36 = vld [vmem:[#allocation10 + $0x7f0] sm:$0xff]   ;;  %v17258_v52 = vld [vmem:[#allocation10 + $0x7f8] sm:$0xff]  }
 0x433   : > { %21537 = vst [vmem:[#allocation69_spill] sm:$0xff] %v20623_v56  ;;  %15874 = vmatprep.subr.bf16.mxu1 %v17246_v55  ;;  %v14024_v55 = vcombine.low %v20557_v42, %v17460_v60  ;;  %v17255_v40 = vld [vmem:[#allocation10 + $0x7b0] sm:$0xff]  }
 0x435   : > { %v15622_v51 = vpop.f32.mrb[220].mxu0 }
 0x436   : > { %15875 = vmatpush3.bf16.msra.mxu1 %v17247_v1  ;;  %v15623_v21 = vpop.f32.mrb[221].mxu0  ;;  %v20642_v1 = vcombine.high %v17460_v60, %v20534_v16 }
 0x437   : > { %15876 = vmatprep.subr.bf16.mxu1 %v17248_v15  ;;  %v20636_v56 = vadd.f32 %v15623_v21, %v15622_v51  ;;  %v15625_v63 = vpop.f32.mrb[222].mxu0  ;;  %v7027_v15 = vor.u32 %v7026_v50, %v7022_v18  ;;  %v7108_v51 = vshll.u32 %v20633_v62, 16 }
 0x438   : > { %v15626_v31 = vpop.f32.mrb[223].mxu0 }
 0x439   : > { %21538 = vst [vmem:[#allocation70_spill] sm:$0xff] %v20636_v56  ;;  %10986 = vmatmul.mubr.bf16.gmra.mrb[248].mxu1 %v14024_v55  ;;  %v20645_v42 = vadd.f32 %v15626_v31, %v15625_v63  ;;  %v21541_v56 = vshrl.u32 %v20553_v9, 16 }
 0x43a   : > { %10993 = vmatprep.mubr.bf16.mxu1 %v14061_v14  ;;  %15877 = vmatpush3.bf16.msra.mxu1 %v17251_v11  ;;  %v14060_v11 = vcombine.low %v17461_v47, %v20593_v58 }
 0x43b   : > { %21540 = vst [vmem:[#allocation72_spill] sm:$0xff] %v20645_v42  ;;  %15878 = vmatprep.subr.bf16.mxu1 %v17252_v39  ;;  %v15324_v6 = vpop.f32.mrb[144].mxu1  ;;  %v6999_v55 = vor.u32 %v6998_v20, %v21541_v56  ;;  %v17259_v56 = vld [vmem:[#allocation10 + $0x7b8] sm:$0xff]   ;;  %v7136_v20 = vshll.u32 %v20642_v1, 16 }
 0x43c   : > { %v15325_v21 = vpop.f32.mrb[145].mxu1 }
 0x43d   : > { %v15684_v16 = vpop.f32.mrb[224].mxu0  ;;  %v15326_v13 = vadd.f32 %v15325_v21, %v15324_v6  ;;  %v15327_v26 = vpop.f32.mrb[146].mxu1  ;;  %v13957_v50 = vcombine.low %v6999_v55, %v7027_v15  ;;  %v17260_v6 = vld [vmem:[#allocation10 + $0x8c0] sm:$0xff]   ;;  %v7110_v21 = vrot.slane %v7108_v51, 1  ;;  %v7138_v55 = vrot.slane %v7136_v20, 1 }
 0x43e   : > { %15879 = vmatpush3.bf16.msra.mxu1 %v17253_v41  ;;  %v15685_v63 = vpop.f32.mrb[225].mxu0  ;;  %v15328_v31 = vpop.f32.mrb[147].mxu1  ;;  %v20657_v41 = vcombine.high %v17461_v47, %v20549_v35  ;;  %v17263_v51 = vld [vmem:[#allocation10 + $0x880] sm:$0xff]  }
 0x43f   : > { %15880 = vmatprep.subr.bf16.mxu1 %v17254_v36  ;;  %v10192_v18 = vadd.f32 %v15326_v13, %v20207_v57  ;;  %v20653_v39 = vadd.f32 %v15685_v63, %v15684_v16  ;;  %v15687_v14 = vpop.f32.mrb[226].mxu0  ;;  %v15329_v9 = vadd.f32 %v15328_v31, %v15327_v26  ;;  %v21542_v16 = vshrl.u32 %v20518_v59, 16  ;;  %v17264_v31 = vld [vmem:[#allocation10 + $0x8c8] sm:$0xff]  }
 0x440   : > { %v15688_v60 = vpop.f32.mrb[227].mxu0  ;;  %v7083_v26 = vor.u32 %v7082_v61, %v7078_v29 }
 0x441   : > { %10994 = vmatmul.mubr.bf16.gmra.mrb[252].mxu1 %v14060_v11  ;;  %v10195_v42 = vadd.f32 %v15329_v9, %v20217_v22  ;;  %v20660_v36 = vadd.f32 %v15688_v60, %v15687_v14  ;;  %v20663_v57 = vadd.f32 %v20320_v24, %v10192_v18  ;;  %v7020_v13 = vor.u32 %v20575_v30, %v21542_v16  ;;  %v17265_v18 = vld [vmem:[#allocation10 + $0x888] sm:$0xff]   ;;  %v17266_v9 = vld [vmem:[#allocation10 + $0x8d0] sm:$0xff]  }
 0x442   : > { %15881 = vmatpush3.bf16.msra.mxu1 %v17255_v40  ;;  %11099 = vmatprep.mubr.bf16.mxu1 %v13957_v50  ;;  %v21543_v22 = vshrl.u32 %v20515_v48, 16  ;;  %v21544_v24 = vshrl.u32 %v20602_v12, 16  ;;  %v20678_v30 = vcombine.high %v20593_v58, %v20595_v53 }
 0x443   : > { %15882 = vmatprep.subr.bf16.mxu1 %v17258_v52  ;;  %v15330_v15 = vpop.f32.mrb[148].mxu1  ;;  %v20669_v47 = vadd.f32 %v20327_v37, %v10195_v42  ;;  %v7164_v52 = vshll.u32 %v20657_v41, 16 }
 0x444   : > { %v6992_v40 = vor.u32 %v20546_v43, %v21543_v22  ;;  %v15331_v60 = vpop.f32.mrb[149].mxu1  ;;  %v7055_v63 = vor.u32 %v7054_v10, %v21544_v24  ;;  %v7190_v58 = vshrl.u32 %v20678_v30, 16  ;;  %v7192_v20 = vshll.u32 %v20678_v30, 16 }
 0x445   : > { %v15690_v59 = vpop.f32.mrb[228].mxu0  ;;  %v15332_v29 = vadd.f32 %v15331_v60, %v15330_v15  ;;  %v15333_v61 = vpop.f32.mrb[150].mxu1  ;;  %v21546_v15 = vshrl.u32 %v20642_v1, 16  ;;  %v7166_v60 = vrot.slane %v7164_v52, 1  ;;  %v21547_v24 = vshrl.u32 %v20540_v5, 16 }
 0x446   : > { %15883 = vmatpush3.bf16.msra.mxu1 %v17259_v56  ;;  %v13956_v37 = vcombine.low %v6992_v40, %v7020_v13  ;;  %v15691_v42 = vpop.f32.mrb[229].mxu0  ;;  %v15334_v48 = vpop.f32.mrb[151].mxu1  ;;  %v13993_v43 = vcombine.low %v7055_v63, %v7083_v26  ;;  %v17269_v40 = vld [vmem:[#allocation10 + $0x890] sm:$0xff]   ;;  %v17270_v63 = vld [vmem:[#allocation10 + $0x8d8] sm:$0xff]   ;;  %v7194_v30 = vrot.slane %v7192_v20, 1 }
 0x447   : > { %15948 = vmatprep.subr.bf16.mxu1 %v17260_v6  ;;  %v10200_v11 = vadd.f32 %v15332_v29, %v20246_v38  ;;  %v20682_v12 = vadd.f32 %v15691_v42, %v15690_v59  ;;  %v15693_v10 = vpop.f32.mrb[230].mxu0  ;;  %v15335_v50 = vadd.f32 %v15334_v48, %v15333_v61  ;;  %v21545_v6 = vshrl.u32 %v20544_v23, 16  ;;  %v17271_v48 = vld [vmem:[#allocation10 + $0x898] sm:$0xff]  }
 0x448   : > { %v15694_v14 = vpop.f32.mrb[231].mxu0  ;;  %v7139_v22 = vor.u32 %v7138_v55, %v21546_v15  ;;  %v7195_v20 = vor.u32 %v7194_v30, %v7190_v58  ;;  %v17276_v15 = vld [vmem:[#allocation10 + $0x8e8] sm:$0xff]  }
 0x449   : > { %11100 = vmatmul.mubr.bf16.vlgmr.msra.gmra.mrb[0].mxu1 %v13956_v37  ;;  %v10203_v56 = vadd.f32 %v15335_v50, %v20259_v33  ;;  %v20687_v16 = vadd.f32 %v15694_v14, %v15693_v10  ;;  %v20690_v38 = vadd.f32 %v20340_v27, %v10200_v11  ;;  %v7076_v13 = vor.u32 %v20589_v3, %v21545_v6  ;;  %v17272_v10 = vld [vmem:[#allocation10 + $0x8e0] sm:$0xff]  }
 0x44a   : > { %11107 = vmatprep.mubr.bf16.mxu1 %v13993_v43  ;;  %15949 = vmatpush3.bf16.msra.mxu1 %v17263_v51  ;;  %v7048_v51 = vor.u32 %v20587_v32, %v21547_v24  ;;  %v5903_v43 = vld [vmem:[#allocation2 + $0x68] sm:$0xee]  ;;  %v17275_v6 = vld [vmem:[#allocation10 + $0x8a0] sm:$0xff]  }
 0x44b   : > { %15950 = vmatprep.subr.bf16.mxu1 %v17264_v31  ;;  %v15336_v26 = vpop.f32.mrb[152].mxu1  ;;  %v20698_v33 = vadd.f32 %v20349_v7, %v10203_v56  ;;  %v21548_v31 = vshrl.u32 %v20633_v62, 16  ;;  %v5901_v7 = vld [vmem:[#allocation2 + $0x48] sm:$0xee]  ;;  %v7162_v62 = vshrl.u32 %v20657_v41, 16 }
 0x44c   : > { %v15337_v27 = vpop.f32.mrb[153].mxu1  ;;  %v13992_v55 = vcombine.low %v7048_v51, %v7076_v13  ;;  %v13896_v41 = vcombine.low %v5901_v7, %v20507_v19  ;;  %v21550_v13 = vshrl.u32 %v20561_v49, 16 }
 0x44d   : > { %v15696_v23 = vpop.f32.mrb[232].mxu0  ;;  %v15338_v59 = vadd.f32 %v15337_v27, %v15336_v26  ;;  %v15339_v3 = vpop.f32.mrb[154].mxu1  ;;  %v7111_v1 = vor.u32 %v7110_v21, %v21548_v31  ;;  %v5905_v27 = vld [vmem:[#allocation2 + $0x88] sm:$0xee] }
 0x44e   : > { %15951 = vmatpush3.bf16.msra.mxu1 %v17265_v18  ;;  %v15697_v29 = vpop.f32.mrb[233].mxu0  ;;  %v15340_v52 = vpop.f32.mrb[155].mxu1  ;;  %v21549_v18 = vshrl.u32 %v20565_v46, 16  ;;  %v7104_v26 = vor.u32 %v20607_v45, %v21550_v13  ;;  %v13901_v46 = vcombine.high %v5903_v43, %v20511_v54  ;;  %v17278_v31 = vld [vmem:[#allocation10 + $0x8f0] sm:$0xff]  }
 0x44f   : > { %15952 = vmatprep.subr.bf16.mxu1 %v17266_v9  ;;  %v10208_v61 = vadd.f32 %v15338_v59, %v20281_v44  ;;  %v20706_v5 = vadd.f32 %v15697_v29, %v15696_v23  ;;  %v15699_v32 = vpop.f32.mrb[234].mxu0  ;;  %v15341_v37 = vadd.f32 %v15340_v52, %v15339_v3  ;;  %v14029_v42 = vcombine.low %v7111_v1, %v7139_v22  ;;  %v17277_v23 = vld [vmem:[#allocation10 + $0x8a8] sm:$0xff]  }
 0x450   : > { %v15700_v11 = vpop.f32.mrb[235].mxu0  ;;  %v7132_v14 = vor.u32 %v20610_v25, %v21549_v18  ;;  %v7167_v9 = vor.u32 %v7166_v60, %v7162_v62  ;;  %v20730_v59 = vrot.slane %v13896_v41, 1  ;;  %v13900_v1 = vcombine.low %v5903_v43, %v20511_v54  ;;  %v17279_v43 = vld [vmem:[#allocation10 + $0x8b0] sm:$0xff]  }
 0x451   : > { %11108 = vmatmul.mubr.bf16.gmra.mrb[4].mxu1 %v13992_v55  ;;  %v10211_v21 = vadd.f32 %v15341_v37, %v20288_v28  ;;  %v20710_v50 = vadd.f32 %v15700_v11, %v15699_v32  ;;  %v20713_v44 = vadd.f32 %v20374_v4, %v10208_v61  ;;  %v7283_v55 = vrot.slane %v13901_v46, 1  ;;  %v21552_v61 = vld [vmem:[#allocation68_spill] sm:$0xff]  ;;  %v21553_v37 = vld [vmem:[#allocation67_spill] sm:$0xff] }
 0x452   : > { %11115 = vmatprep.mubr.bf16.mxu1 %v14029_v42  ;;  %15953 = vmatpush3.bf16.msra.mxu1 %v17269_v40  ;;  %v14028_v58 = vcombine.low %v7104_v26, %v7132_v14  ;;  %v14065_v51 = vcombine.low %v7167_v9, %v7195_v20  ;;  %v21554_v42 = vshrl.u32 %v21553_v37, 16  ;;  %v17284_v9 = vld [vmem:[#allocation10 + $0x8f8] sm:$0xff]  }
 0x453   : > { %15954 = vmatprep.subr.bf16.mxu1 %v17270_v63  ;;  %v15342_v56 = vpop.f32.mrb[156].mxu1  ;;  %v20720_v28 = vadd.f32 %v20380_v34, %v10211_v21  ;;  %v13897_v34 = vcombine.high %v5901_v7, %v20507_v19  ;;  %v21551_v7 = vshrl.u32 %v20573_v8, 16  ;;  %v21557_v21 = vld [vmem:[#allocation34_spill] sm:$0xff] }
 0x454   : > { %v15343_v4 = vpop.f32.mrb[157].mxu1 }
 0x455   : > { %v15702_v22 = vpop.f32.mrb[236].mxu0  ;;  %v15344_v25 = vadd.f32 %v15343_v4, %v15342_v56  ;;  %v15345_v40 = vpop.f32.mrb[158].mxu1  ;;  %v7160_v32 = vor.u32 %v21552_v61, %v21551_v7 }
 0x456   : > { %15955 = vmatpush3.bf16.msra.mxu1 %v17271_v48  ;;  %v15703_v60 = vpop.f32.mrb[237].mxu0  ;;  %v15346_v24 = vpop.f32.mrb[159].mxu1  ;;  %v21555_v48 = vld [vmem:[#allocation71_spill] sm:$0xff] }
 0x457   : > { %15956 = vmatprep.subr.bf16.mxu1 %v17272_v10  ;;  %v10216_v49 = vadd.f32 %v15344_v25, %v20306_v2  ;;  %v20728_v63 = vadd.f32 %v15703_v60, %v15702_v22  ;;  %v15705_v45 = vpop.f32.mrb[238].mxu0  ;;  %v15347_v30 = vadd.f32 %v15346_v24, %v15345_v40  ;;  %v5907_v2 = vld [vmem:[#allocation2 + $0xa8] sm:$0xee]  ;;  %v7188_v11 = vor.u32 %v21555_v48, %v21554_v42  ;;  %v21556_v10 = vld [vmem:[#allocation58_spill] sm:$0xff]  ;;  %v17285_v60 = vld [vmem:[#allocation10 + $0x8b8] sm:$0xff]  }
 0x458   : > { %v15706_v3 = vpop.f32.mrb[239].mxu0  ;;  %v13904_v62 = vcombine.low %v5905_v27, %v21556_v10  ;;  %v13905_v8 = vcombine.high %v5905_v27, %v21556_v10 }
 0x459   : > { %11116 = vmatmul.mubr.bf16.gmra.mrb[8].mxu1 %v14028_v58  ;;  %v10219_v29 = vadd.f32 %v15347_v30, %v20310_v17  ;;  %v20734_v52 = vadd.f32 %v15706_v3, %v15705_v45  ;;  %v20737_v19 = vadd.f32 %v20405_v0, %v10216_v49  ;;  %v7279_v17 = vrot.slane %v13897_v34, 1 }
 0x45a   : > { %11123 = vmatprep.mubr.bf16.mxu1 %v14065_v51  ;;  %15957 = vmatpush3.bf16.msra.mxu1 %v17275_v6  ;;  %v7282_v0 = vrot.slane %v13900_v1, 1  ;;  %v14064_v41 = vcombine.low %v7160_v32, %v7188_v11  ;;  %v7286_v24 = vrot.slane %v13904_v62, 1  ;;  %v5911_v51 = vld [vmem:[#allocation2 + $0xe8] sm:$0xee]  ;;  %v7287_v49 = vrot.slane %v13905_v8, 1 }
 0x45b   : > { %15958 = vmatprep.subr.bf16.mxu1 %v17276_v15  ;;  %v15404_v54 = vpop.f32.mrb[160].mxu1  ;;  %v20747_v18 = vadd.f32 %v21557_v21, %v10219_v29  ;;  %v13961_v4 = vcombine.low %v7279_v17, %v7283_v55  ;;  %v21558_v15 = vld [vmem:[#allocation60_spill] sm:$0xff]  ;;  %v21560_v55 = vld [vmem:[#allocation35_spill] sm:$0xff] }
 0x45c   : > { %v15405_v14 = vpop.f32.mrb[161].mxu1  ;;  %v13909_v46 = vcombine.high %v5907_v2, %v21558_v15  ;;  %v13908_v27 = vcombine.low %v5907_v2, %v21558_v15  ;;  %v21561_v2 = vld [vmem:[#allocation63_spill] sm:$0xff]  ;;  %v13960_v48 = vcombine.low %v20730_v59, %v7282_v0  ;;  %v21563_v0 = vld [vmem:[#allocation36_spill] sm:$0xff]  ;;  %v21564_v15 = vld [vmem:[#allocation38_spill] sm:$0xff] }
 0x45d   : > { %v15406_v56 = vadd.f32 %v15405_v14, %v15404_v54  ;;  %v15407_v6 = vpop.f32.mrb[162].mxu1  ;;  %v13917_v32 = vcombine.high %v5911_v51, %v21561_v2  ;;  %v5913_v8 = vld [vmem:[#allocation2 + $0x108] sm:$0xee] }
 0x45e   : > { %v15764_v20 = vpop.f32.mrb[240].mxu0  ;;  %15959 = vmatpush3.bf16.msra.mxu1 %v17277_v23  ;;  %v15408_v26 = vpop.f32.mrb[163].mxu1  ;;  %v5909_v23 = vld [vmem:[#allocation2 + $0xc8] sm:$0xee]  ;;  %v7291_v1 = vrot.slane %v13909_v46, 1  ;;  %v7290_v61 = vrot.slane %v13908_v27, 1 }
 0x45f   : > { %v15765_v13 = vpop.f32.mrb[241].mxu0  ;;  %15960 = vmatprep.subr.bf16.mxu1 %v17278_v31  ;;  %v10322_v22 = vadd.f32 %v15406_v56, %v20663_v57  ;;  %v15409_v58 = vadd.f32 %v15408_v26, %v15407_v6  ;;  %v21559_v57 = vld [vmem:[#allocation39_spill] sm:$0xff]  ;;  %v13916_v56 = vcombine.low %v5911_v51, %v21561_v2  ;;  %v7299_v6 = vrot.slane %v13917_v32, 1 }
 0x460   : > { %v20752_v25 = vadd.f32 %v15765_v13, %v15764_v20  ;;  %v15767_v40 = vpop.f32.mrb[242].mxu0 }
 0x461   : > { %v15768_v34 = vpop.f32.mrb[243].mxu0  ;;  %11124 = vmatmul.mubr.bf16.gmra.mrb[12].mxu1 %v14064_v41  ;;  %v10325_v45 = vadd.f32 %v15409_v58, %v20669_v47  ;;  %v20759_v3 = vadd.f32 %v21559_v57, %v10322_v22  ;;  %v13921_v58 = vcombine.high %v5913_v8, %v20549_v35 }
 0x462   : > { %v20756_v30 = vadd.f32 %v15768_v34, %v15767_v40  ;;  %15961 = vmatpush3.bf16.msra.mxu1 %v17279_v43  ;;  %11229 = vmatprep.mubr.bf16.mxu1 %v13961_v4  ;;  %v21562_v43 = vld [vmem:[#allocation62_spill] sm:$0xff]  ;;  %v7298_v40 = vrot.slane %v13916_v56, 1 }
 0x463   : > { %15962 = vmatprep.subr.bf16.mxu1 %v17284_v9  ;;  %v15410_v31 = vpop.f32.mrb[164].mxu1  ;;  %v20762_v29 = vadd.f32 %v21560_v55, %v10325_v45  ;;  %v13913_v17 = vcombine.high %v5909_v23, %v21562_v43  ;;  %v13997_v9 = vcombine.low %v7287_v49, %v7291_v1  ;;  %v13912_v32 = vcombine.low %v5909_v23, %v21562_v43 }
 0x464   : > { %v15411_v7 = vpop.f32.mrb[165].mxu1  ;;  %v7303_v35 = vrot.slane %v13921_v58, 1 }
 0x465   : > { %v15412_v47 = vadd.f32 %v15411_v7, %v15410_v31  ;;  %v15413_v42 = vpop.f32.mrb[166].mxu1  ;;  %v7295_v4 = vrot.slane %v13913_v17, 1 }
 0x466   : > { %v15770_v37 = vpop.f32.mrb[244].mxu0  ;;  %15963 = vmatpush3.bf16.msra.mxu1 %v17285_v60  ;;  %v15414_v54 = vpop.f32.mrb[167].mxu1 }
 0x467   : > { %v15771_v11 = vpop.f32.mrb[245].mxu0  ;;  %v10330_v10 = vadd.f32 %v15412_v47, %v20690_v38  ;;  %v15415_v14 = vadd.f32 %v15414_v54, %v15413_v42  ;;  %v5915_v38 = vld [vmem:[#allocation2 + $0x128] sm:$0xee]  ;;  %v14033_v45 = vcombine.low %v7295_v4, %v7299_v6  ;;  %v7294_v54 = vrot.slane %v13912_v32, 1 }
 0x468   : > { %v20768_v62 = vadd.f32 %v15771_v11, %v15770_v37  ;;  %v15773_v21 = vpop.f32.mrb[246].mxu0  ;;  %v13925_v7 = vcombine.high %v5915_v38, %v20595_v53  ;;  %v13924_v56 = vcombine.low %v5915_v38, %v20595_v53  ;;  %v21568_v53 = vld [vmem:[#allocation45_spill] sm:$0xff] }
 0x469   : > { %v15774_v20 = vpop.f32.mrb[247].mxu0  ;;  %11230 = vmatmul.mubr.bf16.vlgmr.msra.gmra.mrb[16].mxu1 %v13960_v48  ;;  %v10333_v41 = vadd.f32 %v15415_v14, %v20698_v33  ;;  %v20775_v13 = vadd.f32 %v21563_v0, %v10330_v10  ;;  %v13996_v33 = vcombine.low %v7286_v24, %v7290_v61  ;;  %v21565_v24 = vld [vmem:[#allocation43_spill] sm:$0xff]  ;;  %v21566_v48 = vld [vmem:[#allocation40_spill] sm:$0xff]  ;;  %v14032_v23 = vcombine.low %v7294_v54, %v7298_v40  ;;  %v21567_v40 = vld [vmem:[#allocation46_spill] sm:$0xff] }
 0x46a   : > { %v20772_v59 = vadd.f32 %v15774_v20, %v15773_v21  ;;  %11237 = vmatprep.mubr.bf16.mxu1 %v13997_v9  ;;  %v7307_v42 = vrot.slane %v13925_v7, 1 }
 0x46b   : > { %v15416_v26 = vpop.f32.mrb[168].mxu1  ;;  %v20778_v46 = vadd.f32 %v21564_v15, %v10333_v41 }
 0x46c   : > { %v15417_v22 = vpop.f32.mrb[169].mxu1  ;;  %v14069_v4 = vcombine.low %v7303_v35, %v7307_v42 }
 0x46d   : > { %v15418_v51 = vadd.f32 %v15417_v22, %v15416_v26  ;;  %v15419_v34 = vpop.f32.mrb[170].mxu1 }
 0x46e   : > { %v15776_v60 = vpop.f32.mrb[248].mxu0  ;;  %v15420_v49 = vpop.f32.mrb[171].mxu1 }
 0x46f   : > { %v15777_v27 = vpop.f32.mrb[249].mxu0  ;;  %v10338_v57 = vadd.f32 %v15418_v51, %v20713_v44  ;;  %v15421_v55 = vadd.f32 %v15420_v49, %v15419_v34 }
 0x470   : > { %v20782_v31 = vadd.f32 %v15777_v27, %v15776_v60  ;;  %v15779_v1 = vpop.f32.mrb[250].mxu0 }
 0x471   : > { %v15780_v2 = vpop.f32.mrb[251].mxu0  ;;  %11238 = vmatmul.mubr.bf16.gmra.mrb[20].mxu1 %v13996_v33  ;;  %v10341_v37 = vadd.f32 %v15421_v55, %v20720_v28  ;;  %v20790_v61 = vadd.f32 %v21565_v24, %v10338_v57  ;;  %v17462_v28 = vld [vmem:[#allocation2 + $0x118] sm:$0x11] }
 0x472   : > { %v20787_v47 = vadd.f32 %v15780_v2, %v15779_v1  ;;  %11245 = vmatprep.mubr.bf16.mxu1 %v14033_v45  ;;  %v13920_v20 = vcombine.low %v5913_v8, %v17462_v28  ;;  %v7306_v8 = vrot.slane %v13924_v56, 1  ;;  %v21569_v24 = vld [vmem:[#allocation37_spill] sm:$0xff] }
 0x473   : > { %v15422_v44 = vpop.f32.mrb[172].mxu1  ;;  %v20793_v11 = vadd.f32 %v21566_v48, %v10341_v37  ;;  %v21570_v48 = vld [vmem:[#allocation53_spill] sm:$0xff] }
 0x474   : > { %v15423_v17 = vpop.f32.mrb[173].mxu1  ;;  %v7302_v51 = vrot.slane %v13920_v20, 1 }
 0x475   : > { %v15424_v21 = vadd.f32 %v15423_v17, %v15422_v44  ;;  %v15425_v14 = vpop.f32.mrb[174].mxu1 }
 0x476   : > { %v15782_v10 = vpop.f32.mrb[252].mxu0  ;;  %v15426_v9 = vpop.f32.mrb[175].mxu1  ;;  %v14068_v45 = vcombine.low %v7302_v51, %v7306_v8 }
 0x477   : > { %v15783_v43 = vpop.f32.mrb[253].mxu0  ;;  %v10346_v6 = vadd.f32 %v15424_v21, %v20737_v19  ;;  %v15427_v26 = vadd.f32 %v15426_v9, %v15425_v14 }
 0x478   : > { %v20797_v41 = vadd.f32 %v15783_v43, %v15782_v10  ;;  %v15785_v0 = vpop.f32.mrb[254].mxu0 }
 0x479   : > { %v15786_v15 = vpop.f32.mrb[255].mxu0  ;;  %11246 = vmatmul.mubr.bf16.gmra.mrb[24].mxu1 %v14032_v23  ;;  %v10349_v22 = vadd.f32 %v15427_v26, %v20747_v18  ;;  %v10411_v60 = vadd.f32 %v21567_v40, %v10346_v6 }
 0x47a   : > { %v20800_v58 = vadd.f32 %v15786_v15, %v15785_v0  ;;  %11253 = vmatprep.mubr.bf16.mxu1 %v14069_v4  ;;  %v21571_v0 = vld [vmem:[#allocation54_spill] sm:$0xff]  ;;  %v21572_v15 = vld [vmem:[#allocation55_spill] sm:$0xff] }
 0x47b   : > { %v10414_v38 = vadd.f32 %v21568_v53, %v10349_v22 }
 0x47c   : > { %v15484_v34 = vpop.f32.mrb[176].mxu1 }
 0x47d   : > { %v15485_v19 = vpop.f32.mrb[177].mxu1 }
 0x47e   : > { %v15844_v33 = vpop.f32.mrb[0].mxu0  ;;  %v15486_v27 = vadd.f32 %v15485_v19, %v15484_v34  ;;  %v15487_v49 = vpop.f32.mrb[178].mxu1 }
 0x47f   : > { %v15845_v57 = vpop.f32.mrb[1].mxu0  ;;  %v15488_v1 = vpop.f32.mrb[179].mxu1 }
 0x480   : > { %v10452_v55 = vadd.f32 %v15486_v27, %v20759_v3  ;;  %v20805_v18 = vadd.f32 %v15845_v57, %v15844_v33  ;;  %v15847_v7 = vpop.f32.mrb[2].mxu0  ;;  %v15489_v2 = vadd.f32 %v15488_v1, %v15487_v49  ;;  %v21573_v1 = vld [vmem:[#allocation49_spill] sm:$0xff] }
 0x481   : > { %v15848_v32 = vpop.f32.mrb[3].mxu0  ;;  %11254 = vmatmul.mubr.bf16.gmra.mrb[28].mxu1 %v14068_v45 }
 0x482   : > { %v10455_v35 = vadd.f32 %v15489_v2, %v20762_v29  ;;  %v20808_v37 = vadd.f32 %v15848_v32, %v15847_v7  ;;  %v10517_v44 = vadd.f32 %v21569_v24, %v10452_v55  ;;  %v21574_v2 = vld [vmem:[#allocation42_spill] sm:$0xff] }
 0x484   : > { %v15490_v42 = vpop.f32.mrb[180].mxu1  ;;  %v10520_v54 = vadd.f32 %v21570_v48, %v10455_v35 }
 0x485   : > { %v15491_v17 = vpop.f32.mrb[181].mxu1 }
 0x486   : > { %v15850_v10 = vpop.f32.mrb[4].mxu0  ;;  %v15492_v21 = vadd.f32 %v15491_v17, %v15490_v42  ;;  %v15493_v14 = vpop.f32.mrb[182].mxu1 }
 0x487   : > { %v15851_v3 = vpop.f32.mrb[5].mxu0  ;;  %v15494_v23 = vpop.f32.mrb[183].mxu1 }
 0x488   : > { %v10460_v43 = vadd.f32 %v15492_v21, %v20775_v13  ;;  %v20813_v9 = vadd.f32 %v15851_v3, %v15850_v10  ;;  %v15853_v28 = vpop.f32.mrb[6].mxu0  ;;  %v15495_v20 = vadd.f32 %v15494_v23, %v15493_v14 }
 0x489   : > { %v15854_v29 = vpop.f32.mrb[7].mxu0 }
 0x48a   : > { %v10463_v56 = vadd.f32 %v15495_v20, %v20778_v46  ;;  %v20816_v6 = vadd.f32 %v15854_v29, %v15853_v28  ;;  %v10525_v26 = vadd.f32 %v21571_v0, %v10460_v43  ;;  %v21575_v28 = vld [vmem:[#allocation56_spill] sm:$0xff] }
 0x48c   : > { %v15496_v4 = vpop.f32.mrb[184].mxu1  ;;  %v10528_v22 = vadd.f32 %v21572_v15, %v10463_v56  ;;  %v21576_v56 = vld [vmem:[#allocation57_spill] sm:$0xff] }
 0x48d   : > { %v15497_v40 = vpop.f32.mrb[185].mxu1 }
 0x48e   : > { %v15856_v51 = vpop.f32.mrb[8].mxu0  ;;  %v15498_v8 = vadd.f32 %v15497_v40, %v15496_v4  ;;  %v15499_v34 = vpop.f32.mrb[186].mxu1 }
 0x48f   : > { %v15857_v53 = vpop.f32.mrb[9].mxu0  ;;  %v15500_v13 = vpop.f32.mrb[187].mxu1 }
 0x490   : > { %v10468_v19 = vadd.f32 %v15498_v8, %v20790_v61  ;;  %v20821_v33 = vadd.f32 %v15857_v53, %v15856_v51  ;;  %v15859_v27 = vpop.f32.mrb[10].mxu0  ;;  %v15501_v49 = vadd.f32 %v15500_v13, %v15499_v34 }
 0x491   : > { %v15860_v46 = vpop.f32.mrb[11].mxu0 }
 0x492   : > { %v10471_v45 = vadd.f32 %v15501_v49, %v20793_v11  ;;  %v20824_v57 = vadd.f32 %v15860_v46, %v15859_v27  ;;  %v10533_v55 = vadd.f32 %v21573_v1, %v10468_v19  ;;  %v21577_v46 = vld [vmem:[#allocation59_spill] sm:$0xff] }
 0x494   : > { %v15502_v7 = vpop.f32.mrb[188].mxu1  ;;  %v10536_v32 = vadd.f32 %v21574_v2, %v10471_v45 }
 0x495   : > { %v15503_v35 = vpop.f32.mrb[189].mxu1 }
 0x496   : > { %v15862_v24 = vpop.f32.mrb[12].mxu0  ;;  %v15504_v42 = vadd.f32 %v15503_v35, %v15502_v7  ;;  %v15505_v48 = vpop.f32.mrb[190].mxu1  ;;  %v21578_v7 = vld [vmem:[#allocation61_spill] sm:$0xff] }
 0x497   : > { %v15863_v17 = vpop.f32.mrb[13].mxu0  ;;  %v15506_v61 = vpop.f32.mrb[191].mxu1 }
 0x498   : > { %v10476_v10 = vadd.f32 %v15504_v42, %v10411_v60  ;;  %v20828_v21 = vadd.f32 %v15863_v17, %v15862_v24  ;;  %v15865_v14 = vpop.f32.mrb[14].mxu0  ;;  %v15507_v3 = vadd.f32 %v15506_v61, %v15505_v48 }
 0x499   : > { %v15866_v23 = vpop.f32.mrb[15].mxu0 }
 0x49a   : > { %v10479_v11 = vadd.f32 %v15507_v3, %v10414_v38  ;;  %v20830_v43 = vadd.f32 %v15866_v23, %v15865_v14  ;;  %v10541_v20 = vadd.f32 %v21575_v28, %v10476_v10  ;;  %v21579_v28 = vld [vmem:[#allocation64_spill] sm:$0xff] }
 0x49c   : > { %v15564_v29 = vpop.f32.mrb[192].mxu1  ;;  %v10544_v0 = vadd.f32 %v21576_v56, %v10479_v11 }
 0x49d   : > { %v15565_v4 = vpop.f32.mrb[193].mxu1 }
 0x49e   : > { %v15924_v15 = vpop.f32.mrb[16].mxu0  ;;  %v15566_v40 = vadd.f32 %v15565_v4, %v15564_v29  ;;  %v15567_v51 = vpop.f32.mrb[194].mxu1  ;;  %v21580_v4 = vld [vmem:[#allocation65_spill] sm:$0xff] }
 0x49f   : > { %v15925_v8 = vpop.f32.mrb[17].mxu0  ;;  %v15568_v34 = vpop.f32.mrb[195].mxu1 }
 0x4a0   : > { %v10582_v60 = vadd.f32 %v15566_v40, %v10517_v44  ;;  %v20834_v53 = vadd.f32 %v15925_v8, %v15924_v15  ;;  %v15927_v13 = vpop.f32.mrb[18].mxu0  ;;  %v15569_v19 = vadd.f32 %v15568_v34, %v15567_v51 }
 0x4a1   : > { %v15928_v27 = vpop.f32.mrb[19].mxu0 }
 0x4a2   : > { %v10585_v38 = vadd.f32 %v15569_v19, %v10520_v54  ;;  %v20836_v49 = vadd.f32 %v15928_v27, %v15927_v13  ;;  %v20839_v45 = vadd.f32 %v21577_v46, %v10582_v60 }
 0x4a4   : > { %v15570_v1 = vpop.f32.mrb[196].mxu1  ;;  %v20842_v2 = vadd.f32 %v21578_v7, %v10585_v38  ;;  %v21581_v7 = vld [vmem:[#allocation66_spill] sm:$0xff] }
 0x4a5   : > { %v15571_v35 = vpop.f32.mrb[197].mxu1 }
 0x4a6   : > { %v15930_v24 = vpop.f32.mrb[20].mxu0  ;;  %v15572_v42 = vadd.f32 %v15571_v35, %v15570_v1  ;;  %v15573_v48 = vpop.f32.mrb[198].mxu1 }
 0x4a7   : > { %v15931_v44 = vpop.f32.mrb[21].mxu0  ;;  %v15574_v17 = vpop.f32.mrb[199].mxu1 }
 0x4a8   : > { %v10590_v61 = vadd.f32 %v15572_v42, %v10525_v26  ;;  %v20844_v10 = vadd.f32 %v15931_v44, %v15930_v24  ;;  %v15933_v14 = vpop.f32.mrb[22].mxu0  ;;  %v15575_v54 = vadd.f32 %v15574_v17, %v15573_v48  ;;  %v21582_v42 = vld [vmem:[#allocation69_spill] sm:$0xff] }
 0x4a9   : > { %v15934_v3 = vpop.f32.mrb[23].mxu0 }
 0x4aa   : > { %v10593_v23 = vadd.f32 %v15575_v54, %v10528_v22  ;;  %v20846_v11 = vadd.f32 %v15934_v3, %v15933_v14  ;;  %v10655_v29 = vadd.f32 %v21579_v28, %v10590_v61 }
 0x4ac   : > { %v15576_v56 = vpop.f32.mrb[200].mxu1  ;;  %v10658_v15 = vadd.f32 %v21580_v4, %v10593_v23 }
 0x4ad   : > { %v15577_v40 = vpop.f32.mrb[201].mxu1 }
 0x4ae   : > { %v15936_v51 = vpop.f32.mrb[24].mxu0  ;;  %v15578_v8 = vadd.f32 %v15577_v40, %v15576_v56  ;;  %v15579_v34 = vpop.f32.mrb[202].mxu1 }
 0x4af   : > { %v15937_v60 = vpop.f32.mrb[25].mxu0  ;;  %v15580_v13 = vpop.f32.mrb[203].mxu1 }
 0x4b0   : > { %v10598_v26 = vadd.f32 %v15578_v8, %v10533_v55  ;;  %v20850_v19 = vadd.f32 %v15937_v60, %v15936_v51  ;;  %v15939_v27 = vpop.f32.mrb[26].mxu0  ;;  %v15581_v38 = vadd.f32 %v15580_v13, %v15579_v34  ;;  %v21583_v51 = vld [vmem:[#allocation70_spill] sm:$0xff]  ;;  %v17298_v34 = vld [vmem:[#allocation12 + $0xc0] sm:$0xff]  }
 0x4b1   : > { %v15940_v46 = vpop.f32.mrb[27].mxu0  ;;  %v17299_v60 = vld [vmem:[#allocation12 + $0x80] sm:$0xff]   ;;  %16028 = vmatprep.subr.bf16.mxu1 %v17298_v34 }
 0x4b2   : > { %v10601_v22 = vadd.f32 %v15581_v38, %v10536_v32  ;;  %v20852_v1 = vadd.f32 %v15940_v46, %v15939_v27  ;;  %v20855_v35 = vadd.f32 %v21581_v7, %v10598_v26  ;;  %v21584_v26 = vld [vmem:[#allocation72_spill] sm:$0xff]  ;;  %v669_v38 = vld [vmem:[#allocation3 + $0x8] sm:$0x1]  ;;  %16029 = vmatpush3.bf16.msra.mxu1 %v17299_v60 }
 0x4b3   : > { %v670_v7 = vsel %vm18802_vm3, 0, %v669_v38  ;;  %v17301_v38 = vld [vmem:[#allocation12 + $0x40] sm:$0xff]  }
 0x4b4   : > { %v15582_v24 = vpop.f32.mrb[204].mxu1  ;;  %v20858_v48 = vadd.f32 %v21582_v42, %v10601_v22  ;;  %671 = vst [vmem:[#allocation3 + $0x8] sm:$0x1] %v670_v7  ;;  %15988 = vmatprep.subr.bf16.mxu0 %v17301_v38  ;;  %v17308_v38 = vld [vmem:[#allocation12 + $0xd8] sm:$0xff]  }
 0x4b5   : > { %v15583_v44 = vpop.f32.mrb[205].mxu1 }
 0x4b6   : > { %v15942_v17 = vpop.f32.mrb[28].mxu0  ;;  %v15584_v61 = vadd.f32 %v15583_v44, %v15582_v24  ;;  %v15585_v14 = vpop.f32.mrb[206].mxu1 }
 0x4b7   : > { %v15943_v55 = vpop.f32.mrb[29].mxu0  ;;  %v15586_v54 = vpop.f32.mrb[207].mxu1 }
 0x4b8   : > { %v10606_v3 = vadd.f32 %v15584_v61, %v10541_v20  ;;  %v20860_v23 = vadd.f32 %v15943_v55, %v15942_v17  ;;  %v15945_v28 = vpop.f32.mrb[30].mxu0  ;;  %v15587_v32 = vadd.f32 %v15586_v54, %v15585_v14  ;;  %v699_v20 = vld [vmem:[#allocation3 + $0xc] sm:$0x1] }
 0x4b9   : > { %v15946_v56 = vpop.f32.mrb[31].mxu0  ;;  %v700_v24 = vsel %vm18822_vm9, 0, %v699_v20  ;;  %v17302_v20 = vld [vmem:[#allocation12 + $0x88] sm:$0xff]  }
 0x4ba   : > { %v10609_v4 = vadd.f32 %v15587_v32, %v10544_v0  ;;  %v20862_v40 = vadd.f32 %v15946_v56, %v15945_v28  ;;  %v20865_v8 = vadd.f32 %v21583_v51, %v10606_v3  ;;  %701 = vst [vmem:[#allocation3 + $0xc] sm:$0x1] %v700_v24  ;;  %v17304_v24 = vld [vmem:[#allocation12 + $0xd0] sm:$0xff]  }
 0x4bc   : > { %v15644_v13 = vpop.f32.mrb[208].mxu1  ;;  %v20868_v27 = vadd.f32 %v21584_v26, %v10609_v4 }
 0x4bd   : > { %v15645_v46 = vpop.f32.mrb[209].mxu1 }
 0x4be   : > { %v15646_v42 = vadd.f32 %v15645_v46, %v15644_v13  ;;  %v15647_v44 = vpop.f32.mrb[210].mxu1  ;;  %v672_v46 = vld [vmem:[#allocation3 + $0x10] sm:$0x1] }
 0x4bf   : > { %v15648_v17 = vpop.f32.mrb[211].mxu1 }
 0x4c0   : > { %v10712_v61 = vadd.f32 %v15646_v42, %v20839_v45  ;;  %v15649_v14 = vadd.f32 %v15648_v17, %v15647_v44  ;;  %v17300_v45 = vld [vmem:[#allocation12 + $0xc8] sm:$0xff]  }
 0x4c1   : > { %16030 = vmatprep.subr.bf16.mxu1 %v17300_v45  ;;  %v17305_v42 = vld [vmem:[#allocation12 + $0x48] sm:$0xff]  }
 0x4c2   : > { %v10715_v55 = vadd.f32 %v15649_v14, %v20842_v2  ;;  %v20877_v54 = vadd.f32 %v20653_v39, %v10712_v61  ;;  %16031 = vmatpush3.bf16.msra.mxu1 %v17302_v20  ;;  %v675_v61 = vld [vmem:[#allocation3 + $0x18] sm:$0x1] }
 0x4c3   : > { %16032 = vmatprep.subr.bf16.mxu1 %v17304_v24 }
 0x4c4   : > { %v15650_v3 = vpop.f32.mrb[212].mxu1  ;;  %v20880_v28 = vadd.f32 %v20660_v36, %v10715_v55  ;;  %v702_v36 = vld [vmem:[#allocation3 + $0x14] sm:$0x1]  ;;  %v17307_v55 = vld [vmem:[#allocation12 + $0x8] sm:$0xff]  }
 0x4c5   : > { %v15651_v32 = vpop.f32.mrb[213].mxu1 }
 0x4c6   : > { %v15652_v56 = vadd.f32 %v15651_v32, %v15650_v3  ;;  %v15653_v4 = vpop.f32.mrb[214].mxu1  ;;  %v676_v3 = vsel %vm18802_vm3, 0, %v675_v61  ;;  %v705_v32 = vld [vmem:[#allocation3 + $0x1c] sm:$0x1]  ;;  %v681_v61 = vld [vmem:[#allocation3 + $0x28] sm:$0x1] }
 0x4c7   : > { %v15654_v51 = vpop.f32.mrb[215].mxu1  ;;  %677 = vst [vmem:[#allocation3 + $0x18] sm:$0x1] %v676_v3 }
 0x4c8   : > { %v10720_v34 = vadd.f32 %v15652_v56, %v10655_v29  ;;  %v15655_v60 = vadd.f32 %v15654_v51, %v15653_v4  ;;  %v673_v29 = vsel %vm18802_vm3, 0, %v672_v46  ;;  %v706_v51 = vsel %vm18822_vm9, 0, %v705_v32 }
 0x4c9   : > { %674 = vst [vmem:[#allocation3 + $0x10] sm:$0x1] %v673_v29  ;;  %707 = vst [vmem:[#allocation3 + $0x1c] sm:$0x1] %v706_v51  ;;  %v708_v29 = vld [vmem:[#allocation3 + $0x24] sm:$0x1] }
 0x4ca   : > { %v10723_v13 = vadd.f32 %v15655_v60, %v10658_v15  ;;  %v20883_v26 = vadd.f32 %v20682_v12, %v10720_v34  ;;  %v703_v15 = vsel %vm18822_vm9, 0, %v702_v36  ;;  %v17303_v12 = vld [vmem:[#allocation12] sm:$0xff]   ;;  %v682_v32 = vsel %vm18802_vm3, 0, %v681_v61  ;;  %v17318_v51 = vld [vmem:[#allocation12 + $0xa8] sm:$0xff]  }
 0x4cb   : > { %704 = vst [vmem:[#allocation3 + $0x14] sm:$0x1] %v703_v15  ;;  %15989 = vmatpush3.bf16.msra.mxu0 %v17303_v12  ;;  %v17312_v12 = vld [vmem:[#allocation12 + $0xe0] sm:$0xff]   ;;  %683 = vst [vmem:[#allocation3 + $0x28] sm:$0x1] %v682_v32  ;;  %v17326_v32 = vld [vmem:[#allocation12 + $0xb8] sm:$0xff]  }
 0x4cc   : > { %v15656_v2 = vpop.f32.mrb[216].mxu1  ;;  %v20886_v39 = vadd.f32 %v20687_v16, %v10723_v13  ;;  %v17306_v16 = vld [vmem:[#allocation12 + $0x90] sm:$0xff]   ;;  %15990 = vmatprep.subr.bf16.mxu0 %v17305_v42 }
 0x4cd   : > { %v15657_v7 = vpop.f32.mrb[217].mxu1  ;;  %16033 = vmatpush3.bf16.msra.mxu1 %v17306_v16  ;;  %v17315_v16 = vld [vmem:[#allocation12 + $0x18] sm:$0xff]  }
 0x4ce   : > { %v15658_v44 = vadd.f32 %v15657_v7, %v15656_v2  ;;  %v15659_v17 = vpop.f32.mrb[218].mxu1  ;;  %v17310_v2 = vld [vmem:[#allocation12 + $0x98] sm:$0xff]   ;;  %16034 = vmatprep.subr.bf16.mxu1 %v17308_v38  ;;  %v678_v7 = vld [vmem:[#allocation3 + $0x20] sm:$0x1] }
 0x4cf   : > { %v15660_v14 = vpop.f32.mrb[219].mxu1  ;;  %15991 = vmatpush3.bf16.msra.mxu0 %v17307_v55 }
 0x4d0   : > { %v10728_v56 = vadd.f32 %v15658_v44, %v20855_v35  ;;  %v15661_v4 = vadd.f32 %v15660_v14, %v15659_v17  ;;  %v17309_v35 = vld [vmem:[#allocation12 + $0x50] sm:$0xff]   ;;  %v17313_v44 = vld [vmem:[#allocation12 + $0x58] sm:$0xff]   ;;  %v17314_v17 = vld [vmem:[#allocation12 + $0xa0] sm:$0xff]  }
 0x4d1   : > { %15992 = vmatprep.subr.bf16.mxu0 %v17309_v35  ;;  %16035 = vmatpush3.bf16.msra.mxu1 %v17310_v2  ;;  %v711_v14 = vld [vmem:[#allocation3 + $0x2c] sm:$0x1] }
 0x4d2   : > { %v10731_v34 = vadd.f32 %v15661_v4, %v20858_v48  ;;  %v20899_v60 = vadd.f32 %v20706_v5, %v10728_v56  ;;  %v17311_v48 = vld [vmem:[#allocation12 + $0x10] sm:$0xff]   ;;  %v679_v5 = vsel %vm18802_vm3, 0, %v678_v7  ;;  %16036 = vmatprep.subr.bf16.mxu1 %v17312_v12  ;;  %v17316_v56 = vld [vmem:[#allocation12 + $0xe8] sm:$0xff]   ;;  %v17317_v4 = vld [vmem:[#allocation12 + $0x60] sm:$0xff]  }
 0x4d3   : > { %680 = vst [vmem:[#allocation3 + $0x20] sm:$0x1] %v679_v5  ;;  %15993 = vmatpush3.bf16.msra.mxu0 %v17311_v48 }
 0x4d4   : > { %v15662_v13 = vpop.f32.mrb[220].mxu1  ;;  %v20902_v45 = vadd.f32 %v20710_v50, %v10731_v34  ;;  %v709_v50 = vsel %vm18822_vm9, 0, %v708_v29  ;;  %15994 = vmatprep.subr.bf16.mxu0 %v17313_v44 }
 0x4d5   : > { %v15663_v20 = vpop.f32.mrb[221].mxu1  ;;  %710 = vst [vmem:[#allocation3 + $0x24] sm:$0x1] %v709_v50  ;;  %16037 = vmatpush3.bf16.msra.mxu1 %v17314_v17 }
 0x4d6   : > { %v15664_v46 = vadd.f32 %v15663_v20, %v15662_v13  ;;  %v15665_v36 = vpop.f32.mrb[222].mxu1  ;;  %16038 = vmatprep.subr.bf16.mxu1 %v17316_v56  ;;  %v17319_v20 = vld [vmem:[#allocation12 + $0x20] sm:$0xff]  }
 0x4d7   : > { %v15666_v15 = vpop.f32.mrb[223].mxu1  ;;  %15995 = vmatpush3.bf16.msra.mxu0 %v17315_v16 }
 0x4d8   : > { %v10736_v24 = vadd.f32 %v15664_v46, %v20865_v8  ;;  %v15667_v42 = vadd.f32 %v15666_v15, %v15665_v36  ;;  %v712_v8 = vsel %vm18822_vm9, 0, %v711_v14  ;;  %15996 = vmatprep.subr.bf16.mxu0 %v17317_v4  ;;  %v17320_v46 = vld [vmem:[#allocation12 + $0xf0] sm:$0xff]   ;;  %v17321_v36 = vld [vmem:[#allocation12 + $0x68] sm:$0xff]   ;;  %v17324_v14 = vld [vmem:[#allocation12 + $0xf8] sm:$0xff]  }
 0x4d9   : > { %713 = vst [vmem:[#allocation3 + $0x2c] sm:$0x1] %v712_v8  ;;  %16039 = vmatpush3.bf16.msra.mxu1 %v17318_v51  ;;  %v17322_v15 = vld [vmem:[#allocation12 + $0xb0] sm:$0xff]   ;;  %v690_v51 = vld [vmem:[#allocation3 + $0x40] sm:$0x1] }
 0x4da   : > { %v10739_v55 = vadd.f32 %v15667_v42, %v20868_v27  ;;  %v20911_v3 = vadd.f32 %v20728_v63, %v10736_v24  ;;  %v684_v63 = vld [vmem:[#allocation3 + $0x30] sm:$0x1]  ;;  %v714_v27 = vld [vmem:[#allocation3 + $0x34] sm:$0x1]  ;;  %16040 = vmatprep.subr.bf16.mxu1 %v17320_v46  ;;  %v17323_v24 = vld [vmem:[#allocation12 + $0x28] sm:$0xff]  }
 0x4db   : > { %v685_v35 = vsel %vm18802_vm3, 0, %v684_v63  ;;  %v715_v2 = vsel %vm18822_vm9, 0, %v714_v27  ;;  %15997 = vmatpush3.bf16.msra.mxu0 %v17319_v20  ;;  %v717_v42 = vld [vmem:[#allocation3 + $0x3c] sm:$0x1]  ;;  %v691_v63 = vsel %vm18802_vm3, 0, %v690_v51  ;;  %v17334_v20 = vld [vmem:[#allocation12 + $0x78] sm:$0xff]  }
 0x4dc   : > { %v15724_v34 = vpop.f32.mrb[224].mxu1  ;;  %v20918_v13 = vadd.f32 %v20734_v52, %v10739_v55  ;;  %686 = vst [vmem:[#allocation3 + $0x30] sm:$0x1] %v685_v35  ;;  %716 = vst [vmem:[#allocation3 + $0x34] sm:$0x1] %v715_v2  ;;  %15998 = vmatprep.subr.bf16.mxu0 %v17321_v36  ;;  %v718_v44 = vsel %vm18822_vm9, 0, %v717_v42 }
 0x4dd   : > { %v15725_v38 = vpop.f32.mrb[225].mxu1  ;;  %v687_v52 = vld [vmem:[#allocation3 + $0x38] sm:$0x1]  ;;  %719 = vst [vmem:[#allocation3 + $0x3c] sm:$0x1] %v718_v44  ;;  %16041 = vmatpush3.bf16.msra.mxu1 %v17322_v15  ;;  %v17325_v55 = vld [vmem:[#allocation12 + $0x70] sm:$0xff]  }
 0x4de   : > { %v15726_v7 = vadd.f32 %v15725_v38, %v15724_v34  ;;  %v15727_v29 = vpop.f32.mrb[226].mxu1  ;;  %v688_v5 = vsel %vm18802_vm3, 0, %v687_v52  ;;  %16042 = vmatprep.subr.bf16.mxu1 %v17324_v14  ;;  %v17327_v34 = vld [vmem:[#allocation12 + $0x30] sm:$0xff]   ;;  %v17333_v27 = vld [vmem:[#allocation12 + $0x1c0] sm:$0xff]   ;;  %692 = vst [vmem:[#allocation3 + $0x40] sm:$0x1] %v691_v63 }
 0x4df   : > { %v15728_v48 = vpop.f32.mrb[227].mxu1  ;;  %689 = vst [vmem:[#allocation3 + $0x38] sm:$0x1] %v688_v5  ;;  %15999 = vmatpush3.bf16.msra.mxu0 %v17323_v24  ;;  %v696_v2 = vld [vmem:[#allocation3 + $0x4] sm:$0x1]  ;;  %v17336_v36 = vld [vmem:[#allocation12 + $0x38] sm:$0xff]  }
 0x4e0   : > { %v10842_v50 = vadd.f32 %v15726_v7, %v20877_v54  ;;  %v15729_v12 = vadd.f32 %v15728_v48, %v15727_v29  ;;  %16000 = vmatprep.subr.bf16.mxu0 %v17325_v55  ;;  %v697_v46 = vsel %vm18822_vm9, 0, %v696_v2  ;;  %v666_v52 = vld [vmem:[#allocation3] sm:$0x1]  ;;  %v17340_v48 = vld [vmem:[#allocation12 + $0x140] sm:$0xff]  }
 0x4e1   : > { %16043 = vmatpush3.bf16.msra.mxu1 %v17326_v32  ;;  %698 = vst [vmem:[#allocation3 + $0x4] sm:$0x1] %v697_v46 }
 0x4e2   : > { %v10845_v17 = vadd.f32 %v15729_v12, %v20880_v28  ;;  %v20931_v16 = vadd.f32 %v20752_v25, %v10842_v50  ;;  %v720_v28 = vld [vmem:[#allocation3 + $0x44] sm:$0x1]  ;;  %16108 = vmatprep.subr.bf16.mxu1 %v17333_v27 }
 0x4e3   : > { %16001 = vmatpush3.bf16.msra.mxu0 %v17327_v34 }
 0x4e4   : > { %v15730_v61 = vpop.f32.mrb[228].mxu1  ;;  %v20934_v54 = vadd.f32 %v20756_v30, %v10845_v17  ;;  %v721_v30 = vsel %vm18822_vm9, 0, %v720_v28  ;;  %16002 = vmatprep.subr.bf16.mxu0 %v17334_v20 }
 0x4e5   : > { %v15731_v8 = vpop.f32.mrb[229].mxu1  ;;  %722 = vst [vmem:[#allocation3 + $0x44] sm:$0x1] %v721_v30 }
 0x4e6   : > { %v15732_v56 = vadd.f32 %v15731_v8, %v15730_v61  ;;  %v15733_v4 = vpop.f32.mrb[230].mxu1 }
 0x4e7   : > { %v15734_v25 = vpop.f32.mrb[231].mxu1  ;;  %16003 = vmatpush3.bf16.msra.mxu0 %v17336_v36 }
 0x4e8   : > { %v10850_v38 = vadd.f32 %v15732_v56, %v20883_v26  ;;  %v15735_v35 = vadd.f32 %v15734_v25, %v15733_v4  ;;  %v667_v26 = vsel %vm18802_vm3, 0, %v666_v52  ;;  %16068 = vmatprep.subr.bf16.mxu0 %v17340_v48 }
 0x4e9   : > { %668 = vst [vmem:[#allocation3] sm:$0x1] %v667_v26 }
 0x4ea   : > { %v10853_v7 = vadd.f32 %v15735_v35, %v20886_v39  ;;  %v10915_v29 = vadd.f32 %v20768_v62, %v10850_v38 }
 0x4ec   : > { %v15736_v15 = vpop.f32.mrb[232].mxu1  ;;  %v10918_v5 = vadd.f32 %v20772_v59, %v10853_v7 }
 0x4ed   : > { %v15737_v50 = vpop.f32.mrb[233].mxu1 }
 0x4ee   : > { %v15738_v12 = vadd.f32 %v15737_v50, %v15736_v15  ;;  %v15739_v24 = vpop.f32.mrb[234].mxu1 }
 0x4ef   : > { %v15740_v42 = vpop.f32.mrb[235].mxu1 }
 0x4f0   : > { %v10858_v39 = vadd.f32 %v15738_v12, %v20899_v60  ;;  %v15741_v62 = vadd.f32 %v15740_v42, %v15739_v24 }
 0x4f2   : > { %v10861_v44 = vadd.f32 %v15741_v62, %v20902_v45  ;;  %v10923_v17 = vadd.f32 %v20782_v31, %v10858_v39  ;;  %v723_v39 = vld [vmem:[#allocation3 + $0x4c] sm:$0x1] }
 0x4f4   : > { %v15742_v61 = vpop.f32.mrb[236].mxu1  ;;  %v10926_v14 = vadd.f32 %v20787_v47, %v10861_v44 }
 0x4f5   : > { %v15743_v55 = vpop.f32.mrb[237].mxu1 }
 0x4f6   : > { %v15744_v32 = vadd.f32 %v15743_v55, %v15742_v61  ;;  %v15745_v59 = vpop.f32.mrb[238].mxu1 }
 0x4f7   : > { %v15746_v8 = vpop.f32.mrb[239].mxu1 }
 0x4f8   : > { %v10866_v56 = vadd.f32 %v15744_v32, %v20911_v3  ;;  %v15747_v4 = vadd.f32 %v15746_v8, %v15745_v59 }
 0x4fa   : > { %v10869_v51 = vadd.f32 %v15747_v4, %v20918_v13  ;;  %v10931_v28 = vadd.f32 %v20797_v41, %v10866_v56 }
 0x4fc   : > { %v15804_v60 = vpop.f32.mrb[240].mxu1  ;;  %v10934_v34 = vadd.f32 %v20800_v58, %v10869_v51 }
 0x4fd   : > { %v15805_v45 = vpop.f32.mrb[241].mxu1 }
 0x4fe   : > { %v15806_v25 = vadd.f32 %v15805_v45, %v15804_v60  ;;  %v15807_v31 = vpop.f32.mrb[242].mxu1 }
 0x4ff   : > { %v15808_v63 = vpop.f32.mrb[243].mxu1 }
 0x500   : > { %v10972_v47 = vadd.f32 %v15806_v25, %v20931_v16  ;;  %v15809_v30 = vadd.f32 %v15808_v63, %v15807_v31 }
 0x502   : > { %v10975_v27 = vadd.f32 %v15809_v30, %v20934_v54  ;;  %v11037_v38 = vadd.f32 %v20805_v18, %v10972_v47 }
 0x504   : > { %v15810_v3 = vpop.f32.mrb[244].mxu1  ;;  %v11040_v35 = vadd.f32 %v20808_v37, %v10975_v27 }
 0x505   : > { %v15811_v13 = vpop.f32.mrb[245].mxu1 }
 0x506   : > { %v15812_v2 = vadd.f32 %v15811_v13, %v15810_v3  ;;  %v15813_v41 = vpop.f32.mrb[246].mxu1 }
 0x507   : > { %v15814_v20 = vpop.f32.mrb[247].mxu1 }
 0x508   : > { %v10980_v46 = vadd.f32 %v15812_v2, %v10915_v29  ;;  %v15815_v58 = vadd.f32 %v15814_v20, %v15813_v41  ;;  %v693_v29 = vld [vmem:[#allocation3 + $0x48] sm:$0x1] }
 0x50a   : > { %v10983_v36 = vadd.f32 %v15815_v58, %v10918_v5  ;;  %v11045_v7 = vadd.f32 %v20813_v9, %v10980_v46  ;;  %v694_v9 = vsel %vm18802_vm3, 0, %v693_v29 }
 0x50b   : > { %695 = vst [vmem:[#allocation3 + $0x48] sm:$0x1] %v694_v9 }
 0x50c   : > { %v15816_v52 = vpop.f32.mrb[248].mxu1  ;;  %v11048_v16 = vadd.f32 %v20816_v6, %v10983_v36  ;;  %v724_v6 = vsel %vm18822_vm9, 0, %v723_v39 }
 0x50d   : > { %v15817_v48 = vpop.f32.mrb[249].mxu1  ;;  %725 = vst [vmem:[#allocation3 + $0x4c] sm:$0x1] %v724_v6 }
 0x50e   : > { %v15818_v26 = vadd.f32 %v15817_v48, %v15816_v52  ;;  %v15819_v54 = vpop.f32.mrb[250].mxu1 }
 0x50f   : > { %v15820_v15 = vpop.f32.mrb[251].mxu1 }
 0x510   : > { %v10988_v18 = vadd.f32 %v15818_v26, %v10923_v17  ;;  %v15821_v50 = vadd.f32 %v15820_v15, %v15819_v54 }
 0x512   : > { %v10991_v12 = vadd.f32 %v15821_v50, %v10926_v14  ;;  %v11053_v37 = vadd.f32 %v20821_v33, %v10988_v18 }
 0x514   : > { %v15822_v24 = vpop.f32.mrb[252].mxu1  ;;  %v11056_v42 = vadd.f32 %v20824_v57, %v10991_v12 }
 0x515   : > { %v15823_v5 = vpop.f32.mrb[253].mxu1 }
 0x516   : > { %v15824_v62 = vadd.f32 %v15823_v5, %v15822_v24  ;;  %v15825_v44 = vpop.f32.mrb[254].mxu1 }
 0x517   : > { %v15826_v17 = vpop.f32.mrb[255].mxu1 }
 0x518   : > { %v10996_v61 = vadd.f32 %v15824_v62, %v10931_v28  ;;  %v15827_v14 = vadd.f32 %v15826_v17, %v15825_v44 }
 0x51a   : > { %v10999_v33 = vadd.f32 %v15827_v14, %v10934_v34  ;;  %v11061_v55 = vadd.f32 %v20828_v21, %v10996_v61  ;;  %v11375_v14 = vld [vmem:[#allocation3 + $0x8] sm:$0xf] }
 0x51c   : > { %v15884_v57 = vpop.f32.mrb[0].mxu1  ;;  %v11064_v32 = vadd.f32 %v20830_v43, %v10999_v33 }
 0x51d   : > { %v15885_v59 = vpop.f32.mrb[1].mxu1 }
 0x51e   : > { %v15886_v8 = vadd.f32 %v15885_v59, %v15884_v57  ;;  %v15887_v56 = vpop.f32.mrb[2].mxu1 }
 0x51f   : > { %v15888_v4 = vpop.f32.mrb[3].mxu1 }
 0x520   : > { %v11102_v51 = vadd.f32 %v15886_v8, %v11037_v38  ;;  %v15889_v0 = vadd.f32 %v15888_v4, %v15887_v56  ;;  %v11381_v56 = vld [vmem:[#allocation3 + $0x10] sm:$0xf]  ;;  %v11384_v4 = vld [vmem:[#allocation3 + $0x14] sm:$0x1] }
 0x522   : > { %v11105_v60 = vadd.f32 %v15889_v0, %v11040_v35  ;;  %v11167_v45 = vadd.f32 %v20834_v53, %v11102_v51 }
 0x524   : > { %v15890_v25 = vpop.f32.mrb[4].mxu1  ;;  %v11170_v31 = vadd.f32 %v20836_v49, %v11105_v60 }
 0x525   : > { %v15891_v28 = vpop.f32.mrb[5].mxu1 }
 0x526   : > { %v15892_v63 = vadd.f32 %v15891_v28, %v15890_v25  ;;  %v15893_v34 = vpop.f32.mrb[6].mxu1 }
 0x527   : > { %v15894_v47 = vpop.f32.mrb[7].mxu1 }
 0x528   : > { %v11110_v21 = vadd.f32 %v15892_v63, %v11045_v7  ;;  %v15895_v30 = vadd.f32 %v15894_v47, %v15893_v34 }
 0x52a   : > { %v11113_v27 = vadd.f32 %v15895_v30, %v11048_v16  ;;  %v11175_v43 = vadd.f32 %v20844_v10, %v11110_v21 }
 0x52c   : > { %v15896_v3 = vpop.f32.mrb[8].mxu1  ;;  %v11178_v13 = vadd.f32 %v20846_v11, %v11113_v27 }
 0x52d   : > { %v15897_v38 = vpop.f32.mrb[9].mxu1 }
 0x52e   : > { %v15898_v2 = vadd.f32 %v15897_v38, %v15896_v3  ;;  %v15899_v35 = vpop.f32.mrb[10].mxu1 }
 0x52f   : > { %v15900_v41 = vpop.f32.mrb[11].mxu1 }
 0x530   : > { %v11118_v53 = vadd.f32 %v15898_v2, %v11053_v37  ;;  %v15901_v20 = vadd.f32 %v15900_v41, %v15899_v35  ;;  %v11431_v2 = vld [vmem:[#allocation3 + $0x4] sm:$0x1]  ;;  %v11439_v35 = vld [vmem:[#allocation3] sm:$0xe] }
 0x532   : > { %v11121_v46 = vadd.f32 %v15901_v20, %v11056_v42  ;;  %v20975_v49 = vadd.f32 %v20850_v19, %v11118_v53 }
 0x534   : > { %v15902_v58 = vpop.f32.mrb[12].mxu1  ;;  %v20978_v36 = vadd.f32 %v20852_v1, %v11121_v46  ;;  %v20994_v46 = vld [vmem:[#allocation3] sm:$0xf] }
 0x535   : > { %v15903_v7 = vpop.f32.mrb[13].mxu1 }
 0x536   : > { %v15904_v52 = vadd.f32 %v15903_v7, %v15902_v58  ;;  %v15905_v10 = vpop.f32.mrb[14].mxu1  ;;  %v11387_v58 = vld [vmem:[#allocation3 + $0x18] sm:$0xf]  ;;  %v11390_v7 = vld [vmem:[#allocation3 + $0x1c] sm:$0x1] }
 0x537   : > { %v15906_v16 = vpop.f32.mrb[15].mxu1 }
 0x538   : > { %v11126_v48 = vadd.f32 %v15904_v52, %v11061_v55  ;;  %v15907_v11 = vadd.f32 %v15906_v16, %v15905_v10 }
 0x53a   : > { %v11129_v26 = vadd.f32 %v15907_v11, %v11064_v32  ;;  %v20981_v54 = vadd.f32 %v20860_v23, %v11126_v48 }
 0x53c   : > { %v15964_v15 = vpop.f32.mrb[16].mxu1  ;;  %v20984_v18 = vadd.f32 %v20862_v40, %v11129_v26  ;;  %v11378_v40 = vld [vmem:[#allocation3 + $0xc] sm:$0x1] }
 0x53d   : > { %v15965_v19 = vpop.f32.mrb[17].mxu1 }
 0x53e   : > { %v15966_v50 = vadd.f32 %v15965_v19, %v15964_v15  ;;  %v15967_v12 = vpop.f32.mrb[18].mxu1  ;;  %v11393_v15 = vld [vmem:[#allocation3 + $0x20] sm:$0xf]  ;;  %v11396_v19 = vld [vmem:[#allocation3 + $0x24] sm:$0x1] }
 0x53f   : > { %v15968_v37 = vpop.f32.mrb[19].mxu1 }
 0x540   : > { %v11232_v1 = vadd.f32 %v15966_v50, %v11167_v45  ;;  %v15969_v24 = vadd.f32 %v15968_v37, %v15967_v12 }
 0x542   : > { %v14571_v42 = vpack.c.bf16 %v11232_v1, %v11232_v1  ;;  %v11235_v29 = vadd.f32 %v15969_v24, %v11170_v31  ;;  %v14374_v1 = vcombine.low %v11439_v35, %v11431_v2  ;;  %v20999_v24 = vcombine.low %v20994_v46, %v11431_v2 }
 0x544   : > { %v11295_v39 = vshrl.u32 %v14571_v42, 16  ;;  %v14572_v5 = vpack.c.bf16 %v11235_v29, %v11235_v29  ;;  %v15970_v9 = vpop.f32.mrb[20].mxu1  ;;  %v11298_v44 = vshll.u32 %v14571_v42, 16 }
 0x545   : > { %v15971_v6 = vpop.f32.mrb[21].mxu1 }
 0x546   : > { %v11297_v62 = vrot.slane %v11295_v39, 7  ;;  %v11303_v23 = vshrl.u32 %v14572_v5, 16  ;;  %v15972_v17 = vadd.f32 %v15971_v6, %v15970_v9  ;;  %v15973_v61 = vpop.f32.mrb[22].mxu1  ;;  %v11306_v33 = vshll.u32 %v14572_v5, 16 }
 0x547   : > { %v15974_v55 = vpop.f32.mrb[23].mxu1 }
 0x548   : > { %v11300_v57 = vor.u32 %v11298_v44, %v11297_v62  ;;  %v11301_v32 = vrot.slane %v11297_v62, 4  ;;  %v11305_v59 = vrot.slane %v11303_v23, 7  ;;  %v11240_v8 = vadd.f32 %v15972_v17, %v11175_v43 }
 0x549   : > { %v15975_v51 = vadd.f32 %v15974_v55, %v15973_v61  ;;  %v11399_v61 = vld [vmem:[#allocation3 + $0x28] sm:$0xf] }
 0x54a   : > { %v11376_v60 = vsel %vm18934_vm13, %v11300_v57, %v11375_v14  ;;  %v11379_v45 = vsel %vm18802_vm3, %v11301_v32, %v11378_v40  ;;  %v11308_v25 = vor.u32 %v11306_v33, %v11305_v59  ;;  %v11309_v31 = vrot.slane %v11305_v59, 4  ;;  %v11402_v32 = vld [vmem:[#allocation3 + $0x2c] sm:$0x1] }
 0x54b   : > { %11377 = vst [vmem:[#allocation3 + $0x8] sm:$0xf] %v11376_v60  ;;  %11380 = vst [vmem:[#allocation3 + $0xc] sm:$0x1] %v11379_v45  ;;  %v14573_v28 = vpack.c.bf16 %v11240_v8, %v11240_v8  ;;  %v11243_v63 = vadd.f32 %v15975_v51, %v11178_v13  ;;  %v11616_v60 = vrot.slane %v14374_v1, 1  ;;  %v17341_v1 = vld [vmem:[#allocation12 + $0x188] sm:$0xff]  }
 0x54c   : > { %v11382_v34 = vsel %vm18934_vm13, %v11308_v25, %v11381_v56  ;;  %v11385_v47 = vsel %vm18802_vm3, %v11309_v31, %v11384_v4  ;;  %v15976_v21 = vpop.f32.mrb[24].mxu1  ;;  %v11539_v25 = vshll.u32 %v20999_v24, 16 }
 0x54d   : > { %11383 = vst [vmem:[#allocation3 + $0x10] sm:$0xf] %v11382_v34  ;;  %11386 = vst [vmem:[#allocation3 + $0x14] sm:$0x1] %v11385_v47  ;;  %v11311_v30 = vshrl.u32 %v14573_v28, 16  ;;  %v14574_v27 = vpack.c.bf16 %v11243_v63, %v11243_v63  ;;  %v15977_v43 = vpop.f32.mrb[25].mxu1 }
 0x54e   : > { %v15978_v3 = vadd.f32 %v15977_v43, %v15976_v21  ;;  %v15979_v38 = vpop.f32.mrb[26].mxu1  ;;  %v11314_v53 = vshll.u32 %v14573_v28, 16  ;;  %v11405_v47 = vld [vmem:[#allocation3 + $0x30] sm:$0xf]  ;;  %v11408_v21 = vld [vmem:[#allocation3 + $0x34] sm:$0x1] }
 0x54f   : > { %v11313_v41 = vrot.slane %v11311_v30, 7  ;;  %v11319_v20 = vshrl.u32 %v14574_v27, 16  ;;  %v15980_v13 = vpop.f32.mrb[27].mxu1  ;;  %v11322_v26 = vshll.u32 %v14574_v27, 16 }
 0x550   : > { %v11248_v52 = vadd.f32 %v15978_v3, %v20975_v49  ;;  %v15981_v10 = vadd.f32 %v15980_v13, %v15979_v38 }
 0x551   : > { %v11316_v16 = vor.u32 %v11314_v53, %v11313_v41  ;;  %v11317_v48 = vrot.slane %v11313_v41, 4  ;;  %v11321_v11 = vrot.slane %v11319_v20, 7  ;;  %v17335_v53 = vld [vmem:[#allocation12 + $0x180] sm:$0xff]   ;;  %v11541_v20 = vrot.slane %v11539_v25, 1 }
 0x552   : > { %v14575_v50 = vpack.c.bf16 %v11248_v52, %v11248_v52  ;;  %v11251_v12 = vadd.f32 %v15981_v10, %v20978_v36  ;;  %v11432_v37 = vld [vmem:[#allocation3 + $0xc] sm:$0x1]  ;;  %v11440_v5 = vld [vmem:[#allocation3 + $0x8] sm:$0xe]  ;;  %v17339_v10 = vld [vmem:[#allocation12 + $0x1c8] sm:$0xff]  }
 0x553   : > { %v11388_v42 = vsel %vm18934_vm13, %v11316_v16, %v11387_v58  ;;  %v11391_v49 = vsel %vm18802_vm3, %v11317_v48, %v11390_v7  ;;  %v11324_v29 = vor.u32 %v11322_v26, %v11321_v11  ;;  %v11325_v39 = vrot.slane %v11321_v11, 4  ;;  %v21005_v36 = vld [vmem:[#allocation3 + $0x8] sm:$0xf]  ;;  %v11411_v11 = vld [vmem:[#allocation3 + $0x38] sm:$0xf] }
 0x554   : > { %11389 = vst [vmem:[#allocation3 + $0x18] sm:$0xf] %v11388_v42  ;;  %11392 = vst [vmem:[#allocation3 + $0x1c] sm:$0x1] %v11391_v49  ;;  %v11327_v9 = vshrl.u32 %v14575_v50, 16  ;;  %v14576_v6 = vpack.c.bf16 %v11251_v12, %v11251_v12  ;;  %v15982_v62 = vpop.f32.mrb[28].mxu1  ;;  %v14375_v33 = vcombine.low %v11440_v5, %v11432_v37 }
 0x555   : > { %v21007_v44 = vld [vmem:[#allocation3 + $0x10] sm:$0xf]  ;;  %v11394_v23 = vsel %vm18934_vm13, %v11324_v29, %v11393_v15  ;;  %v11397_v17 = vsel %vm18802_vm3, %v11325_v39, %v11396_v19  ;;  %v15983_v14 = vpop.f32.mrb[29].mxu1  ;;  %v11330_v57 = vshll.u32 %v14575_v50, 16  ;;  %v21017_v27 = vld [vmem:[#allocation3 + $0x8] sm:$0xf] }
 0x556   : > { %v14417_v40 = vcombine.low %v21005_v36, %v21007_v44  ;;  %11395 = vst [vmem:[#allocation3 + $0x20] sm:$0xf] %v11394_v23  ;;  %11398 = vst [vmem:[#allocation3 + $0x24] sm:$0x1] %v11397_v17  ;;  %v11329_v55 = vrot.slane %v11327_v9, 7  ;;  %v11335_v59 = vshrl.u32 %v14576_v6, 16  ;;  %v15984_v8 = vadd.f32 %v15983_v14, %v15982_v62 }
 0x557   : > { %v15985_v56 = vpop.f32.mrb[30].mxu1  ;;  %v11338_v4 = vshll.u32 %v14576_v6, 16  ;;  %v11617_v45 = vrot.slane %v14375_v33, 1  ;;  %v14367_v52 = vcombine.low %v21017_v27, %v11432_v37  ;;  %v11414_v50 = vld [vmem:[#allocation3 + $0x3c] sm:$0x1]  ;;  %v17348_v9 = vld [vmem:[#allocation12 + $0x1d0] sm:$0xff]  }
 0x558   : > { %v15986_v51 = vpop.f32.mrb[31].mxu1  ;;  %12673 = vmatprep.mubr.bf16.mxu1 %v14417_v40  ;;  %v11332_v31 = vor.u32 %v11330_v57, %v11329_v55  ;;  %v11333_v28 = vrot.slane %v11329_v55, 4  ;;  %v11337_v63 = vrot.slane %v11335_v59, 7  ;;  %v11256_v34 = vadd.f32 %v15984_v8, %v20981_v54  ;;  %v11417_v42 = vld [vmem:[#allocation3 + $0x40] sm:$0xf]  ;;  %v17345_v25 = vld [vmem:[#allocation12 + $0x100] sm:$0xff]  }
 0x559   : > { %v15987_v30 = vadd.f32 %v15986_v51, %v15985_v56  ;;  %v11537_v54 = vshrl.u32 %v20999_v24, 16  ;;  %v14416_v7 = vcombine.low %v11616_v60, %v11617_v45  ;;  %v11420_v49 = vld [vmem:[#allocation3 + $0x44] sm:$0x1]  ;;  %v11544_v29 = vshrl.u32 %v14367_v52, 16  ;;  %v11441_v14 = vld [vmem:[#allocation3 + $0x10] sm:$0xe] }
 0x55a   : > { %v11400_v43 = vsel %vm18934_vm13, %v11332_v31, %v11399_v61  ;;  %v11403_v3 = vsel %vm18802_vm3, %v11333_v28, %v11402_v32  ;;  %v11340_v38 = vor.u32 %v11338_v4, %v11337_v63  ;;  %v11341_v2 = vrot.slane %v11337_v63, 4  ;;  %v11433_v61 = vld [vmem:[#allocation3 + $0x14] sm:$0x1]  ;;  %v21036_v57 = vld [vmem:[#allocation3 + $0x10] sm:$0xf]  ;;  %v17350_v4 = vld [vmem:[#allocation12 + $0x190] sm:$0xff]  }
 0x55b   : > { %11401 = vst [vmem:[#allocation3 + $0x28] sm:$0xf] %v11400_v43  ;;  %11404 = vst [vmem:[#allocation3 + $0x2c] sm:$0x1] %v11403_v3  ;;  %v14577_v35 = vpack.c.bf16 %v11256_v34, %v11256_v34  ;;  %v11259_v41 = vadd.f32 %v15987_v30, %v20984_v18  ;;  %12674 = vmatmul.mubr.bf16.vlgmr.msra.gmra.mrb[32].mxu1 %v14416_v7  ;;  %v11546_v18 = vshll.u32 %v14367_v52, 16  ;;  %v17355_v28 = vld [vmem:[#allocation12 + $0x1d8] sm:$0xff]  }
 0x55c   : > { %v11406_v13 = vsel %vm18934_vm13, %v11340_v38, %v11405_v47  ;;  %v11409_v58 = vsel %vm18802_vm3, %v11341_v2, %v11408_v21  ;;  %16109 = vmatpush3.bf16.msra.mxu1 %v17335_v53  ;;  %v11542_v37 = vor.u32 %v11541_v20, %v11537_v54  ;;  %v21032_v5 = vld [vmem:[#allocation3 + $0x18] sm:$0xf]  ;;  %v11434_v33 = vld [vmem:[#allocation3 + $0x1c] sm:$0x1]  ;;  %v14414_v60 = vcombine.low %v20994_v46, %v21017_v27  ;;  %v17349_v21 = vld [vmem:[#allocation12 + $0x148] sm:$0xff]  }
 0x55d   : > { %11407 = vst [vmem:[#allocation3 + $0x30] sm:$0xf] %v11406_v13  ;;  %11410 = vst [vmem:[#allocation3 + $0x34] sm:$0x1] %v11409_v58  ;;  %v11343_v16 = vshrl.u32 %v14577_v35, 16  ;;  %v14578_v48 = vpack.c.bf16 %v11259_v41, %v11259_v41  ;;  %v11346_v19 = vshll.u32 %v14577_v35, 16  ;;  %16110 = vmatprep.subr.bf16.mxu1 %v17339_v10  ;;  %v14376_v31 = vcombine.low %v11441_v14, %v11433_v61 }
 0x55e   : > { %v21030_v26 = vld [vmem:[#allocation3 + $0x20] sm:$0xf]  ;;  %v11548_v39 = vrot.slane %v11546_v18, 1  ;;  %v11442_v55 = vld [vmem:[#allocation3 + $0x18] sm:$0xe]  ;;  %v14368_v30 = vcombine.low %v21036_v57, %v11433_v61  ;;  %v17356_v35 = vld [vmem:[#allocation12 + $0x150] sm:$0xff]  }
 0x55f   : > { %v11345_v15 = vrot.slane %v11343_v16, 7  ;;  %v11351_v12 = vshrl.u32 %v14578_v48, 16  ;;  %v11354_v24 = vshll.u32 %v14578_v48, 16  ;;  %v14426_v17 = vcombine.low %v21032_v5, %v21030_v26  ;;  %v21042_v51 = vld [vmem:[#allocation3 + $0x18] sm:$0xf]  ;;  %v17351_v43 = vld [vmem:[#allocation12 + $0x108] sm:$0xff]  }
 0x560   : > { %v11549_v40 = vor.u32 %v11548_v39, %v11544_v29  ;;  %16111 = vmatpush3.bf16.msra.mxu1 %v17341_v1  ;;  %v14377_v47 = vcombine.low %v11442_v55, %v11434_v33  ;;  %v14369_v46 = vcombine.low %v21042_v51, %v11434_v33  ;;  %v11435_v27 = vld [vmem:[#allocation3 + $0x24] sm:$0x1]  ;;  %v11443_v3 = vld [vmem:[#allocation3 + $0x20] sm:$0xe]  ;;  %v11618_v38 = vrot.slane %v14376_v31, 1  ;;  %v17357_v54 = vld [vmem:[#allocation12 + $0x198] sm:$0xff]  }
 0x561   : > { %v11348_v6 = vor.u32 %v11346_v19, %v11345_v15  ;;  %v11349_v62 = vrot.slane %v11345_v15, 4  ;;  %v11353_v23 = vrot.slane %v11351_v12, 7  ;;  %12681 = vmatprep.mubr.bf16.mxu1 %v14426_v17  ;;  %16112 = vmatprep.subr.bf16.mxu1 %v17348_v9  ;;  %v11553_v0 = vshll.u32 %v14368_v30, 16  ;;  %v21054_v41 = vld [vmem:[#allocation3 + $0x20] sm:$0xf]  ;;  %v17364_v15 = vld [vmem:[#allocation12 + $0x1e0] sm:$0xff]  }
 0x562   : > { %v14415_v45 = vcombine.low %v11542_v37, %v11549_v40  ;;  %v11619_v2 = vrot.slane %v14377_v47, 1  ;;  %v11560_v53 = vshll.u32 %v14369_v46, 16  ;;  %v11436_v20 = vld [vmem:[#allocation3 + $0x2c] sm:$0x1]  ;;  %v11444_v13 = vld [vmem:[#allocation3 + $0x28] sm:$0xe]  ;;  %v14370_v37 = vcombine.low %v21054_v41, %v11435_v27 }
 0x563   : > { %v11412_v32 = vsel %vm18934_vm13, %v11348_v6, %v11411_v11  ;;  %v11415_v59 = vsel %vm18802_vm3, %v11349_v62, %v11414_v50  ;;  %v11356_v8 = vor.u32 %v11354_v24, %v11353_v23  ;;  %v11357_v56 = vrot.slane %v11353_v23, 4  ;;  %v21056_v10 = vld [vmem:[#allocation3 + $0x28] sm:$0xf]  ;;  %v21062_v1 = vld [vmem:[#allocation3 + $0xc] sm:$0x1]  ;;  %v17366_v61 = vld [vmem:[#allocation12 + $0x1a0] sm:$0xff]  }
 0x564   : > { %11413 = vst [vmem:[#allocation3 + $0x38] sm:$0xf] %v11412_v32  ;;  %11416 = vst [vmem:[#allocation3 + $0x3c] sm:$0x1] %v11415_v59  ;;  %12608 = vmatprep.mubr.bf16.mxu0 %v14415_v45  ;;  %16113 = vmatpush3.bf16.msra.mxu1 %v17350_v4  ;;  %v21052_v22 = vld [vmem:[#allocation3 + $0x30] sm:$0xf]  ;;  %v14425_v58 = vcombine.low %v11618_v38, %v11619_v2  ;;  %v14378_v50 = vcombine.low %v11443_v3, %v11435_v27 }
 0x565   : > { %v11418_v63 = vsel %vm18934_vm13, %v11356_v8, %v11417_v42  ;;  %v11421_v34 = vsel %vm18802_vm3, %v11357_v56, %v11420_v49  ;;  %12609 = vmatmul.mubr.bf16.vlgmr.msra.gmra.mrb[32].mxu0 %v14414_v60  ;;  %16114 = vmatprep.subr.bf16.mxu1 %v17355_v28  ;;  %v11551_v7 = vshrl.u32 %v14368_v30, 16  ;;  %v11555_v52 = vrot.slane %v11553_v0, 1  ;;  %v21058_v16 = vld [vmem:[#allocation3 + $0x28] sm:$0xf]  ;;  %v17365_v49 = vld [vmem:[#allocation12 + $0x158] sm:$0xff]   ;;  %v17371_v56 = vld [vmem:[#allocation12 + $0x1e8] sm:$0xff]  }
 0x566   : > { %11419 = vst [vmem:[#allocation3 + $0x40] sm:$0xf] %v11418_v63  ;;  %11422 = vst [vmem:[#allocation3 + $0x44] sm:$0x1] %v11421_v34  ;;  %16069 = vmatpush3.bf16.msra.mxu0 %v17345_v25  ;;  %v11558_v48 = vshrl.u32 %v14369_v46, 16  ;;  %v11562_v11 = vrot.slane %v11560_v53, 1  ;;  %v14435_v18 = vcombine.low %v21056_v10, %v21052_v22  ;;  %12682 = vmatmul.mubr.bf16.gmra.mrb[36].mxu1 %v14425_v58 }
 0x567   : > { %16070 = vmatprep.subr.bf16.mxu0 %v17349_v21  ;;  %v11556_v19 = vor.u32 %v11555_v52, %v11551_v7  ;;  %v14379_v12 = vcombine.low %v11444_v13, %v11436_v20  ;;  %v17361_v42 = vld [vmem:[#allocation12 + $0x110] sm:$0xff]   ;;  %v14371_v29 = vcombine.low %v21058_v16, %v11436_v20  ;;  %v21066_v39 = vld [vmem:[#allocation3 + $0x14] sm:$0x1]  ;;  %v11620_v9 = vrot.slane %v14378_v50, 1  ;;  %v11445_v33 = vld [vmem:[#allocation3 + $0x30] sm:$0xe] }
 0x568   : > { %v11563_v24 = vor.u32 %v11562_v11, %v11558_v48  ;;  %16115 = vmatpush3.bf16.msra.mxu1 %v17357_v54  ;;  %12689 = vmatprep.mubr.bf16.mxu1 %v14435_v18  ;;  %v21070_v23 = vld [vmem:[#allocation3 + $0x34] sm:$0x1]  ;;  %v11567_v14 = vshll.u32 %v14370_v37, 16  ;;  %v21074_v55 = vld [vmem:[#allocation3 + $0x10] sm:$0xf]  ;;  %v14423_v32 = vcombine.low %v21036_v57, %v21042_v51  ;;  %v21080_v45 = vcombine.low %v21005_v36, %v21062_v1  ;;  %v17372_v21 = vld [vmem:[#allocation12 + $0x160] sm:$0xff]  }
 0x569   : > { %v11621_v6 = vrot.slane %v14379_v12, 1  ;;  %16116 = vmatprep.subr.bf16.mxu1 %v17364_v15  ;;  %v11574_v8 = vshll.u32 %v14371_v29, 16  ;;  %v17367_v25 = vld [vmem:[#allocation12 + $0x118] sm:$0xff]   ;;  %v21084_v63 = vld [vmem:[#allocation3 + $0x18] sm:$0xf]  ;;  %v11565_v57 = vshrl.u32 %v14370_v37, 16  ;;  %v14380_v36 = vcombine.low %v11445_v33, %v21070_v23 }
 0x56a   : > { %16071 = vmatpush3.bf16.msra.mxu0 %v17351_v43  ;;  %v14424_v17 = vcombine.low %v11556_v19, %v11563_v24  ;;  %v11569_v31 = vrot.slane %v11567_v14, 1  ;;  %v21086_v34 = vld [vmem:[#allocation3 + $0x14] sm:$0x1]  ;;  %v11572_v51 = vshrl.u32 %v14371_v29, 16  ;;  %v21089_v30 = vld [vmem:[#allocation3 + $0x1c] sm:$0x1]  ;;  %v21093_v43 = vcombine.low %v21007_v44, %v21066_v39 }
 0x56b   : > { %16072 = vmatprep.subr.bf16.mxu0 %v17356_v35  ;;  %v21072_v40 = vld [vmem:[#allocation3 + $0x38] sm:$0xf]  ;;  %v14434_v59 = vcombine.low %v11620_v9, %v11621_v6  ;;  %v11438_v4 = vld [vmem:[#allocation3 + $0x3c] sm:$0x1]  ;;  %v11576_v47 = vrot.slane %v11574_v8, 1  ;;  %v17373_v46 = vld [vmem:[#allocation12 + $0x1a8] sm:$0xff]   ;;  %v14398_v0 = vcombine.low %v21074_v55, %v21086_v34  ;;  %v14399_v54 = vcombine.low %v21084_v63, %v21089_v30 }
 0x56c   : > { %v11446_v60 = vld [vmem:[#allocation3 + $0x38] sm:$0xe]  ;;  %12616 = vmatprep.mubr.bf16.mxu0 %v14424_v17  ;;  %16117 = vmatpush3.bf16.msra.mxu1 %v17366_v61  ;;  %v11570_v3 = vor.u32 %v11569_v31, %v11565_v57  ;;  %v17380_v2 = vld [vmem:[#allocation12 + $0x1f0] sm:$0xff]   ;;  %v21099_v44 = vld [vmem:[#allocation3 + $0x30] sm:$0xf]  ;;  %v11667_v13 = vshll.u32 %v21080_v45, 16  ;;  %v14432_v15 = vcombine.low %v21054_v41, %v21058_v16 }
 0x56d   : > { %v21068_v62 = vld [vmem:[#allocation3 + $0x40] sm:$0xf]  ;;  %12617 = vmatmul.mubr.bf16.gmra.mrb[36].mxu0 %v14423_v32  ;;  %v14381_v27 = vcombine.low %v11446_v60, %v11438_v4  ;;  %v11577_v38 = vor.u32 %v11576_v47, %v11572_v51  ;;  %16118 = vmatprep.subr.bf16.mxu1 %v17371_v56  ;;  %v17377_v35 = vld [vmem:[#allocation12 + $0x120] sm:$0xff]   ;;  %v11622_v7 = vrot.slane %v14380_v36, 1  ;;  %v17382_v48 = vld [vmem:[#allocation12 + $0x1b0] sm:$0xff]   ;;  %v11795_v11 = vshll.u32 %v14398_v0, 16 }
 0x56e   : > { %16073 = vmatpush3.bf16.msra.mxu0 %v17361_v42  ;;  %v14444_v28 = vcombine.low %v21072_v40, %v21068_v62  ;;  %12690 = vmatmul.mubr.bf16.gmra.mrb[40].mxu1 %v14434_v59  ;;  %v21101_v20 = vld [vmem:[#allocation3 + $0x38] sm:$0xf]  ;;  %v17381_v52 = vld [vmem:[#allocation12 + $0x168] sm:$0xff]   ;;  %v11674_v18 = vshll.u32 %v21093_v43, 16  ;;  %v11802_v19 = vshll.u32 %v14399_v54, 16  ;;  %v14372_v37 = vcombine.low %v21099_v44, %v21070_v23  ;;  %v17390_v9 = vld [vmem:[#allocation12 + $0x1f8] sm:$0xff]  }
 0x56f   : > { %16074 = vmatprep.subr.bf16.mxu0 %v17365_v49  ;;  %v11623_v53 = vrot.slane %v14381_v27, 1  ;;  %v14433_v58 = vcombine.low %v11570_v3, %v11577_v38  ;;  %v21107_v50 = vld [vmem:[#allocation3 + $0x8] sm:$0xe]  ;;  %v11464_v12 = vld [vmem:[#allocation3 + $0x10] sm:$0xe]  ;;  %v11797_v49 = vrot.slane %v11795_v11, 1  ;;  %v14373_v29 = vcombine.low %v21101_v20, %v11438_v4 }
 0x570   : > { %12697 = vmatprep.mubr.bf16.mxu1 %v14444_v28  ;;  %16119 = vmatpush3.bf16.msra.mxu1 %v17373_v46  ;;  %v21109_v24 = vld [vmem:[#allocation3 + $0x20] sm:$0xf]  ;;  %v21114_v6 = vld [vmem:[#allocation3 + $0x28] sm:$0xf]  ;;  %v21116_v41 = vld [vmem:[#allocation3 + $0x24] sm:$0x1]  ;;  %v14391_v4 = vcombine.low %v11464_v12, %v21066_v39  ;;  %v14390_v46 = vcombine.low %v21107_v50, %v21062_v1 }
 0x571   : > { %12624 = vmatprep.mubr.bf16.mxu0 %v14433_v58  ;;  %v14443_v42 = vcombine.low %v11622_v7, %v11623_v53  ;;  %16120 = vmatprep.subr.bf16.mxu1 %v17380_v2  ;;  %v11793_v16 = vshrl.u32 %v14398_v0, 16  ;;  %v11800_v17 = vshrl.u32 %v14399_v54, 16  ;;  %v11804_v61 = vrot.slane %v11802_v19, 1  ;;  %v17386_v14 = vld [vmem:[#allocation12 + $0x128] sm:$0xff]   ;;  %v21118_v33 = vld [vmem:[#allocation3 + $0x2c] sm:$0x1] }
 0x572   : > { %16075 = vmatpush3.bf16.msra.mxu0 %v17367_v25  ;;  %v21120_v32 = vrot.slane %v11667_v13, 1  ;;  %v11672_v59 = vshrl.u32 %v21093_v43, 16  ;;  %v11581_v23 = vshll.u32 %v14372_v37, 16  ;;  %v17391_v8 = vld [vmem:[#allocation12 + $0x170] sm:$0xff]   ;;  %v17392_v56 = vld [vmem:[#allocation12 + $0x1b8] sm:$0xff]   ;;  %v21124_v60 = vrot.slane %v11674_v18, 1 }
 0x573   : > { %16076 = vmatprep.subr.bf16.mxu0 %v17372_v21  ;;  %v11798_v25 = vor.u32 %v11797_v49, %v11793_v16  ;;  %v11805_v31 = vor.u32 %v11804_v61, %v11800_v17  ;;  %v11588_v28 = vshll.u32 %v14373_v29, 16  ;;  %v21126_v57 = vld [vmem:[#allocation3 + $0x48] sm:$0xf]  ;;  %v21128_v51 = vld [vmem:[#allocation3 + $0x4c] sm:$0x1]  ;;  %v14400_v39 = vcombine.low %v21109_v24, %v21116_v41  ;;  %v17404_v3 = vld [vmem:[#allocation16] sm:$0xff]  }
 0x574   : > { %16121 = vmatpush3.bf16.msra.mxu1 %v17382_v48  ;;  %v21130_v47 = vld [vmem:[#allocation3 + $0x1c] sm:$0x1]  ;;  %v11583_v21 = vrot.slane %v11581_v23, 1  ;;  %v17393_v36 = vld [vmem:[#allocation12 + $0x130] sm:$0xff]   ;;  %v14401_v27 = vcombine.low %v21114_v6, %v21118_v33  ;;  %v21138_v38 = vld [vmem:[#allocation3 + $0x24] sm:$0x1]  ;;  %v14420_v23 = vcombine.low %v21074_v55, %v21084_v63  ;;  %v11677_v63 = vor.u32 %v21124_v60, %v11672_v59 }
 0x575   : > { %12625 = vmatmul.mubr.bf16.gmra.mrb[40].mxu0 %v14432_v15  ;;  %16122 = vmatprep.subr.bf16.mxu1 %v17390_v9  ;;  %v14421_v2 = vcombine.low %v11798_v25, %v11805_v31  ;;  %v11579_v0 = vshrl.u32 %v14372_v37, 16  ;;  %v11590_v53 = vrot.slane %v11588_v28, 1  ;;  %v17396_v54 = vld [vmem:[#allocation12 + $0x178] sm:$0xff]   ;;  %v11745_v13 = vrot.slane %v14391_v4, 1  ;;  %v21152_v19 = vld [vmem:[#allocation3 + $0x38] sm:$0xf] }
 0x576   : > { %16077 = vmatpush3.bf16.msra.mxu0 %v17377_v35  ;;  %12698 = vmatmul.mubr.bf16.gmra.mrb[44].mxu1 %v14443_v42  ;;  %v11586_v35 = vshrl.u32 %v14373_v29, 16  ;;  %v11809_v58 = vshll.u32 %v14400_v39, 16  ;;  %v21140_v7 = vld [vmem:[#allocation3 + $0x30] sm:$0xf]  ;;  %v21142_v1 = vld [vmem:[#allocation3 + $0x34] sm:$0x1]  ;;  %v21150_v48 = vcombine.low %v21032_v5, %v21130_v47  ;;  %v21158_v12 = vcombine.low %v21030_v26, %v21138_v38 }
 0x577   : > { %16078 = vmatprep.subr.bf16.mxu0 %v17381_v52  ;;  %v21146_v52 = vcombine.low %v21126_v57, %v21128_v51  ;;  %12803 = vmatprep.mubr.bf16.mxu1 %v14421_v2  ;;  %v11584_v11 = vor.u32 %v11583_v21, %v11579_v0  ;;  %v11816_v15 = vshll.u32 %v14401_v27, 16  ;;  %v21154_v50 = vld [vmem:[#allocation3 + $0x3c] sm:$0x1]  ;;  %v11744_v42 = vrot.slane %v14390_v46, 1  ;;  %v11466_v29 = vld [vmem:[#allocation3 + $0x20] sm:$0xe] }
 0x578   : > { %v11591_v18 = vor.u32 %v11590_v53, %v11586_v35  ;;  %16123 = vmatpush3.bf16.msra.mxu1 %v17392_v56  ;;  %v11807_v49 = vshrl.u32 %v14400_v39, 16  ;;  %v11811_v37 = vrot.slane %v11809_v58, 1  ;;  %v11814_v9 = vshrl.u32 %v14401_v27, 16  ;;  %v17402_v17 = vld [vmem:[#allocation12 + $0x138] sm:$0xff]   ;;  %v21160_v61 = vld [vmem:[#allocation12 + $0x200] sm:$0xff]   ;;  %v17411_v55 = vld [vmem:[#allocation16 + $0x8] sm:$0xff]  }
 0x579   : > { %16292 = vmatprep.subr.bf16.mxu1 %v17404_v3  ;;  %v11818_v16 = vrot.slane %v11816_v15, 1  ;;  %v14441_v26 = vcombine.low %v21099_v44, %v21101_v20  ;;  %v11465_v56 = vld [vmem:[#allocation3 + $0x18] sm:$0xe]  ;;  %v14403_v4 = vcombine.low %v21152_v19, %v21154_v50  ;;  %v21170_v25 = vld [vmem:[#allocation3 + $0x40] sm:$0xf]  ;;  %v11665_v20 = vshrl.u32 %v21080_v45, 16 }
 0x57a   : > { %16079 = vmatpush3.bf16.msra.mxu0 %v17386_v14  ;;  %v14442_v5 = vcombine.low %v11584_v11, %v11591_v18  ;;  %v14402_v14 = vcombine.low %v21140_v7, %v21142_v1  ;;  %v21172_v31 = vld [vmem:[#allocation3 + $0x44] sm:$0x1]  ;;  %v11812_v28 = vor.u32 %v11811_v37, %v11807_v49  ;;  %v14392_v27 = vcombine.low %v11465_v56, %v21130_v47  ;;  %v11460_v35 = vld [vmem:[#allocation3 + $0x34] sm:$0x1]  ;;  %v17413_v47 = vld [vmem:[#allocation16 + $0x10] sm:$0xff]  }
 0x57b   : > { %16080 = vmatprep.subr.bf16.mxu0 %v17391_v8  ;;  %v14419_v8 = vcombine.low %v11744_v42, %v11745_v13  ;;  %v11819_v21 = vor.u32 %v11818_v16, %v11814_v9  ;;  %v11830_v44 = vshll.u32 %v14403_v4, 16  ;;  %v14404_v2 = vcombine.low %v21170_v25, %v21172_v31  ;;  %v11468_v11 = vld [vmem:[#allocation3 + $0x30] sm:$0xe]  ;;  %v17410_v9 = vld [vmem:[#allocation12 + $0x208] sm:$0xff]   ;;  %v11467_v16 = vld [vmem:[#allocation3 + $0x28] sm:$0xe] }
 0x57c   : > { %12632 = vmatprep.mubr.bf16.mxu0 %v14442_v5  ;;  %v11823_v46 = vshll.u32 %v14402_v14, 16  ;;  %v11828_v59 = vshrl.u32 %v14403_v4, 16  ;;  %v11670_v0 = vor.u32 %v21120_v32, %v11665_v20  ;;  %v11681_v45 = vshll.u32 %v21150_v48, 16  ;;  %v17422_v4 = vld [vmem:[#allocation16 + $0x18] sm:$0xff]  }
 0x57d   : > { %12633 = vmatmul.mubr.bf16.gmra.mrb[44].mxu0 %v14441_v26  ;;  %v14430_v39 = vcombine.low %v11812_v28, %v11819_v21  ;;  %v11832_v60 = vrot.slane %v11830_v44, 1  ;;  %v11821_v13 = vshrl.u32 %v14402_v14, 16  ;;  %v11837_v18 = vshll.u32 %v14404_v2, 16 }
 0x57e   : > { %16081 = vmatpush3.bf16.msra.mxu0 %v17393_v36  ;;  %v14393_v36 = vcombine.low %v11466_v29, %v21138_v38  ;;  %12804 = vmatmul.mubr.bf16.vlgmr.msra.gmra.mrb[48].mxu1 %v14420_v23  ;;  %v11688_v38 = vshll.u32 %v21158_v12, 16  ;;  %v11825_v43 = vrot.slane %v11823_v46, 1  ;;  %v14418_v15 = vcombine.low %v11670_v0, %v11677_v63  ;;  %v11462_v46 = vld [vmem:[#allocation3 + $0x44] sm:$0x1] }
 0x57f   : > { %16082 = vmatprep.subr.bf16.mxu0 %v17396_v54  ;;  %12738 = vmatprep.mubr.bf16.mxu0 %v14419_v8  ;;  %v11844_v54 = vshll.u32 %v21146_v52, 16  ;;  %v11833_v58 = vor.u32 %v11832_v60, %v11828_v59  ;;  %v11746_v42 = vrot.slane %v14392_v27, 1  ;;  %v11842_v49 = vshrl.u32 %v21146_v52, 16  ;;  %v11469_v60 = vld [vmem:[#allocation3 + $0x38] sm:$0xe] }
 0x580   : > { %16293 = vmatpush3.bf16.msra.mxu1 %v17404_v3  ;;  %12811 = vmatprep.mubr.bf16.mxu1 %v14430_v39  ;;  %v11747_v53 = vrot.slane %v14393_v36, 1  ;;  %v11459_v3 = vld [vmem:[#allocation3 + $0x2c] sm:$0x1]  ;;  %v11690_v37 = vrot.slane %v11688_v38, 1  ;;  %v21189_v32 = vcombine.low %v21052_v22, %v11460_v35  ;;  %v14429_v29 = vcombine.low %v21109_v24, %v21114_v6  ;;  %v11470_v39 = vld [vmem:[#allocation3 + $0x40] sm:$0xe] }
 0x581   : > { %16294 = vmatprep.subr.bf16.mxu1 %v17411_v55  ;;  %v11826_v5 = vor.u32 %v11825_v43, %v11821_v13  ;;  %v14395_v23 = vcombine.low %v11468_v11, %v11460_v35  ;;  %v11846_v26 = vrot.slane %v11844_v54, 1  ;;  %v11686_v8 = vshrl.u32 %v21158_v12, 16  ;;  %v17412_v36 = vld [vmem:[#allocation12 + $0x210] sm:$0xff]  }
 0x582   : > { %16083 = vmatpush3.bf16.msra.mxu0 %v17402_v17  ;;  %v11683_v17 = vrot.slane %v11681_v45, 1  ;;  %v14428_v14 = vcombine.low %v11746_v42, %v11747_v53  ;;  %v14386_v52 = vcombine.low %v21056_v10, %v11459_v3  ;;  %v11839_v56 = vrot.slane %v11837_v18, 1  ;;  %v17424_v45 = vld [vmem:[#allocation16 + $0x20] sm:$0xff]  }
 0x583   : > { %16268 = vmatprep.subr.bf16.mxu0 %v21160_v61  ;;  %v14439_v22 = vcombine.low %v11826_v5, %v11833_v58  ;;  %v14394_v24 = vcombine.low %v11467_v16, %v11459_v3  ;;  %v11679_v6 = vshrl.u32 %v21150_v48, 16  ;;  %v11691_v28 = vor.u32 %v11690_v37, %v11686_v8  ;;  %v17428_v58 = vld [vmem:[#allocation16 + $0x28] sm:$0xff]   ;;  %v17423_v18 = vld [vmem:[#allocation12 + $0x220] sm:$0xff]  }
 0x584   : > { %16295 = vmatpush3.bf16.msra.mxu1 %v17411_v55  ;;  %v11702_v21 = vshll.u32 %v21189_v32, 16  ;;  %v11835_v12 = vshrl.u32 %v14404_v2, 16  ;;  %v11749_v10 = vrot.slane %v14395_v23, 1  ;;  %v11695_v63 = vshll.u32 %v14386_v52, 16  ;;  %v17421_v2 = vld [vmem:[#allocation12 + $0x218] sm:$0xff]   ;;  %v17427_v5 = vld [vmem:[#allocation12 + $0x228] sm:$0xff]  }
 0x585   : > { %16296 = vmatprep.subr.bf16.mxu1 %v17413_v47  ;;  %12739 = vmatmul.mubr.bf16.vlgmr.msra.gmra.mrb[48].mxu0 %v14418_v15  ;;  %v11684_v55 = vor.u32 %v11683_v17, %v11679_v6  ;;  %v11847_v20 = vor.u32 %v11846_v26, %v11842_v49  ;;  %v11748_v27 = vrot.slane %v14394_v24, 1  ;;  %v14389_v43 = vcombine.low %v21068_v62, %v11462_v46  ;;  %v11489_v49 = vld [vmem:[#allocation3 + $0x18] sm:$0xe]  ;;  %v17430_v17 = vld [vmem:[#allocation16 + $0x30] sm:$0xff]  }
 0x586   : > { %12812 = vmatmul.mubr.bf16.gmra.mrb[52].mxu1 %v14429_v29  ;;  %12746 = vmatprep.mubr.bf16.mxu0 %v14428_v14  ;;  %v11840_v44 = vor.u32 %v11839_v56, %v11835_v12  ;;  %v11704_v38 = vrot.slane %v11702_v21, 1  ;;  %v14438_v59 = vcombine.low %v21140_v7, %v21152_v19  ;;  %v14397_v35 = vcombine.low %v11470_v39, %v11462_v46  ;;  %v21588_v24 = vld [vmem:[#allocation47_spill] sm:$0xff]  ;;  %v11493_v6 = vld [vmem:[#allocation3 + $0x38] sm:$0xe]  ;;  %v11492_v46 = vld [vmem:[#allocation3 + $0x30] sm:$0xe] }
 0x587   : > { %16269 = vmatpush3.bf16.msra.mxu0 %v21160_v61  ;;  %12819 = vmatprep.mubr.bf16.mxu1 %v14439_v22  ;;  %v11461_v61 = vld [vmem:[#allocation3 + $0x3c] sm:$0x1]  ;;  %v14427_v48 = vcombine.low %v11684_v55, %v11691_v28  ;;  %v14437_v0 = vcombine.low %v11748_v27, %v11749_v10  ;;  %v11697_v53 = vrot.slane %v11695_v63, 1  ;;  %v11693_v7 = vshrl.u32 %v14386_v52, 16  ;;  %v11490_v28 = vld [vmem:[#allocation3 + $0x20] sm:$0xe] }
 0x588   : > { %16270 = vmatprep.subr.bf16.mxu0 %v17410_v9  ;;  %16297 = vmatpush3.bf16.msra.mxu1 %v17413_v47  ;;  %v11700_v47 = vshrl.u32 %v21189_v32, 16  ;;  %v14388_v54 = vcombine.low %v21072_v40, %v11461_v61  ;;  %v14448_v13 = vcombine.low %v11840_v44, %v11847_v20  ;;  %v14396_v62 = vcombine.low %v11469_v60, %v11461_v61  ;;  %v11494_v39 = vld [vmem:[#allocation3 + $0x40] sm:$0xe] }
 0x589   : > { %16298 = vmatprep.subr.bf16.mxu1 %v17422_v4  ;;  %v11716_v11 = vshll.u32 %v14389_v43, 16  ;;  %v11751_v15 = vrot.slane %v14397_v35, 1  ;;  %v11698_v3 = vor.u32 %v11697_v53, %v11693_v7  ;;  %v14447_v29 = vcombine.low %v21170_v25, %v21126_v57  ;;  %v17429_v57 = vld [vmem:[#allocation12 + $0x230] sm:$0xff]  }
 0x58a   : > { %v11705_v19 = vor.u32 %v11704_v38, %v11700_v47  ;;  %v11709_v42 = vshll.u32 %v14388_v54, 16  ;;  %v11750_v40 = vrot.slane %v14396_v62, 1  ;;  %v14407_v14 = vcombine.low %v11489_v49, %v21089_v30  ;;  %v11491_v25 = vld [vmem:[#allocation3 + $0x28] sm:$0xe] }
 0x58b   : > { %16271 = vmatpush3.bf16.msra.mxu0 %v17410_v9  ;;  %v11718_v32 = vrot.slane %v11716_v11, 1  ;;  %v11488_v9 = vld [vmem:[#allocation3 + $0x10] sm:$0xe]  ;;  %v11714_v26 = vshrl.u32 %v14389_v43, 16  ;;  %v11707_v52 = vshrl.u32 %v14388_v54, 16  ;;  %v14409_v12 = vcombine.low %v11491_v25, %v21118_v33 }
 0x58c   : > { %16272 = vmatprep.subr.bf16.mxu0 %v17412_v36  ;;  %16299 = vmatpush3.bf16.msra.mxu1 %v17422_v4  ;;  %v14436_v37 = vcombine.low %v11698_v3, %v11705_v19  ;;  %v14446_v16 = vcombine.low %v11750_v40, %v11751_v15  ;;  %v11711_v23 = vrot.slane %v11709_v42, 1  ;;  %v14406_v8 = vcombine.low %v11488_v9, %v21086_v34  ;;  %v17434_v4 = vld [vmem:[#allocation16 + $0x38] sm:$0xff]   ;;  %v11495_v33 = vld [vmem:[#allocation3 + $0x48] sm:$0xe] }
 0x58d   : > { %12747 = vmatmul.mubr.bf16.gmra.mrb[52].mxu0 %v14427_v48  ;;  %16300 = vmatprep.subr.bf16.mxu1 %v17424_v45  ;;  %v11719_v22 = vor.u32 %v11718_v32, %v11714_v26  ;;  %v11873_v56 = vrot.slane %v14407_v14, 1  ;;  %v17433_v34 = vld [vmem:[#allocation12 + $0x238] sm:$0xff]   ;;  %v14411_v55 = vcombine.low %v11493_v6, %v21154_v50  ;;  %v14408_v63 = vcombine.low %v11490_v28, %v21116_v41 }
 0x58e   : > { %12820 = vmatmul.mubr.bf16.gmra.mrb[56].mxu1 %v14438_v59  ;;  %12754 = vmatprep.mubr.bf16.mxu0 %v14437_v0  ;;  %v11712_v30 = vor.u32 %v11711_v23, %v11707_v52  ;;  %v11872_v21 = vrot.slane %v14406_v8, 1  ;;  %v14410_v44 = vcombine.low %v11492_v46, %v21142_v1  ;;  %v11875_v20 = vrot.slane %v14409_v12, 1  ;;  %v21589_v48 = vld [vmem:[#allocation48_spill] sm:$0xff]  ;;  %v21590_v59 = vld [vmem:[#allocation50_spill] sm:$0xff] }
 0x58f   : > { %16273 = vmatpush3.bf16.msra.mxu0 %v17412_v36  ;;  %12827 = vmatprep.mubr.bf16.mxu1 %v14448_v13  ;;  %v11877_v61 = vrot.slane %v14411_v55, 1  ;;  %v11874_v27 = vrot.slane %v14408_v63, 1  ;;  %v14412_v50 = vcombine.low %v11494_v39, %v21172_v31  ;;  %v14413_v41 = vcombine.low %v11495_v33, %v21128_v51  ;;  %v21591_v0 = vld [vmem:[#allocation52_spill] sm:$0xff] }
 0x590   : > { %16274 = vmatprep.subr.bf16.mxu0 %v17421_v2  ;;  %16301 = vmatpush3.bf16.msra.mxu1 %v17424_v45  ;;  %v14445_v36 = vcombine.low %v11712_v30, %v11719_v22  ;;  %v14422_v10 = vcombine.low %v11872_v21, %v11873_v56  ;;  %v11876_v38 = vrot.slane %v14410_v44, 1 }
 0x591   : > { %16302 = vmatprep.subr.bf16.mxu1 %v17428_v58  ;;  %v14431_v43 = vcombine.low %v11874_v27, %v11875_v20  ;;  %v11878_v1 = vrot.slane %v14412_v50, 1  ;;  %v11879_v60 = vrot.slane %v14413_v41, 1 }
 0x593   : > { %16275 = vmatpush3.bf16.msra.mxu0 %v17421_v2  ;;  %v14440_v2 = vcombine.low %v11876_v38, %v11877_v61  ;;  %v14449_v45 = vcombine.low %v11878_v1, %v11879_v60 }
 0x594   : > { %16276 = vmatprep.subr.bf16.mxu0 %v17423_v18  ;;  %16303 = vmatpush3.bf16.msra.mxu1 %v17428_v58 }
 0x595   : > { %12755 = vmatmul.mubr.bf16.gmra.mrb[56].mxu0 %v14436_v37  ;;  %16304 = vmatprep.subr.bf16.mxu1 %v17430_v17 }
 0x596   : > { %12828 = vmatmul.mubr.bf16.gmra.mrb[60].mxu1 %v14447_v29  ;;  %12762 = vmatprep.mubr.bf16.mxu0 %v14446_v16 }
 0x597   : > { %16277 = vmatpush3.bf16.msra.mxu0 %v17423_v18  ;;  %16308 = vmatprep.mubr.bf16.mxu1 %v21588_v24 }
 0x598   : > { %16278 = vmatprep.subr.bf16.mxu0 %v17427_v5  ;;  %16305 = vmatpush3.bf16.msra.mxu1 %v17430_v17 }
 0x599   : > { %16306 = vmatprep.subr.bf16.mxu1 %v17434_v4 }
 0x59b   : > { %16279 = vmatpush3.bf16.msra.mxu0 %v17427_v5 }
 0x59c   : > { %16280 = vmatprep.subr.bf16.mxu0 %v17429_v57  ;;  %16307 = vmatpush3.bf16.msra.mxu1 %v17434_v4 }
 0x59d   : > { %12763 = vmatmul.mubr.bf16.gmra.mrb[60].mxu0 %v14445_v36 }
 0x59e   : > { %16284 = vmatprep.mubr.bf16.mxu0 %v14422_v10 }
 0x59f   : > { %16281 = vmatpush3.bf16.msra.mxu0 %v17429_v57  ;;  %16309 = vmatmul.mubr.bf16.vlgmr.msra.gmra.mrb[64].mxu1 %v21589_v48 }
 0x5a0   : > { %16282 = vmatprep.subr.bf16.mxu0 %v17433_v34  ;;  %16312 = vmatprep.mubr.bf16.mxu1 %v21590_v59 }
 0x5a3   : > { %16283 = vmatpush3.bf16.msra.mxu0 %v17433_v34 }
 0x5a6   : > { %16285 = vmatmul.mubr.bf16.vlgmr.msra.gmra.mrb[64].mxu0 %v14431_v43 }
 0x5a7   : > { %16288 = vmatprep.mubr.bf16.mxu0 %v14440_v2  ;;  %16313 = vmatmul.mubr.bf16.gmra.mrb[68].mxu1 %v21591_v0 }
 0x5ae   : > { %16289 = vmatmul.mubr.bf16.gmra.mrb[68].mxu0 %v14449_v45 }
 0x62e   : > { %v16044_v35 = vpop.f32.mrb[32].mxu1 }
 0x62f   : > { %v16045_v53 = vpop.f32.mrb[33].mxu1 }
 0x630   : > { %v16046_v47 = vadd.f32 %v16045_v53, %v16044_v35  ;;  %v16047_v54 = vpop.f32.mrb[34].mxu1 }
 0x631   : > { %v16048_v13 = vpop.f32.mrb[35].mxu1 }
 0x632   : > { %v16049_v62 = vadd.f32 %v16048_v13, %v16047_v54 }
 0x638   : > { %v16004_v31 = vpop.f32.mrb[32].mxu0 }
 0x639   : > { %v16005_v58 = vpop.f32.mrb[33].mxu0  ;;  %v16050_v15 = vpop.f32.mrb[36].mxu1 }
 0x63a   : > { %v16006_v51 = vadd.f32 %v16005_v58, %v16004_v31  ;;  %v16007_v7 = vpop.f32.mrb[34].mxu0  ;;  %v16051_v3 = vpop.f32.mrb[37].mxu1 }
 0x63b   : > { %v16008_v19 = vpop.f32.mrb[35].mxu0  ;;  %v16052_v49 = vadd.f32 %v16051_v3, %v16050_v15  ;;  %v16053_v40 = vpop.f32.mrb[38].mxu1 }
 0x63c   : > { %v12676_v11 = vadd.f32 %v16046_v47, %v16006_v51  ;;  %v16009_v18 = vadd.f32 %v16008_v19, %v16007_v7  ;;  %v16054_v37 = vpop.f32.mrb[39].mxu1 }
 0x63d   : > { %v16055_v32 = vadd.f32 %v16054_v37, %v16053_v40 }
 0x63e   : > { %v12679_v42 = vadd.f32 %v16049_v62, %v16009_v18 }
 0x640   : > { %v16010_v29 = vpop.f32.mrb[36].mxu0 }
 0x641   : > { %v16011_v5 = vpop.f32.mrb[37].mxu0  ;;  %v16056_v17 = vpop.f32.mrb[40].mxu1 }
 0x642   : > { %v16012_v9 = vadd.f32 %v16011_v5, %v16010_v29  ;;  %v16013_v16 = vpop.f32.mrb[38].mxu0  ;;  %v16057_v23 = vpop.f32.mrb[41].mxu1 }
 0x643   : > { %v16014_v14 = vpop.f32.mrb[39].mxu0  ;;  %v16058_v52 = vadd.f32 %v16057_v23, %v16056_v17  ;;  %v16059_v22 = vpop.f32.mrb[42].mxu1 }
 0x644   : > { %v12684_v26 = vadd.f32 %v16052_v49, %v16012_v9  ;;  %v16015_v8 = vadd.f32 %v16014_v14, %v16013_v16  ;;  %v16060_v57 = vpop.f32.mrb[43].mxu1 }
 0x645   : > { %v16061_v56 = vadd.f32 %v16060_v57, %v16059_v22 }
 0x646   : > { %v12687_v25 = vadd.f32 %v16055_v32, %v16015_v8 }
 0x648   : > { %v16016_v4 = vpop.f32.mrb[40].mxu0 }
 0x649   : > { %v16017_v24 = vpop.f32.mrb[41].mxu0  ;;  %v16062_v28 = vpop.f32.mrb[44].mxu1 }
 0x64a   : > { %v16018_v30 = vadd.f32 %v16017_v24, %v16016_v4  ;;  %v16019_v6 = vpop.f32.mrb[42].mxu0  ;;  %v16063_v36 = vpop.f32.mrb[45].mxu1 }
 0x64b   : > { %v16020_v21 = vpop.f32.mrb[43].mxu0  ;;  %v16064_v46 = vadd.f32 %v16063_v36, %v16062_v28  ;;  %v16065_v10 = vpop.f32.mrb[46].mxu1 }
 0x64c   : > { %v21217_v12 = vadd.f32 %v16058_v52, %v16018_v30  ;;  %v16021_v34 = vadd.f32 %v16020_v21, %v16019_v6  ;;  %v16066_v55 = vpop.f32.mrb[47].mxu1 }
 0x64d   : > { %v16067_v44 = vadd.f32 %v16066_v55, %v16065_v10 }
 0x64e   : > { %v12695_v63 = vadd.f32 %v16061_v56, %v16021_v34 }
 0x650   : > { %v16022_v20 = vpop.f32.mrb[44].mxu0 }
 0x651   : > { %v16124_v39 = vpop.f32.mrb[48].mxu1  ;;  %v16023_v33 = vpop.f32.mrb[45].mxu0 }
 0x652   : > { %v16125_v61 = vpop.f32.mrb[49].mxu1  ;;  %v16024_v27 = vadd.f32 %v16023_v33, %v16022_v20  ;;  %v16025_v48 = vpop.f32.mrb[46].mxu0 }
 0x653   : > { %v16126_v38 = vadd.f32 %v16125_v61, %v16124_v39  ;;  %v16127_v43 = vpop.f32.mrb[50].mxu1  ;;  %v16026_v50 = vpop.f32.mrb[47].mxu0 }
 0x654   : > { %v16128_v41 = vpop.f32.mrb[51].mxu1  ;;  %v12700_v59 = vadd.f32 %v16064_v46, %v16024_v27  ;;  %v16027_v2 = vadd.f32 %v16026_v50, %v16025_v48 }
 0x655   : > { %v16129_v1 = vadd.f32 %v16128_v41, %v16127_v43  ;;  %v21224_v43 = vld [vmem:[#allocation18] ss:$0 sm:$0xff] }
 0x656   : > { %v12703_v60 = vadd.f32 %v16067_v44, %v16027_v2 }
 0x658   : > { %v16084_v0 = vpop.f32.mrb[48].mxu0 }
 0x659   : > { %v16130_v45 = vpop.f32.mrb[52].mxu1  ;;  %v16085_v35 = vpop.f32.mrb[49].mxu0 }
 0x65a   : > { %v16131_v53 = vpop.f32.mrb[53].mxu1  ;;  %v16086_v47 = vadd.f32 %v16085_v35, %v16084_v0  ;;  %v16087_v54 = vpop.f32.mrb[50].mxu0  ;;  %v21229_v35 = vld [vmem:[#allocation19] ss:$0 sm:$0xff] }
 0x65b   : > { %v16132_v13 = vadd.f32 %v16131_v53, %v16130_v45  ;;  %v16133_v62 = vpop.f32.mrb[54].mxu1  ;;  %v16088_v31 = vpop.f32.mrb[51].mxu0  ;;  %v21227_v45 = vld [vmem:[#allocation13] ss:$0 sm:$0xff] }
 0x65c   : > { %v16134_v58 = vpop.f32.mrb[55].mxu1  ;;  %v12741_v51 = vadd.f32 %v16086_v47, %v12676_v11  ;;  %v16089_v7 = vadd.f32 %v16088_v31, %v16087_v54 }
 0x65d   : > { %v16135_v19 = vadd.f32 %v16134_v58, %v16133_v62  ;;  %v21232_v62 = vld [vmem:[#allocation15] ss:$0 sm:$0xff] }
 0x65e   : > { %v12744_v18 = vadd.f32 %v16089_v7, %v12679_v42  ;;  %v12806_v15 = vadd.f32 %v16126_v38, %v12741_v51 }
 0x660   : > { %v16090_v3 = vpop.f32.mrb[52].mxu0  ;;  %v21219_v40 = vadd.f32 %v16129_v1, %v12744_v18 }
 0x661   : > { %v16136_v49 = vpop.f32.mrb[56].mxu1  ;;  %v16091_v37 = vpop.f32.mrb[53].mxu0 }
 0x662   : > { %v16137_v32 = vpop.f32.mrb[57].mxu1  ;;  %v16092_v29 = vadd.f32 %v16091_v37, %v16090_v3  ;;  %v16093_v5 = vpop.f32.mrb[54].mxu0 }
 0x663   : > { %v16138_v9 = vadd.f32 %v16137_v32, %v16136_v49  ;;  %v16139_v16 = vpop.f32.mrb[58].mxu1  ;;  %v16094_v17 = vpop.f32.mrb[55].mxu0 }
 0x664   : > { %v16140_v14 = vpop.f32.mrb[59].mxu1  ;;  %v12749_v23 = vadd.f32 %v16092_v29, %v12684_v26  ;;  %v16095_v8 = vadd.f32 %v16094_v17, %v16093_v5 }
 0x665   : > { %v16141_v52 = vadd.f32 %v16140_v14, %v16139_v16 }
 0x666   : > { %v12752_v11 = vadd.f32 %v16095_v8, %v12687_v25  ;;  %v12814_v22 = vadd.f32 %v16132_v13, %v12749_v23 }
 0x668   : > { %v16096_v57 = vpop.f32.mrb[56].mxu0  ;;  %v12817_v56 = vadd.f32 %v16135_v19, %v12752_v11 }
 0x669   : > { %v16142_v42 = vpop.f32.mrb[60].mxu1  ;;  %v16097_v4 = vpop.f32.mrb[57].mxu0 }
 0x66a   : > { %v16143_v24 = vpop.f32.mrb[61].mxu1  ;;  %v16098_v30 = vadd.f32 %v16097_v4, %v16096_v57  ;;  %v16099_v6 = vpop.f32.mrb[58].mxu0 }
 0x66b   : > { %v16144_v28 = vadd.f32 %v16143_v24, %v16142_v42  ;;  %v16145_v21 = vpop.f32.mrb[62].mxu1  ;;  %v16100_v36 = vpop.f32.mrb[59].mxu0 }
 0x66c   : > { %v16146_v34 = vpop.f32.mrb[63].mxu1  ;;  %v12757_v46 = vadd.f32 %v16098_v30, %v21217_v12  ;;  %v16101_v10 = vadd.f32 %v16100_v36, %v16099_v6 }
 0x66d   : > { %v16147_v55 = vadd.f32 %v16146_v34, %v16145_v21 }
 0x66e   : > { %v12760_v26 = vadd.f32 %v16101_v10, %v12695_v63  ;;  %v12822_v44 = vadd.f32 %v16138_v9, %v12757_v46 }
 0x670   : > { %v16102_v20 = vpop.f32.mrb[60].mxu0  ;;  %v21222_v25 = vadd.f32 %v16141_v52, %v12760_v26 }
 0x671   : > { %v16103_v39 = vpop.f32.mrb[61].mxu0 }
 0x672   : > { %v16104_v33 = vadd.f32 %v16103_v39, %v16102_v20  ;;  %v16105_v61 = vpop.f32.mrb[62].mxu0  ;;  %v16310_v50 = vpop.f32.mrb[64].mxu1 }
 0x673   : > { %v16106_v27 = vpop.f32.mrb[63].mxu0  ;;  %v13029_v2 = vpop.f32.mrb[65].mxu1  ;;  %v13069_v1 = vmul.f32 %v16310_v50, %v21224_v43 }
 0x674   : > { %v12765_v48 = vadd.f32 %v16104_v33, %v12700_v59  ;;  %v16107_v38 = vadd.f32 %v16106_v27, %v16105_v61  ;;  %v16311_v63 = vpop.f32.mrb[66].mxu1  ;;  %v13067_v53 = vmul.f32 %v21224_v43, %v13029_v2 }
 0x675   : > { %v13032_v47 = vpop.f32.mrb[67].mxu1  ;;  %v13084_v51 = vadd.f32 %v21229_v35, %v13069_v1  ;;  %v13070_v19 = vmul.f32 %v16311_v63, %v21224_v43 }
 0x676   : > { %v12768_v41 = vadd.f32 %v16107_v38, %v12703_v60  ;;  %v12830_v12 = vadd.f32 %v16144_v28, %v12765_v48  ;;  %v13082_v49 = vadd.f32 %v21229_v35, %v13067_v53  ;;  %v13068_v32 = vmul.f32 %v21224_v43, %v13032_v47 }
 0x678   : > { %v12833_v59 = vadd.f32 %v16147_v55, %v12768_v41  ;;  %v13083_v42 = vadd.f32 %v21229_v35, %v13068_v32 }
 0x679   : > { %v16286_v0 = vpop.f32.mrb[64].mxu0 }
 0x67a   : > { %v12879_v54 = vadd.f32 %v16286_v0, %v12814_v22  ;;  %v12870_v13 = vpop.f32.mrb[65].mxu0  ;;  %v16314_v5 = vpop.f32.mrb[68].mxu1 }
 0x67b   : > { %v12871_v60 = vadd.f32 %v12870_v13, %v12806_v15  ;;  %v16287_v31 = vpop.f32.mrb[66].mxu0  ;;  %v13073_v17 = vmul.f32 %v16314_v5, %v21224_v43  ;;  %v13045_v14 = vpop.f32.mrb[69].mxu1 }
 0x67c   : > { %v12910_v58 = vmul.f32 %v21227_v45, %v12879_v54  ;;  %v12882_v7 = vadd.f32 %v16287_v31, %v12817_v56  ;;  %v12873_v18 = vpop.f32.mrb[67].mxu0  ;;  %v13071_v52 = vmul.f32 %v21224_v43, %v13045_v14  ;;  %v16315_v11 = vpop.f32.mrb[70].mxu1 }
 0x67d   : > { %v12908_v3 = vmul.f32 %v21227_v45, %v12871_v60  ;;  %v12874_v37 = vadd.f32 %v12873_v18, %v21219_v40  ;;  %v13085_v40 = vadd.f32 %v21229_v35, %v13070_v19  ;;  %v13048_v4 = vpop.f32.mrb[71].mxu1  ;;  %v13088_v28 = vadd.f32 %v21229_v35, %v13073_v17 }
 0x67e   : > { %v12925_v29 = vadd.f32 %v21232_v62, %v12910_v58  ;;  %v12911_v15 = vmul.f32 %v21227_v45, %v12882_v7  ;;  %v13074_v55 = vmul.f32 %v16315_v11, %v21224_v43  ;;  %v13086_v39 = vadd.f32 %v21229_v35, %v13071_v52 }
 0x67f   : > { %v12923_v9 = vadd.f32 %v21232_v62, %v12908_v3  ;;  %v12909_v16 = vmul.f32 %v21227_v45, %v12874_v37  ;;  %v13072_v38 = vmul.f32 %v21224_v43, %v13048_v4 }
 0x680   : > { %v13092_v23 = vadd.f32 %v13084_v51, %v12925_v29  ;;  %v12926_v8 = vadd.f32 %v21232_v62, %v12911_v15  ;;  %v13089_v0 = vadd.f32 %v21229_v35, %v13074_v55 }
 0x681   : > { %v13090_v22 = vadd.f32 %v13082_v49, %v12923_v9  ;;  %v12924_v57 = vadd.f32 %v21232_v62, %v12909_v16  ;;  %v16290_v56 = vpop.f32.mrb[68].mxu0  ;;  %v13087_v53 = vadd.f32 %v21229_v35, %v13072_v38 }
 0x682   : > { %v13100_v24 = vmax.f32 %v13092_v23, 0.0  ;;  %v13093_v30 = vadd.f32 %v13085_v40, %v12926_v8  ;;  %v12895_v6 = vadd.f32 %v16290_v56, %v12830_v12  ;;  %v12886_v21 = vpop.f32.mrb[69].mxu0 }
 0x683   : > { %v13098_v36 = vmax.f32 %v13090_v22, 0.0  ;;  %v13091_v34 = vadd.f32 %v13083_v42, %v12924_v57  ;;  %v12887_v46 = vadd.f32 %v12886_v21, %v12822_v44  ;;  %v16291_v10 = vpop.f32.mrb[70].mxu0 }
 0x684   : > { %13108 = vst [vmem:[%s21256_s16 + $0x10] sm:$0xff] %v13100_v24  ;;  %v13101_v26 = vmax.f32 %v13093_v30, 0.0  ;;  %v12914_v20 = vmul.f32 %v21227_v45, %v12895_v6  ;;  %v12898_v33 = vadd.f32 %v16291_v10, %v12833_v59  ;;  %v12889_v61 = vpop.f32.mrb[71].mxu0 }
 0x685   : > { %13106 = vst [vmem:[%s21256_s16] sm:$0xff] %v13098_v36  ;;  %v13099_v27 = vmax.f32 %v13091_v34, 0.0  ;;  %v12912_v44 = vmul.f32 %v21227_v45, %v12887_v46  ;;  %v12890_v48 = vadd.f32 %v12889_v61, %v21222_v25 }
 0x686   : > { %13109 = vst [vmem:[%s21256_s16 + $0x18] sm:$0xff] %v13101_v26  ;;  %v12929_v50 = vadd.f32 %v21232_v62, %v12914_v20  ;;  %v12915_v41 = vmul.f32 %v21227_v45, %v12898_v33 }
 0x687   : > { %13107 = vst [vmem:[%s21256_s16 + $0x8] sm:$0xff] %v13099_v27  ;;  %v12927_v2 = vadd.f32 %v21232_v62, %v12912_v44  ;;  %v12913_v12 = vmul.f32 %v21227_v45, %v12890_v48 }
 0x688   : > { %v13096_v1 = vadd.f32 %v13088_v28, %v12929_v50  ;;  %v12930_v63 = vadd.f32 %v21232_v62, %v12915_v41 }
 0x689   : > { %v13094_v25 = vadd.f32 %v13086_v39, %v12927_v2  ;;  %v12928_v43 = vadd.f32 %v21232_v62, %v12913_v12 }
 0x68a   : > { %v13104_v47 = vmax.f32 %v13096_v1, 0.0  ;;  %v13097_v59 = vadd.f32 %v13089_v0, %v12930_v63 }
 0x68b   : > { %v13102_v45 = vmax.f32 %v13094_v25, 0.0  ;;  %v13095_v54 = vadd.f32 %v13087_v53, %v12928_v43 }
 0x68c   : > { %13112 = vst [vmem:[%s21256_s16 + $0x30] sm:$0xff] %v13104_v47  ;;  %v13105_v13 = vmax.f32 %v13097_v59, 0.0 }
 0x68d   : > { %13110 = vst [vmem:[%s21256_s16 + $0x20] sm:$0xff] %v13102_v45  ;;  %v13103_v35 = vmax.f32 %v13095_v54, 0.0 }
 0x68e   : > { %13113 = vst [vmem:[%s21256_s16 + $0x38] sm:$0xff] %v13105_v13 }
 0x68f   : > { %13111 = vst [vmem:[%s21256_s16 + $0x28] sm:$0xff] %v13103_v35 }
 0x690   : > { %17756 = shalt.err (!%p17753_p10)
}
 0x691   : > { %s17757_s28 = scalar_lea.hbm %s21281_s26, 1024  ;;  %s17761_s13 = scalar_lea.hbm %s21342_s11, 2048 }
 0x692   : > { %p17758_p2 = scmp.ne.s32.totalorder %s21281_s26, %s17757_s28  ;;  %p17762_p7 = scmp.lt.u32.totalorder %s21281_s26, %s21342_s11 }
 0x693   : > { %p17763_p8 = scmp.lt.u32.totalorder %s17761_s13, %s17757_s28  ;;  %p17765_p13 = scmp.lt.u32.totalorder %s17757_s28, %s21281_s26 }
 0x694   : > { %p17759_p3 = pnand %p17758_p2, %p21592_p1 }
 0x695   : > { %p17764_p11 = por %p17763_p8, %p17762_p7 }
 0x696   : > { %p17760_p4 = pneg %p17759_p3 }
 0x697   : > { %p17766_p0 = por %p17765_p13, %p17764_p11 }
 0x699   : > { %p17767_p6 = pnand %p17766_p0, %p17760_p4 }
 0x69b   : > { %17770 = shalt.err (!%p17767_p6)
}
 0x69c   : > { %s17845_s2 = smov 128   ;;  %s17846_s19 = smov 8  }
 0x69d   : > { %16357 = dma.vmem_to_hbm [thread:$0]  (%p21592_p1), %s21283_s6, 1024, %s21281_s26, %s21290_s21, %s17845_s2, %s17845_s2, %s17846_s19  }
 0x69e PF: > { %s21593_s16 = sld [smem:[#allocation29_spill]]  ;;  %s21594_s4 = sld [smem:[#allocation33_spill]] }
 0x69f   : > { %p16414_p5 = scmp.ge.s32.totalorder %s17829_s20, 2 }
 0x6a4   : > { %s13143_s12 = sand.u32 1, %s21593_s16   ;;  %p21595_p9 = scmp.ne.s32.totalorder %s21594_s4, 0 }
 0x6a5   : > { %s13144_s15 = scalar_lea.sflag [#allocation6], %s13143_s12 }
 0x6a6   : > { %p16391_p12 = pnand %p16414_p5, %p21595_p9 }
 0x6a8   : > { %17812 = dma.done.wait (!%p16391_p12), %s13144_s15, 1024  }
 0x6a9   : > { %17814 = vsyncadd (!%p16391_p12), %s13144_s15, 4294966272  ;;  %s21596_s20 = sld [smem:[#allocation31_spill]]  ;;  %s21597_s22 = sld [smem:[#allocation30_spill]] }
 0x6aa   : > { %s21598_s19 = sld [smem:[#allocation32_spill]]  ;;  %s21599_s17 = smov %s17821_s18 }
 0x6af   : > { %p27_p10 = scmp.ge.s32.totalorder %s21596_s20, 4   ;;  %s21600_s18 = smov %s21597_s22 }
 0x6b1   :  { %29 = sbr.rel (!%p27_p10) target bundleno = 13 (0xd), region = 146 }
 0x6b8   :  { %13149 = vsyncpa [#allocation5], 1 }
 0x6b9   :  { %13151 = vsyncpa [#allocation5 + $0x1], 1 }
 0x6ba   :  { %13152 = vsyncpa [#allocation8], 1 }
 0x6bb   :  { %13153 = vsyncpa [#allocation11], 1 }
 0x6bc   :  { %13154 = vsyncpa [#allocation14], 1 }
 0x6bd   :  { %13155 = vsyncpa [#allocation17], 1 }
 0x6be   :  { %13156 = vsyncpa [#allocation20], 1 }
 0x6bf   :  { %13157 = vsyncpa [#allocation6], 1 }
 0x6c0   :  { %13159 = vsyncpa [#allocation6 + $0x1], 1 }

</bundles_post_ra>
